<compile_context>
chip_gen: v7x
topology: tpu7x:2x2x1
jax: 0.10.0
libtpu: 0.0.40
codegen_flags: <defaults>
</compile_context>

<pallas_src>
import jax
import jax.numpy as jnp
import numpy as np
from jax.experimental import pallas as pl
from jax.experimental.pallas import tpu as pltpu

# ---- Module hyper-parameters (defaults of AttentionNeRF) --------------------
D = 8
W = 256
INPUT_ATTN_CH = 256
INPUT_CH_VIEWS = 27
INPUT_CH_XYZ = 63
DIM_LATENT = 0                                              # latent_code=None path
SKIPS = (4,)
INPUT_CH_ALL = INPUT_ATTN_CH + DIM_LATENT + INPUT_CH_XYZ    # 319
X_DIM = INPUT_CH_ALL + INPUT_CH_VIEWS                       # 346
W_HALF = W // 2                                             # 128
VIEW_SLICE_OFF = W                                          # 256 (lane-aligned slice start)
VIEW_SLICE_LEN = X_DIM - VIEW_SLICE_OFF                     # 90 (= 63 pts tail + 27 views)

# MACs per row (for the cost estimate; counts the zero-padded fused columns too).
_MACS_PER_ROW = (
    X_DIM * (2 * W)              # fused x @ [w0 | w5a]          (346 x 512)
    + 6 * W * W                  # pts_linears 1,2,3,4,6,7
    + W * W                      # skip layer, h-part (w5b)
    + W * (W_HALF + 4)           # views_linears[0] feature part + fused alpha head
    + VIEW_SLICE_LEN * W_HALF    # views_linears[0] view part (zero-padded rows)
    + 2 * W_HALF * W_HALF        # views_linears[1], [2]
    + W_HALF * 4                 # rgb head (zero-padded to 4 cols)
)


# ---------------------------- Pallas kernel ----------------------------------
def _nerf_kernel(x_ref, w05a, b0, wstack,
                 b1, b2, b3, b4, b5, b6, b7,
                 wv0fa, wv0v, bv0, wv1, bv1, wv2, bv2,
                 wr4, bout, out_ref):
    f32 = jnp.float32
    bf16 = jnp.bfloat16
    relu = lambda t: jnp.maximum(t, 0.0)

    def mm(a, w):                       # bf16 operands, f32 MXU accumulation
        return jnp.dot(a, w, preferred_element_type=f32)

    # Single in-kernel cast of the raw f32 input block (VPU work, cheap).
    xb = x_ref[...].astype(bf16)                               # (tm, 346)

    # Fused first matmul: x @ [w0 | w5a], both zero-padded over the 27 view
    # lanes.  Exact (zeros), and ceil(346/256)==ceil(319/256) so no extra
    # MXU K-pass.  Split at lane 256 is free.
    t = mm(xb, w05a[...])                                      # (tm, 512) f32
    skip = t[:, W:]                                            # pts @ w5a (skip operand)
    # Bias-add / relu stay f32 (v5e VPU has no bf16 datapath); the single
    # post-relu cast is the same bf16 value the matmul would have cast anyway.
    h = relu(t[:, :W] + b0[...]).astype(bf16)                  # layer 0: 319 -> 256

    for wi, b in zip(range(4), (b1, b2, b3, b4)):              # layers 1..4
        h = relu(mm(h, wstack[wi]) + b[...]).astype(bf16)
    h = relu(skip + mm(h, wstack[4]) + b5[...]).astype(bf16)   # layer 5 (skip concat)
    h = relu(mm(h, wstack[5]) + b6[...]).astype(bf16)          # layer 6
    h = relu(mm(h, wstack[6]) + b7[...]).astype(bf16)          # layer 7

    # views branch: views_linears[0] consumes cat([feature, input_views]);
    # the alpha head is fused into the same matmul (cols 128..131 of wv0fa).
    t2 = mm(h, wv0fa[...])                                     # (tm, 132) f32
    # view contribution: lane-256-aligned slice of x (covers pts[256:319] too,
    # which hit zero rows of the padded wv0v -> exact, same single MXU K-pass).
    vt = mm(xb[:, VIEW_SLICE_OFF:], wv0v[...])                 # (tm, 128) f32
    hv = relu(t2[:, :W_HALF] + vt + bv0[...]).astype(bf16)     # 283 -> 128
    hv = relu(mm(hv, wv1[...]) + bv1[...]).astype(bf16)
    hv = relu(mm(hv, wv2[...]) + bv2[...]).astype(bf16)

    # out = [rgb | alpha]: wr4 = [wr | 0] -> rgb in cols 0..2;
    # t2[:, 128:132] = [0, 0, 0, alpha]; bout = [br | ba].
    out_ref[...] = mm(hv, wr4[...]) + t2[:, W_HALF:W_HALF + 4] + bout[...]


# ------------------------------- Wrapper --------------------------------------
def _round_up(v, m):
    return ((v + m - 1) // m) * m


def attention_nerf_pallas(x, params, *, tm=512):
    """x: [N, 346] f32; returns [N, 4] f32.

    No preprocessing passes over x: it is tiled directly by the BlockSpec,
    split/cast in-kernel, and a ragged last tile is handled by Pallas'
    partial-block masking (rows are independent).  tm defaults to 512
    (multiple of 256 for the v6e/v7x MXU, of 128 for v5e) and is shrunk so the
    grid has >= 2 steps when N allows (both v7x TensorCores get work).  VMEM at
    tm=512 (~1.5 MB bf16 weights x2 buffers, ~1.4 MB f32 input blocks, a few MB
    of live f32/bf16 activations) stays well under the 16 MiB v5e scoped
    default; an explicit 32 MiB limit is requested only if tm is pushed higher.
    """
    n = x.shape[0]
    f32 = jnp.float32
    bf16 = jnp.bfloat16
    p = params

    tm = min(tm, max(256, _round_up(pl.cdiv(n, 2), 256)))
    grid = (pl.cdiv(n, tm),)

    # ---- Weight prep (trace-time only; cast to bf16 once) -------------------
    w5a = p["w5"][:INPUT_CH_ALL]                         # (319, 256) skip: initial part
    w5b = p["w5"][INPUT_CH_ALL:]                         # (256, 256) skip: h part
    w05a = jnp.concatenate([p["w0"], w5a], axis=1)       # (319, 512) fused pts weight
    w05a = jnp.pad(w05a, ((0, INPUT_CH_VIEWS), (0, 0)))  # (346, 512): view rows zeroed

    wstack = jnp.stack([p["w1"], p["w2"], p["w3"], p["w4"],
                        w5b, p["w6"], p["w7"]])          # (7, 256, 256)

    wv0f = p["wv0"][:W]                                  # (256, 128) feature part
    wv0v = p["wv0"][W:]                                  # (27, 128)  views part
    # views_linears[0] fused with the alpha head: cols 0..127 = wv0f,
    # cols 128..130 = 0, col 131 = wa.
    wv0fa = jnp.concatenate([wv0f, jnp.zeros((W, 3), f32), p["wa"]], axis=1)  # (256, 132)
    # view weight padded so the lane-aligned x[:, 256:346] slice can feed it.
    wv0v_ext = jnp.pad(wv0v, ((INPUT_CH_ALL - VIEW_SLICE_OFF, 0), (0, 0)))    # (90, 128)

    wr4 = jnp.pad(p["wr"], ((0, 0), (0, 1)))             # (128, 4) = [wr | 0]
    bout = jnp.concatenate([p["br"], p["ba"]], axis=-1)  # (1, 4)   = [br | ba]

    weights = [
        w05a.astype(bf16), p["b0"],
        wstack.astype(bf16),
        p["b1"], p["b2"], p["b3"], p["b4"], p["b5"], p["b6"], p["b7"],
        wv0fa.astype(bf16), wv0v_ext.astype(bf16), p["bv0"],
        p["wv1"].astype(bf16), p["bv1"],
        p["wv2"].astype(bf16), p["bv2"],
        wr4.astype(bf16), bout,
    ]

    def full_spec(arr):
        zeros = (0,) * arr.ndim
        return pl.BlockSpec(arr.shape, lambda i, _z=zeros: _z)

    in_specs = [pl.BlockSpec((tm, X_DIM), lambda i: (i, 0))] \
        + [full_spec(w) for w in weights]

    weight_bytes = sum(int(np.prod(w.shape)) * int(np.dtype(w.dtype).itemsize)
                       for w in weights)
    n_rows_padded = grid[0] * tm
    cost = pl.CostEstimate(
        flops=2 * n_rows_padded * _MACS_PER_ROW,
        transcendentals=0,
        bytes_accessed=weight_bytes + n * X_DIM * 4 + n * 4 * 4,
    )

    cp_kwargs = dict(dimension_semantics=("parallel",))
    if tm > 512:
        cp_kwargs["vmem_limit_bytes"] = 32 * 1024 * 1024

    out = pl.pallas_call(
        _nerf_kernel,
        out_shape=jax.ShapeDtypeStruct((n, 4), jnp.float32),
        grid_spec=pltpu.PrefetchScalarGridSpec(
            num_scalar_prefetch=0,
            grid=grid,
            in_specs=in_specs,
            out_specs=pl.BlockSpec((tm, 4), lambda i: (i, 0)),
        ),
        compiler_params=pltpu.CompilerParams(**cp_kwargs),
        cost_estimate=cost,
    )(x, *weights)

    return out


# --------------------------- Parameter init ----------------------------------
def init_params(key):
    """Deterministic synthetic parameters (weights stored [in, out], torch-shaped)."""
    specs = {
        "w0": (INPUT_CH_ALL, W), "b0": (1, W),
        "w1": (W, W), "b1": (1, W),
        "w2": (W, W), "b2": (1, W),
        "w3": (W, W), "b3": (1, W),
        "w4": (W, W), "b4": (1, W),
        # skip layer: Linear(input_ch_all + W, W); input order = [initial | h]
        "w5": (INPUT_CH_ALL + W, W), "b5": (1, W),
        "w6": (W, W), "b6": (1, W),
        "w7": (W, W), "b7": (1, W),
        "wa": (W, 1), "ba": (1, 1),
        # views_linears[0]: Linear(W + input_ch_views, W//2); input = [feature | views]
        "wv0": (W + INPUT_CH_VIEWS, W_HALF), "bv0": (1, W_HALF),
        "wv1": (W_HALF, W_HALF), "bv1": (1, W_HALF),
        "wv2": (W_HALF, W_HALF), "bv2": (1, W_HALF),
        "wr": (W_HALF, 3), "br": (1, 3),
    }
    params = {}
    keys = jax.random.split(key, len(specs))
    for k, (name, shape) in zip(keys, specs.items()):
        fan_in = shape[0] if name.startswith("w") else shape[1]
        scale = 1.0 / np.sqrt(max(fan_in, 1))
        params[name] = scale * jax.random.normal(k, shape, dtype=jnp.float32)
    return params


# ------------------------- Pure-JAX reference --------------------------------
def attention_nerf_ref(x, p):
    """Mirrors torch forward (cat-then-matmul), with matched bf16 matmul operands."""
    bf16 = jnp.bfloat16
    relu = lambda t: jnp.maximum(t, 0.0)

    def lin(a, w, b):
        return jnp.dot(a.astype(bf16), w.astype(bf16),
                       preferred_element_type=jnp.float32) + b

    pts = x[:, :INPUT_CH_ALL]
    views = x[:, INPUT_CH_ALL:]
    initial = pts

    h = initial
    for i in range(D):
        h = relu(lin(h, p[f"w{i}"], p[f"b{i}"]))
        if i in SKIPS:
            h = jnp.concatenate([initial, h], axis=-1)

    alpha = lin(h, p["wa"], p["ba"])
    feature = h
    hv = jnp.concatenate([feature, views], axis=-1)
    hv = relu(lin(hv, p["wv0"], p["bv0"]))
    hv = relu(lin(hv, p["wv1"], p["bv1"]))
    hv = relu(lin(hv, p["wv2"], p["bv2"]))
    rgb = lin(hv, p["wr"], p["br"])
    return jnp.concatenate([rgb, alpha], axis=-1)


# ------------------------------- Main -----------------------------------------
if __name__ == "__main__":
    key = jax.random.PRNGKey(0)
    kx, kp = jax.random.split(key)

    # N deliberately not a multiple of tm: exercises the ragged last grid block
    # (grid = 2 at tm=512: one full tile + one 488-row partial tile; the grid of
    # 2 also keeps both v7x TensorCores busy).
    N = 1000
    x = jax.random.normal(kx, (N, X_DIM), dtype=jnp.float32)
    params = init_params(kp)

    out = jax.block_until_ready(attention_nerf_pallas(x, params))
    ref = jax.block_until_ready(attention_nerf_ref(x, params))

    # Kernel and reference quantize identically to bf16 (f32 accumulation), so
    # differences are only f32 accumulation-order noise.
    np.testing.assert_allclose(np.asarray(out), np.asarray(ref),
                               rtol=2e-3, atol=2e-3)

    assert out.shape == (N, 4) and out.dtype == jnp.float32
    print("KERNEL_OK")
</pallas_src>

<mosaic_0001>
module attributes {stable_mosaic.version = 11 : i64} {
  func.func @_nerf_kernel(%arg0: i32, %arg1: memref<512x346xf32, #tpu.memory_space<vmem>>, %arg2: memref<346x512xbf16, #tpu.memory_space<vmem>>, %arg3: memref<1x256xf32, #tpu.memory_space<vmem>>, %arg4: memref<7x256x256xbf16, #tpu.memory_space<vmem>>, %arg5: memref<1x256xf32, #tpu.memory_space<vmem>>, %arg6: memref<1x256xf32, #tpu.memory_space<vmem>>, %arg7: memref<1x256xf32, #tpu.memory_space<vmem>>, %arg8: memref<1x256xf32, #tpu.memory_space<vmem>>, %arg9: memref<1x256xf32, #tpu.memory_space<vmem>>, %arg10: memref<1x256xf32, #tpu.memory_space<vmem>>, %arg11: memref<1x256xf32, #tpu.memory_space<vmem>>, %arg12: memref<256x132xbf16, #tpu.memory_space<vmem>>, %arg13: memref<90x128xbf16, #tpu.memory_space<vmem>>, %arg14: memref<1x128xf32, #tpu.memory_space<vmem>>, %arg15: memref<128x128xbf16, #tpu.memory_space<vmem>>, %arg16: memref<1x128xf32, #tpu.memory_space<vmem>>, %arg17: memref<128x128xbf16, #tpu.memory_space<vmem>>, %arg18: memref<1x128xf32, #tpu.memory_space<vmem>>, %arg19: memref<128x4xbf16, #tpu.memory_space<vmem>>, %arg20: memref<1x4xf32, #tpu.memory_space<vmem>>, %arg21: memref<512x4xf32, #tpu.memory_space<vmem>>) attributes {dimension_semantics = [#tpu.dimension_semantics<parallel>], iteration_bounds = array<i64: 2>, scalar_prefetch = 0 : i64, scratch_operands = 0 : i64, tpu.core_type = #tpu.core_type<tc>, window_params = [{transform_indices = @transform_0, window_bounds = array<i64: 512, 346>}, {pipeline_mode = #tpu.pipeline_mode<synchronous>, transform_indices = @transform_1, window_bounds = array<i64: 346, 512>}, {pipeline_mode = #tpu.pipeline_mode<synchronous>, transform_indices = @transform_2, window_bounds = array<i64: 1, 256>}, {pipeline_mode = #tpu.pipeline_mode<synchronous>, transform_indices = @transform_3, window_bounds = array<i64: 7, 256, 256>}, {pipeline_mode = #tpu.pipeline_mode<synchronous>, transform_indices = @transform_4, window_bounds = array<i64: 1, 256>}, {pipeline_mode = #tpu.pipeline_mode<synchronous>, transform_indices = @transform_5, window_bounds = array<i64: 1, 256>}, {pipeline_mode = #tpu.pipeline_mode<synchronous>, transform_indices = @transform_6, window_bounds = array<i64: 1, 256>}, {pipeline_mode = #tpu.pipeline_mode<synchronous>, transform_indices = @transform_7, window_bounds = array<i64: 1, 256>}, {pipeline_mode = #tpu.pipeline_mode<synchronous>, transform_indices = @transform_8, window_bounds = array<i64: 1, 256>}, {pipeline_mode = #tpu.pipeline_mode<synchronous>, transform_indices = @transform_9, window_bounds = array<i64: 1, 256>}, {pipeline_mode = #tpu.pipeline_mode<synchronous>, transform_indices = @transform_10, window_bounds = array<i64: 1, 256>}, {pipeline_mode = #tpu.pipeline_mode<synchronous>, transform_indices = @transform_11, window_bounds = array<i64: 256, 132>}, {pipeline_mode = #tpu.pipeline_mode<synchronous>, transform_indices = @transform_12, window_bounds = array<i64: 90, 128>}, {pipeline_mode = #tpu.pipeline_mode<synchronous>, transform_indices = @transform_13, window_bounds = array<i64: 1, 128>}, {pipeline_mode = #tpu.pipeline_mode<synchronous>, transform_indices = @transform_14, window_bounds = array<i64: 128, 128>}, {pipeline_mode = #tpu.pipeline_mode<synchronous>, transform_indices = @transform_15, window_bounds = array<i64: 1, 128>}, {pipeline_mode = #tpu.pipeline_mode<synchronous>, transform_indices = @transform_16, window_bounds = array<i64: 128, 128>}, {pipeline_mode = #tpu.pipeline_mode<synchronous>, transform_indices = @transform_17, window_bounds = array<i64: 1, 128>}, {pipeline_mode = #tpu.pipeline_mode<synchronous>, transform_indices = @transform_18, window_bounds = array<i64: 128, 4>}, {pipeline_mode = #tpu.pipeline_mode<synchronous>, transform_indices = @transform_19, window_bounds = array<i64: 1, 4>}, {transform_indices = @transform_20, window_bounds = array<i64: 512, 4>}]} {
    %c0 = arith.constant 0 : index
    %c0_0 = arith.constant 0 : index
    %0 = vector.load %arg1[%c0, %c0_0] : memref<512x346xf32, #tpu.memory_space<vmem>>, vector<512x346xf32>
    %1 = arith.truncf %0 : vector<512x346xf32> to vector<512x346xbf16>
    %c0_1 = arith.constant 0 : index
    %c0_2 = arith.constant 0 : index
    %2 = vector.load %arg2[%c0_1, %c0_2] : memref<346x512xbf16, #tpu.memory_space<vmem>>, vector<346x512xbf16>
    %cst = arith.constant dense<0.000000e+00> : vector<512x512xf32>
    %3 = tpu.matmul %1, %2, %cst {dimension_numbers = #tpu.dot_dimension_numbers<[1], [0], [0], [1], [0, 0, 1, 1], [], []>} : vector<512x346xbf16>, vector<346x512xbf16>, vector<512x512xf32> -> vector<512x512xf32>
    %4 = vector.extract_strided_slice %3 {offsets = [0, 256], sizes = [512, 256], strides = [1, 1]} : vector<512x512xf32> to vector<512x256xf32>
    %5 = vector.extract_strided_slice %3 {offsets = [0, 0], sizes = [512, 256], strides = [1, 1]} : vector<512x512xf32> to vector<512x256xf32>
    %c0_3 = arith.constant 0 : index
    %c0_4 = arith.constant 0 : index
    %6 = vector.load %arg3[%c0_3, %c0_4] : memref<1x256xf32, #tpu.memory_space<vmem>>, vector<1x256xf32>
    %7 = vector.broadcast %6 : vector<1x256xf32> to vector<512x256xf32>
    %8 = arith.addf %5, %7 : vector<512x256xf32>
    %cst_5 = arith.constant 0.000000e+00 : f32
    %9 = vector.broadcast %cst_5 : f32 to vector<512x256xf32>
    %10 = arith.maximumf %8, %9 : vector<512x256xf32>
    %11 = arith.truncf %10 : vector<512x256xf32> to vector<512x256xbf16>
    %c0_6 = arith.constant 0 : index
    %c0_7 = arith.constant 0 : index
    %c0_8 = arith.constant 0 : index
    %12 = vector.load %arg4[%c0_6, %c0_7, %c0_8] : memref<7x256x256xbf16, #tpu.memory_space<vmem>>, vector<1x256x256xbf16>
    %13 = vector.shape_cast %12 : vector<1x256x256xbf16> to vector<256x256xbf16>
    %cst_9 = arith.constant dense<0.000000e+00> : vector<512x256xf32>
    %14 = tpu.matmul %11, %13, %cst_9 {dimension_numbers = #tpu.dot_dimension_numbers<[1], [0], [0], [1], [0, 0, 1, 1], [], []>} : vector<512x256xbf16>, vector<256x256xbf16>, vector<512x256xf32> -> vector<512x256xf32>
    %c0_10 = arith.constant 0 : index
    %c0_11 = arith.constant 0 : index
    %15 = vector.load %arg5[%c0_10, %c0_11] : memref<1x256xf32, #tpu.memory_space<vmem>>, vector<1x256xf32>
    %16 = vector.broadcast %15 : vector<1x256xf32> to vector<512x256xf32>
    %17 = arith.addf %14, %16 : vector<512x256xf32>
    %cst_12 = arith.constant 0.000000e+00 : f32
    %18 = vector.broadcast %cst_12 : f32 to vector<512x256xf32>
    %19 = arith.maximumf %17, %18 : vector<512x256xf32>
    %20 = arith.truncf %19 : vector<512x256xf32> to vector<512x256xbf16>
    %c1 = arith.constant 1 : index
    %c0_13 = arith.constant 0 : index
    %c0_14 = arith.constant 0 : index
    %21 = vector.load %arg4[%c1, %c0_13, %c0_14] : memref<7x256x256xbf16, #tpu.memory_space<vmem>>, vector<1x256x256xbf16>
    %22 = vector.shape_cast %21 : vector<1x256x256xbf16> to vector<256x256xbf16>
    %cst_15 = arith.constant dense<0.000000e+00> : vector<512x256xf32>
    %23 = tpu.matmul %20, %22, %cst_15 {dimension_numbers = #tpu.dot_dimension_numbers<[1], [0], [0], [1], [0, 0, 1, 1], [], []>} : vector<512x256xbf16>, vector<256x256xbf16>, vector<512x256xf32> -> vector<512x256xf32>
    %c0_16 = arith.constant 0 : index
    %c0_17 = arith.constant 0 : index
    %24 = vector.load %arg6[%c0_16, %c0_17] : memref<1x256xf32, #tpu.memory_space<vmem>>, vector<1x256xf32>
    %25 = vector.broadcast %24 : vector<1x256xf32> to vector<512x256xf32>
    %26 = arith.addf %23, %25 : vector<512x256xf32>
    %cst_18 = arith.constant 0.000000e+00 : f32
    %27 = vector.broadcast %cst_18 : f32 to vector<512x256xf32>
    %28 = arith.maximumf %26, %27 : vector<512x256xf32>
    %29 = arith.truncf %28 : vector<512x256xf32> to vector<512x256xbf16>
    %c2 = arith.constant 2 : index
    %c0_19 = arith.constant 0 : index
    %c0_20 = arith.constant 0 : index
    %30 = vector.load %arg4[%c2, %c0_19, %c0_20] : memref<7x256x256xbf16, #tpu.memory_space<vmem>>, vector<1x256x256xbf16>
    %31 = vector.shape_cast %30 : vector<1x256x256xbf16> to vector<256x256xbf16>
    %cst_21 = arith.constant dense<0.000000e+00> : vector<512x256xf32>
    %32 = tpu.matmul %29, %31, %cst_21 {dimension_numbers = #tpu.dot_dimension_numbers<[1], [0], [0], [1], [0, 0, 1, 1], [], []>} : vector<512x256xbf16>, vector<256x256xbf16>, vector<512x256xf32> -> vector<512x256xf32>
    %c0_22 = arith.constant 0 : index
    %c0_23 = arith.constant 0 : index
    %33 = vector.load %arg7[%c0_22, %c0_23] : memref<1x256xf32, #tpu.memory_space<vmem>>, vector<1x256xf32>
    %34 = vector.broadcast %33 : vector<1x256xf32> to vector<512x256xf32>
    %35 = arith.addf %32, %34 : vector<512x256xf32>
    %cst_24 = arith.constant 0.000000e+00 : f32
    %36 = vector.broadcast %cst_24 : f32 to vector<512x256xf32>
    %37 = arith.maximumf %35, %36 : vector<512x256xf32>
    %38 = arith.truncf %37 : vector<512x256xf32> to vector<512x256xbf16>
    %c3 = arith.constant 3 : index
    %c0_25 = arith.constant 0 : index
    %c0_26 = arith.constant 0 : index
    %39 = vector.load %arg4[%c3, %c0_25, %c0_26] : memref<7x256x256xbf16, #tpu.memory_space<vmem>>, vector<1x256x256xbf16>
    %40 = vector.shape_cast %39 : vector<1x256x256xbf16> to vector<256x256xbf16>
    %cst_27 = arith.constant dense<0.000000e+00> : vector<512x256xf32>
    %41 = tpu.matmul %38, %40, %cst_27 {dimension_numbers = #tpu.dot_dimension_numbers<[1], [0], [0], [1], [0, 0, 1, 1], [], []>} : vector<512x256xbf16>, vector<256x256xbf16>, vector<512x256xf32> -> vector<512x256xf32>
    %c0_28 = arith.constant 0 : index
    %c0_29 = arith.constant 0 : index
    %42 = vector.load %arg8[%c0_28, %c0_29] : memref<1x256xf32, #tpu.memory_space<vmem>>, vector<1x256xf32>
    %43 = vector.broadcast %42 : vector<1x256xf32> to vector<512x256xf32>
    %44 = arith.addf %41, %43 : vector<512x256xf32>
    %cst_30 = arith.constant 0.000000e+00 : f32
    %45 = vector.broadcast %cst_30 : f32 to vector<512x256xf32>
    %46 = arith.maximumf %44, %45 : vector<512x256xf32>
    %47 = arith.truncf %46 : vector<512x256xf32> to vector<512x256xbf16>
    %c4 = arith.constant 4 : index
    %c0_31 = arith.constant 0 : index
    %c0_32 = arith.constant 0 : index
    %48 = vector.load %arg4[%c4, %c0_31, %c0_32] : memref<7x256x256xbf16, #tpu.memory_space<vmem>>, vector<1x256x256xbf16>
    %49 = vector.shape_cast %48 : vector<1x256x256xbf16> to vector<256x256xbf16>
    %cst_33 = arith.constant dense<0.000000e+00> : vector<512x256xf32>
    %50 = tpu.matmul %47, %49, %cst_33 {dimension_numbers = #tpu.dot_dimension_numbers<[1], [0], [0], [1], [0, 0, 1, 1], [], []>} : vector<512x256xbf16>, vector<256x256xbf16>, vector<512x256xf32> -> vector<512x256xf32>
    %51 = arith.addf %4, %50 : vector<512x256xf32>
    %c0_34 = arith.constant 0 : index
    %c0_35 = arith.constant 0 : index
    %52 = vector.load %arg9[%c0_34, %c0_35] : memref<1x256xf32, #tpu.memory_space<vmem>>, vector<1x256xf32>
    %53 = vector.broadcast %52 : vector<1x256xf32> to vector<512x256xf32>
    %54 = arith.addf %51, %53 : vector<512x256xf32>
    %cst_36 = arith.constant 0.000000e+00 : f32
    %55 = vector.broadcast %cst_36 : f32 to vector<512x256xf32>
    %56 = arith.maximumf %54, %55 : vector<512x256xf32>
    %57 = arith.truncf %56 : vector<512x256xf32> to vector<512x256xbf16>
    %c5 = arith.constant 5 : index
    %c0_37 = arith.constant 0 : index
    %c0_38 = arith.constant 0 : index
    %58 = vector.load %arg4[%c5, %c0_37, %c0_38] : memref<7x256x256xbf16, #tpu.memory_space<vmem>>, vector<1x256x256xbf16>
    %59 = vector.shape_cast %58 : vector<1x256x256xbf16> to vector<256x256xbf16>
    %cst_39 = arith.constant dense<0.000000e+00> : vector<512x256xf32>
    %60 = tpu.matmul %57, %59, %cst_39 {dimension_numbers = #tpu.dot_dimension_numbers<[1], [0], [0], [1], [0, 0, 1, 1], [], []>} : vector<512x256xbf16>, vector<256x256xbf16>, vector<512x256xf32> -> vector<512x256xf32>
    %c0_40 = arith.constant 0 : index
    %c0_41 = arith.constant 0 : index
    %61 = vector.load %arg10[%c0_40, %c0_41] : memref<1x256xf32, #tpu.memory_space<vmem>>, vector<1x256xf32>
    %62 = vector.broadcast %61 : vector<1x256xf32> to vector<512x256xf32>
    %63 = arith.addf %60, %62 : vector<512x256xf32>
    %cst_42 = arith.constant 0.000000e+00 : f32
    %64 = vector.broadcast %cst_42 : f32 to vector<512x256xf32>
    %65 = arith.maximumf %63, %64 : vector<512x256xf32>
    %66 = arith.truncf %65 : vector<512x256xf32> to vector<512x256xbf16>
    %c6 = arith.constant 6 : index
    %c0_43 = arith.constant 0 : index
    %c0_44 = arith.constant 0 : index
    %67 = vector.load %arg4[%c6, %c0_43, %c0_44] : memref<7x256x256xbf16, #tpu.memory_space<vmem>>, vector<1x256x256xbf16>
    %68 = vector.shape_cast %67 : vector<1x256x256xbf16> to vector<256x256xbf16>
    %cst_45 = arith.constant dense<0.000000e+00> : vector<512x256xf32>
    %69 = tpu.matmul %66, %68, %cst_45 {dimension_numbers = #tpu.dot_dimension_numbers<[1], [0], [0], [1], [0, 0, 1, 1], [], []>} : vector<512x256xbf16>, vector<256x256xbf16>, vector<512x256xf32> -> vector<512x256xf32>
    %c0_46 = arith.constant 0 : index
    %c0_47 = arith.constant 0 : index
    %70 = vector.load %arg11[%c0_46, %c0_47] : memref<1x256xf32, #tpu.memory_space<vmem>>, vector<1x256xf32>
    %71 = vector.broadcast %70 : vector<1x256xf32> to vector<512x256xf32>
    %72 = arith.addf %69, %71 : vector<512x256xf32>
    %cst_48 = arith.constant 0.000000e+00 : f32
    %73 = vector.broadcast %cst_48 : f32 to vector<512x256xf32>
    %74 = arith.maximumf %72, %73 : vector<512x256xf32>
    %75 = arith.truncf %74 : vector<512x256xf32> to vector<512x256xbf16>
    %c0_49 = arith.constant 0 : index
    %c0_50 = arith.constant 0 : index
    %76 = vector.load %arg12[%c0_49, %c0_50] : memref<256x132xbf16, #tpu.memory_space<vmem>>, vector<256x132xbf16>
    %cst_51 = arith.constant dense<0.000000e+00> : vector<512x132xf32>
    %77 = tpu.matmul %75, %76, %cst_51 {dimension_numbers = #tpu.dot_dimension_numbers<[1], [0], [0], [1], [0, 0, 1, 1], [], []>} : vector<512x256xbf16>, vector<256x132xbf16>, vector<512x132xf32> -> vector<512x132xf32>
    %78 = vector.extract_strided_slice %1 {offsets = [0, 256], sizes = [512, 90], strides = [1, 1]} : vector<512x346xbf16> to vector<512x90xbf16>
    %c0_52 = arith.constant 0 : index
    %c0_53 = arith.constant 0 : index
    %79 = vector.load %arg13[%c0_52, %c0_53] : memref<90x128xbf16, #tpu.memory_space<vmem>>, vector<90x128xbf16>
    %cst_54 = arith.constant dense<0.000000e+00> : vector<512x128xf32>
    %80 = tpu.matmul %78, %79, %cst_54 {dimension_numbers = #tpu.dot_dimension_numbers<[1], [0], [0], [1], [0, 0, 1, 1], [], []>} : vector<512x90xbf16>, vector<90x128xbf16>, vector<512x128xf32> -> vector<512x128xf32>
    %81 = vector.extract_strided_slice %77 {offsets = [0, 0], sizes = [512, 128], strides = [1, 1]} : vector<512x132xf32> to vector<512x128xf32>
    %82 = arith.addf %81, %80 : vector<512x128xf32>
    %c0_55 = arith.constant 0 : index
    %c0_56 = arith.constant 0 : index
    %83 = vector.load %arg14[%c0_55, %c0_56] : memref<1x128xf32, #tpu.memory_space<vmem>>, vector<1x128xf32>
    %84 = vector.broadcast %83 : vector<1x128xf32> to vector<512x128xf32>
    %85 = arith.addf %82, %84 : vector<512x128xf32>
    %cst_57 = arith.constant 0.000000e+00 : f32
    %86 = vector.broadcast %cst_57 : f32 to vector<512x128xf32>
    %87 = arith.maximumf %85, %86 : vector<512x128xf32>
    %88 = arith.truncf %87 : vector<512x128xf32> to vector<512x128xbf16>
    %c0_58 = arith.constant 0 : index
    %c0_59 = arith.constant 0 : index
    %89 = vector.load %arg15[%c0_58, %c0_59] : memref<128x128xbf16, #tpu.memory_space<vmem>>, vector<128x128xbf16>
    %cst_60 = arith.constant dense<0.000000e+00> : vector<512x128xf32>
    %90 = tpu.matmul %88, %89, %cst_60 {dimension_numbers = #tpu.dot_dimension_numbers<[1], [0], [0], [1], [0, 0, 1, 1], [], []>} : vector<512x128xbf16>, vector<128x128xbf16>, vector<512x128xf32> -> vector<512x128xf32>
    %c0_61 = arith.constant 0 : index
    %c0_62 = arith.constant 0 : index
    %91 = vector.load %arg16[%c0_61, %c0_62] : memref<1x128xf32, #tpu.memory_space<vmem>>, vector<1x128xf32>
    %92 = vector.broadcast %91 : vector<1x128xf32> to vector<512x128xf32>
    %93 = arith.addf %90, %92 : vector<512x128xf32>
    %cst_63 = arith.constant 0.000000e+00 : f32
    %94 = vector.broadcast %cst_63 : f32 to vector<512x128xf32>
    %95 = arith.maximumf %93, %94 : vector<512x128xf32>
    %96 = arith.truncf %95 : vector<512x128xf32> to vector<512x128xbf16>
    %c0_64 = arith.constant 0 : index
    %c0_65 = arith.constant 0 : index
    %97 = vector.load %arg17[%c0_64, %c0_65] : memref<128x128xbf16, #tpu.memory_space<vmem>>, vector<128x128xbf16>
    %cst_66 = arith.constant dense<0.000000e+00> : vector<512x128xf32>
    %98 = tpu.matmul %96, %97, %cst_66 {dimension_numbers = #tpu.dot_dimension_numbers<[1], [0], [0], [1], [0, 0, 1, 1], [], []>} : vector<512x128xbf16>, vector<128x128xbf16>, vector<512x128xf32> -> vector<512x128xf32>
    %c0_67 = arith.constant 0 : index
    %c0_68 = arith.constant 0 : index
    %99 = vector.load %arg18[%c0_67, %c0_68] : memref<1x128xf32, #tpu.memory_space<vmem>>, vector<1x128xf32>
    %100 = vector.broadcast %99 : vector<1x128xf32> to vector<512x128xf32>
    %101 = arith.addf %98, %100 : vector<512x128xf32>
    %cst_69 = arith.constant 0.000000e+00 : f32
    %102 = vector.broadcast %cst_69 : f32 to vector<512x128xf32>
    %103 = arith.maximumf %101, %102 : vector<512x128xf32>
    %104 = arith.truncf %103 : vector<512x128xf32> to vector<512x128xbf16>
    %c0_70 = arith.constant 0 : index
    %c0_71 = arith.constant 0 : index
    %105 = vector.load %arg19[%c0_70, %c0_71] : memref<128x4xbf16, #tpu.memory_space<vmem>>, vector<128x4xbf16>
    %cst_72 = arith.constant dense<0.000000e+00> : vector<512x4xf32>
    %106 = tpu.matmul %104, %105, %cst_72 {dimension_numbers = #tpu.dot_dimension_numbers<[1], [0], [0], [1], [0, 0, 1, 1], [], []>} : vector<512x128xbf16>, vector<128x4xbf16>, vector<512x4xf32> -> vector<512x4xf32>
    %107 = vector.extract_strided_slice %77 {offsets = [0, 128], sizes = [512, 4], strides = [1, 1]} : vector<512x132xf32> to vector<512x4xf32>
    %108 = arith.addf %106, %107 : vector<512x4xf32>
    %c0_73 = arith.constant 0 : index
    %c0_74 = arith.constant 0 : index
    %109 = vector.load %arg20[%c0_73, %c0_74] : memref<1x4xf32, #tpu.memory_space<vmem>>, vector<1x4xf32>
    %110 = vector.broadcast %109 : vector<1x4xf32> to vector<512x4xf32>
    %111 = arith.addf %108, %110 : vector<512x4xf32>
    %c0_75 = arith.constant 0 : index
    %c0_76 = arith.constant 0 : index
    %112 = vector.load %arg21[%c0_75, %c0_76] : memref<512x4xf32, #tpu.memory_space<vmem>>, vector<512x4xf32>
    tpu.vector_store %arg21[%c0_75, %c0_76], %111 {strides = array<i32>} : memref<512x4xf32, #tpu.memory_space<vmem>>, vector<512x4xf32>,
    return
  }
  func.func @transform_0(%arg0: i32) -> (i32, i32) {
    %c0_i32 = arith.constant 0 : i32
    %c0_i32_0 = arith.constant 0 : i32
    return %arg0, %c0_i32 : i32, i32
  }
  func.func @transform_1(%arg0: i32) -> (i32, i32) {
    %c0_i32 = arith.constant 0 : i32
    %c0_i32_0 = arith.constant 0 : i32
    %c0_i32_1 = arith.constant 0 : i32
    return %c0_i32, %c0_i32_0 : i32, i32
  }
  func.func @transform_2(%arg0: i32) -> (i32, i32) {
    %c0_i32 = arith.constant 0 : i32
    %c0_i32_0 = arith.constant 0 : i32
    %c0_i32_1 = arith.constant 0 : i32
    return %c0_i32, %c0_i32_0 : i32, i32
  }
  func.func @transform_3(%arg0: i32) -> (i32, i32, i32) {
    %c0_i32 = arith.constant 0 : i32
    %c0_i32_0 = arith.constant 0 : i32
    %c0_i32_1 = arith.constant 0 : i32
    %c0_i32_2 = arith.constant 0 : i32
    return %c0_i32, %c0_i32_0, %c0_i32_1 : i32, i32, i32
  }
  func.func @transform_4(%arg0: i32) -> (i32, i32) {
    %c0_i32 = arith.constant 0 : i32
    %c0_i32_0 = arith.constant 0 : i32
    %c0_i32_1 = arith.constant 0 : i32
    return %c0_i32, %c0_i32_0 : i32, i32
  }
  func.func @transform_5(%arg0: i32) -> (i32, i32) {
    %c0_i32 = arith.constant 0 : i32
    %c0_i32_0 = arith.constant 0 : i32
    %c0_i32_1 = arith.constant 0 : i32
    return %c0_i32, %c0_i32_0 : i32, i32
  }
  func.func @transform_6(%arg0: i32) -> (i32, i32) {
    %c0_i32 = arith.constant 0 : i32
    %c0_i32_0 = arith.constant 0 : i32
    %c0_i32_1 = arith.constant 0 : i32
    return %c0_i32, %c0_i32_0 : i32, i32
  }
  func.func @transform_7(%arg0: i32) -> (i32, i32) {
    %c0_i32 = arith.constant 0 : i32
    %c0_i32_0 = arith.constant 0 : i32
    %c0_i32_1 = arith.constant 0 : i32
    return %c0_i32, %c0_i32_0 : i32, i32
  }
  func.func @transform_8(%arg0: i32) -> (i32, i32) {
    %c0_i32 = arith.constant 0 : i32
    %c0_i32_0 = arith.constant 0 : i32
    %c0_i32_1 = arith.constant 0 : i32
    return %c0_i32, %c0_i32_0 : i32, i32
  }
  func.func @transform_9(%arg0: i32) -> (i32, i32) {
    %c0_i32 = arith.constant 0 : i32
    %c0_i32_0 = arith.constant 0 : i32
    %c0_i32_1 = arith.constant 0 : i32
    return %c0_i32, %c0_i32_0 : i32, i32
  }
  func.func @transform_10(%arg0: i32) -> (i32, i32) {
    %c0_i32 = arith.constant 0 : i32
    %c0_i32_0 = arith.constant 0 : i32
    %c0_i32_1 = arith.constant 0 : i32
    return %c0_i32, %c0_i32_0 : i32, i32
  }
  func.func @transform_11(%arg0: i32) -> (i32, i32) {
    %c0_i32 = arith.constant 0 : i32
    %c0_i32_0 = arith.constant 0 : i32
    %c0_i32_1 = arith.constant 0 : i32
    return %c0_i32, %c0_i32_0 : i32, i32
  }
  func.func @transform_12(%arg0: i32) -> (i32, i32) {
    %c0_i32 = arith.constant 0 : i32
    %c0_i32_0 = arith.constant 0 : i32
    %c0_i32_1 = arith.constant 0 : i32
    return %c0_i32, %c0_i32_0 : i32, i32
  }
  func.func @transform_13(%arg0: i32) -> (i32, i32) {
    %c0_i32 = arith.constant 0 : i32
    %c0_i32_0 = arith.constant 0 : i32
    %c0_i32_1 = arith.constant 0 : i32
    return %c0_i32, %c0_i32_0 : i32, i32
  }
  func.func @transform_14(%arg0: i32) -> (i32, i32) {
    %c0_i32 = arith.constant 0 : i32
    %c0_i32_0 = arith.constant 0 : i32
    %c0_i32_1 = arith.constant 0 : i32
    return %c0_i32, %c0_i32_0 : i32, i32
  }
  func.func @transform_15(%arg0: i32) -> (i32, i32) {
    %c0_i32 = arith.constant 0 : i32
    %c0_i32_0 = arith.constant 0 : i32
    %c0_i32_1 = arith.constant 0 : i32
    return %c0_i32, %c0_i32_0 : i32, i32
  }
  func.func @transform_16(%arg0: i32) -> (i32, i32) {
    %c0_i32 = arith.constant 0 : i32
    %c0_i32_0 = arith.constant 0 : i32
    %c0_i32_1 = arith.constant 0 : i32
    return %c0_i32, %c0_i32_0 : i32, i32
  }
  func.func @transform_17(%arg0: i32) -> (i32, i32) {
    %c0_i32 = arith.constant 0 : i32
    %c0_i32_0 = arith.constant 0 : i32
    %c0_i32_1 = arith.constant 0 : i32
    return %c0_i32, %c0_i32_0 : i32, i32
  }
  func.func @transform_18(%arg0: i32) -> (i32, i32) {
    %c0_i32 = arith.constant 0 : i32
    %c0_i32_0 = arith.constant 0 : i32
    %c0_i32_1 = arith.constant 0 : i32
    return %c0_i32, %c0_i32_0 : i32, i32
  }
  func.func @transform_19(%arg0: i32) -> (i32, i32) {
    %c0_i32 = arith.constant 0 : i32
    %c0_i32_0 = arith.constant 0 : i32
    %c0_i32_1 = arith.constant 0 : i32
    return %c0_i32, %c0_i32_0 : i32, i32
  }
  func.func @transform_20(%arg0: i32) -> (i32, i32) {
    %c0_i32 = arith.constant 0 : i32
    %c0_i32_0 = arith.constant 0 : i32
    return %arg0, %c0_i32 : i32, i32
  }
}

</mosaic_0001>

<bundles_post_ra>
// kernel: tpu_custom_call.1
= control target key start
LH: loop header
LB: loop body
LE: loop exit
PB: predicated region body
PF: predicated region fallthrough
CT: control target
= control target key end

     0   :  { %s18684_s0 = inlined_call_operand.vmem [shape: f32[1000,346], index: 0, kind: input, shape index: {}]   ;;  %s18685_s1 = inlined_call_operand.vmem [shape: bf16[346,512], index: 1, kind: input, shape index: {}]   ;;  %s18686_s2 = inlined_call_operand.vmem [shape: f32[1,256], index: 2, kind: input, shape index: {}]   ;;  %s18687_s3 = inlined_call_operand.vmem [shape: bf16[7,256,256], index: 3, kind: input, shape index: {}]   ;;  %s18688_s4 = inlined_call_operand.vmem [shape: f32[1,256], index: 4, kind: input, shape index: {}]   ;;  %s18689_s5 = inlined_call_operand.vmem [shape: f32[1,256], index: 5, kind: input, shape index: {}]   ;;  %s18690_s6 = inlined_call_operand.vmem [shape: f32[1,256], index: 6, kind: input, shape index: {}]   ;;  %s18691_s7 = inlined_call_operand.vmem [shape: f32[1,256], index: 7, kind: input, shape index: {}]   ;;  %s18692_s8 = inlined_call_operand.vmem [shape: f32[1,256], index: 8, kind: input, shape index: {}]   ;;  %s18693_s9 = inlined_call_operand.vmem [shape: f32[1,256], index: 9, kind: input, shape index: {}]   ;;  %s18694_s10 = inlined_call_operand.vmem [shape: f32[1,256], index: 10, kind: input, shape index: {}]   ;;  %s18695_s11 = inlined_call_operand.vmem [shape: bf16[256,132], index: 11, kind: input, shape index: {}]   ;;  %s18696_s12 = inlined_call_operand.vmem [shape: bf16[90,128], index: 12, kind: input, shape index: {}]   ;;  %s18697_s13 = inlined_call_operand.vmem [shape: f32[1,128], index: 13, kind: input, shape index: {}]   ;;  %s18698_s14 = inlined_call_operand.vmem [shape: bf16[128,128], index: 14, kind: input, shape index: {}]   ;;  %s18699_s15 = inlined_call_operand.vmem [shape: f32[1,128], index: 15, kind: input, shape index: {}]   ;;  %s18700_s16 = inlined_call_operand.vmem [shape: bf16[128,128], index: 16, kind: input, shape index: {}]   ;;  %s18701_s17 = inlined_call_operand.vmem [shape: f32[1,128], index: 17, kind: input, shape index: {}]   ;;  %s18702_s18 = inlined_call_operand.vmem [shape: bf16[128,4], index: 18, kind: input, shape index: {}]   ;;  %s18703_s19 = inlined_call_operand.vmem [shape: f32[1,4], index: 19, kind: input, shape index: {}]   ;;  %s18704_s20 = inlined_call_operand.vmem [shape: f32[1000,4], index: 20, kind: output, shape index: {}]  }
   0x1   :  { %18714 = sst [smem:[#allocation27_spill]] %s18684_s0 }
   0x2   :  { %18715 = sst [smem:[#allocation28_spill]] %s18685_s1 }
   0x3   :  { %18716 = sst [smem:[#allocation29_spill]] %s18686_s2 }
   0x4   :  { %18717 = sst [smem:[#allocation30_spill]] %s18687_s3 }
   0x5   :  { %18718 = sst [smem:[#allocation31_spill]] %s18688_s4 }
   0x6   :  { %18719 = sst [smem:[#allocation32_spill]] %s18689_s5 }
   0x7   :  { %18720 = sst [smem:[#allocation33_spill]] %s18704_s20 }
   0x8   :  { %s14198_s1 = smov 0   ;;  %s14200_s22 = smov 0  }
   0x9   :  { %s14202_s23 = smov 0  }
   0xa LB: > { %18721 = sst [smem:[#allocation3_spill]] %s14054_s22  ;;  %s14211_s24 = sadd.s32 4294967295, %s14058_s23   ;;  %s14058_s23 = sphi %s14202_s23, %s18783_s23   ;;  %s14054_s22 = sphi %s14200_s22, %s18785_s22   ;;  %s14050_s1 = sphi %s14198_s1, %s18784_s1  }
   0xb   : > { %18722 = sst [smem:[#allocation4_spill]] %s14211_s24  ;;  %s14213_s2 = sadd.s32 1, %s14058_s23  }
   0xc   : > { %18723 = sst [smem:[#allocation5_spill]] %s14213_s2  ;;  %s459_s25 = ssub.s32 %s14058_s23, %s14213_s2 }
   0xd   : > { %s462_s3 = sadd.s32 1, %s14054_s22  ;;  %p460_p0 = scmp.eq.s32.totalorder %s459_s25, 0 }
   0xe   : > { %p472_p1 = scmp.ne.s32.totalorder %s14054_s22, %s14050_s1  ;;  %p473_p2 = scmp.eq.s32.totalorder %s14211_s24, 1 }
   0xf   : > { %p11817_p3 = scmp.ge.s32.totalorder %s14058_s23, 1  ;;  %p574_p5 = scmp.lt.s32.totalorder %s14058_s23, 3 }
  0x10   : > { %s14221_s26 = scalar_select %p460_p0, %s14054_s22, %s462_s3  }
  0x11   : > { %p14223_p4 = por %p473_p2, %p472_p1  ;;  %p575_p6 = pnand %p11817_p3, %p574_p5 }
  0x12   : > { %18724 = sst [smem:[#allocation6_spill]] %s14221_s26 }
  0x13   : > { %578 = sbr.rel (%p575_p6) target bundleno = 3437 (0xd6d), region = 100 }
  0x1a   : > { %s18726_s29 = sld [smem:[#allocation28_spill]]  ;;  %s14240_s23 = sshll.u32 %s14211_s24, 6  ;;  %vm1569_vm0 = vcmask 1044480   ;;  %vm1472_vm1 = vcmask 736256   ;;  %vm11282_vm2 = vcmask 31744  }
  0x1b   : > { %p643_p7 = scmp.lt.s32.totalorder %s14240_s23, 124  ;;  %s18727_s22 = sld [smem:[#allocation27_spill]] }
  0x1c   : > { %s18728_s0 = sld [smem:[#allocation30_spill]]  ;;  %s18732_s24 = sld [smem:[#allocation31_spill]] }
  0x1d   : > { %s644_s26 = scalar_select %p643_p7, %s14240_s23, 124 }
  0x1e   : > { %s18733_s5 = sld [smem:[#allocation32_spill]]  ;;  %s634_s30 = sand.u32 1, %s14050_s1  }
  0x1f   : > { %s13368_s2 = smul.u32 24, %s644_s26  ;;  %s11818_s20 = sshll.u32 %s634_s30, 9 }
  0x20   : > { %v13458_v0 = vld [vmem:[%s18726_s29 + $0x4] ss:$16 sps:$4 sm:$0xff]   ;;  %v13460_v1 = vld [vmem:[%s18726_s29] ss:$16 sps:$4 sm:$0xff]   ;;  %s18226_s1 = scalar_lea.vmem [#allocation2], %s11818_s20   ;;  %s18776_s21 = sld [smem:[#allocation4_spill]] (%p14223_p4) }
  0x21   : > { %1582 = vmatprep.subr.bf16.mxu0 %v13458_v0  ;;  %v13461_v2 = vld [vmem:[%s18726_s29 + $0x24] ss:$16 sps:$4 sm:$0xff]   ;;  %v13463_v3 = vld [vmem:[%s18726_s29 + $0x20] ss:$16 sps:$4 sm:$0xff]   ;;  %s14268_s3 = scalar_lea.vmem %s18727_s22, %s13368_s2  ;;  %s18729_s2 = sld [smem:[#allocation29_spill]] }
  0x22   : > { %1583 = vmatpush1.bf16.msra.mxu0 %v13460_v1  ;;  %v13464_v4 = vld [vmem:[%s18726_s29 + $0x44] ss:$16 sps:$4 sm:$0xff]   ;;  %v13466_v5 = vld [vmem:[%s18726_s29 + $0x40] ss:$16 sps:$4 sm:$0xff]   ;;  %v661_v13 = vld [vmem:[%s14268_s3 + $0x8] sm:$0xff]  ;;  %s11355_s25 = ssub.s32 (%p14223_p4), 125, %s14240_s23 }
  0x23   : > { %1584 = vmatprep.subr.bf16.mxu0 %v13461_v2  ;;  %v13467_v6 = vld [vmem:[%s18726_s29 + $0x64] ss:$16 sps:$4 sm:$0xff]   ;;  %v13469_v7 = vld [vmem:[%s18726_s29 + $0x60] ss:$16 sps:$4 sm:$0xff]   ;;  %v663_v36 = vld [vmem:[%s14268_s3 + $0x18] sm:$0xff]  ;;  %p11356_p8 = scmp.lt.s32.totalorder (%p14223_p4), %s11355_s25, 64 }
  0x24   : > { %v13470_v8 = vld [vmem:[%s18726_s29 + $0x84] ss:$16 sps:$4 sm:$0xff]   ;;  %v13472_v9 = vld [vmem:[%s18726_s29 + $0x80] ss:$16 sps:$4 sm:$0xff]   ;;  %v667_v38 = vld [vmem:[%s14268_s3 + $0x38] sm:$0xff]  ;;  %s18777_s26 = sld [smem:[#allocation33_spill]] (%p14223_p4) }
  0x25   : > { %v13473_v10 = vld [vmem:[%s18726_s29 + $0xa4] ss:$16 sps:$4 sm:$0xff]   ;;  %v13475_v11 = vld [vmem:[%s18726_s29 + $0xa0] ss:$16 sps:$4 sm:$0xff]   ;;  %v669_v45 = vld [vmem:[%s14268_s3 + $0x48] sm:$0xff] }
  0x26   : > { %1585 = vmatpush1.bf16.msra.mxu0 %v13463_v3  ;;  %v13476_v12 = vld [vmem:[%s18726_s29 + $0xc4] ss:$16 sps:$4 sm:$0xff]   ;;  %v13478_v16 = vld [vmem:[%s18726_s29 + $0xc0] ss:$16 sps:$4 sm:$0xff]   ;;  %v673_v46 = vld [vmem:[%s14268_s3 + $0x68] sm:$0xff] }
  0x27   : > { %1586 = vmatprep.subr.bf16.mxu0 %v13464_v4  ;;  %v664_v14 = vld [vmem:[%s14268_s3 + $0x20] sm:$0xff]  ;;  %v670_v39 = vld [vmem:[%s14268_s3 + $0x50] sm:$0xff]  ;;  %v675_v55 = vld [vmem:[%s14268_s3 + $0x78] sm:$0xff] }
  0x28   : > { %v853_v15 = vpack.c.bf16 %v664_v14, %v661_v13  ;;  %v13479_v17 = vld [vmem:[%s18726_s29 + $0xe4] ss:$16 sps:$4 sm:$0xff]   ;;  %v13481_v18 = vld [vmem:[%s18726_s29 + $0xe0] ss:$16 sps:$4 sm:$0xff]   ;;  %v14350_v43 = vpack.c.bf16 %v670_v39, %v667_v38  ;;  %v679_v56 = vld [vmem:[%s14268_s3 + $0x98] sm:$0xff] }
  0x29   : > { %v13482_v19 = vld [vmem:[%s18726_s29 + $0x104] ss:$16 sps:$4 sm:$0xff]   ;;  %v13484_v20 = vld [vmem:[%s18726_s29 + $0x100] ss:$16 sps:$4 sm:$0xff]   ;;  %v681_v62 = vld [vmem:[%s14268_s3 + $0xa8] sm:$0xff] }
  0x2a   : > { %1587 = vmatpush1.bf16.msra.mxu0 %v13466_v5  ;;  %1614 = vmatprep.mubr.bf16.mxu0 %v853_v15  ;;  %v13485_v21 = vld [vmem:[%s18726_s29 + $0x124] ss:$16 sps:$4 sm:$0xff]   ;;  %v13487_v22 = vld [vmem:[%s18726_s29 + $0x120] ss:$16 sps:$4 sm:$0xff]   ;;  %v685_v63 = vld [vmem:[%s14268_s3 + $0xc8] sm:$0xff] }
  0x2b   : > { %1588 = vmatprep.subr.bf16.mxu0 %v13467_v6  ;;  %2320 = vmatprep.mubr.bf16.mxu1 %v853_v15  ;;  %v13488_v23 = vld [vmem:[%s18726_s29 + $0x144] ss:$16 sps:$4 sm:$0xff]   ;;  %v13490_v24 = vld [vmem:[%s18726_s29 + $0x140] ss:$16 sps:$4 sm:$0xff]   ;;  %v687_v4 = vld [vmem:[%s14268_s3 + $0xd8] sm:$0xff] }
  0x2c   : > { %v13491_v25 = vld [vmem:[%s18726_s29 + $0x164] ss:$16 sps:$4 sm:$0xff]   ;;  %v13493_v26 = vld [vmem:[%s18726_s29 + $0x160] ss:$16 sps:$4 sm:$0xff]   ;;  %v13518_v5 = vld [vmem:[%s18726_s29 + $0xc] ss:$16 sps:$4 sm:$0xff]  }
  0x2d   : > { %v13494_v27 = vld [vmem:[%s18726_s29 + $0x184] ss:$16 sps:$4 sm:$0xff]   ;;  %v13496_v28 = vld [vmem:[%s18726_s29 + $0x180] ss:$16 sps:$4 sm:$0xff]   ;;  %v691_v6 = vld [vmem:[%s14268_s3 + $0xf8] sm:$0xff]  ;;  %2288 = vmatprep.subr.bf16.mxu1 %v13518_v5 }
  0x2e   : > { %1589 = vmatpush1.bf16.msra.mxu0 %v13469_v7  ;;  %v13497_v29 = vld [vmem:[%s18726_s29 + $0x1a4] ss:$16 sps:$4 sm:$0xff]   ;;  %v13499_v30 = vld [vmem:[%s18726_s29 + $0x1a0] ss:$16 sps:$4 sm:$0xff]   ;;  %v13524_v13 = vld [vmem:[%s18726_s29 + $0x4c] ss:$16 sps:$4 sm:$0xff]  }
  0x2f   : > { %1590 = vmatprep.subr.bf16.mxu0 %v13470_v8  ;;  %v13500_v31 = vld [vmem:[%s18726_s29 + $0x1c4] ss:$16 sps:$4 sm:$0xff]   ;;  %v13502_v32 = vld [vmem:[%s18726_s29 + $0x1c0] ss:$16 sps:$4 sm:$0xff]   ;;  %v13520_v8 = vld [vmem:[%s18726_s29 + $0x8] ss:$16 sps:$4 sm:$0xff]  }
  0x30   : > { %v13503_v33 = vld [vmem:[%s18726_s29 + $0x1e4] ss:$16 sps:$4 sm:$0xff]   ;;  %v13505_v34 = vld [vmem:[%s18726_s29 + $0x1e0] ss:$16 sps:$4 sm:$0xff]   ;;  %2289 = vmatpush1.bf16.msra.mxu1 %v13520_v8  ;;  %v693_v15 = vld [vmem:[%s14268_s3 + $0x108] sm:$0xff] }
  0x31   : > { %v660_v35 = vld [vmem:[%s14268_s3] sm:$0xff]  ;;  %v666_v44 = vld [vmem:[%s14268_s3 + $0x30] sm:$0xff]  ;;  %v709_v38 = vld [vmem:[%s14268_s3 + $0x188] sm:$0xff] }
  0x32   : > { %1591 = vmatpush1.bf16.msra.mxu0 %v13472_v9  ;;  %v13508_v37 = vld [vmem:[%s18726_s29 + $0x204] ss:$16 sps:$4 sm:$0xff]   ;;  %v13506_v40 = vld [vmem:[%s18726_s29 + $0x200] ss:$16 sps:$4 sm:$0xff]   ;;  %v14345_v41 = vpack.c.bf16 %v663_v36, %v660_v35  ;;  %v14367_v51 = vpack.c.bf16 %v669_v45, %v666_v44  ;;  %v13539_v35 = vld [vmem:[%s18726_s29 + $0xcc] ss:$16 sps:$4 sm:$0xff]  }
  0x33   : > { %1592 = vmatprep.subr.bf16.mxu0 %v13473_v10  ;;  %v13511_v42 = vld [vmem:[%s18726_s29 + $0x224] ss:$16 sps:$4 sm:$0xff]   ;;  %v13509_v48 = vld [vmem:[%s18726_s29 + $0x220] ss:$16 sps:$4 sm:$0xff]   ;;  %v13542_v45 = vld [vmem:[%s18726_s29 + $0xec] ss:$16 sps:$4 sm:$0xff]  }
  0x34   : > { %v676_v47 = vld [vmem:[%s14268_s3 + $0x80] sm:$0xff]  ;;  %v682_v57 = vld [vmem:[%s14268_s3 + $0xb0] sm:$0xff]  ;;  %v13556_v8 = vld [vmem:[%s18726_s29 + $0x168] ss:$16 sps:$4 sm:$0xff]  }
  0x35   : > { %v13514_v49 = vld [vmem:[%s18726_s29 + $0x244] ss:$16 sps:$4 sm:$0xff]   ;;  %v13512_v50 = vld [vmem:[%s18726_s29 + $0x240] ss:$16 sps:$4 sm:$0xff]   ;;  %v14372_v53 = vpack.c.bf16 %v676_v47, %v673_v46  ;;  %v14385_v60 = vpack.c.bf16 %v682_v57, %v679_v56  ;;  %v13544_v46 = vld [vmem:[%s18726_s29 + $0xe8] ss:$16 sps:$4 sm:$0xff]  }
  0x36   : > { %1593 = vmatpush1.bf16.msra.mxu0 %v13475_v11  ;;  %v13517_v52 = vld [vmem:[%s18726_s29 + $0x264] ss:$16 sps:$4 sm:$0xff]   ;;  %v13515_v58 = vld [vmem:[%s18726_s29 + $0x260] ss:$16 sps:$4 sm:$0xff]   ;;  %v13521_v11 = vld [vmem:[%s18726_s29 + $0x2c] ss:$16 sps:$4 sm:$0xff]  }
  0x37   : > { %1594 = vmatprep.subr.bf16.mxu0 %v13476_v12  ;;  %v672_v54 = vld [vmem:[%s14268_s3 + $0x60] sm:$0xff]  ;;  %v678_v61 = vld [vmem:[%s14268_s3 + $0x90] sm:$0xff]  ;;  %v13523_v12 = vld [vmem:[%s18726_s29 + $0x28] ss:$16 sps:$4 sm:$0xff]   ;;  %2290 = vmatprep.subr.bf16.mxu1 %v13521_v11 }
  0x38   : > { %v14383_v59 = vpack.c.bf16 %v675_v55, %v672_v54  ;;  %v688_v0 = vld [vmem:[%s14268_s3 + $0xe0] sm:$0xff]  ;;  %v14393_v1 = vpack.c.bf16 %v681_v62, %v678_v61  ;;  %v694_v7 = vld [vmem:[%s14268_s3 + $0x110] sm:$0xff]  ;;  %2291 = vmatpush1.bf16.msra.mxu1 %v13523_v12  ;;  %v13545_v47 = vld [vmem:[%s18726_s29 + $0x10c] ss:$16 sps:$4 sm:$0xff]  }
  0x39   : > { %v14395_v2 = vpack.c.bf16 %v688_v0, %v685_v63  ;;  %v684_v3 = vld [vmem:[%s14268_s3 + $0xc0] sm:$0xff]  ;;  %v14411_v10 = vpack.c.bf16 %v694_v7, %v691_v6  ;;  %v690_v14 = vld [vmem:[%s14268_s3 + $0xf0] sm:$0xff]  ;;  %2292 = vmatprep.subr.bf16.mxu1 %v13524_v13  ;;  %v13547_v54 = vld [vmem:[%s18726_s29 + $0x108] ss:$16 sps:$4 sm:$0xff]  }
  0x3a   : > { %1595 = vmatpush1.bf16.msra.mxu0 %v13478_v16  ;;  %v14409_v9 = vpack.c.bf16 %v687_v4, %v684_v3  ;;  %v697_v16 = vld [vmem:[%s14268_s3 + $0x128] sm:$0xff]  ;;  %v702_v36 = vld [vmem:[%s14268_s3 + $0x150] sm:$0xff]  ;;  %v712_v39 = vld [vmem:[%s14268_s3 + $0x1a0] sm:$0xff] }
  0x3b   : > { %1596 = vmatprep.subr.bf16.mxu0 %v13479_v17  ;;  %v700_v17 = vld [vmem:[%s14268_s3 + $0x140] sm:$0xff]  ;;  %v14483_v44 = vpack.c.bf16 %v712_v39, %v709_v38  ;;  %v13548_v57 = vld [vmem:[%s18726_s29 + $0x12c] ss:$16 sps:$4 sm:$0xff]   ;;  %v714_v62 = vld [vmem:[%s14268_s3 + $0x1b0] sm:$0xff] }
  0x3c   : > { %v13551_v61 = vld [vmem:[%s18726_s29 + $0x14c] ss:$16 sps:$4 sm:$0xff]   ;;  %v724_v3 = vld [vmem:[%s14268_s3 + $0x200] sm:$0xff]  ;;  %v13553_v4 = vld [vmem:[%s18726_s29 + $0x148] ss:$16 sps:$4 sm:$0xff]  }
  0x3d   : > { %v717_v63 = vld [vmem:[%s14268_s3 + $0x1c8] sm:$0xff]  ;;  %v720_v12 = vld [vmem:[%s14268_s3 + $0x1e0] sm:$0xff]  ;;  %v723_v13 = vld [vmem:[%s14268_s3 + $0x1f8] sm:$0xff] }
  0x3e   : > { %1597 = vmatpush1.bf16.msra.mxu0 %v13481_v18  ;;  %v13526_v18 = vld [vmem:[%s18726_s29 + $0x48] ss:$16 sps:$4 sm:$0xff]   ;;  %v14525_v5 = vpack.c.bf16 %v717_v63, %v714_v62  ;;  %v13554_v7 = vld [vmem:[%s18726_s29 + $0x16c] ss:$16 sps:$4 sm:$0xff]   ;;  %v754_v63 = vld [vmem:[%s14268_s3 + $0x2f0] sm:$0xff] }
  0x3f   : > { %1598 = vmatprep.subr.bf16.mxu0 %v13482_v19  ;;  %v14431_v19 = vpack.c.bf16 %v693_v15, %v690_v14  ;;  %2293 = vmatpush1.bf16.msra.mxu1 %v13526_v18  ;;  %v721_v0 = vld [vmem:[%s14268_s3 + $0x1e8] sm:$0xff]  ;;  %v727_v14 = vld [vmem:[%s14268_s3 + $0x218] sm:$0xff]  ;;  %v730_v15 = vld [vmem:[%s14268_s3 + $0x230] sm:$0xff] }
  0x40   : > { %v14527_v6 = vpack.c.bf16 %v724_v3, %v721_v0  ;;  %v13557_v11 = vld [vmem:[%s18726_s29 + $0x18c] ss:$16 sps:$4 sm:$0xff]   ;;  %v14549_v18 = vpack.c.bf16 %v730_v15, %v727_v14  ;;  %v13571_v38 = vld [vmem:[%s18726_s29 + $0x1e8] ss:$16 sps:$4 sm:$0xff]  }
  0x41   : > { %v735_v39 = vld [vmem:[%s14268_s3 + $0x258] sm:$0xff] }
  0x42   : > { %1599 = vmatpush1.bf16.msra.mxu0 %v13484_v20  ;;  %v14433_v20 = vpack.c.bf16 %v700_v17, %v697_v16  ;;  %v13559_v16 = vld [vmem:[%s18726_s29 + $0x188] ss:$16 sps:$4 sm:$0xff]   ;;  %v14547_v17 = vpack.c.bf16 %v723_v13, %v720_v12  ;;  %v766_v13 = vld [vmem:[%s14268_s3 + $0x350] sm:$0xff] }
  0x43   : > { %1600 = vmatprep.subr.bf16.mxu0 %v13485_v21  ;;  %v696_v21 = vld [vmem:[%s14268_s3 + $0x120] sm:$0xff]  ;;  %v751_v62 = vld [vmem:[%s14268_s3 + $0x2d8] sm:$0xff] }
  0x44   : > { %v14625_v3 = vpack.c.bf16 %v754_v63, %v751_v62  ;;  %v763_v12 = vld [vmem:[%s14268_s3 + $0x338] sm:$0xff]  ;;  %v801_v63 = vld [vmem:[%s14268_s3 + $0x468] sm:$0xff] }
  0x45   : > { %v14649_v15 = vpack.c.bf16 %v766_v13, %v763_v12  ;;  %v814_v12 = vld [vmem:[%s14268_s3 + $0x4d0] sm:$0xff] }
  0x46   : > { %1601 = vmatpush1.bf16.msra.mxu0 %v13487_v22  ;;  %v13527_v22 = vld [vmem:[%s18726_s29 + $0x6c] ss:$16 sps:$4 sm:$0xff]  }
  0x47   : > { %1602 = vmatprep.subr.bf16.mxu0 %v13488_v23  ;;  %v13529_v23 = vld [vmem:[%s18726_s29 + $0x280] ss:$16 sps:$4 sm:$0xff]   ;;  %2294 = vmatprep.subr.bf16.mxu1 %v13527_v22  ;;  %v13560_v22 = vld [vmem:[%s18726_s29 + $0x1ac] ss:$16 sps:$4 sm:$0xff]  }
  0x4a   : > { %1603 = vmatpush1.bf16.msra.mxu0 %v13490_v24  ;;  %v13531_v24 = vld [vmem:[%s18726_s29 + $0x284] ss:$16 sps:$4 sm:$0xff]  }
  0x4b   : > { %1604 = vmatprep.subr.bf16.mxu0 %v13491_v25  ;;  %v699_v25 = vld [vmem:[%s14268_s3 + $0x138] sm:$0xff] }
  0x4e   : > { %1605 = vmatpush1.bf16.msra.mxu0 %v13493_v26  ;;  %v13532_v26 = vld [vmem:[%s18726_s29 + $0x68] ss:$16 sps:$4 sm:$0xff]  }
  0x4f   : > { %1606 = vmatprep.subr.bf16.mxu0 %v13494_v27  ;;  %v13533_v27 = vld [vmem:[%s18726_s29 + $0x8c] ss:$16 sps:$4 sm:$0xff]   ;;  %2295 = vmatpush1.bf16.msra.mxu1 %v13532_v26 }
  0x50   : > { %2296 = vmatprep.subr.bf16.mxu1 %v13533_v27  ;;  %v13565_v26 = vld [vmem:[%s18726_s29 + $0x1cc] ss:$16 sps:$4 sm:$0xff]  }
  0x51   : > { %v733_v27 = vld [vmem:[%s14268_s3 + $0x248] sm:$0xff] }
  0x52   : > { %1607 = vmatpush1.bf16.msra.mxu0 %v13496_v28  ;;  %v703_v28 = vld [vmem:[%s14268_s3 + $0x158] sm:$0xff] }
  0x53   : > { %1608 = vmatprep.subr.bf16.mxu0 %v13497_v29  ;;  %v706_v29 = vld [vmem:[%s14268_s3 + $0x170] sm:$0xff] }
  0x56   : > { %1609 = vmatpush1.bf16.msra.mxu0 %v13499_v30  ;;  %v13535_v30 = vld [vmem:[%s18726_s29 + $0x88] ss:$16 sps:$4 sm:$0xff]  }
  0x57   : > { %1610 = vmatprep.subr.bf16.mxu0 %v13500_v31  ;;  %v14459_v31 = vpack.c.bf16 %v699_v25, %v696_v21  ;;  %2297 = vmatpush1.bf16.msra.mxu1 %v13535_v30  ;;  %v726_v21 = vld [vmem:[%s14268_s3 + $0x210] sm:$0xff]  ;;  %v13568_v30 = vld [vmem:[%s18726_s29 + $0x1c8] ss:$16 sps:$4 sm:$0xff]  }
  0x58   : > { %v13563_v25 = vld [vmem:[%s18726_s29 + $0x2a4] ss:$16 sps:$4 sm:$0x1f]  }
  0x5a   : > { %1611 = vmatpush1.bf16.msra.mxu0 %v13502_v32  ;;  %v14461_v32 = vpack.c.bf16 %v706_v29, %v703_v28  ;;  %v736_v28 = vld [vmem:[%s14268_s3 + $0x260] sm:$0xff] }
  0x5b   : > { %1612 = vmatprep.subr.bf16.mxu0 %v13503_v33  ;;  %v13536_v33 = vld [vmem:[%s18726_s29 + $0xac] ss:$16 sps:$4 sm:$0xff]   ;;  %v13567_v29 = vld [vmem:[%s18726_s29 + $0x2a0] ss:$16 sps:$4 sm:$0x1f]  }
  0x5c   : > { %2298 = vmatprep.subr.bf16.mxu1 %v13536_v33 }
  0x5e   : > { %1613 = vmatpush1.bf16.msra.mxu0 %v13505_v34  ;;  %v13538_v34 = vld [vmem:[%s18726_s29 + $0xa8] ss:$16 sps:$4 sm:$0xff]  }
  0x5f   : > { %1935 = vmatprep.subr.bf16.mxu0 %v13508_v37  ;;  %v705_v37 = vld [vmem:[%s14268_s3 + $0x168] sm:$0xff]  ;;  %2299 = vmatpush1.bf16.msra.mxu1 %v13538_v34  ;;  %v1571_v34 = vsel %vm1569_vm0, %v13567_v29, 0  ;;  %v774_v29 = vld [vmem:[%s14268_s3 + $0x390] sm:$0xff] }
  0x60   : > { %2300 = vmatprep.subr.bf16.mxu1 %v13539_v35  ;;  %v14579_v35 = vpack.c.bf16 %v736_v28, %v733_v27  ;;  %v778_v27 = vld [vmem:[%s14268_s3 + $0x3b0] sm:$0xff] }
  0x61   : > { %1615 = vmatmul.mubr.bf16.vlgmr.msra.gmra.mrb[0].mxu0 %v14345_v41 }
  0x62   : > { %1936 = vmatpush1.bf16.msra.mxu0 %v13506_v40  ;;  %1624 = vmatprep.mubr.bf16.mxu0 %v14350_v43  ;;  %v13541_v40 = vld [vmem:[%s18726_s29 + $0xc8] ss:$16 sps:$4 sm:$0xff]  }
  0x63   : > { %1937 = vmatprep.subr.bf16.mxu0 %v13511_v42  ;;  %v14481_v42 = vpack.c.bf16 %v705_v37, %v702_v36  ;;  %2301 = vmatpush1.bf16.msra.mxu1 %v13541_v40  ;;  %v732_v36 = vld [vmem:[%s14268_s3 + $0x240] sm:$0xff]  ;;  %v13569_v37 = vld [vmem:[%s18726_s29 + $0x1ec] ss:$16 sps:$4 sm:$0xff]  }
  0x64   : > { %2302 = vmatprep.subr.bf16.mxu1 %v13542_v45  ;;  %v739_v40 = vld [vmem:[%s14268_s3 + $0x278] sm:$0xff] }
  0x65   : > { %v13574_v45 = vld [vmem:[%s18726_s29 + $0x20c] ss:$16 sps:$4 sm:$0xff]  }
  0x66   : > { %1938 = vmatpush1.bf16.msra.mxu0 %v13509_v48  ;;  %v708_v48 = vld [vmem:[%s14268_s3 + $0x180] sm:$0xff] }
  0x67   : > { %1939 = vmatprep.subr.bf16.mxu0 %v13514_v49  ;;  %v711_v49 = vld [vmem:[%s14268_s3 + $0x198] sm:$0xff]  ;;  %2303 = vmatpush1.bf16.msra.mxu1 %v13544_v46  ;;  %v742_v46 = vld [vmem:[%s14268_s3 + $0x290] sm:$0xff] }
  0x68   : > { %v14503_v55 = vpack.c.bf16 %v711_v49, %v708_v48  ;;  %2304 = vmatprep.subr.bf16.mxu1 %v13545_v47  ;;  %v13572_v47 = vld [vmem:[%s18726_s29 + $0x208] ss:$16 sps:$4 sm:$0xff]   ;;  %v14599_v48 = vpack.c.bf16 %v735_v39, %v732_v36  ;;  %v14601_v49 = vpack.c.bf16 %v742_v46, %v739_v40  ;;  %v784_v36 = vld [vmem:[%s14268_s3 + $0x3e0] sm:$0xff]  ;;  %v790_v40 = vld [vmem:[%s14268_s3 + $0x410] sm:$0xff] }
  0x69   : > { %1625 = vmatmul.mubr.bf16.gmra.mrb[4].mxu0 %v14367_v51  ;;  %v787_v39 = vld [vmem:[%s14268_s3 + $0x3f8] sm:$0xff] }
  0x6a   : > { %1634 = vmatprep.mubr.bf16.mxu0 %v14372_v53  ;;  %1940 = vmatpush1.bf16.msra.mxu0 %v13512_v50  ;;  %v715_v50 = vld [vmem:[%s14268_s3 + $0x1b8] sm:$0xff]  ;;  %v14706_v46 = vpack.c.bf16 %v790_v40, %v787_v39  ;;  %v834_v39 = vld [vmem:[%s14268_s3 + $0x570] sm:$0xff]  ;;  %v837_v40 = vld [vmem:[%s14268_s3 + $0x588] sm:$0xff] }
  0x6b   : > { %1941 = vmatprep.subr.bf16.mxu0 %v13517_v52  ;;  %v718_v52 = vld [vmem:[%s14268_s3 + $0x1d0] sm:$0xff]  ;;  %2305 = vmatpush1.bf16.msra.mxu1 %v13547_v54  ;;  %v745_v54 = vld [vmem:[%s14268_s3 + $0x2a8] sm:$0xff] }
  0x6c   : > { %v14505_v56 = vpack.c.bf16 %v718_v52, %v715_v50  ;;  %2306 = vmatprep.subr.bf16.mxu1 %v13548_v57  ;;  %v738_v50 = vld [vmem:[%s14268_s3 + $0x270] sm:$0xff]  ;;  %v741_v52 = vld [vmem:[%s14268_s3 + $0x288] sm:$0xff]  ;;  %v748_v57 = vld [vmem:[%s14268_s3 + $0x2c0] sm:$0xff] }
  0x6e   : > { %1942 = vmatpush1.bf16.msra.mxu0 %v13515_v58  ;;  %v13550_v58 = vld [vmem:[%s18726_s29 + $0x128] ss:$16 sps:$4 sm:$0xff]  }
  0x6f   : > { %1943 = vmatprep.subr.bf16.mxu0 %v13531_v24  ;;  %2307 = vmatpush1.bf16.msra.mxu1 %v13550_v58  ;;  %v729_v24 = vld [vmem:[%s14268_s3 + $0x228] sm:$0xff]  ;;  %v14611_v58 = vpack.c.bf16 %v741_v52, %v738_v50  ;;  %v796_v50 = vld [vmem:[%s14268_s3 + $0x440] sm:$0xff] }
  0x70   : > { %2308 = vmatprep.subr.bf16.mxu1 %v13551_v61  ;;  %v14576_v33 = vpack.c.bf16 %v729_v24, %v726_v21  ;;  %v14613_v61 = vpack.c.bf16 %v748_v57, %v745_v54  ;;  %v769_v21 = vld [vmem:[%s14268_s3 + $0x368] sm:$0xff]  ;;  %v771_v24 = vld [vmem:[%s14268_s3 + $0x378] sm:$0xff] }
  0x71   : > { %1635 = vmatmul.mubr.bf16.gmra.mrb[8].mxu0 %v14383_v59  ;;  %v799_v57 = vld [vmem:[%s14268_s3 + $0x458] sm:$0xff] }
  0x72   : > { %1644 = vmatprep.mubr.bf16.mxu0 %v14385_v60  ;;  %1944 = vmatpush1.bf16.msra.mxu0 %v13529_v23  ;;  %v13562_v23 = vld [vmem:[%s18726_s29 + $0x1a8] ss:$16 sps:$4 sm:$0xff]  }
  0x73   : > { %2309 = vmatpush1.bf16.msra.mxu1 %v13553_v4  ;;  %11909 = vmatprep.subr.msk.bf16.mxu0 %vm1569_vm0, %v13563_v25  ;;  %v757_v4 = vld [vmem:[%s14268_s3 + $0x308] sm:$0xff] }
  0x74   : > { %2310 = vmatprep.subr.bf16.mxu1 %v13554_v7  ;;  %v760_v7 = vld [vmem:[%s14268_s3 + $0x320] sm:$0xff]  ;;  %v13578_v25 = vld [vmem:[%s18726_s29 + $0x228] ss:$16 sps:$4 sm:$0xff]  }
  0x76   : > { %1946 = vmatpush1.bf16.msra.mxu0 %v1571_v34  ;;  %v781_v34 = vld [vmem:[%s14268_s3 + $0x3c8] sm:$0xff] }
  0x77   : > { %2311 = vmatpush1.bf16.msra.mxu1 %v13556_v8 }
  0x78   : > { %2312 = vmatprep.subr.bf16.mxu1 %v13557_v11  ;;  %v14637_v11 = vpack.c.bf16 %v760_v7, %v757_v4  ;;  %v804_v7 = vld [vmem:[%s14268_s3 + $0x480] sm:$0xff] }
  0x79   : > { %1645 = vmatmul.mubr.bf16.gmra.mrb[12].mxu0 %v14393_v1 }
  0x7a   : > { %1654 = vmatprep.mubr.bf16.mxu0 %v14395_v2 }
  0x7b   : > { %2313 = vmatpush1.bf16.msra.mxu1 %v13559_v16  ;;  %v13577_v16 = vld [vmem:[%s18728_s0 + $0x4] ss:$8 sps:$4 sm:$0xff]  }
  0x7c   : > { %2314 = vmatprep.subr.bf16.mxu1 %v13560_v22  ;;  %v772_v22 = vld [vmem:[%s14268_s3 + $0x380] sm:$0xff]  ;;  %3530 = vmatprep.subr.bf16.mxu0 %v13577_v16 }
  0x7d   : > { %v820_v16 = vld [vmem:[%s14268_s3 + $0x500] sm:$0xff] }
  0x7f   : > { %2315 = vmatpush1.bf16.msra.mxu1 %v13562_v23 }
  0x80   : > { %2316 = vmatprep.subr.bf16.mxu1 %v13565_v26  ;;  %v13580_v26 = vld [vmem:[%s18726_s29 + $0x22c] ss:$16 sps:$4 sm:$0xff]  }
  0x81   : > { %1655 = vmatmul.mubr.bf16.gmra.mrb[16].mxu0 %v14409_v9 }
  0x82   : > { %1664 = vmatprep.mubr.bf16.mxu0 %v14411_v10 }
  0x83   : > { %2317 = vmatpush1.bf16.msra.mxu1 %v13568_v30  ;;  %v777_v30 = vld [vmem:[%s14268_s3 + $0x3a8] sm:$0xff] }
  0x84   : > { %2318 = vmatprep.subr.bf16.mxu1 %v13569_v37  ;;  %v14692_v37 = vpack.c.bf16 %v777_v30, %v774_v29 }
  0x87   : > { %2319 = vmatpush1.bf16.msra.mxu1 %v13571_v38  ;;  %v14694_v38 = vpack.c.bf16 %v784_v36, %v781_v34  ;;  %v828_v34 = vld [vmem:[%s14268_s3 + $0x540] sm:$0xff]  ;;  %v835_v36 = vld [vmem:[%s14268_s3 + $0x578] sm:$0xff] }
  0x88   : > { %2641 = vmatprep.subr.bf16.mxu1 %v13574_v45 }
  0x89   : > { %1665 = vmatmul.mubr.bf16.gmra.mrb[20].mxu0 %v14431_v19 }
  0x8a   : > { %1674 = vmatprep.mubr.bf16.mxu0 %v14433_v20  ;;  %2321 = vmatmul.mubr.bf16.vlgmr.msra.gmra.mrb[0].mxu1 %v14345_v41  ;;  %v744_v41 = vld [vmem:[%s14268_s3 + $0x2a0] sm:$0xff] }
  0x8b   : > { %2642 = vmatpush1.bf16.msra.mxu1 %v13572_v47  ;;  %2330 = vmatprep.mubr.bf16.mxu1 %v14350_v43  ;;  %v747_v43 = vld [vmem:[%s14268_s3 + $0x2b8] sm:$0xff]  ;;  %v793_v47 = vld [vmem:[%s14268_s3 + $0x428] sm:$0xff] }
  0x8c   : > { %v14623_v0 = vpack.c.bf16 %v747_v43, %v744_v41  ;;  %2643 = vmatprep.subr.bf16.mxu1 %v13580_v26  ;;  %v14718_v54 = vpack.c.bf16 %v796_v50, %v793_v47  ;;  %v802_v41 = vld [vmem:[%s14268_s3 + $0x470] sm:$0xff]  ;;  %v14824_v47 = vpack.c.bf16 %v837_v40, %v834_v39  ;;  %v13617_v39 = vld [vmem:[%s18728_s0 + $0xa0] ss:$8 sps:$4 sm:$0xff]  }
  0x8d   : > { %v14730_v62 = vpack.c.bf16 %v802_v41, %v799_v57  ;;  %v698_v40 = vld [vmem:[%s14268_s3 + $0x130] sm:$0xff] }
  0x8f   : > { %2644 = vmatpush1.bf16.msra.mxu1 %v13578_v25 }
  0x91   : > { %1675 = vmatmul.mubr.bf16.gmra.mrb[24].mxu0 %v14459_v31 }
  0x92   : > { %1684 = vmatprep.mubr.bf16.mxu0 %v14461_v32  ;;  %2331 = vmatmul.mubr.bf16.gmra.mrb[4].mxu1 %v14367_v51  ;;  %v750_v51 = vld [vmem:[%s14268_s3 + $0x2d0] sm:$0xff] }
  0x93   : > { %2340 = vmatprep.mubr.bf16.mxu1 %v14372_v53  ;;  %v753_v53 = vld [vmem:[%s14268_s3 + $0x2e8] sm:$0xff] }
  0x94   : > { %v14635_v8 = vpack.c.bf16 %v753_v53, %v750_v51  ;;  %v805_v51 = vld [vmem:[%s14268_s3 + $0x488] sm:$0xff] }
  0x99   : > { %1685 = vmatmul.mubr.bf16.gmra.mrb[28].mxu0 %v14481_v42 }
  0x9a   : > { %1694 = vmatprep.mubr.bf16.mxu0 %v14483_v44  ;;  %2341 = vmatmul.mubr.bf16.gmra.mrb[8].mxu1 %v14383_v59  ;;  %v756_v59 = vld [vmem:[%s14268_s3 + $0x300] sm:$0xff] }
  0x9b   : > { %2350 = vmatprep.mubr.bf16.mxu1 %v14385_v60  ;;  %v759_v60 = vld [vmem:[%s14268_s3 + $0x318] sm:$0xff] }
  0x9c   : > { %v14647_v14 = vpack.c.bf16 %v759_v60, %v756_v59  ;;  %v807_v59 = vld [vmem:[%s14268_s3 + $0x498] sm:$0xff] }
  0x9d   : > { %v811_v60 = vld [vmem:[%s14268_s3 + $0x4b8] sm:$0xff]  ;;  %v14758_v13 = vpack.c.bf16 %v807_v59, %v804_v7  ;;  %v13584_v7 = vld [vmem:[%s18728_s0 + $0x20] ss:$8 sps:$4 sm:$0xff]  }
  0x9e   : > { %v13589_v59 = vld [vmem:[%s18728_s0 + $0x34] ss:$8 sps:$4 sm:$0xff]  }
  0xa1   : > { %1695 = vmatmul.mubr.bf16.gmra.mrb[32].mxu0 %v14503_v55 }
  0xa2   : > { %1704 = vmatprep.mubr.bf16.mxu0 %v14505_v56  ;;  %2351 = vmatmul.mubr.bf16.gmra.mrb[12].mxu1 %v14393_v1  ;;  %v762_v1 = vld [vmem:[%s14268_s3 + $0x330] sm:$0xff] }
  0xa3   : > { %2360 = vmatprep.mubr.bf16.mxu1 %v14395_v2  ;;  %v765_v2 = vld [vmem:[%s14268_s3 + $0x348] sm:$0xff] }
  0xa4   : > { %v14662_v23 = vpack.c.bf16 %v765_v2, %v762_v1  ;;  %v14760_v1 = vpack.c.bf16 %v814_v12, %v811_v60  ;;  %v817_v2 = vld [vmem:[%s14268_s3 + $0x4e8] sm:$0xff] }
  0xa5   : > { %v13611_v60 = vld [vmem:[%s18726_s29 + $0x288] ss:$16 sps:$4 sm:$0xff]   ;;  %v13613_v12 = vld [vmem:[%s18726_s29 + $0x28c] ss:$16 sps:$4 sm:$0xff]  }
  0xa9   : > { %1705 = vmatmul.mubr.bf16.gmra.mrb[36].mxu0 %v14525_v5 }
  0xaa   : > { %1714 = vmatprep.mubr.bf16.mxu0 %v14527_v6  ;;  %2361 = vmatmul.mubr.bf16.gmra.mrb[16].mxu1 %v14409_v9  ;;  %v14664_v9 = vpack.c.bf16 %v772_v22, %v769_v21  ;;  %v14772_v22 = vpack.c.bf16 %v820_v16, %v817_v2  ;;  %v13593_v16 = vld [vmem:[%s18728_s0 + $0x40] ss:$8 sps:$4 sm:$0xff]  }
  0xab   : > { %2370 = vmatprep.mubr.bf16.mxu1 %v14411_v10  ;;  %v768_v10 = vld [vmem:[%s14268_s3 + $0x360] sm:$0xff] }
  0xb1   : > { %1715 = vmatmul.mubr.bf16.gmra.mrb[40].mxu0 %v14547_v17 }
  0xb2   : > { %1724 = vmatprep.mubr.bf16.mxu0 %v14549_v18  ;;  %2371 = vmatmul.mubr.bf16.gmra.mrb[20].mxu1 %v14431_v19  ;;  %v775_v19 = vld [vmem:[%s14268_s3 + $0x398] sm:$0xff] }
  0xb3   : > { %2380 = vmatprep.mubr.bf16.mxu1 %v14433_v20  ;;  %v14680_v20 = vpack.c.bf16 %v771_v24, %v768_v10  ;;  %v14682_v28 = vpack.c.bf16 %v778_v27, %v775_v19  ;;  %v823_v10 = vld [vmem:[%s14268_s3 + $0x518] sm:$0xff]  ;;  %v826_v24 = vld [vmem:[%s14268_s3 + $0x530] sm:$0xff]  ;;  %v829_v19 = vld [vmem:[%s14268_s3 + $0x548] sm:$0xff] }
  0xb4   : > { %v14784_v26 = vpack.c.bf16 %v826_v24, %v823_v10  ;;  %v832_v27 = vld [vmem:[%s14268_s3 + $0x560] sm:$0xff]  ;;  %v683_v10 = vld [vmem:[%s14268_s3 + $0xb8] sm:$0xff] }
  0xb5   : > { %v14796_v30 = vpack.c.bf16 %v832_v27, %v829_v19  ;;  %v13596_v24 = vld [vmem:[%s18728_s0 + $0x50] ss:$8 sps:$4 sm:$0xff]   ;;  %v689_v27 = vld [vmem:[%s14268_s3 + $0xe8] sm:$0xff] }
  0xb6   : > { %v686_v19 = vld [vmem:[%s14268_s3 + $0xd0] sm:$0xff] }
  0xb9   : > { %1725 = vmatmul.mubr.bf16.gmra.mrb[44].mxu0 %v14576_v33 }
  0xba   : > { %1734 = vmatprep.mubr.bf16.mxu0 %v14579_v35  ;;  %2381 = vmatmul.mubr.bf16.gmra.mrb[24].mxu1 %v14459_v31  ;;  %v780_v31 = vld [vmem:[%s14268_s3 + $0x3c0] sm:$0xff] }
  0xbb   : > { %2390 = vmatprep.mubr.bf16.mxu1 %v14461_v32  ;;  %v783_v32 = vld [vmem:[%s14268_s3 + $0x3d8] sm:$0xff] }
  0xbc   : > { %v14704_v45 = vpack.c.bf16 %v783_v32, %v780_v31 }
  0xc1   : > { %1735 = vmatmul.mubr.bf16.gmra.mrb[48].mxu0 %v14599_v48 }
  0xc2   : > { %1744 = vmatprep.mubr.bf16.mxu0 %v14601_v49  ;;  %2391 = vmatmul.mubr.bf16.gmra.mrb[28].mxu1 %v14481_v42  ;;  %v786_v42 = vld [vmem:[%s14268_s3 + $0x3f0] sm:$0xff] }
  0xc3   : > { %2400 = vmatprep.mubr.bf16.mxu1 %v14483_v44  ;;  %v789_v44 = vld [vmem:[%s14268_s3 + $0x408] sm:$0xff] }
  0xc4   : > { %v14716_v52 = vpack.c.bf16 %v789_v44, %v786_v42  ;;  %v841_v42 = vld [vmem:[%s14268_s3 + $0x5a8] sm:$0xff]  ;;  %v844_v44 = vld [vmem:[%s14268_s3 + $0x5c0] sm:$0xff] }
  0xc5   : > { %v14826_v50 = vpack.c.bf16 %v844_v44, %v841_v42  ;;  %v701_v42 = vld [vmem:[%s14268_s3 + $0x148] sm:$0xff] }
  0xc6   : > { %v14977_v44 = vpack.c.bf16 %v701_v42, %v698_v40  ;;  %v776_v42 = vld [vmem:[%s14268_s3 + $0x3a0] sm:$0xff] }
  0xc9   : > { %1745 = vmatmul.mubr.bf16.gmra.mrb[52].mxu0 %v14611_v58 }
  0xca   : > { %1754 = vmatprep.mubr.bf16.mxu0 %v14613_v61  ;;  %2401 = vmatmul.mubr.bf16.gmra.mrb[32].mxu1 %v14503_v55  ;;  %v792_v55 = vld [vmem:[%s14268_s3 + $0x420] sm:$0xff] }
  0xcb   : > { %2410 = vmatprep.mubr.bf16.mxu1 %v14505_v56  ;;  %v795_v56 = vld [vmem:[%s14268_s3 + $0x438] sm:$0xff] }
  0xcc   : > { %v14728_v43 = vpack.c.bf16 %v795_v56, %v792_v55  ;;  %v847_v55 = vld [vmem:[%s14268_s3 + $0x5d8] sm:$0xff]  ;;  %v850_v56 = vld [vmem:[%s14268_s3 + $0x5f0] sm:$0xff] }
  0xcd   : > { %v14838_v41 = vpack.c.bf16 %v850_v56, %v847_v55 }
  0xd1   : > { %1755 = vmatmul.mubr.bf16.gmra.mrb[56].mxu0 %v14623_v0 }
  0xd2   : > { %1764 = vmatprep.mubr.bf16.mxu0 %v14625_v3  ;;  %2411 = vmatmul.mubr.bf16.gmra.mrb[36].mxu1 %v14525_v5  ;;  %v13590_v5 = vld [vmem:[%s18726_s29 + $0x248] ss:$16 sps:$4 sm:$0xff]  }
  0xd3   : > { %2420 = vmatprep.mubr.bf16.mxu1 %v14527_v6  ;;  %v798_v6 = vld [vmem:[%s14268_s3 + $0x450] sm:$0xff] }
  0xd4   : > { %v14746_v53 = vpack.c.bf16 %v801_v63, %v798_v6  ;;  %v14092_v6 = vmov 0  }
  0xd9   : > { %1765 = vmatmul.mubr.bf16.gmra.mrb[60].mxu0 %v14635_v8 }
  0xda   : > { %1774 = vmatprep.mubr.bf16.mxu0 %v14637_v11  ;;  %2421 = vmatmul.mubr.bf16.gmra.mrb[40].mxu1 %v14547_v17  ;;  %v13592_v17 = vld [vmem:[%s18726_s29 + $0x24c] ss:$16 sps:$4 sm:$0xff]  }
  0xdb   : > { %2430 = vmatprep.mubr.bf16.mxu1 %v14549_v18  ;;  %v808_v18 = vld [vmem:[%s14268_s3 + $0x4a0] sm:$0xff]  ;;  %2645 = vmatprep.subr.bf16.mxu1 %v13592_v17 }
  0xdc   : > { %2646 = vmatpush1.bf16.msra.mxu1 %v13590_v5  ;;  %v14748_v4 = vpack.c.bf16 %v808_v18, %v805_v51  ;;  %v13575_v17 = vld [vmem:[%s18728_s0] ss:$8 sps:$4 sm:$0xff]   ;;  %v671_v51 = vld [vmem:[%s14268_s3 + $0x58] sm:$0xff] }
  0xdd   : > { %v13581_v18 = vld [vmem:[%s18728_s0 + $0x10] ss:$8 sps:$4 sm:$0xff]  }
  0xe1   : > { %1775 = vmatmul.mubr.bf16.gmra.mrb[64].mxu0 %v14647_v14 }
  0xe2   : > { %1784 = vmatprep.mubr.bf16.mxu0 %v14649_v15  ;;  %2431 = vmatmul.mubr.bf16.gmra.mrb[44].mxu1 %v14576_v33  ;;  %v810_v33 = vld [vmem:[%s14268_s3 + $0x4b0] sm:$0xff] }
  0xe3   : > { %2440 = vmatprep.mubr.bf16.mxu1 %v14579_v35  ;;  %v813_v35 = vld [vmem:[%s14268_s3 + $0x4c8] sm:$0xff] }
  0xe4   : > { %v14770_v21 = vpack.c.bf16 %v813_v35, %v810_v33  ;;  %v674_v33 = vld [vmem:[%s14268_s3 + $0x70] sm:$0xff]  ;;  %v677_v35 = vld [vmem:[%s14268_s3 + $0x88] sm:$0xff] }
  0xe5   : > { %v14902_v2 = vpack.c.bf16 %v677_v35, %v674_v33  ;;  %v13635_v33 = vld [vmem:[%s18728_s0 + $0xe0] ss:$8 sps:$4 sm:$0xff]   ;;  %v13637_v35 = vld [vmem:[%s18728_s0 + $0xe4] ss:$8 sps:$4 sm:$0xff]  }
  0xe9   : > { %1785 = vmatmul.mubr.bf16.gmra.mrb[68].mxu0 %v14662_v23 }
  0xea   : > { %1794 = vmatprep.mubr.bf16.mxu0 %v14664_v9  ;;  %2441 = vmatmul.mubr.bf16.gmra.mrb[48].mxu1 %v14599_v48  ;;  %v816_v48 = vld [vmem:[%s14268_s3 + $0x4e0] sm:$0xff] }
  0xeb   : > { %2450 = vmatprep.mubr.bf16.mxu1 %v14601_v49  ;;  %v819_v49 = vld [vmem:[%s14268_s3 + $0x4f8] sm:$0xff] }
  0xec   : > { %v14782_v25 = vpack.c.bf16 %v819_v49, %v816_v48  ;;  %v13598_v48 = vld [vmem:[%s18728_s0 + $0x54] ss:$8 sps:$4 sm:$0xff]   ;;  %v680_v49 = vld [vmem:[%s14268_s3 + $0xa0] sm:$0xff] }
  0xf1   : > { %1795 = vmatmul.mubr.bf16.gmra.mrb[72].mxu0 %v14680_v20 }
  0xf2   : > { %1804 = vmatprep.mubr.bf16.mxu0 %v14682_v28  ;;  %2451 = vmatmul.mubr.bf16.gmra.mrb[52].mxu1 %v14611_v58  ;;  %v822_v58 = vld [vmem:[%s14268_s3 + $0x510] sm:$0xff] }
  0xf3   : > { %2460 = vmatprep.mubr.bf16.mxu1 %v14613_v61  ;;  %v825_v61 = vld [vmem:[%s14268_s3 + $0x528] sm:$0xff] }
  0xf4   : > { %v14794_v29 = vpack.c.bf16 %v825_v61, %v822_v58  ;;  %v13602_v58 = vld [vmem:[%s18728_s0 + $0x60] ss:$8 sps:$4 sm:$0xff]   ;;  %v13607_v61 = vld [vmem:[%s18728_s0 + $0x74] ss:$8 sps:$4 sm:$0xff]  }
  0xf9   : > { %1805 = vmatmul.mubr.bf16.gmra.mrb[76].mxu0 %v14692_v37 }
  0xfa   : > { %1814 = vmatprep.mubr.bf16.mxu0 %v14694_v38  ;;  %2461 = vmatmul.mubr.bf16.gmra.mrb[56].mxu1 %v14623_v0  ;;  %v13599_v0 = vld [vmem:[%s18726_s29 + $0x268] ss:$16 sps:$4 sm:$0xff]  }
  0xfb   : > { %2470 = vmatprep.mubr.bf16.mxu1 %v14625_v3  ;;  %v13601_v3 = vld [vmem:[%s18726_s29 + $0x26c] ss:$16 sps:$4 sm:$0xff]  }
  0xfc   : > { %2647 = vmatprep.subr.bf16.mxu1 %v13601_v3  ;;  %v13608_v3 = vld [vmem:[%s18728_s0 + $0x80] ss:$8 sps:$4 sm:$0xff]  }
  0xfd   : > { %2648 = vmatpush1.bf16.msra.mxu1 %v13599_v0  ;;  %v13605_v0 = vld [vmem:[%s18728_s0 + $0x70] ss:$8 sps:$4 sm:$0xff]  }
  0xfe   : > { %2649 = vmatprep.subr.bf16.mxu1 %v13613_v12  ;;  %v13634_v12 = vld [vmem:[%s18728_s0 + $0x104] ss:$8 sps:$4 sm:$0xff]  }
 0x101   : > { %1815 = vmatmul.mubr.bf16.gmra.mrb[80].mxu0 %v14704_v45  ;;  %2650 = vmatpush1.bf16.msra.mxu1 %v13611_v60  ;;  %v13632_v60 = vld [vmem:[%s18728_s0 + $0x100] ss:$8 sps:$4 sm:$0xff]  }
 0x102   : > { %1824 = vmatprep.mubr.bf16.mxu0 %v14706_v46  ;;  %2471 = vmatmul.mubr.bf16.gmra.mrb[60].mxu1 %v14635_v8  ;;  %v831_v8 = vld [vmem:[%s14268_s3 + $0x558] sm:$0xff] }
 0x103   : > { %2480 = vmatprep.mubr.bf16.mxu1 %v14637_v11  ;;  %v838_v11 = vld [vmem:[%s14268_s3 + $0x590] sm:$0xff]  ;;  %v14812_v31 = vpack.c.bf16 %v831_v8, %v828_v34  ;;  %v692_v8 = vld [vmem:[%s14268_s3 + $0x100] sm:$0xff] }
 0x104   : > { %v14814_v32 = vpack.c.bf16 %v838_v11, %v835_v36  ;;  %v13616_v34 = vld [vmem:[%s18728_s0 + $0x94] ss:$8 sps:$4 sm:$0xff]   ;;  %v13614_v11 = vld [vmem:[%s18728_s0 + $0x90] ss:$8 sps:$4 sm:$0xff]  }
 0x105   : > { %v695_v36 = vld [vmem:[%s14268_s3 + $0x118] sm:$0xff] }
 0x109   : > { %1825 = vmatmul.mubr.bf16.gmra.mrb[84].mxu0 %v14716_v52 }
 0x10a   : > { %1834 = vmatprep.mubr.bf16.mxu0 %v14718_v54  ;;  %2481 = vmatmul.mubr.bf16.gmra.mrb[64].mxu1 %v14647_v14  ;;  %v840_v14 = vld [vmem:[%s14268_s3 + $0x5a0] sm:$0xff] }
 0x10b   : > { %2490 = vmatprep.mubr.bf16.mxu1 %v14649_v15  ;;  %v843_v15 = vld [vmem:[%s14268_s3 + $0x5b8] sm:$0xff] }
 0x10c   : > { %v14836_v57 = vpack.c.bf16 %v843_v15, %v840_v14  ;;  %v704_v14 = vld [vmem:[%s14268_s3 + $0x160] sm:$0xff]  ;;  %v13622_v15 = vld [vmem:[%s18728_s0 + $0xb4] ss:$8 sps:$4 sm:$0xff]  }
 0x111   : > { %1835 = vmatmul.mubr.bf16.gmra.mrb[88].mxu0 %v14728_v43 }
 0x112   : > { %1844 = vmatprep.mubr.bf16.mxu0 %v14730_v62  ;;  %2491 = vmatmul.mubr.bf16.gmra.mrb[68].mxu1 %v14662_v23  ;;  %v846_v23 = vld [vmem:[%s14268_s3 + $0x5d0] sm:$0xff] }
 0x113   : > { %2500 = vmatprep.mubr.bf16.mxu1 %v14664_v9  ;;  %v849_v9 = vld [vmem:[%s14268_s3 + $0x5e8] sm:$0xff] }
 0x114   : > { %v14846_v5 = vpack.c.bf16 %v849_v9, %v846_v23  ;;  %v710_v23 = vld [vmem:[%s14268_s3 + $0x190] sm:$0xff]  ;;  %v713_v9 = vld [vmem:[%s14268_s3 + $0x1a8] sm:$0xff] }
 0x119   : > { %1845 = vmatmul.mubr.bf16.gmra.mrb[92].mxu0 %v14746_v53 }
 0x11a   : > { %1854 = vmatprep.mubr.bf16.mxu0 %v14748_v4  ;;  %2501 = vmatmul.mubr.bf16.gmra.mrb[72].mxu1 %v14680_v20  ;;  %v662_v20 = vld [vmem:[%s14268_s3 + $0x10] sm:$0xff] }
 0x11b   : > { %2510 = vmatprep.mubr.bf16.mxu1 %v14682_v28  ;;  %v665_v28 = vld [vmem:[%s14268_s3 + $0x28] sm:$0xff] }
 0x11c   : > { %v14854_v63 = vpack.c.bf16 %v665_v28, %v662_v20  ;;  %v15009_v20 = vpack.c.bf16 %v713_v9, %v710_v23  ;;  %v716_v28 = vld [vmem:[%s14268_s3 + $0x1c0] sm:$0xff]  ;;  %v791_v9 = vld [vmem:[%s14268_s3 + $0x418] sm:$0xff] }
 0x11d   : > { %v788_v23 = vld [vmem:[%s14268_s3 + $0x400] sm:$0xff] }
 0x121   : > { %1855 = vmatmul.mubr.bf16.gmra.mrb[96].mxu0 %v14758_v13 }
 0x122   : > { %1864 = vmatprep.mubr.bf16.mxu0 %v14760_v1  ;;  %2511 = vmatmul.mubr.bf16.gmra.mrb[76].mxu1 %v14692_v37  ;;  %v13583_v37 = vld [vmem:[%s18728_s0 + $0x14] ss:$8 sps:$4 sm:$0xff]  }
 0x123   : > { %2520 = vmatprep.mubr.bf16.mxu1 %v14694_v38  ;;  %v668_v38 = vld [vmem:[%s14268_s3 + $0x40] sm:$0xff] }
 0x129   : > { %1865 = vmatmul.mubr.bf16.gmra.mrb[100].mxu0 %v14770_v21 }
 0x12a   : > { %1874 = vmatprep.mubr.bf16.mxu0 %v14772_v22  ;;  %2521 = vmatmul.mubr.bf16.gmra.mrb[80].mxu1 %v14704_v45  ;;  %v13586_v45 = vld [vmem:[%s18728_s0 + $0x24] ss:$8 sps:$4 sm:$0xff]  }
 0x12b   : > { %2530 = vmatprep.mubr.bf16.mxu1 %v14706_v46  ;;  %v14875_v46 = vpack.c.bf16 %v671_v51, %v668_v38  ;;  %v728_v51 = vld [vmem:[%s14268_s3 + $0x220] sm:$0xff] }
 0x131   : > { %1875 = vmatmul.mubr.bf16.gmra.mrb[104].mxu0 %v14782_v25 }
 0x132   : > { %1884 = vmatprep.mubr.bf16.mxu0 %v14784_v26  ;;  %2531 = vmatmul.mubr.bf16.gmra.mrb[84].mxu1 %v14716_v52  ;;  %v13587_v52 = vld [vmem:[%s18728_s0 + $0x30] ss:$8 sps:$4 sm:$0xff]  }
 0x133   : > { %2540 = vmatprep.mubr.bf16.mxu1 %v14718_v54  ;;  %v13595_v54 = vld [vmem:[%s18728_s0 + $0x44] ss:$8 sps:$4 sm:$0xff]  }
 0x139   : > { %1885 = vmatmul.mubr.bf16.gmra.mrb[108].mxu0 %v14794_v29 }
 0x13a   : > { %1894 = vmatprep.mubr.bf16.mxu0 %v14796_v30  ;;  %2541 = vmatmul.mubr.bf16.gmra.mrb[88].mxu1 %v14728_v43  ;;  %v13604_v43 = vld [vmem:[%s18728_s0 + $0x64] ss:$8 sps:$4 sm:$0xff]  }
 0x13b   : > { %2550 = vmatprep.mubr.bf16.mxu1 %v14730_v62  ;;  %v14923_v62 = vpack.c.bf16 %v683_v10, %v680_v49  ;;  %v752_v49 = vld [vmem:[%s14268_s3 + $0x2e0] sm:$0xff]  ;;  %v755_v10 = vld [vmem:[%s14268_s3 + $0x2f8] sm:$0xff] }
 0x141   : > { %1895 = vmatmul.mubr.bf16.gmra.mrb[112].mxu0 %v14812_v31 }
 0x142   : > { %1904 = vmatprep.mubr.bf16.mxu0 %v14814_v32  ;;  %2551 = vmatmul.mubr.bf16.gmra.mrb[92].mxu1 %v14746_v53  ;;  %v13610_v53 = vld [vmem:[%s18728_s0 + $0x84] ss:$8 sps:$4 sm:$0xff]  }
 0x143   : > { %2560 = vmatprep.mubr.bf16.mxu1 %v14748_v4  ;;  %v14944_v4 = vpack.c.bf16 %v689_v27, %v686_v19  ;;  %v15111_v19 = vpack.c.bf16 %v755_v10, %v752_v49  ;;  %v758_v27 = vld [vmem:[%s14268_s3 + $0x310] sm:$0xff] }
 0x144   : > { %v818_v10 = vld [vmem:[%s14268_s3 + $0x4f0] sm:$0xff] }
 0x149   : > { %1905 = vmatmul.mubr.bf16.gmra.mrb[116].mxu0 %v14824_v47 }
 0x14a   : > { %1914 = vmatprep.mubr.bf16.mxu0 %v14826_v50  ;;  %2561 = vmatmul.mubr.bf16.gmra.mrb[96].mxu1 %v14758_v13  ;;  %v13619_v13 = vld [vmem:[%s18728_s0 + $0xa4] ss:$8 sps:$4 sm:$0xff]  }
 0x14b   : > { %2570 = vmatprep.mubr.bf16.mxu1 %v14760_v1  ;;  %v14965_v1 = vpack.c.bf16 %v695_v36, %v692_v8  ;;  %v13644_v8 = vld [vmem:[%s18728_s0 + $0x120] ss:$8 sps:$4 sm:$0xff]   ;;  %v13646_v36 = vld [vmem:[%s18728_s0 + $0x124] ss:$8 sps:$4 sm:$0xff]  }
 0x151   : > { %1915 = vmatmul.mubr.bf16.gmra.mrb[120].mxu0 %v14836_v57 }
 0x152   : > { %1924 = vmatprep.mubr.bf16.mxu0 %v14838_v41  ;;  %2571 = vmatmul.mubr.bf16.gmra.mrb[100].mxu1 %v14770_v21  ;;  %v707_v21 = vld [vmem:[%s14268_s3 + $0x178] sm:$0xff] }
 0x153   : > { %2580 = vmatprep.mubr.bf16.mxu1 %v14772_v22  ;;  %v13620_v22 = vld [vmem:[%s18728_s0 + $0xb0] ss:$8 sps:$4 sm:$0xff]   ;;  %v15000_v56 = vpack.c.bf16 %v707_v21, %v704_v14 }
 0x154   : > { %v779_v14 = vld [vmem:[%s14268_s3 + $0x3b8] sm:$0xff] }
 0x155   : > { %v13647_v21 = vld [vmem:[%s18728_s0 + $0x130] ss:$8 sps:$4 sm:$0xff]  }
 0x159   : > { %1925 = vmatmul.mubr.bf16.gmra.mrb[124].mxu0 %v14846_v5 }
 0x15a   : > { %1967 = vmatprep.mubr.bf16.mxu0 %v14092_v6  ;;  %2581 = vmatmul.mubr.bf16.gmra.mrb[104].mxu1 %v14782_v25  ;;  %v13623_v25 = vld [vmem:[%s18726_s29 + $0x2ac] ss:$16 sps:$4 sm:$0x1f]  }
 0x15b   : > { %2590 = vmatprep.mubr.bf16.mxu1 %v14784_v26  ;;  %v13625_v26 = vld [vmem:[%s18726_s29 + $0x2a8] ss:$16 sps:$4 sm:$0x1f]   ;;  %11942 = vmatprep.subr.msk.bf16.mxu1 %vm1569_vm0, %v13623_v25  ;;  %v782_v25 = vld [vmem:[%s14268_s3 + $0x3d0] sm:$0xff] }
 0x15c   : > { %v1577_v55 = vsel %vm1569_vm0, %v13625_v26, 0  ;;  %v785_v26 = vld [vmem:[%s14268_s3 + $0x3e8] sm:$0xff] }
 0x15d   : > { %2652 = vmatpush1.bf16.msra.mxu1 %v1577_v55  ;;  %v15173_v55 = vpack.c.bf16 %v785_v26, %v782_v25 }
 0x15e   : > { %4280 = vmatprep.subr.bf16.mxu1 %v13634_v12  ;;  %v815_v12 = vld [vmem:[%s14268_s3 + $0x4d8] sm:$0xff] }
 0x161   : > { %11910 = vmatmul.mubr.msk.bf16.vlgmr.msra.gmra.mrb[0].mxu0 %vm1472_vm1, %v14854_v63 }
 0x162   : > { %3531 = vmatpush1.bf16.msra.mxu0 %v13575_v17  ;;  %1977 = vmatprep.mubr.bf16.mxu0 %v14092_v6  ;;  %v719_v17 = vld [vmem:[%s14268_s3 + $0x1d8] sm:$0xff] }
 0x163   : > { %3532 = vmatprep.subr.bf16.mxu0 %v13583_v37  ;;  %2591 = vmatmul.mubr.bf16.gmra.mrb[108].mxu1 %v14794_v29  ;;  %v13626_v29 = vld [vmem:[%s18728_s0 + $0xc0] ss:$8 sps:$4 sm:$0xff]  }
 0x164   : > { %2600 = vmatprep.mubr.bf16.mxu1 %v14796_v30  ;;  %v13628_v30 = vld [vmem:[%s18728_s0 + $0xc4] ss:$8 sps:$4 sm:$0xff]  }
 0x165   : > { %v725_v37 = vld [vmem:[%s14268_s3 + $0x208] sm:$0xff] }
 0x166   : > { %3533 = vmatpush1.bf16.msra.mxu0 %v13581_v18  ;;  %v734_v18 = vld [vmem:[%s14268_s3 + $0x250] sm:$0xff] }
 0x167   : > { %3534 = vmatprep.subr.bf16.mxu0 %v13586_v45  ;;  %v737_v45 = vld [vmem:[%s14268_s3 + $0x268] sm:$0xff] }
 0x169   : > { %11911 = vmatmul.mubr.msk.bf16.gmra.mrb[4].mxu0 %vm1472_vm1, %v14875_v46 }
 0x16a   : > { %1987 = vmatprep.mubr.bf16.mxu0 %v14092_v6  ;;  %3535 = vmatpush1.bf16.msra.mxu0 %v13584_v7  ;;  %v15057_v7 = vpack.c.bf16 %v737_v45, %v734_v18  ;;  %v806_v45 = vld [vmem:[%s14268_s3 + $0x490] sm:$0xff] }
 0x16b   : > { %3536 = vmatprep.subr.bf16.mxu0 %v13589_v59  ;;  %2601 = vmatmul.mubr.bf16.gmra.mrb[112].mxu1 %v14812_v31  ;;  %v15024_v31 = vpack.c.bf16 %v719_v17, %v716_v28  ;;  %v743_v59 = vld [vmem:[%s14268_s3 + $0x298] sm:$0xff]  ;;  %v15189_v28 = vpack.c.bf16 %v791_v9, %v788_v23  ;;  %v794_v17 = vld [vmem:[%s14268_s3 + $0x430] sm:$0xff] }
 0x16c   : > { %2610 = vmatprep.mubr.bf16.mxu1 %v14814_v32  ;;  %v722_v32 = vld [vmem:[%s14268_s3 + $0x1f0] sm:$0xff] }
 0x16d   : > { %v15033_v38 = vpack.c.bf16 %v725_v37, %v722_v32  ;;  %v797_v32 = vld [vmem:[%s14268_s3 + $0x448] sm:$0xff] }
 0x16e   : > { %3537 = vmatpush1.bf16.msra.mxu0 %v13587_v52  ;;  %v15199_v37 = vpack.c.bf16 %v797_v32, %v794_v17 }
 0x16f   : > { %3538 = vmatprep.subr.bf16.mxu0 %v13595_v54  ;;  %v746_v54 = vld [vmem:[%s14268_s3 + $0x2b0] sm:$0xff] }
 0x171   : > { %11912 = vmatmul.mubr.msk.bf16.gmra.mrb[8].mxu0 %vm1472_vm1, %v14902_v2 }
 0x172   : > { %1997 = vmatprep.mubr.bf16.mxu0 %v14092_v6  ;;  %3539 = vmatpush1.bf16.msra.mxu0 %v13593_v16  ;;  %v749_v16 = vld [vmem:[%s14268_s3 + $0x2c8] sm:$0xff] }
 0x173   : > { %3540 = vmatprep.subr.bf16.mxu0 %v13598_v48  ;;  %2611 = vmatmul.mubr.bf16.gmra.mrb[116].mxu1 %v14824_v47  ;;  %v13629_v47 = vld [vmem:[%s18728_s0 + $0xd0] ss:$8 sps:$4 sm:$0xff]   ;;  %v15089_v48 = vpack.c.bf16 %v749_v16, %v746_v54  ;;  %v2996_v16 = vlaneseq }
 0x174   : > { %2620 = vmatprep.mubr.bf16.mxu1 %v14826_v50  ;;  %v13631_v50 = vld [vmem:[%s18728_s0 + $0xd4] ss:$8 sps:$4 sm:$0xff]  }
 0x175   : > { %v2997_v49 = vshrl.u32 %v2996_v16, 7 }
 0x176   : > { %3541 = vmatpush1.bf16.msra.mxu0 %v13596_v24  ;;  %v13638_v24 = vld [vmem:[%s18728_s0 + $0x110] ss:$8 sps:$4 sm:$0xff]  }
 0x177   : > { %3542 = vmatprep.subr.bf16.mxu0 %v13604_v43  ;;  %v13640_v43 = vld [vmem:[%s18728_s0 + $0x114] ss:$8 sps:$4 sm:$0xff]  }
 0x179   : > { %11913 = vmatmul.mubr.msk.bf16.gmra.mrb[12].mxu0 %vm1472_vm1, %v14923_v62 }
 0x17a   : > { %2007 = vmatprep.mubr.bf16.mxu0 %v14092_v6  ;;  %3543 = vmatpush1.bf16.msra.mxu0 %v13602_v58  ;;  %v13641_v58 = vld [vmem:[%s18728_s0 + $0xf0] ss:$8 sps:$4 sm:$0xff]  }
 0x17b   : > { %3544 = vmatprep.subr.bf16.mxu0 %v13607_v61  ;;  %2621 = vmatmul.mubr.bf16.gmra.mrb[120].mxu1 %v14836_v57  ;;  %v731_v57 = vld [vmem:[%s14268_s3 + $0x238] sm:$0xff] }
 0x17c   : > { %2630 = vmatprep.mubr.bf16.mxu1 %v14838_v41  ;;  %v15048_v41 = vpack.c.bf16 %v731_v57, %v728_v51  ;;  %v13643_v61 = vld [vmem:[%s18728_s0 + $0xf4] ss:$8 sps:$4 sm:$0xff]   ;;  %v13653_v51 = vld [vmem:[%s18728_s0 + $0x150] ss:$8 sps:$4 sm:$0xff]  }
 0x17d   : > { %v13655_v57 = vld [vmem:[%s18728_s0 + $0x154] ss:$8 sps:$4 sm:$0xff]  }
 0x17e   : > { %3545 = vmatpush1.bf16.msra.mxu0 %v13605_v0  ;;  %v761_v0 = vld [vmem:[%s14268_s3 + $0x328] sm:$0xff] }
 0x17f   : > { %3546 = vmatprep.subr.bf16.mxu0 %v13610_v53  ;;  %v15121_v53 = vpack.c.bf16 %v761_v0, %v758_v27  ;;  %v15258_v27 = vsub.s32 1, %v2997_v49 }
 0x181   : > { %11914 = vmatmul.mubr.msk.bf16.gmra.mrb[16].mxu0 %vm1472_vm1, %v14944_v4 }
 0x182   : > { %2017 = vmatprep.mubr.bf16.mxu0 %v14092_v6  ;;  %3547 = vmatpush1.bf16.msra.mxu0 %v13608_v3  ;;  %v764_v3 = vld [vmem:[%s14268_s3 + $0x340] sm:$0xff] }
 0x183   : > { %3548 = vmatprep.subr.bf16.mxu0 %v13616_v34  ;;  %2631 = vmatmul.mubr.bf16.gmra.mrb[124].mxu1 %v14846_v5  ;;  %v740_v5 = vld [vmem:[%s14268_s3 + $0x280] sm:$0xff]  ;;  %v767_v34 = vld [vmem:[%s14268_s3 + $0x358] sm:$0xff] }
 0x184   : > { %2673 = vmatprep.mubr.bf16.mxu1 %v14092_v6  ;;  %v15079_v52 = vpack.c.bf16 %v743_v59, %v740_v5  ;;  %v809_v5 = vld [vmem:[%s14268_s3 + $0x4a8] sm:$0xff] }
 0x185   : > { %v15225_v59 = vpack.c.bf16 %v809_v5, %v806_v45 }
 0x186   : > { %3549 = vmatpush1.bf16.msra.mxu0 %v13614_v11  ;;  %v15137_v11 = vpack.c.bf16 %v767_v34, %v764_v3  ;;  %v824_v3 = vld [vmem:[%s14268_s3 + $0x520] sm:$0xff] }
 0x187   : > { %3550 = vmatprep.subr.bf16.mxu0 %v13619_v13  ;;  %v770_v13 = vld [vmem:[%s14268_s3 + $0x370] sm:$0xff] }
 0x189   : > { %11915 = vmatmul.mubr.msk.bf16.gmra.mrb[20].mxu0 %vm1472_vm1, %v14965_v1 }
 0x18a   : > { %2027 = vmatprep.mubr.bf16.mxu0 %v14092_v6  ;;  %3551 = vmatpush1.bf16.msra.mxu0 %v13617_v39  ;;  %v773_v39 = vld [vmem:[%s14268_s3 + $0x388] sm:$0xff] }
 0x18b   : > { %3552 = vmatprep.subr.bf16.mxu0 %v13622_v15  ;;  %11943 = vmatmul.mubr.msk.bf16.vlgmr.msra.gmra.mrb[0].mxu1 %vm1472_vm1, %v14854_v63  ;;  %v15147_v40 = vpack.c.bf16 %v773_v39, %v770_v13  ;;  %v15163_v15 = vpack.c.bf16 %v779_v14, %v776_v42  ;;  %v13661_v13 = vld [vmem:[%s18728_s0 + $0x174] ss:$8 sps:$4 sm:$0xff]  }
 0x18c   : > { %2683 = vmatprep.mubr.bf16.mxu1 %v14092_v6  ;;  %4281 = vmatpush1.bf16.msra.mxu1 %v13632_v60  ;;  %v812_v60 = vld [vmem:[%s14268_s3 + $0x4c0] sm:$0xff] }
 0x18d   : > { %4282 = vmatprep.subr.bf16.mxu1 %v13640_v43  ;;  %v15241_v54 = vpack.c.bf16 %v815_v12, %v812_v60 }
 0x18e   : > { %3553 = vmatpush1.bf16.msra.mxu0 %v13620_v22  ;;  %v13649_v22 = vld [vmem:[%s18728_s0 + $0x134] ss:$8 sps:$4 sm:$0xff]  }
 0x18f   : > { %3554 = vmatprep.subr.bf16.mxu0 %v13628_v30  ;;  %v13652_v30 = vld [vmem:[%s18728_s0 + $0x144] ss:$8 sps:$4 sm:$0xff]  }
 0x190   : > { %4283 = vmatpush1.bf16.msra.mxu1 %v13638_v24  ;;  %v821_v24 = vld [vmem:[%s14268_s3 + $0x508] sm:$0xff] }
 0x191   : > { %11916 = vmatmul.mubr.msk.bf16.gmra.mrb[24].mxu0 %vm1472_vm1, %v14977_v44  ;;  %4284 = vmatprep.subr.bf16.mxu1 %v13646_v36  ;;  %v15251_v43 = vpack.c.bf16 %v821_v24, %v818_v10  ;;  %v13659_v36 = vld [vmem:[%s18728_s0 + $0x170] ss:$8 sps:$4 sm:$0xff]  }
 0x192   : > { %2037 = vmatprep.mubr.bf16.mxu0 %v14092_v6  ;;  %3555 = vmatpush1.bf16.msra.mxu0 %v13626_v29  ;;  %v13650_v29 = vld [vmem:[%s18728_s0 + $0x140] ss:$8 sps:$4 sm:$0xff]  }
 0x193   : > { %3556 = vmatprep.subr.bf16.mxu0 %v13631_v50  ;;  %11944 = vmatmul.mubr.msk.bf16.gmra.mrb[4].mxu1 %vm1472_vm1, %v14875_v46  ;;  %v803_v50 = vld [vmem:[%s14268_s3 + $0x478] sm:$0xff] }
 0x194   : > { %2693 = vmatprep.mubr.bf16.mxu1 %v14092_v6  ;;  %4285 = vmatpush1.bf16.msra.mxu1 %v13644_v8  ;;  %v827_v8 = vld [vmem:[%s14268_s3 + $0x538] sm:$0xff] }
 0x195   : > { %4286 = vmatprep.subr.bf16.mxu1 %v13649_v22 }
 0x196   : > { %3557 = vmatpush1.bf16.msra.mxu0 %v13629_v47  ;;  %v800_v47 = vld [vmem:[%s14268_s3 + $0x460] sm:$0xff] }
 0x197   : > { %3558 = vmatprep.subr.bf16.mxu0 %v13637_v35  ;;  %v15215_v18 = vpack.c.bf16 %v803_v50, %v800_v47  ;;  %v13658_v35 = vld [vmem:[%s18728_s0 + $0x164] ss:$8 sps:$4 sm:$0xff]   ;;  %v830_v47 = vld [vmem:[%s14268_s3 + $0x550] sm:$0xff] }
 0x198   : > { %4287 = vmatpush1.bf16.msra.mxu1 %v13647_v21  ;;  %v15281_v21 = vpack.c.bf16 %v827_v8, %v824_v3  ;;  %v833_v50 = vld [vmem:[%s14268_s3 + $0x568] sm:$0xff]  ;;  %v836_v3 = vld [vmem:[%s14268_s3 + $0x580] sm:$0xff]  ;;  %v839_v8 = vld [vmem:[%s14268_s3 + $0x598] sm:$0xff] }
 0x199   : > { %11917 = vmatmul.mubr.msk.bf16.gmra.mrb[28].mxu0 %vm1472_vm1, %v15000_v56  ;;  %4288 = vmatprep.subr.bf16.mxu1 %v13652_v30  ;;  %v15299_v12 = vpack.c.bf16 %v833_v50, %v830_v47 }
 0x19a   : > { %2047 = vmatprep.mubr.bf16.mxu0 %v14092_v6  ;;  %3559 = vmatpush1.bf16.msra.mxu0 %v13635_v33  ;;  %v13656_v33 = vld [vmem:[%s18728_s0 + $0x160] ss:$8 sps:$4 sm:$0xff]  }
 0x19b   : > { %11945 = vmatmul.mubr.msk.bf16.gmra.mrb[8].mxu1 %vm1472_vm1, %v14902_v2  ;;  %3560 = vmatprep.subr.bf16.mxu0 %v13643_v61  ;;  %v2994_v61 = vld [vmem:[%s18729_s2] sm:$0x3] }
 0x19c   : > { %2703 = vmatprep.mubr.bf16.mxu1 %v14092_v6  ;;  %4289 = vmatpush1.bf16.msra.mxu1 %v13650_v29  ;;  %v15270_v34 = vrot.slane %v2994_v61, %v15258_v27 }
 0x19d   : > { %4290 = vmatprep.subr.bf16.mxu1 %v13655_v57 }
 0x19e   : > { %3561 = vmatpush1.bf16.msra.mxu0 %v13641_v58  ;;  %v15253_v58 = vsub.s32 0, %v2997_v49 }
 0x1a0   : > { %4291 = vmatpush1.bf16.msra.mxu1 %v13653_v51  ;;  %v15266_v0 = vrot.slane %v2994_v61, %v15253_v58 }
 0x1a1   : > { %11918 = vmatmul.mubr.msk.bf16.gmra.mrb[32].mxu0 %vm1472_vm1, %v15009_v20  ;;  %4292 = vmatprep.subr.bf16.mxu1 %v13658_v35 }
 0x1a2   : > { %2057 = vmatprep.mubr.bf16.mxu0 %v14092_v6 }
 0x1a3   : > { %11946 = vmatmul.mubr.msk.bf16.gmra.mrb[12].mxu1 %vm1472_vm1, %v14923_v62 }
 0x1a4   : > { %2713 = vmatprep.mubr.bf16.mxu1 %v14092_v6  ;;  %4293 = vmatpush1.bf16.msra.mxu1 %v13656_v33 }
 0x1a5   : > { %4294 = vmatprep.subr.bf16.mxu1 %v13661_v13 }
 0x1a8   : > { %4295 = vmatpush1.bf16.msra.mxu1 %v13659_v36 }
 0x1a9   : > { %11919 = vmatmul.mubr.msk.bf16.gmra.mrb[36].mxu0 %vm1472_vm1, %v15024_v31 }
 0x1aa   : > { %2067 = vmatprep.mubr.bf16.mxu0 %v14092_v6 }
 0x1ab   : > { %11947 = vmatmul.mubr.msk.bf16.gmra.mrb[16].mxu1 %vm1472_vm1, %v14944_v4 }
 0x1ac   : > { %2723 = vmatprep.mubr.bf16.mxu1 %v14092_v6 }
 0x1b1   : > { %11920 = vmatmul.mubr.msk.bf16.gmra.mrb[40].mxu0 %vm1472_vm1, %v15033_v38 }
 0x1b2   : > { %2077 = vmatprep.mubr.bf16.mxu0 %v14092_v6 }
 0x1b3   : > { %11948 = vmatmul.mubr.msk.bf16.gmra.mrb[20].mxu1 %vm1472_vm1, %v14965_v1 }
 0x1b4   : > { %2733 = vmatprep.mubr.bf16.mxu1 %v14092_v6 }
 0x1b9   : > { %11921 = vmatmul.mubr.msk.bf16.gmra.mrb[44].mxu0 %vm1472_vm1, %v15048_v41 }
 0x1ba   : > { %2087 = vmatprep.mubr.bf16.mxu0 %v14092_v6 }
 0x1bb   : > { %11949 = vmatmul.mubr.msk.bf16.gmra.mrb[24].mxu1 %vm1472_vm1, %v14977_v44 }
 0x1bc   : > { %2743 = vmatprep.mubr.bf16.mxu1 %v14092_v6 }
 0x1c1   : > { %11922 = vmatmul.mubr.msk.bf16.gmra.mrb[48].mxu0 %vm1472_vm1, %v15057_v7 }
 0x1c2   : > { %2097 = vmatprep.mubr.bf16.mxu0 %v14092_v6 }
 0x1c3   : > { %11950 = vmatmul.mubr.msk.bf16.gmra.mrb[28].mxu1 %vm1472_vm1, %v15000_v56 }
 0x1c4   : > { %2753 = vmatprep.mubr.bf16.mxu1 %v14092_v6 }
 0x1c9   : > { %11923 = vmatmul.mubr.msk.bf16.gmra.mrb[52].mxu0 %vm1472_vm1, %v15079_v52 }
 0x1ca   : > { %2107 = vmatprep.mubr.bf16.mxu0 %v14092_v6 }
 0x1cb   : > { %11951 = vmatmul.mubr.msk.bf16.gmra.mrb[32].mxu1 %vm1472_vm1, %v15009_v20 }
 0x1cc   : > { %2763 = vmatprep.mubr.bf16.mxu1 %v14092_v6 }
 0x1d1   : > { %11924 = vmatmul.mubr.msk.bf16.gmra.mrb[56].mxu0 %vm1472_vm1, %v15089_v48 }
 0x1d2   : > { %2117 = vmatprep.mubr.bf16.mxu0 %v14092_v6 }
 0x1d3   : > { %11952 = vmatmul.mubr.msk.bf16.gmra.mrb[36].mxu1 %vm1472_vm1, %v15024_v31 }
 0x1d4   : > { %2773 = vmatprep.mubr.bf16.mxu1 %v14092_v6 }
 0x1d9   : > { %11925 = vmatmul.mubr.msk.bf16.gmra.mrb[60].mxu0 %vm1472_vm1, %v15111_v19 }
 0x1da   : > { %2127 = vmatprep.mubr.bf16.mxu0 %v14092_v6 }
 0x1db   : > { %11953 = vmatmul.mubr.msk.bf16.gmra.mrb[40].mxu1 %vm1472_vm1, %v15033_v38 }
 0x1dc   : > { %2783 = vmatprep.mubr.bf16.mxu1 %v14092_v6 }
 0x1e1   : > { %11926 = vmatmul.mubr.msk.bf16.gmra.mrb[64].mxu0 %vm1472_vm1, %v15121_v53 }
 0x1e2   : > { %2137 = vmatprep.mubr.bf16.mxu0 %v14092_v6 }
 0x1e3   : > { %11954 = vmatmul.mubr.msk.bf16.gmra.mrb[44].mxu1 %vm1472_vm1, %v15048_v41 }
 0x1e4   : > { %2793 = vmatprep.mubr.bf16.mxu1 %v14092_v6 }
 0x1e9   : > { %11927 = vmatmul.mubr.msk.bf16.gmra.mrb[68].mxu0 %vm1472_vm1, %v15137_v11 }
 0x1ea   : > { %2147 = vmatprep.mubr.bf16.mxu0 %v14092_v6 }
 0x1eb   : > { %11955 = vmatmul.mubr.msk.bf16.gmra.mrb[48].mxu1 %vm1472_vm1, %v15057_v7 }
 0x1ec   : > { %2803 = vmatprep.mubr.bf16.mxu1 %v14092_v6 }
 0x1f1   : > { %11928 = vmatmul.mubr.msk.bf16.gmra.mrb[72].mxu0 %vm1472_vm1, %v15147_v40 }
 0x1f2   : > { %2157 = vmatprep.mubr.bf16.mxu0 %v14092_v6 }
 0x1f3   : > { %11956 = vmatmul.mubr.msk.bf16.gmra.mrb[52].mxu1 %vm1472_vm1, %v15079_v52 }
 0x1f4   : > { %2813 = vmatprep.mubr.bf16.mxu1 %v14092_v6 }
 0x1f9   : > { %11929 = vmatmul.mubr.msk.bf16.gmra.mrb[76].mxu0 %vm1472_vm1, %v15163_v15 }
 0x1fa   : > { %2167 = vmatprep.mubr.bf16.mxu0 %v14092_v6 }
 0x1fb   : > { %11957 = vmatmul.mubr.msk.bf16.gmra.mrb[56].mxu1 %vm1472_vm1, %v15089_v48 }
 0x1fc   : > { %2823 = vmatprep.mubr.bf16.mxu1 %v14092_v6 }
 0x201   : > { %11930 = vmatmul.mubr.msk.bf16.gmra.mrb[80].mxu0 %vm1472_vm1, %v15173_v55 }
 0x202   : > { %2177 = vmatprep.mubr.bf16.mxu0 %v14092_v6 }
 0x203   : > { %11958 = vmatmul.mubr.msk.bf16.gmra.mrb[60].mxu1 %vm1472_vm1, %v15111_v19 }
 0x204   : > { %2833 = vmatprep.mubr.bf16.mxu1 %v14092_v6 }
 0x209   : > { %11931 = vmatmul.mubr.msk.bf16.gmra.mrb[84].mxu0 %vm1472_vm1, %v15189_v28 }
 0x20a   : > { %2187 = vmatprep.mubr.bf16.mxu0 %v14092_v6 }
 0x20b   : > { %11959 = vmatmul.mubr.msk.bf16.gmra.mrb[64].mxu1 %vm1472_vm1, %v15121_v53 }
 0x20c   : > { %2843 = vmatprep.mubr.bf16.mxu1 %v14092_v6 }
 0x211   : > { %11932 = vmatmul.mubr.msk.bf16.gmra.mrb[88].mxu0 %vm1472_vm1, %v15199_v37 }
 0x212   : > { %2197 = vmatprep.mubr.bf16.mxu0 %v14092_v6 }
 0x213   : > { %11960 = vmatmul.mubr.msk.bf16.gmra.mrb[68].mxu1 %vm1472_vm1, %v15137_v11 }
 0x214   : > { %2853 = vmatprep.mubr.bf16.mxu1 %v14092_v6 }
 0x219   : > { %11933 = vmatmul.mubr.msk.bf16.gmra.mrb[92].mxu0 %vm1472_vm1, %v15215_v18 }
 0x21a   : > { %2207 = vmatprep.mubr.bf16.mxu0 %v14092_v6 }
 0x21b   : > { %11961 = vmatmul.mubr.msk.bf16.gmra.mrb[72].mxu1 %vm1472_vm1, %v15147_v40 }
 0x21c   : > { %2863 = vmatprep.mubr.bf16.mxu1 %v14092_v6 }
 0x221   : > { %11934 = vmatmul.mubr.msk.bf16.gmra.mrb[96].mxu0 %vm1472_vm1, %v15225_v59 }
 0x222   : > { %2217 = vmatprep.mubr.bf16.mxu0 %v14092_v6 }
 0x223   : > { %11962 = vmatmul.mubr.msk.bf16.gmra.mrb[76].mxu1 %vm1472_vm1, %v15163_v15 }
 0x224   : > { %2873 = vmatprep.mubr.bf16.mxu1 %v14092_v6 }
 0x229   : > { %11935 = vmatmul.mubr.msk.bf16.gmra.mrb[100].mxu0 %vm1472_vm1, %v15241_v54 }
 0x22a   : > { %2227 = vmatprep.mubr.bf16.mxu0 %v14092_v6 }
 0x22b   : > { %11963 = vmatmul.mubr.msk.bf16.gmra.mrb[80].mxu1 %vm1472_vm1, %v15173_v55 }
 0x22c   : > { %2883 = vmatprep.mubr.bf16.mxu1 %v14092_v6 }
 0x231   : > { %11936 = vmatmul.mubr.msk.bf16.gmra.mrb[104].mxu0 %vm1472_vm1, %v15251_v43 }
 0x232   : > { %2237 = vmatprep.mubr.bf16.mxu0 %v14092_v6 }
 0x233   : > { %11964 = vmatmul.mubr.msk.bf16.gmra.mrb[84].mxu1 %vm1472_vm1, %v15189_v28 }
 0x234   : > { %v1969_v39 = vpop.f32.mrb[0].mxu0  ;;  %2893 = vmatprep.mubr.bf16.mxu1 %v14092_v6 }
 0x235   : > { %v3006_v42 = vadd.f32 %v15266_v0, %v1969_v39  ;;  %v1971_v14 = vpop.f32.mrb[1].mxu0  ;;  %v13662_v39 = vld [vmem:[%s18728_s0 + $0x180] ss:$8 sps:$4 sm:$0xff]  }
 0x236   : > { %v3007_v22 = vadd.f32 %v15270_v34, %v1971_v14  ;;  %v1973_v25 = vpop.f32.mrb[2].mxu0 }
 0x237   : > { %v3008_v26 = vadd.f32 %v15266_v0, %v1973_v25  ;;  %v1975_v23 = vpop.f32.mrb[3].mxu0  ;;  %v3134_v29 = vmax.f32 %v3006_v42, 0.0  ;;  %v13664_v42 = vld [vmem:[%s18728_s0 + $0x184] ss:$8 sps:$4 sm:$0xff]  }
 0x238   : > { %v3009_v9 = vadd.f32 %v15270_v34, %v1975_v23  ;;  %v3135_v17 = vmax.f32 %v3007_v22, 0.0  ;;  %4296 = vmatprep.subr.bf16.mxu1 %v13664_v42 }
 0x239   : > { %v3136_v30 = vmax.f32 %v3008_v26, 0.0  ;;  %11937 = vmatmul.mubr.msk.bf16.gmra.mrb[108].mxu0 %vm1472_vm1, %v15281_v21  ;;  %4297 = vmatpush1.bf16.msra.mxu1 %v13662_v39 }
 0x23a   : > { %v3137_v32 = vmax.f32 %v3009_v9, 0.0  ;;  %2247 = vmatprep.mubr.bf16.mxu0 %v14092_v6  ;;  %v15323_v9 = vpack.c.bf16 %v839_v8, %v836_v3 }
 0x23b   : > { %v15294_v51 = vpack.c.bf16 %v3136_v30, %v3134_v29  ;;  %11965 = vmatmul.mubr.msk.bf16.gmra.mrb[88].mxu1 %vm1472_vm1, %v15199_v37 }
 0x23c   : > { %v1979_v57 = vpop.f32.mrb[4].mxu0  ;;  %v15296_v45 = vpack.c.bf16 %v3137_v32, %v3135_v17  ;;  %2903 = vmatprep.mubr.bf16.mxu1 %v14092_v6 }
 0x23d   : > { %v3010_v5 = vadd.f32 %v15266_v0, %v1979_v57  ;;  %v1981_v60 = vpop.f32.mrb[5].mxu0 }
 0x23e   : > { %v3011_v33 = vadd.f32 %v15270_v34, %v1981_v60  ;;  %v1983_v35 = vpop.f32.mrb[6].mxu0 }
 0x23f   : > { %v3012_v16 = vadd.f32 %v15266_v0, %v1983_v35  ;;  %v1985_v49 = vpop.f32.mrb[7].mxu0  ;;  %v3138_v24 = vmax.f32 %v3010_v5, 0.0  ;;  %v845_v35 = vld [vmem:[%s14268_s3 + $0x5c8] sm:$0xff] }
 0x240   : > { %v3013_v10 = vadd.f32 %v15270_v34, %v1985_v49  ;;  %v3139_v36 = vmax.f32 %v3011_v33, 0.0  ;;  %v842_v33 = vld [vmem:[%s14268_s3 + $0x5b0] sm:$0xff] }
 0x241   : > { %v3140_v61 = vmax.f32 %v3012_v16, 0.0  ;;  %11938 = vmatmul.mubr.msk.bf16.gmra.mrb[112].mxu0 %vm1472_vm1, %v15299_v12  ;;  %v15341_v3 = vpack.c.bf16 %v845_v35, %v842_v33 }
 0x242   : > { %v3141_v13 = vmax.f32 %v3013_v10, 0.0  ;;  %2257 = vmatprep.mubr.bf16.mxu0 %v14092_v6 }
 0x243   : > { %v15318_v14 = vpack.c.bf16 %v3140_v61, %v3138_v24  ;;  %18730 = vst [vmem:[#allocation7_spill] sm:$0xff] %v15341_v3  ;;  %11966 = vmatmul.mubr.msk.bf16.gmra.mrb[92].mxu1 %vm1472_vm1, %v15215_v18 }
 0x244   : > { %v1989_v22 = vpop.f32.mrb[8].mxu0  ;;  %v15320_v25 = vpack.c.bf16 %v3141_v13, %v3139_v36  ;;  %2913 = vmatprep.mubr.bf16.mxu1 %v14092_v6 }
 0x245   : > { %v3014_v26 = vadd.f32 %v15266_v0, %v1989_v22  ;;  %v1991_v23 = vpop.f32.mrb[9].mxu0 }
 0x246   : > { %v3015_v29 = vadd.f32 %v15270_v34, %v1991_v23  ;;  %v1993_v30 = vpop.f32.mrb[10].mxu0  ;;  %v848_v23 = vld [vmem:[%s14268_s3 + $0x5e0] sm:$0xff] }
 0x247   : > { %v3016_v17 = vadd.f32 %v15266_v0, %v1993_v30  ;;  %v1995_v32 = vpop.f32.mrb[11].mxu0  ;;  %v3142_v50 = vmax.f32 %v3014_v26, 0.0 }
 0x248   : > { %v3017_v47 = vadd.f32 %v15270_v34, %v1995_v32  ;;  %v3143_v5 = vmax.f32 %v3015_v29, 0.0  ;;  %v851_v29 = vld [vmem:[%s14268_s3 + $0x5f8] sm:$0xff]  ;;  %s12506_s3 = sshll.u32 (%p14223_p4), %s18776_s21, 9 }
 0x249   : > { %v3144_v57 = vmax.f32 %v3016_v17, 0.0  ;;  %11939 = vmatmul.mubr.msk.bf16.gmra.mrb[116].mxu0 %vm1472_vm1, %v15323_v9  ;;  %v13665_v32 = vld [vmem:[%s18728_s0 + $0x190] ss:$8 sps:$4 sm:$0xff]   ;;  %v15365_v35 = vpack.c.bf16 %v851_v29, %v848_v23  ;;  %s18485_s4 = scalar_lea.vmem (%p14223_p4), %s18777_s26, %s12506_s3  }
 0x24a   : > { %v3145_v60 = vmax.f32 %v3017_v47, 0.0  ;;  %2267 = vmatprep.mubr.bf16.mxu0 %v14092_v6  ;;  %v13667_v47 = vld [vmem:[%s18728_s0 + $0x194] ss:$8 sps:$4 sm:$0xff]  }
 0x24b   : > { %v15336_v16 = vpack.c.bf16 %v3144_v57, %v3142_v50  ;;  %4298 = vmatprep.subr.bf16.mxu1 %v13667_v47  ;;  %18731 = vst [vmem:[#allocation8_spill] sm:$0xff] %v15365_v35  ;;  %11967 = vmatmul.mubr.msk.bf16.gmra.mrb[96].mxu1 %vm1472_vm1, %v15225_v59 }
 0x24c   : > { %v1999_v49 = vpop.f32.mrb[12].mxu0  ;;  %v15338_v10 = vpack.c.bf16 %v3145_v60, %v3143_v5  ;;  %4299 = vmatpush1.bf16.msra.mxu1 %v13665_v32  ;;  %2923 = vmatprep.mubr.bf16.mxu1 %v14092_v6 }
 0x24d   : > { %v3018_v24 = vadd.f32 %v15266_v0, %v1999_v49  ;;  %v2001_v61 = vpop.f32.mrb[13].mxu0 }
 0x24e   : > { %v3019_v8 = vadd.f32 %v15270_v34, %v2001_v61  ;;  %v2003_v36 = vpop.f32.mrb[14].mxu0 }
 0x24f   : > { %v3020_v13 = vadd.f32 %v15266_v0, %v2003_v36  ;;  %v2005_v39 = vpop.f32.mrb[15].mxu0  ;;  %v3146_v22 = vmax.f32 %v3018_v24, 0.0 }
 0x250   : > { %v3021_v42 = vadd.f32 %v15270_v34, %v2005_v39  ;;  %v3147_v30 = vmax.f32 %v3019_v8, 0.0 }
 0x251   : > { %v3148_v26 = vmax.f32 %v3020_v13, 0.0  ;;  %11940 = vmatmul.mubr.msk.bf16.gmra.mrb[120].mxu0 %vm1472_vm1, %v15341_v3 }
 0x252   : > { %v3149_v17 = vmax.f32 %v3021_v42, 0.0  ;;  %2277 = vmatprep.mubr.bf16.mxu0 %v14092_v6 }
 0x253   : > { %v15360_v50 = vpack.c.bf16 %v3148_v26, %v3146_v22  ;;  %11968 = vmatmul.mubr.msk.bf16.gmra.mrb[100].mxu1 %vm1472_vm1, %v15241_v54 }
 0x254   : > { %v2009_v57 = vpop.f32.mrb[16].mxu0  ;;  %v15362_v5 = vpack.c.bf16 %v3149_v17, %v3147_v30  ;;  %2933 = vmatprep.mubr.bf16.mxu1 %v14092_v6 }
 0x255   : > { %v3022_v60 = vadd.f32 %v15266_v0, %v2009_v57  ;;  %v2011_v33 = vpop.f32.mrb[17].mxu0 }
 0x256   : > { %v3023_v49 = vadd.f32 %v15270_v34, %v2011_v33  ;;  %v2013_v24 = vpop.f32.mrb[18].mxu0 }
 0x257   : > { %v3024_v61 = vadd.f32 %v15266_v0, %v2013_v24  ;;  %v2015_v8 = vpop.f32.mrb[19].mxu0  ;;  %v3150_v13 = vmax.f32 %v3022_v60, 0.0 }
 0x258   : > { %v3025_v36 = vadd.f32 %v15270_v34, %v2015_v8  ;;  %v3151_v42 = vmax.f32 %v3023_v49, 0.0  ;;  %v13668_v8 = vld [vmem:[%s18728_s0 + $0x1a0] ss:$8 sps:$4 sm:$0xff]  }
 0x259   : > { %v3152_v39 = vmax.f32 %v3024_v61, 0.0  ;;  %11941 = vmatmul.mubr.msk.bf16.gmra.mrb[124].mxu0 %vm1472_vm1, %v15365_v35 }
 0x25a   : > { %v3153_v22 = vmax.f32 %v3025_v36, 0.0  ;;  %3562 = vmatprep.mubr.bf16.mxu0 %v15296_v45  ;;  %v13670_v36 = vld [vmem:[%s18728_s0 + $0x1a4] ss:$8 sps:$4 sm:$0xff]  }
 0x25b   : > { %v15376_v26 = vpack.c.bf16 %v3152_v39, %v3150_v13  ;;  %4300 = vmatprep.subr.bf16.mxu1 %v13670_v36  ;;  %11969 = vmatmul.mubr.msk.bf16.gmra.mrb[104].mxu1 %vm1472_vm1, %v15251_v43 }
 0x25c   : > { %v2019_v23 = vpop.f32.mrb[20].mxu0  ;;  %v15378_v29 = vpack.c.bf16 %v3153_v22, %v3151_v42  ;;  %4301 = vmatpush1.bf16.msra.mxu1 %v13668_v8  ;;  %2943 = vmatprep.mubr.bf16.mxu1 %v14092_v6 }
 0x25d   : > { %v3026_v30 = vadd.f32 %v15266_v0, %v2019_v23  ;;  %v2021_v17 = vpop.f32.mrb[21].mxu0 }
 0x25e   : > { %v3027_v32 = vadd.f32 %v15270_v34, %v2021_v17  ;;  %v2023_v47 = vpop.f32.mrb[22].mxu0 }
 0x25f   : > { %v3028_v57 = vadd.f32 %v15266_v0, %v2023_v47  ;;  %v2025_v60 = vpop.f32.mrb[23].mxu0  ;;  %v3154_v45 = vmax.f32 %v3026_v30, 0.0 }
 0x260   : > { %v3029_v33 = vadd.f32 %v15270_v34, %v2025_v60  ;;  %v3155_v24 = vmax.f32 %v3027_v32, 0.0 }
 0x261   : > { %v3156_v49 = vmax.f32 %v3028_v57, 0.0  ;;  %3563 = vmatmul.mubr.bf16.vlgmr.msra.gmra.mrb[128].mxu0 %v15294_v51 }
 0x262   : > { %v3157_v61 = vmax.f32 %v3029_v33, 0.0  ;;  %3572 = vmatprep.mubr.bf16.mxu0 %v15320_v25 }
 0x263   : > { %v15395_v13 = vpack.c.bf16 %v3156_v49, %v3154_v45  ;;  %11970 = vmatmul.mubr.msk.bf16.gmra.mrb[108].mxu1 %vm1472_vm1, %v15281_v21 }
 0x264   : > { %v2029_v39 = vpop.f32.mrb[24].mxu0  ;;  %v15397_v42 = vpack.c.bf16 %v3157_v61, %v3155_v24  ;;  %2953 = vmatprep.mubr.bf16.mxu1 %v14092_v6 }
 0x265   : > { %v3030_v51 = vadd.f32 %v15266_v0, %v2029_v39  ;;  %v2031_v22 = vpop.f32.mrb[25].mxu0 }
 0x266   : > { %v3031_v25 = vadd.f32 %v15270_v34, %v2031_v22  ;;  %v2033_v23 = vpop.f32.mrb[26].mxu0 }
 0x267   : > { %v3032_v30 = vadd.f32 %v15266_v0, %v2033_v23  ;;  %v2035_v17 = vpop.f32.mrb[27].mxu0  ;;  %v3158_v47 = vmax.f32 %v3030_v51, 0.0 }
 0x268   : > { %v3033_v32 = vadd.f32 %v15270_v34, %v2035_v17  ;;  %v3159_v60 = vmax.f32 %v3031_v25, 0.0  ;;  %v13671_v17 = vld [vmem:[%s18728_s0 + $0x1b0] ss:$8 sps:$4 sm:$0xff]  }
 0x269   : > { %v3160_v57 = vmax.f32 %v3032_v30, 0.0  ;;  %3573 = vmatmul.mubr.bf16.gmra.mrb[132].mxu0 %v15318_v14 }
 0x26a   : > { %v3161_v33 = vmax.f32 %v3033_v32, 0.0  ;;  %3582 = vmatprep.mubr.bf16.mxu0 %v15338_v10  ;;  %v13673_v32 = vld [vmem:[%s18728_s0 + $0x1b4] ss:$8 sps:$4 sm:$0xff]  }
 0x26b   : > { %v15408_v45 = vpack.c.bf16 %v3160_v57, %v3158_v47  ;;  %4302 = vmatprep.subr.bf16.mxu1 %v13673_v32  ;;  %11971 = vmatmul.mubr.msk.bf16.gmra.mrb[112].mxu1 %vm1472_vm1, %v15299_v12 }
 0x26c   : > { %v2039_v49 = vpop.f32.mrb[28].mxu0  ;;  %v15410_v24 = vpack.c.bf16 %v3161_v33, %v3159_v60  ;;  %4303 = vmatpush1.bf16.msra.mxu1 %v13671_v17  ;;  %2963 = vmatprep.mubr.bf16.mxu1 %v14092_v6 }
 0x26d   : > { %v3034_v61 = vadd.f32 %v15266_v0, %v2039_v49  ;;  %v2041_v8 = vpop.f32.mrb[29].mxu0 }
 0x26e   : > { %v3035_v36 = vadd.f32 %v15270_v34, %v2041_v8  ;;  %v2043_v39 = vpop.f32.mrb[30].mxu0 }
 0x26f   : > { %v3036_v51 = vadd.f32 %v15266_v0, %v2043_v39  ;;  %v2045_v22 = vpop.f32.mrb[31].mxu0  ;;  %v3162_v10 = vmax.f32 %v3034_v61, 0.0 }
 0x270   : > { %v3037_v14 = vadd.f32 %v15270_v34, %v2045_v22  ;;  %v3163_v23 = vmax.f32 %v3035_v36, 0.0 }
 0x271   : > { %v3164_v25 = vmax.f32 %v3036_v51, 0.0  ;;  %3583 = vmatmul.mubr.bf16.gmra.mrb[136].mxu0 %v15336_v16 }
 0x272   : > { %v3165_v30 = vmax.f32 %v3037_v14, 0.0  ;;  %3592 = vmatprep.mubr.bf16.mxu0 %v15362_v5 }
 0x273   : > { %v15427_v47 = vpack.c.bf16 %v3164_v25, %v3162_v10  ;;  %11972 = vmatmul.mubr.msk.bf16.gmra.mrb[116].mxu1 %vm1472_vm1, %v15323_v9 }
 0x274   : > { %v2049_v57 = vpop.f32.mrb[32].mxu0  ;;  %v15429_v60 = vpack.c.bf16 %v3165_v30, %v3163_v23  ;;  %2973 = vmatprep.mubr.bf16.mxu1 %v14092_v6 }
 0x275   : > { %v3038_v16 = vadd.f32 %v15266_v0, %v2049_v57  ;;  %v2051_v33 = vpop.f32.mrb[33].mxu0 }
 0x276   : > { %v3039_v5 = vadd.f32 %v15270_v34, %v2051_v33  ;;  %v2053_v49 = vpop.f32.mrb[34].mxu0 }
 0x277   : > { %v3040_v61 = vadd.f32 %v15266_v0, %v2053_v49  ;;  %v2055_v8 = vpop.f32.mrb[35].mxu0  ;;  %v3166_v39 = vmax.f32 %v3038_v16, 0.0 }
 0x278   : > { %v3041_v36 = vadd.f32 %v15270_v34, %v2055_v8  ;;  %v3167_v22 = vmax.f32 %v3039_v5, 0.0  ;;  %v13674_v8 = vld [vmem:[%s18728_s0 + $0x1c0] ss:$8 sps:$4 sm:$0xff]  }
 0x279   : > { %v3168_v51 = vmax.f32 %v3040_v61, 0.0  ;;  %3593 = vmatmul.mubr.bf16.gmra.mrb[140].mxu0 %v15360_v50 }
 0x27a   : > { %v3169_v14 = vmax.f32 %v3041_v36, 0.0  ;;  %3602 = vmatprep.mubr.bf16.mxu0 %v15378_v29  ;;  %v13676_v36 = vld [vmem:[%s18728_s0 + $0x1c4] ss:$8 sps:$4 sm:$0xff]  }
 0x27b   : > { %v15440_v10 = vpack.c.bf16 %v3168_v51, %v3166_v39  ;;  %4304 = vmatprep.subr.bf16.mxu1 %v13676_v36  ;;  %11973 = vmatmul.mubr.msk.bf16.gmra.mrb[120].mxu1 %vm1472_vm1, %v15341_v3 }
 0x27c   : > { %v2059_v25 = vpop.f32.mrb[36].mxu0  ;;  %v15442_v23 = vpack.c.bf16 %v3169_v14, %v3167_v22  ;;  %4305 = vmatpush1.bf16.msra.mxu1 %v13674_v8  ;;  %2983 = vmatprep.mubr.bf16.mxu1 %v14092_v6 }
 0x27d   : > { %v3042_v30 = vadd.f32 %v15266_v0, %v2059_v25  ;;  %v2061_v17 = vpop.f32.mrb[37].mxu0 }
 0x27e   : > { %v3043_v32 = vadd.f32 %v15270_v34, %v2061_v17  ;;  %v2063_v57 = vpop.f32.mrb[38].mxu0 }
 0x27f   : > { %v3044_v16 = vadd.f32 %v15266_v0, %v2063_v57  ;;  %v2065_v33 = vpop.f32.mrb[39].mxu0  ;;  %v3170_v29 = vmax.f32 %v3042_v30, 0.0 }
 0x280   : > { %v3045_v50 = vadd.f32 %v15270_v34, %v2065_v33  ;;  %v3171_v49 = vmax.f32 %v3043_v32, 0.0 }
 0x281   : > { %v3172_v5 = vmax.f32 %v3044_v16, 0.0  ;;  %3603 = vmatmul.mubr.bf16.gmra.mrb[144].mxu0 %v15376_v26 }
 0x282   : > { %v3173_v61 = vmax.f32 %v3045_v50, 0.0  ;;  %3612 = vmatprep.mubr.bf16.mxu0 %v15397_v42 }
 0x283   : > { %v15459_v39 = vpack.c.bf16 %v3172_v5, %v3170_v29  ;;  %11974 = vmatmul.mubr.msk.bf16.gmra.mrb[124].mxu1 %vm1472_vm1, %v15365_v35 }
 0x284   : > { %v2069_v51 = vpop.f32.mrb[40].mxu0  ;;  %v15461_v22 = vpack.c.bf16 %v3173_v61, %v3171_v49 }
 0x285   : > { %v3046_v26 = vadd.f32 %v15266_v0, %v2069_v51  ;;  %v2071_v14 = vpop.f32.mrb[41].mxu0 }
 0x286   : > { %v3047_v42 = vadd.f32 %v15270_v34, %v2071_v14  ;;  %v2073_v25 = vpop.f32.mrb[42].mxu0 }
 0x287   : > { %v3048_v30 = vadd.f32 %v15266_v0, %v2073_v25  ;;  %v2075_v17 = vpop.f32.mrb[43].mxu0  ;;  %v3174_v57 = vmax.f32 %v3046_v26, 0.0 }
 0x288   : > { %v3049_v32 = vadd.f32 %v15270_v34, %v2075_v17  ;;  %v3175_v33 = vmax.f32 %v3047_v42, 0.0  ;;  %v13677_v17 = vld [vmem:[%s18728_s0 + $0x1d0] ss:$8 sps:$4 sm:$0xff]  }
 0x289   : > { %v3176_v16 = vmax.f32 %v3048_v30, 0.0  ;;  %3613 = vmatmul.mubr.bf16.gmra.mrb[148].mxu0 %v15395_v13 }
 0x28a   : > { %v3177_v50 = vmax.f32 %v3049_v32, 0.0  ;;  %3622 = vmatprep.mubr.bf16.mxu0 %v15410_v24  ;;  %v13679_v32 = vld [vmem:[%s18728_s0 + $0x1d4] ss:$8 sps:$4 sm:$0xff]  }
 0x28b   : > { %v15472_v29 = vpack.c.bf16 %v3176_v16, %v3174_v57  ;;  %4306 = vmatprep.subr.bf16.mxu1 %v13679_v32 }
 0x28c   : > { %v2079_v5 = vpop.f32.mrb[44].mxu0  ;;  %v15474_v49 = vpack.c.bf16 %v3177_v50, %v3175_v33  ;;  %4307 = vmatpush1.bf16.msra.mxu1 %v13677_v17 }
 0x28d   : > { %v3050_v61 = vadd.f32 %v15266_v0, %v2079_v5  ;;  %v2081_v8 = vpop.f32.mrb[45].mxu0 }
 0x28e   : > { %v3051_v36 = vadd.f32 %v15270_v34, %v2081_v8  ;;  %v2083_v51 = vpop.f32.mrb[46].mxu0 }
 0x28f   : > { %v3052_v26 = vadd.f32 %v15266_v0, %v2083_v51  ;;  %v2085_v14 = vpop.f32.mrb[47].mxu0  ;;  %v3178_v24 = vmax.f32 %v3050_v61, 0.0 }
 0x290   : > { %v3053_v13 = vadd.f32 %v15270_v34, %v2085_v14  ;;  %v3179_v25 = vmax.f32 %v3051_v36, 0.0 }
 0x291   : > { %v3180_v42 = vmax.f32 %v3052_v26, 0.0  ;;  %3623 = vmatmul.mubr.bf16.gmra.mrb[152].mxu0 %v15408_v45 }
 0x292   : > { %v3181_v30 = vmax.f32 %v3053_v13, 0.0  ;;  %3632 = vmatprep.mubr.bf16.mxu0 %v15429_v60 }
 0x293   : > { %v15491_v57 = vpack.c.bf16 %v3180_v42, %v3178_v24 }
 0x294   : > { %v2089_v16 = vpop.f32.mrb[48].mxu0  ;;  %v15493_v33 = vpack.c.bf16 %v3181_v30, %v3179_v25 }
 0x295   : > { %v3054_v45 = vadd.f32 %v15266_v0, %v2089_v16  ;;  %v2091_v50 = vpop.f32.mrb[49].mxu0 }
 0x296   : > { %v3055_v60 = vadd.f32 %v15270_v34, %v2091_v50  ;;  %v2093_v5 = vpop.f32.mrb[50].mxu0 }
 0x297   : > { %v3056_v61 = vadd.f32 %v15266_v0, %v2093_v5  ;;  %v2095_v8 = vpop.f32.mrb[51].mxu0  ;;  %v3182_v51 = vmax.f32 %v3054_v45, 0.0 }
 0x298   : > { %v3057_v36 = vadd.f32 %v15270_v34, %v2095_v8  ;;  %v3183_v14 = vmax.f32 %v3055_v60, 0.0  ;;  %v13682_v60 = vld [vmem:[%s18728_s0 + $0x204] ss:$8 sps:$4 sm:$0xff]  }
 0x299   : > { %v3184_v26 = vmax.f32 %v3056_v61, 0.0  ;;  %3633 = vmatmul.mubr.bf16.gmra.mrb[156].mxu0 %v15427_v47  ;;  %5030 = vmatprep.subr.bf16.mxu0 %v13682_v60 }
 0x29a   : > { %v3185_v13 = vmax.f32 %v3057_v36, 0.0  ;;  %3642 = vmatprep.mubr.bf16.mxu0 %v15442_v23  ;;  %v13680_v23 = vld [vmem:[%s18728_s0 + $0x200] ss:$8 sps:$4 sm:$0xff]  }
 0x29b   : > { %v15504_v24 = vpack.c.bf16 %v3184_v26, %v3182_v51  ;;  %v13683_v51 = vld [vmem:[%s18728_s0 + $0x1e0] ss:$8 sps:$4 sm:$0xff]   ;;  %v13685_v26 = vld [vmem:[%s18728_s0 + $0x1e4] ss:$8 sps:$4 sm:$0xff]   ;;  %5031 = vmatpush1.bf16.msra.mxu0 %v13680_v23 }
 0x29c   : > { %v2099_v42 = vpop.f32.mrb[52].mxu0  ;;  %v15506_v25 = vpack.c.bf16 %v3185_v13, %v3183_v14  ;;  %4308 = vmatprep.subr.bf16.mxu1 %v13685_v26 }
 0x29d   : > { %v3058_v30 = vadd.f32 %v15266_v0, %v2099_v42  ;;  %v2101_v17 = vpop.f32.mrb[53].mxu0  ;;  %4309 = vmatpush1.bf16.msra.mxu1 %v13683_v51 }
 0x29e   : > { %v3059_v32 = vadd.f32 %v15270_v34, %v2101_v17  ;;  %v2103_v16 = vpop.f32.mrb[54].mxu0 }
 0x29f   : > { %v3060_v45 = vadd.f32 %v15266_v0, %v2103_v16  ;;  %v2105_v50 = vpop.f32.mrb[55].mxu0  ;;  %v3186_v5 = vmax.f32 %v3058_v30, 0.0 }
 0x2a0   : > { %v3061_v47 = vadd.f32 %v15270_v34, %v2105_v50  ;;  %v3187_v8 = vmax.f32 %v3059_v32, 0.0 }
 0x2a1   : > { %v3188_v61 = vmax.f32 %v3060_v45, 0.0  ;;  %3643 = vmatmul.mubr.bf16.gmra.mrb[160].mxu0 %v15440_v10 }
 0x2a2   : > { %v3189_v36 = vmax.f32 %v3061_v47, 0.0  ;;  %3652 = vmatprep.mubr.bf16.mxu0 %v15461_v22 }
 0x2a3   : > { %v15529_v14 = vpack.c.bf16 %v3188_v61, %v3186_v5 }
 0x2a4   : > { %v2109_v13 = vpop.f32.mrb[56].mxu0  ;;  %v15531_v42 = vpack.c.bf16 %v3189_v36, %v3187_v8 }
 0x2a5   : > { %v3062_v10 = vadd.f32 %v15266_v0, %v2109_v13  ;;  %v2111_v30 = vpop.f32.mrb[57].mxu0 }
 0x2a6   : > { %v3063_v22 = vadd.f32 %v15270_v34, %v2111_v30  ;;  %v2113_v17 = vpop.f32.mrb[58].mxu0 }
 0x2a7   : > { %v3064_v32 = vadd.f32 %v15266_v0, %v2113_v17  ;;  %v2115_v16 = vpop.f32.mrb[59].mxu0  ;;  %v3190_v50 = vmax.f32 %v3062_v10, 0.0 }
 0x2a8   : > { %v3065_v45 = vadd.f32 %v15270_v34, %v2115_v16  ;;  %v3191_v23 = vmax.f32 %v3063_v22, 0.0  ;;  %v13688_v22 = vld [vmem:[%s18728_s0 + $0x214] ss:$8 sps:$4 sm:$0xff]  }
 0x2a9   : > { %v3192_v47 = vmax.f32 %v3064_v32, 0.0  ;;  %3653 = vmatmul.mubr.bf16.gmra.mrb[164].mxu0 %v15459_v39  ;;  %5032 = vmatprep.subr.bf16.mxu0 %v13688_v22 }
 0x2aa   : > { %v3193_v60 = vmax.f32 %v3065_v45, 0.0  ;;  %3662 = vmatprep.mubr.bf16.mxu0 %v15474_v49  ;;  %v13686_v49 = vld [vmem:[%s18728_s0 + $0x210] ss:$8 sps:$4 sm:$0xff]  }
 0x2ab   : > { %v15542_v5 = vpack.c.bf16 %v3192_v47, %v3190_v50  ;;  %v13689_v50 = vld [vmem:[%s18728_s0 + $0x1f0] ss:$8 sps:$4 sm:$0xff]   ;;  %v13691_v47 = vld [vmem:[%s18728_s0 + $0x1f4] ss:$8 sps:$4 sm:$0xff]   ;;  %5033 = vmatpush1.bf16.msra.mxu0 %v13686_v49 }
 0x2ac   : > { %v2119_v61 = vpop.f32.mrb[60].mxu0  ;;  %v15544_v8 = vpack.c.bf16 %v3193_v60, %v3191_v23  ;;  %4310 = vmatprep.subr.bf16.mxu1 %v13691_v47 }
 0x2ad   : > { %v3066_v36 = vadd.f32 %v15266_v0, %v2119_v61  ;;  %v2121_v51 = vpop.f32.mrb[61].mxu0  ;;  %4311 = vmatpush1.bf16.msra.mxu1 %v13689_v50 }
 0x2ae   : > { %v3067_v26 = vadd.f32 %v15270_v34, %v2121_v51  ;;  %v2123_v13 = vpop.f32.mrb[62].mxu0 }
 0x2af   : > { %v3068_v10 = vadd.f32 %v15266_v0, %v2123_v13  ;;  %v2125_v30 = vpop.f32.mrb[63].mxu0  ;;  %v3194_v17 = vmax.f32 %v3066_v36, 0.0 }
 0x2b0   : > { %v3069_v39 = vadd.f32 %v15270_v34, %v2125_v30  ;;  %v3195_v16 = vmax.f32 %v3067_v26, 0.0 }
 0x2b1   : > { %v3196_v32 = vmax.f32 %v3068_v10, 0.0  ;;  %3663 = vmatmul.mubr.bf16.gmra.mrb[168].mxu0 %v15472_v29 }
 0x2b2   : > { %v3197_v45 = vmax.f32 %v3069_v39, 0.0  ;;  %3672 = vmatprep.mubr.bf16.mxu0 %v15493_v33 }
 0x2b3   : > { %v15567_v23 = vpack.c.bf16 %v3196_v32, %v3194_v17 }
 0x2b4   : > { %v2129_v6 = vpop.f32.mrb[64].mxu0  ;;  %v15569_v60 = vpack.c.bf16 %v3197_v45, %v3195_v16 }
 0x2b5   : > { %v3070_v29 = vadd.f32 %v15266_v0, %v2129_v6  ;;  %v2131_v61 = vpop.f32.mrb[65].mxu0 }
 0x2b6   : > { %v3071_v33 = vadd.f32 %v15270_v34, %v2131_v61  ;;  %v2133_v36 = vpop.f32.mrb[66].mxu0  ;;  %v13694_v61 = vld [vmem:[%s18728_s0 + $0x224] ss:$8 sps:$4 sm:$0xff]  }
 0x2b7   : > { %v3072_v51 = vadd.f32 %v15266_v0, %v2133_v36  ;;  %v2135_v26 = vpop.f32.mrb[67].mxu0  ;;  %v3198_v10 = vmax.f32 %v3070_v29, 0.0  ;;  %5034 = vmatprep.subr.bf16.mxu0 %v13694_v61 }
 0x2b8   : > { %v3073_v13 = vadd.f32 %v15270_v34, %v2135_v26  ;;  %v3199_v39 = vmax.f32 %v3071_v33, 0.0 }
 0x2b9   : > { %v3200_v30 = vmax.f32 %v3072_v51, 0.0  ;;  %3673 = vmatmul.mubr.bf16.gmra.mrb[172].mxu0 %v15491_v57 }
 0x2ba   : > { %v3201_v49 = vmax.f32 %v3073_v13, 0.0  ;;  %3682 = vmatprep.mubr.bf16.mxu0 %v15506_v25  ;;  %v13692_v25 = vld [vmem:[%s18728_s0 + $0x220] ss:$8 sps:$4 sm:$0xff]  }
 0x2bb   : > { %v15579_v22 = vpack.c.bf16 %v3200_v30, %v3198_v10  ;;  %5035 = vmatpush1.bf16.msra.mxu0 %v13692_v25 }
 0x2bc   : > { %v2139_v17 = vpop.f32.mrb[68].mxu0  ;;  %v15581_v32 = vpack.c.bf16 %v3201_v49, %v3199_v39 }
 0x2bd   : > { %v3074_v16 = vadd.f32 %v15266_v0, %v2139_v17  ;;  %v2141_v45 = vpop.f32.mrb[69].mxu0 }
 0x2be   : > { %v3075_v50 = vadd.f32 %v15270_v34, %v2141_v45  ;;  %v2143_v47 = vpop.f32.mrb[70].mxu0 }
 0x2bf   : > { %v3076_v6 = vadd.f32 %v15266_v0, %v2143_v47  ;;  %v2145_v29 = vpop.f32.mrb[71].mxu0  ;;  %v3202_v33 = vmax.f32 %v3074_v16, 0.0 }
 0x2c0   : > { %v3077_v57 = vadd.f32 %v15270_v34, %v2145_v29  ;;  %v3203_v51 = vmax.f32 %v3075_v50, 0.0 }
 0x2c1   : > { %v3204_v36 = vmax.f32 %v3076_v6, 0.0  ;;  %3683 = vmatmul.mubr.bf16.gmra.mrb[176].mxu0 %v15504_v24 }
 0x2c2   : > { %v3205_v26 = vmax.f32 %v3077_v57, 0.0  ;;  %3692 = vmatprep.mubr.bf16.mxu0 %v15531_v42 }
 0x2c3   : > { %v15595_v13 = vpack.c.bf16 %v3204_v36, %v3202_v33 }
 0x2c4   : > { %v2149_v10 = vpop.f32.mrb[72].mxu0  ;;  %v15597_v30 = vpack.c.bf16 %v3205_v26, %v3203_v51 }
 0x2c5   : > { %v3078_v39 = vadd.f32 %v15266_v0, %v2149_v10  ;;  %v2151_v49 = vpop.f32.mrb[73].mxu0 }
 0x2c6   : > { %v3079_v17 = vadd.f32 %v15270_v34, %v2151_v49  ;;  %v2153_v16 = vpop.f32.mrb[74].mxu0  ;;  %v13697_v49 = vld [vmem:[%s18728_s0 + $0x234] ss:$8 sps:$4 sm:$0xff]  }
 0x2c7   : > { %v3080_v45 = vadd.f32 %v15266_v0, %v2153_v16  ;;  %v2155_v24 = vpop.f32.mrb[75].mxu0  ;;  %v3206_v47 = vmax.f32 %v3078_v39, 0.0  ;;  %5036 = vmatprep.subr.bf16.mxu0 %v13697_v49 }
 0x2c8   : > { %v3081_v50 = vadd.f32 %v15270_v34, %v2155_v24  ;;  %v3207_v6 = vmax.f32 %v3079_v17, 0.0 }
 0x2c9   : > { %v3208_v42 = vmax.f32 %v3080_v45, 0.0  ;;  %3693 = vmatmul.mubr.bf16.gmra.mrb[180].mxu0 %v15529_v14 }
 0x2ca   : > { %v3209_v29 = vmax.f32 %v3081_v50, 0.0  ;;  %3702 = vmatprep.mubr.bf16.mxu0 %v15544_v8  ;;  %v13695_v8 = vld [vmem:[%s18728_s0 + $0x230] ss:$8 sps:$4 sm:$0xff]  }
 0x2cb   : > { %v15605_v57 = vpack.c.bf16 %v3208_v42, %v3206_v47  ;;  %5037 = vmatpush1.bf16.msra.mxu0 %v13695_v8 }
 0x2cc   : > { %v2159_v25 = vpop.f32.mrb[76].mxu0  ;;  %v15607_v61 = vpack.c.bf16 %v3209_v29, %v3207_v6 }
 0x2cd   : > { %v3082_v33 = vadd.f32 %v15266_v0, %v2159_v25  ;;  %v2161_v36 = vpop.f32.mrb[77].mxu0 }
 0x2ce   : > { %v3083_v51 = vadd.f32 %v15270_v34, %v2161_v36  ;;  %v2163_v26 = vpop.f32.mrb[78].mxu0 }
 0x2cf   : > { %v3084_v10 = vadd.f32 %v15266_v0, %v2163_v26  ;;  %v2165_v39 = vpop.f32.mrb[79].mxu0  ;;  %v3210_v17 = vmax.f32 %v3082_v33, 0.0 }
 0x2d0   : > { %v3085_v14 = vadd.f32 %v15270_v34, %v2165_v39  ;;  %v3211_v45 = vmax.f32 %v3083_v51, 0.0 }
 0x2d1   : > { %v3212_v16 = vmax.f32 %v3084_v10, 0.0  ;;  %3703 = vmatmul.mubr.bf16.gmra.mrb[184].mxu0 %v15542_v5 }
 0x2d2   : > { %v3213_v24 = vmax.f32 %v3085_v14, 0.0  ;;  %3712 = vmatprep.mubr.bf16.mxu0 %v15569_v60 }
 0x2d3   : > { %v15621_v50 = vpack.c.bf16 %v3212_v16, %v3210_v17 }
 0x2d4   : > { %v2169_v47 = vpop.f32.mrb[80].mxu0  ;;  %v15623_v42 = vpack.c.bf16 %v3213_v24, %v3211_v45 }
 0x2d5   : > { %v3086_v6 = vadd.f32 %v15266_v0, %v2169_v47  ;;  %v2171_v29 = vpop.f32.mrb[81].mxu0 }
 0x2d6   : > { %v3087_v25 = vadd.f32 %v15270_v34, %v2171_v29  ;;  %v2173_v33 = vpop.f32.mrb[82].mxu0  ;;  %v13700_v29 = vld [vmem:[%s18728_s0 + $0x244] ss:$8 sps:$4 sm:$0xff]  }
 0x2d7   : > { %v3088_v36 = vadd.f32 %v15266_v0, %v2173_v33  ;;  %v2175_v5 = vpop.f32.mrb[83].mxu0  ;;  %v3214_v26 = vmax.f32 %v3086_v6, 0.0  ;;  %5038 = vmatprep.subr.bf16.mxu0 %v13700_v29 }
 0x2d8   : > { %v3089_v51 = vadd.f32 %v15270_v34, %v2175_v5  ;;  %v3215_v10 = vmax.f32 %v3087_v25, 0.0 }
 0x2d9   : > { %v3216_v60 = vmax.f32 %v3088_v36, 0.0  ;;  %3713 = vmatmul.mubr.bf16.gmra.mrb[188].mxu0 %v15567_v23 }
 0x2da   : > { %v3217_v39 = vmax.f32 %v3089_v51, 0.0  ;;  %3722 = vmatprep.mubr.bf16.mxu0 %v15581_v32  ;;  %v13698_v32 = vld [vmem:[%s18728_s0 + $0x240] ss:$8 sps:$4 sm:$0xff]  }
 0x2db   : > { %v15631_v14 = vpack.c.bf16 %v3216_v60, %v3214_v26  ;;  %5039 = vmatpush1.bf16.msra.mxu0 %v13698_v32 }
 0x2dc   : > { %v2179_v8 = vpop.f32.mrb[84].mxu0  ;;  %v15633_v49 = vpack.c.bf16 %v3217_v39, %v3215_v10 }
 0x2dd   : > { %v3090_v17 = vadd.f32 %v15266_v0, %v2179_v8  ;;  %v2181_v16 = vpop.f32.mrb[85].mxu0 }
 0x2de   : > { %v3091_v45 = vadd.f32 %v15270_v34, %v2181_v16  ;;  %v2183_v24 = vpop.f32.mrb[86].mxu0 }
 0x2df   : > { %v3092_v47 = vadd.f32 %v15266_v0, %v2183_v24  ;;  %v2185_v6 = vpop.f32.mrb[87].mxu0  ;;  %v3218_v25 = vmax.f32 %v3090_v17, 0.0 }
 0x2e0   : > { %v3093_v23 = vadd.f32 %v15270_v34, %v2185_v6  ;;  %v3219_v36 = vmax.f32 %v3091_v45, 0.0 }
 0x2e1   : > { %v3220_v33 = vmax.f32 %v3092_v47, 0.0  ;;  %3723 = vmatmul.mubr.bf16.gmra.mrb[192].mxu0 %v15579_v22 }
 0x2e2   : > { %v3221_v5 = vmax.f32 %v3093_v23, 0.0  ;;  %3732 = vmatprep.mubr.bf16.mxu0 %v15597_v30 }
 0x2e3   : > { %v15647_v51 = vpack.c.bf16 %v3220_v33, %v3218_v25 }
 0x2e4   : > { %v2189_v26 = vpop.f32.mrb[88].mxu0  ;;  %v15649_v60 = vpack.c.bf16 %v3221_v5, %v3219_v36 }
 0x2e5   : > { %v3094_v10 = vadd.f32 %v15266_v0, %v2189_v26  ;;  %v2191_v39 = vpop.f32.mrb[89].mxu0 }
 0x2e6   : > { %v3095_v8 = vadd.f32 %v15270_v34, %v2191_v39  ;;  %v2193_v17 = vpop.f32.mrb[90].mxu0  ;;  %v13703_v39 = vld [vmem:[%s18728_s0 + $0x254] ss:$8 sps:$4 sm:$0xff]  }
 0x2e7   : > { %v3096_v16 = vadd.f32 %v15266_v0, %v2193_v17  ;;  %v2195_v22 = vpop.f32.mrb[91].mxu0  ;;  %v3222_v24 = vmax.f32 %v3094_v10, 0.0  ;;  %5040 = vmatprep.subr.bf16.mxu0 %v13703_v39 }
 0x2e8   : > { %v3097_v45 = vadd.f32 %v15270_v34, %v2195_v22  ;;  %v3223_v47 = vmax.f32 %v3095_v8, 0.0 }
 0x2e9   : > { %v3224_v30 = vmax.f32 %v3096_v16, 0.0  ;;  %3733 = vmatmul.mubr.bf16.gmra.mrb[196].mxu0 %v15595_v13 }
 0x2ea   : > { %v3225_v6 = vmax.f32 %v3097_v45, 0.0  ;;  %3742 = vmatprep.mubr.bf16.mxu0 %v15607_v61  ;;  %v13701_v61 = vld [vmem:[%s18728_s0 + $0x250] ss:$8 sps:$4 sm:$0xff]  }
 0x2eb   : > { %v15657_v23 = vpack.c.bf16 %v3224_v30, %v3222_v24  ;;  %5041 = vmatpush1.bf16.msra.mxu0 %v13701_v61 }
 0x2ec   : > { %v2199_v32 = vpop.f32.mrb[92].mxu0  ;;  %v15659_v29 = vpack.c.bf16 %v3225_v6, %v3223_v47 }
 0x2ed   : > { %v3098_v25 = vadd.f32 %v15266_v0, %v2199_v32  ;;  %v2201_v33 = vpop.f32.mrb[93].mxu0 }
 0x2ee   : > { %v3099_v36 = vadd.f32 %v15270_v34, %v2201_v33  ;;  %v2203_v5 = vpop.f32.mrb[94].mxu0 }
 0x2ef   : > { %v3100_v26 = vadd.f32 %v15266_v0, %v2203_v5  ;;  %v2205_v10 = vpop.f32.mrb[95].mxu0  ;;  %v3226_v8 = vmax.f32 %v3098_v25, 0.0 }
 0x2f0   : > { %v3101_v13 = vadd.f32 %v15270_v34, %v2205_v10  ;;  %v3227_v16 = vmax.f32 %v3099_v36, 0.0 }
 0x2f1   : > { %v3228_v17 = vmax.f32 %v3100_v26, 0.0  ;;  %3743 = vmatmul.mubr.bf16.gmra.mrb[200].mxu0 %v15605_v57 }
 0x2f2   : > { %v3229_v22 = vmax.f32 %v3101_v13, 0.0  ;;  %3752 = vmatprep.mubr.bf16.mxu0 %v15623_v42 }
 0x2f3   : > { %v15673_v45 = vpack.c.bf16 %v3228_v17, %v3226_v8 }
 0x2f4   : > { %v2209_v24 = vpop.f32.mrb[96].mxu0  ;;  %v15675_v30 = vpack.c.bf16 %v3229_v22, %v3227_v16 }
 0x2f5   : > { %v3102_v47 = vadd.f32 %v15266_v0, %v2209_v24  ;;  %v2211_v6 = vpop.f32.mrb[97].mxu0 }
 0x2f6   : > { %v3103_v32 = vadd.f32 %v15270_v34, %v2211_v6  ;;  %v2213_v25 = vpop.f32.mrb[98].mxu0  ;;  %v13706_v6 = vld [vmem:[%s18728_s0 + $0x264] ss:$8 sps:$4 sm:$0xff]  }
 0x2f7   : > { %v3104_v33 = vadd.f32 %v15266_v0, %v2213_v25  ;;  %v2215_v57 = vpop.f32.mrb[99].mxu0  ;;  %v3230_v5 = vmax.f32 %v3102_v47, 0.0  ;;  %5042 = vmatprep.subr.bf16.mxu0 %v13706_v6 }
 0x2f8   : > { %v3105_v36 = vadd.f32 %v15270_v34, %v2215_v57  ;;  %v3231_v26 = vmax.f32 %v3103_v32, 0.0 }
 0x2f9   : > { %v3232_v42 = vmax.f32 %v3104_v33, 0.0  ;;  %3753 = vmatmul.mubr.bf16.gmra.mrb[204].mxu0 %v15621_v50 }
 0x2fa   : > { %v3233_v10 = vmax.f32 %v3105_v36, 0.0  ;;  %3762 = vmatprep.mubr.bf16.mxu0 %v15633_v49  ;;  %v13704_v49 = vld [vmem:[%s18728_s0 + $0x260] ss:$8 sps:$4 sm:$0xff]  }
 0x2fb   : > { %v15683_v13 = vpack.c.bf16 %v3232_v42, %v3230_v5  ;;  %5043 = vmatpush1.bf16.msra.mxu0 %v13704_v49 }
 0x2fc   : > { %v2219_v61 = vpop.f32.mrb[100].mxu0  ;;  %v15685_v39 = vpack.c.bf16 %v3233_v10, %v3231_v26 }
 0x2fd   : > { %v3106_v8 = vadd.f32 %v15266_v0, %v2219_v61  ;;  %v2221_v17 = vpop.f32.mrb[101].mxu0 }
 0x2fe   : > { %v3107_v16 = vadd.f32 %v15270_v34, %v2221_v17  ;;  %v2223_v22 = vpop.f32.mrb[102].mxu0 }
 0x2ff   : > { %v3108_v24 = vadd.f32 %v15266_v0, %v2223_v22  ;;  %v2225_v47 = vpop.f32.mrb[103].mxu0  ;;  %v3234_v32 = vmax.f32 %v3106_v8, 0.0 }
 0x300   : > { %v3109_v50 = vadd.f32 %v15270_v34, %v2225_v47  ;;  %v3235_v33 = vmax.f32 %v3107_v16, 0.0 }
 0x301   : > { %v3236_v25 = vmax.f32 %v3108_v24, 0.0  ;;  %3763 = vmatmul.mubr.bf16.gmra.mrb[208].mxu0 %v15631_v14 }
 0x302   : > { %v3237_v57 = vmax.f32 %v3109_v50, 0.0  ;;  %3772 = vmatprep.mubr.bf16.mxu0 %v15649_v60 }
 0x303   : > { %v15699_v36 = vpack.c.bf16 %v3236_v25, %v3234_v32 }
 0x304   : > { %v2229_v5 = vpop.f32.mrb[104].mxu0  ;;  %v15701_v42 = vpack.c.bf16 %v3237_v57, %v3235_v33 }
 0x305   : > { %v3110_v26 = vadd.f32 %v15266_v0, %v2229_v5  ;;  %v2231_v10 = vpop.f32.mrb[105].mxu0 }
 0x306   : > { %v3111_v61 = vadd.f32 %v15270_v34, %v2231_v10  ;;  %v2233_v8 = vpop.f32.mrb[106].mxu0  ;;  %v13709_v10 = vld [vmem:[%s18728_s0 + $0x274] ss:$8 sps:$4 sm:$0xff]  }
 0x307   : > { %v3112_v17 = vadd.f32 %v15266_v0, %v2233_v8  ;;  %v2235_v14 = vpop.f32.mrb[107].mxu0  ;;  %v3238_v22 = vmax.f32 %v3110_v26, 0.0  ;;  %5044 = vmatprep.subr.bf16.mxu0 %v13709_v10 }
 0x308   : > { %v3113_v16 = vadd.f32 %v15270_v34, %v2235_v14  ;;  %v3239_v24 = vmax.f32 %v3111_v61, 0.0 }
 0x309   : > { %v3240_v60 = vmax.f32 %v3112_v17, 0.0  ;;  %3773 = vmatmul.mubr.bf16.gmra.mrb[212].mxu0 %v15647_v51 }
 0x30a   : > { %v3241_v47 = vmax.f32 %v3113_v16, 0.0  ;;  %3782 = vmatprep.mubr.bf16.mxu0 %v15659_v29  ;;  %v13707_v29 = vld [vmem:[%s18728_s0 + $0x270] ss:$8 sps:$4 sm:$0xff]  }
 0x30b   : > { %v15709_v50 = vpack.c.bf16 %v3240_v60, %v3238_v22  ;;  %5045 = vmatpush1.bf16.msra.mxu0 %v13707_v29 }
 0x30c   : > { %v2239_v49 = vpop.f32.mrb[108].mxu0  ;;  %v15711_v6 = vpack.c.bf16 %v3241_v47, %v3239_v24 }
 0x30d   : > { %v3114_v32 = vadd.f32 %v15266_v0, %v2239_v49  ;;  %v2241_v25 = vpop.f32.mrb[109].mxu0 }
 0x30e   : > { %v3115_v33 = vadd.f32 %v15270_v34, %v2241_v25  ;;  %v2243_v57 = vpop.f32.mrb[110].mxu0 }
 0x30f   : > { %v3116_v5 = vadd.f32 %v15266_v0, %v2243_v57  ;;  %v2245_v26 = vpop.f32.mrb[111].mxu0  ;;  %v3242_v61 = vmax.f32 %v3114_v32, 0.0 }
 0x310   : > { %v3117_v51 = vadd.f32 %v15270_v34, %v2245_v26  ;;  %v3243_v17 = vmax.f32 %v3115_v33, 0.0 }
 0x311   : > { %v3244_v8 = vmax.f32 %v3116_v5, 0.0  ;;  %3783 = vmatmul.mubr.bf16.gmra.mrb[216].mxu0 %v15657_v23 }
 0x312   : > { %v3245_v14 = vmax.f32 %v3117_v51, 0.0  ;;  %3792 = vmatprep.mubr.bf16.mxu0 %v15675_v30 }
 0x313   : > { %v15725_v16 = vpack.c.bf16 %v3244_v8, %v3242_v61 }
 0x314   : > { %v2249_v22 = vpop.f32.mrb[112].mxu0  ;;  %v15727_v60 = vpack.c.bf16 %v3245_v14, %v3243_v17 }
 0x315   : > { %v3118_v24 = vadd.f32 %v15266_v0, %v2249_v22  ;;  %v2251_v47 = vpop.f32.mrb[113].mxu0 }
 0x316   : > { %v3119_v49 = vadd.f32 %v15270_v34, %v2251_v47  ;;  %v2253_v32 = vpop.f32.mrb[114].mxu0  ;;  %v13712_v47 = vld [vmem:[%s18728_s0 + $0x284] ss:$8 sps:$4 sm:$0xff]  }
 0x317   : > { %v3120_v25 = vadd.f32 %v15266_v0, %v2253_v32  ;;  %v2255_v23 = vpop.f32.mrb[115].mxu0  ;;  %v3246_v57 = vmax.f32 %v3118_v24, 0.0  ;;  %5046 = vmatprep.subr.bf16.mxu0 %v13712_v47 }
 0x318   : > { %v3121_v33 = vadd.f32 %v15270_v34, %v2255_v23  ;;  %v3247_v5 = vmax.f32 %v3119_v49, 0.0 }
 0x319   : > { %v3248_v30 = vmax.f32 %v3120_v25, 0.0  ;;  %3793 = vmatmul.mubr.bf16.gmra.mrb[220].mxu0 %v15673_v45 }
 0x31a   : > { %v3249_v26 = vmax.f32 %v3121_v33, 0.0  ;;  %3802 = vmatprep.mubr.bf16.mxu0 %v15685_v39  ;;  %v13710_v39 = vld [vmem:[%s18728_s0 + $0x280] ss:$8 sps:$4 sm:$0xff]  }
 0x31b   : > { %v15735_v51 = vpack.c.bf16 %v3248_v30, %v3246_v57  ;;  %5047 = vmatpush1.bf16.msra.mxu0 %v13710_v39 }
 0x31c   : > { %v2259_v29 = vpop.f32.mrb[116].mxu0  ;;  %v15737_v10 = vpack.c.bf16 %v3249_v26, %v3247_v5 }
 0x31d   : > { %v3122_v61 = vadd.f32 %v15266_v0, %v2259_v29  ;;  %v2261_v8 = vpop.f32.mrb[117].mxu0 }
 0x31e   : > { %v3123_v17 = vadd.f32 %v15270_v34, %v2261_v8  ;;  %v2263_v14 = vpop.f32.mrb[118].mxu0 }
 0x31f   : > { %v3124_v22 = vadd.f32 %v15266_v0, %v2263_v14  ;;  %v2265_v24 = vpop.f32.mrb[119].mxu0  ;;  %v3250_v49 = vmax.f32 %v3122_v61, 0.0 }
 0x320   : > { %v3125_v45 = vadd.f32 %v15270_v34, %v2265_v24  ;;  %v3251_v25 = vmax.f32 %v3123_v17, 0.0 }
 0x321   : > { %v3252_v32 = vmax.f32 %v3124_v22, 0.0  ;;  %3803 = vmatmul.mubr.bf16.gmra.mrb[224].mxu0 %v15683_v13 }
 0x322   : > { %v3253_v23 = vmax.f32 %v3125_v45, 0.0  ;;  %3812 = vmatprep.mubr.bf16.mxu0 %v15701_v42 }
 0x323   : > { %v15751_v33 = vpack.c.bf16 %v3252_v32, %v3250_v49 }
 0x324   : > { %v2269_v57 = vpop.f32.mrb[120].mxu0  ;;  %v15753_v30 = vpack.c.bf16 %v3253_v23, %v3251_v25 }
 0x325   : > { %v3126_v5 = vadd.f32 %v15266_v0, %v2269_v57  ;;  %v2271_v26 = vpop.f32.mrb[121].mxu0  ;;  %v3358_v57 = vld [vmem:[%s18732_s24] sm:$0x3] }
 0x326   : > { %v3127_v29 = vadd.f32 %v15270_v34, %v2271_v26  ;;  %v2273_v61 = vpop.f32.mrb[122].mxu0  ;;  %v13713_v26 = vld [vmem:[%s18728_s0 + $0x290] ss:$8 sps:$4 sm:$0xff]  }
 0x327   : > { %v3128_v8 = vadd.f32 %v15266_v0, %v2273_v61  ;;  %v2275_v13 = vpop.f32.mrb[123].mxu0  ;;  %v3254_v14 = vmax.f32 %v3126_v5, 0.0 }
 0x328   : > { %v3129_v17 = vadd.f32 %v15270_v34, %v2275_v13  ;;  %v3255_v22 = vmax.f32 %v3127_v29, 0.0  ;;  %v13715_v29 = vld [vmem:[%s18728_s0 + $0x294] ss:$8 sps:$4 sm:$0xff]   ;;  %v15780_v13 = vrot.slane %v3358_v57, %v15253_v58 }
 0x329   : > { %v3256_v42 = vmax.f32 %v3128_v8, 0.0  ;;  %3813 = vmatmul.mubr.bf16.gmra.mrb[228].mxu0 %v15699_v36  ;;  %5048 = vmatprep.subr.bf16.mxu0 %v13715_v29 }
 0x32a   : > { %v3257_v24 = vmax.f32 %v3129_v17, 0.0  ;;  %3822 = vmatprep.mubr.bf16.mxu0 %v15711_v6  ;;  %5049 = vmatpush1.bf16.msra.mxu0 %v13713_v26 }
 0x32b   : > { %v15761_v45 = vpack.c.bf16 %v3256_v42, %v3254_v14 }
 0x32c   : > { %v2279_v39 = vpop.f32.mrb[124].mxu0  ;;  %v15763_v47 = vpack.c.bf16 %v3257_v24, %v3255_v22 }
 0x32d   : > { %v3130_v49 = vadd.f32 %v15266_v0, %v2279_v39  ;;  %v2281_v32 = vpop.f32.mrb[125].mxu0 }
 0x32e   : > { %v3131_v25 = vadd.f32 %v15270_v34, %v2281_v32  ;;  %v2283_v23 = vpop.f32.mrb[126].mxu0 }
 0x32f   : > { %v3132_v36 = vadd.f32 %v15266_v0, %v2283_v23  ;;  %v2285_v5 = vpop.f32.mrb[127].mxu0  ;;  %v3258_v61 = vmax.f32 %v3130_v49, 0.0 }
 0x330   : > { %v3133_v6 = vadd.f32 %v15270_v34, %v2285_v5  ;;  %v3259_v17 = vmax.f32 %v3131_v25, 0.0  ;;  %v15784_v34 = vrot.slane %v3358_v57, %v15258_v27 }
 0x331   : > { %v3260_v8 = vmax.f32 %v3132_v36, 0.0  ;;  %3823 = vmatmul.mubr.bf16.gmra.mrb[232].mxu0 %v15709_v50 }
 0x332   : > { %v3261_v0 = vmax.f32 %v3133_v6, 0.0  ;;  %3832 = vmatprep.mubr.bf16.mxu0 %v15727_v60 }
 0x333   : > { %v15786_v14 = vpack.c.bf16 %v3260_v8, %v3258_v61 }
 0x334   : > { %v3564_v42 = vpop.f32.mrb[128].mxu0  ;;  %v15788_v22 = vpack.c.bf16 %v3261_v0, %v3259_v17 }
 0x335   : > { %v3565_v24 = vadd.f32 %v3564_v42, %v15780_v13  ;;  %v3566_v50 = vpop.f32.mrb[129].mxu0 }
 0x336   : > { %v3567_v39 = vadd.f32 %v3566_v50, %v15784_v34  ;;  %v3568_v49 = vpop.f32.mrb[130].mxu0  ;;  %v13718_v50 = vld [vmem:[%s18728_s0 + $0x2a4] ss:$8 sps:$4 sm:$0xff]  }
 0x337   : > { %v3569_v32 = vadd.f32 %v3568_v49, %v15780_v13  ;;  %v3570_v25 = vpop.f32.mrb[131].mxu0  ;;  %v3883_v23 = vmax.f32 %v3565_v24, 0.0  ;;  %5050 = vmatprep.subr.bf16.mxu0 %v13718_v50 }
 0x338   : > { %v3571_v60 = vadd.f32 %v3570_v25, %v15784_v34  ;;  %v3884_v36 = vmax.f32 %v3567_v39, 0.0 }
 0x339   : > { %v3885_v57 = vmax.f32 %v3569_v32, 0.0  ;;  %3833 = vmatmul.mubr.bf16.gmra.mrb[236].mxu0 %v15725_v16 }
 0x33a   : > { %v3886_v5 = vmax.f32 %v3571_v60, 0.0  ;;  %3842 = vmatprep.mubr.bf16.mxu0 %v15737_v10  ;;  %v13716_v10 = vld [vmem:[%s18728_s0 + $0x2a0] ss:$8 sps:$4 sm:$0xff]  }
 0x33b   : > { %v4011_v6 = vpack.c.bf16 %v3885_v57, %v3883_v23  ;;  %5051 = vmatpush1.bf16.msra.mxu0 %v13716_v10 }
 0x33c   : > { %v3574_v26 = vpop.f32.mrb[132].mxu0  ;;  %v4012_v29 = vpack.c.bf16 %v3886_v5, %v3884_v36 }
 0x33d   : > { %v3575_v61 = vadd.f32 %v3574_v26, %v15780_v13  ;;  %v3576_v8 = vpop.f32.mrb[133].mxu0 }
 0x33e   : > { %v3577_v17 = vadd.f32 %v3576_v8, %v15784_v34  ;;  %v3578_v0 = vpop.f32.mrb[134].mxu0  ;;  %4312 = vmatprep.mubr.bf16.mxu1 %v4012_v29 }
 0x33f   : > { %v3579_v42 = vadd.f32 %v3578_v0, %v15780_v13  ;;  %v3580_v24 = vpop.f32.mrb[135].mxu0  ;;  %4313 = vmatmul.mubr.bf16.vlgmr.msra.gmra.mrb[128].mxu1 %v4011_v6  ;;  %v3887_v39 = vmax.f32 %v3575_v61, 0.0 }
 0x340   : > { %v3581_v16 = vadd.f32 %v3580_v24, %v15784_v34  ;;  %v3888_v32 = vmax.f32 %v3577_v17, 0.0 }
 0x341   : > { %v3889_v49 = vmax.f32 %v3579_v42, 0.0  ;;  %3843 = vmatmul.mubr.bf16.gmra.mrb[240].mxu0 %v15735_v51 }
 0x342   : > { %v3890_v25 = vmax.f32 %v3581_v16, 0.0  ;;  %3852 = vmatprep.mubr.bf16.mxu0 %v15753_v30 }
 0x343   : > { %v4013_v60 = vpack.c.bf16 %v3889_v49, %v3887_v39 }
 0x344   : > { %v3584_v23 = vpop.f32.mrb[136].mxu0  ;;  %v4014_v57 = vpack.c.bf16 %v3890_v25, %v3888_v32 }
 0x345   : > { %v3585_v36 = vadd.f32 %v3584_v23, %v15780_v13  ;;  %v3586_v5 = vpop.f32.mrb[137].mxu0 }
 0x346   : > { %v3587_v6 = vadd.f32 %v3586_v5, %v15784_v34  ;;  %v3588_v26 = vpop.f32.mrb[138].mxu0  ;;  %4322 = vmatprep.mubr.bf16.mxu1 %v4014_v57 }
 0x347   : > { %v3589_v29 = vadd.f32 %v3588_v26, %v15780_v13  ;;  %v3590_v61 = vpop.f32.mrb[139].mxu0  ;;  %4323 = vmatmul.mubr.bf16.gmra.mrb[132].mxu1 %v4013_v60  ;;  %v3891_v8 = vmax.f32 %v3585_v36, 0.0  ;;  %v13721_v60 = vld [vmem:[%s18728_s0 + $0x2b4] ss:$8 sps:$4 sm:$0xff]  }
 0x348   : > { %v3591_v51 = vadd.f32 %v3590_v61, %v15784_v34  ;;  %v3892_v17 = vmax.f32 %v3587_v6, 0.0  ;;  %5052 = vmatprep.subr.bf16.mxu0 %v13721_v60 }
 0x349   : > { %v3893_v30 = vmax.f32 %v3589_v29, 0.0  ;;  %3853 = vmatmul.mubr.bf16.gmra.mrb[244].mxu0 %v15751_v33 }
 0x34a   : > { %v3894_v0 = vmax.f32 %v3591_v51, 0.0  ;;  %3862 = vmatprep.mubr.bf16.mxu0 %v15763_v47  ;;  %v13719_v47 = vld [vmem:[%s18728_s0 + $0x2b0] ss:$8 sps:$4 sm:$0xff]  }
 0x34b   : > { %v4015_v42 = vpack.c.bf16 %v3893_v30, %v3891_v8  ;;  %5053 = vmatpush1.bf16.msra.mxu0 %v13719_v47 }
 0x34c   : > { %v3594_v24 = vpop.f32.mrb[140].mxu0  ;;  %v4016_v16 = vpack.c.bf16 %v3894_v0, %v3892_v17 }
 0x34d   : > { %v3595_v10 = vadd.f32 %v3594_v24, %v15780_v13  ;;  %v3596_v50 = vpop.f32.mrb[141].mxu0 }
 0x34e   : > { %v3597_v39 = vadd.f32 %v3596_v50, %v15784_v34  ;;  %v3598_v49 = vpop.f32.mrb[142].mxu0  ;;  %4332 = vmatprep.mubr.bf16.mxu1 %v4016_v16 }
 0x34f   : > { %v3599_v32 = vadd.f32 %v3598_v49, %v15780_v13  ;;  %v3600_v25 = vpop.f32.mrb[143].mxu0  ;;  %4333 = vmatmul.mubr.bf16.gmra.mrb[136].mxu1 %v4015_v42  ;;  %v3895_v23 = vmax.f32 %v3595_v10, 0.0 }
 0x350   : > { %v3601_v33 = vadd.f32 %v3600_v25, %v15784_v34  ;;  %v3896_v36 = vmax.f32 %v3597_v39, 0.0 }
 0x351   : > { %v3897_v57 = vmax.f32 %v3599_v32, 0.0  ;;  %3863 = vmatmul.mubr.bf16.gmra.mrb[248].mxu0 %v15761_v45 }
 0x352   : > { %v3898_v5 = vmax.f32 %v3601_v33, 0.0  ;;  %3872 = vmatprep.mubr.bf16.mxu0 %v15788_v22 }
 0x353   : > { %v4017_v6 = vpack.c.bf16 %v3897_v57, %v3895_v23  ;;  %v13724_v57 = vld [vmem:[%s18728_s0 + $0x2c4] ss:$8 sps:$4 sm:$0xff]  }
 0x354   : > { %v3604_v26 = vpop.f32.mrb[144].mxu0  ;;  %v4018_v29 = vpack.c.bf16 %v3898_v5, %v3896_v36  ;;  %5054 = vmatprep.subr.bf16.mxu0 %v13724_v57 }
 0x355   : > { %v3605_v61 = vadd.f32 %v3604_v26, %v15780_v13  ;;  %v3606_v51 = vpop.f32.mrb[145].mxu0 }
 0x356   : > { %v3607_v8 = vadd.f32 %v3606_v51, %v15784_v34  ;;  %v3608_v30 = vpop.f32.mrb[146].mxu0  ;;  %4342 = vmatprep.mubr.bf16.mxu1 %v4018_v29 }
 0x357   : > { %v3609_v17 = vadd.f32 %v3608_v30, %v15780_v13  ;;  %v3610_v0 = vpop.f32.mrb[147].mxu0  ;;  %4343 = vmatmul.mubr.bf16.gmra.mrb[140].mxu1 %v4017_v6  ;;  %v3899_v42 = vmax.f32 %v3605_v61, 0.0 }
 0x358   : > { %v3611_v45 = vadd.f32 %v3610_v0, %v15784_v34  ;;  %v3900_v24 = vmax.f32 %v3607_v8, 0.0 }
 0x359   : > { %v3901_v22 = vmax.f32 %v3609_v17, 0.0  ;;  %3873 = vmatmul.mubr.bf16.gmra.mrb[252].mxu0 %v15786_v14  ;;  %v13722_v14 = vld [vmem:[%s18728_s0 + $0x2c0] ss:$8 sps:$4 sm:$0xff]  }
 0x35a   : > { %v3902_v16 = vmax.f32 %v3611_v45, 0.0  ;;  %5055 = vmatpush1.bf16.msra.mxu0 %v13722_v14 }
 0x35b   : > { %v4019_v10 = vpack.c.bf16 %v3901_v22, %v3899_v42 }
 0x35c   : > { %v3614_v50 = vpop.f32.mrb[148].mxu0  ;;  %v4020_v39 = vpack.c.bf16 %v3902_v16, %v3900_v24 }
 0x35d   : > { %v3615_v49 = vadd.f32 %v3614_v50, %v15780_v13  ;;  %v3616_v32 = vpop.f32.mrb[149].mxu0 }
 0x35e   : > { %v3617_v25 = vadd.f32 %v3616_v32, %v15784_v34  ;;  %v3618_v33 = vpop.f32.mrb[150].mxu0  ;;  %4352 = vmatprep.mubr.bf16.mxu1 %v4020_v39 }
 0x35f   : > { %v3619_v47 = vadd.f32 %v3618_v33, %v15780_v13  ;;  %v3620_v60 = vpop.f32.mrb[151].mxu0  ;;  %4353 = vmatmul.mubr.bf16.gmra.mrb[144].mxu1 %v4019_v10  ;;  %v3903_v36 = vmax.f32 %v3615_v49, 0.0 }
 0x360   : > { %v3621_v23 = vadd.f32 %v3620_v60, %v15784_v34  ;;  %v3904_v6 = vmax.f32 %v3617_v25, 0.0 }
 0x361   : > { %v3905_v5 = vmax.f32 %v3619_v47, 0.0 }
 0x362   : > { %v3906_v26 = vmax.f32 %v3621_v23, 0.0 }
 0x363   : > { %v4021_v29 = vpack.c.bf16 %v3905_v5, %v3903_v36  ;;  %v13725_v36 = vld [vmem:[%s18728_s0 + $0x2d0] ss:$8 sps:$4 sm:$0xff]   ;;  %v13727_v5 = vld [vmem:[%s18728_s0 + $0x2d4] ss:$8 sps:$4 sm:$0xff]  }
 0x364   : > { %v3624_v61 = vpop.f32.mrb[152].mxu0  ;;  %v4022_v51 = vpack.c.bf16 %v3906_v26, %v3904_v6  ;;  %5056 = vmatprep.subr.bf16.mxu0 %v13727_v5 }
 0x365   : > { %v3625_v8 = vadd.f32 %v3624_v61, %v15780_v13  ;;  %v3626_v30 = vpop.f32.mrb[153].mxu0  ;;  %5057 = vmatpush1.bf16.msra.mxu0 %v13725_v36 }
 0x366   : > { %v3627_v17 = vadd.f32 %v3626_v30, %v15784_v34  ;;  %v3628_v0 = vpop.f32.mrb[154].mxu0  ;;  %4362 = vmatprep.mubr.bf16.mxu1 %v4022_v51 }
 0x367   : > { %v3629_v45 = vadd.f32 %v3628_v0, %v15780_v13  ;;  %v3630_v42 = vpop.f32.mrb[155].mxu0  ;;  %4363 = vmatmul.mubr.bf16.gmra.mrb[148].mxu1 %v4021_v29  ;;  %v3907_v24 = vmax.f32 %v3625_v8, 0.0 }
 0x368   : > { %v3631_v22 = vadd.f32 %v3630_v42, %v15784_v34  ;;  %v3908_v10 = vmax.f32 %v3627_v17, 0.0 }
 0x369   : > { %v3909_v16 = vmax.f32 %v3629_v45, 0.0 }
 0x36a   : > { %v3910_v50 = vmax.f32 %v3631_v22, 0.0 }
 0x36b   : > { %v4023_v39 = vpack.c.bf16 %v3909_v16, %v3907_v24 }
 0x36c   : > { %v3634_v49 = vpop.f32.mrb[156].mxu0  ;;  %v4024_v32 = vpack.c.bf16 %v3910_v50, %v3908_v10 }
 0x36d   : > { %v3635_v25 = vadd.f32 %v3634_v49, %v15780_v13  ;;  %v3636_v33 = vpop.f32.mrb[157].mxu0 }
 0x36e   : > { %v3637_v47 = vadd.f32 %v3636_v33, %v15784_v34  ;;  %v3638_v60 = vpop.f32.mrb[158].mxu0  ;;  %4372 = vmatprep.mubr.bf16.mxu1 %v4024_v32  ;;  %v13728_v32 = vld [vmem:[%s18728_s0 + $0x300] ss:$8 sps:$4 sm:$0xff]  }
 0x36f   : > { %v3639_v23 = vadd.f32 %v3638_v60, %v15780_v13  ;;  %v3640_v14 = vpop.f32.mrb[159].mxu0  ;;  %4373 = vmatmul.mubr.bf16.gmra.mrb[152].mxu1 %v4023_v39  ;;  %v3911_v6 = vmax.f32 %v3635_v25, 0.0  ;;  %v13730_v25 = vld [vmem:[%s18728_s0 + $0x304] ss:$8 sps:$4 sm:$0xff]  }
 0x370   : > { %v3641_v57 = vadd.f32 %v3640_v14, %v15784_v34  ;;  %v3912_v29 = vmax.f32 %v3637_v47, 0.0  ;;  %5780 = vmatprep.subr.bf16.mxu1 %v13730_v25 }
 0x371   : > { %v3913_v26 = vmax.f32 %v3639_v23, 0.0  ;;  %5781 = vmatpush1.bf16.msra.mxu1 %v13728_v32 }
 0x372   : > { %v3914_v61 = vmax.f32 %v3641_v57, 0.0 }
 0x373   : > { %v4025_v51 = vpack.c.bf16 %v3913_v26, %v3911_v6 }
 0x374   : > { %v3644_v8 = vpop.f32.mrb[160].mxu0  ;;  %v4026_v30 = vpack.c.bf16 %v3914_v61, %v3912_v29  ;;  %v13731_v29 = vld [vmem:[%s18728_s0 + $0x2e0] ss:$8 sps:$4 sm:$0xff]   ;;  %v13733_v61 = vld [vmem:[%s18728_s0 + $0x2e4] ss:$8 sps:$4 sm:$0xff]  }
 0x375   : > { %v3645_v17 = vadd.f32 %v3644_v8, %v15780_v13  ;;  %v3646_v0 = vpop.f32.mrb[161].mxu0  ;;  %5058 = vmatprep.subr.bf16.mxu0 %v13733_v61 }
 0x376   : > { %v3647_v45 = vadd.f32 %v3646_v0, %v15784_v34  ;;  %v3648_v42 = vpop.f32.mrb[162].mxu0  ;;  %4382 = vmatprep.mubr.bf16.mxu1 %v4026_v30  ;;  %5059 = vmatpush1.bf16.msra.mxu0 %v13731_v29 }
 0x377   : > { %v3649_v22 = vadd.f32 %v3648_v42, %v15780_v13  ;;  %v3650_v24 = vpop.f32.mrb[163].mxu0  ;;  %4383 = vmatmul.mubr.bf16.gmra.mrb[156].mxu1 %v4025_v51  ;;  %v3915_v10 = vmax.f32 %v3645_v17, 0.0 }
 0x378   : > { %v3651_v16 = vadd.f32 %v3650_v24, %v15784_v34  ;;  %v3916_v39 = vmax.f32 %v3647_v45, 0.0 }
 0x379   : > { %v3917_v50 = vmax.f32 %v3649_v22, 0.0 }
 0x37a   : > { %v3918_v49 = vmax.f32 %v3651_v16, 0.0 }
 0x37b   : > { %v4027_v33 = vpack.c.bf16 %v3917_v50, %v3915_v10 }
 0x37c   : > { %v3654_v47 = vpop.f32.mrb[164].mxu0  ;;  %v4028_v60 = vpack.c.bf16 %v3918_v49, %v3916_v39 }
 0x37d   : > { %v3655_v23 = vadd.f32 %v3654_v47, %v15780_v13  ;;  %v3656_v14 = vpop.f32.mrb[165].mxu0 }
 0x37e   : > { %v3657_v57 = vadd.f32 %v3656_v14, %v15784_v34  ;;  %v3658_v36 = vpop.f32.mrb[166].mxu0  ;;  %4392 = vmatprep.mubr.bf16.mxu1 %v4028_v60  ;;  %v13734_v60 = vld [vmem:[%s18728_s0 + $0x310] ss:$8 sps:$4 sm:$0xff]  }
 0x37f   : > { %v3659_v5 = vadd.f32 %v3658_v36, %v15780_v13  ;;  %v3660_v6 = vpop.f32.mrb[167].mxu0  ;;  %4393 = vmatmul.mubr.bf16.gmra.mrb[160].mxu1 %v4027_v33  ;;  %v3919_v51 = vmax.f32 %v3655_v23, 0.0  ;;  %v13736_v23 = vld [vmem:[%s18728_s0 + $0x314] ss:$8 sps:$4 sm:$0xff]  }
 0x380   : > { %v3661_v26 = vadd.f32 %v3660_v6, %v15784_v34  ;;  %v3920_v30 = vmax.f32 %v3657_v57, 0.0  ;;  %5782 = vmatprep.subr.bf16.mxu1 %v13736_v23 }
 0x381   : > { %v3921_v8 = vmax.f32 %v3659_v5, 0.0  ;;  %5783 = vmatpush1.bf16.msra.mxu1 %v13734_v60 }
 0x382   : > { %v3922_v17 = vmax.f32 %v3661_v26, 0.0 }
 0x383   : > { %v4029_v0 = vpack.c.bf16 %v3921_v8, %v3919_v51 }
 0x384   : > { %v3664_v45 = vpop.f32.mrb[168].mxu0  ;;  %v4030_v42 = vpack.c.bf16 %v3922_v17, %v3920_v30  ;;  %v13737_v30 = vld [vmem:[%s18728_s0 + $0x2f0] ss:$8 sps:$4 sm:$0xff]   ;;  %v13739_v17 = vld [vmem:[%s18728_s0 + $0x2f4] ss:$8 sps:$4 sm:$0xff]  }
 0x385   : > { %v3665_v22 = vadd.f32 %v3664_v45, %v15780_v13  ;;  %v3666_v24 = vpop.f32.mrb[169].mxu0  ;;  %5060 = vmatprep.subr.bf16.mxu0 %v13739_v17 }
 0x386   : > { %v3667_v16 = vadd.f32 %v3666_v24, %v15784_v34  ;;  %v3668_v10 = vpop.f32.mrb[170].mxu0  ;;  %4402 = vmatprep.mubr.bf16.mxu1 %v4030_v42  ;;  %5061 = vmatpush1.bf16.msra.mxu0 %v13737_v30  ;;  %v13742_v30 = vld [vmem:[%s18728_s0 + $0x324] ss:$8 sps:$4 sm:$0xff]  }
 0x387   : > { %v3669_v50 = vadd.f32 %v3668_v10, %v15780_v13  ;;  %v3670_v39 = vpop.f32.mrb[171].mxu0  ;;  %4403 = vmatmul.mubr.bf16.gmra.mrb[164].mxu1 %v4029_v0  ;;  %v3923_v32 = vmax.f32 %v3665_v22, 0.0  ;;  %5784 = vmatprep.subr.bf16.mxu1 %v13742_v30 }
 0x388   : > { %v3671_v49 = vadd.f32 %v3670_v39, %v15784_v34  ;;  %v3924_v33 = vmax.f32 %v3667_v16, 0.0 }
 0x389   : > { %v3925_v25 = vmax.f32 %v3669_v50, 0.0 }
 0x38a   : > { %v3926_v47 = vmax.f32 %v3671_v49, 0.0 }
 0x38b   : > { %v4031_v14 = vpack.c.bf16 %v3925_v25, %v3923_v32 }
 0x38c   : > { %v3674_v57 = vpop.f32.mrb[172].mxu0  ;;  %v4032_v36 = vpack.c.bf16 %v3926_v47, %v3924_v33 }
 0x38d   : > { %v3675_v5 = vadd.f32 %v3674_v57, %v15780_v13  ;;  %v3676_v6 = vpop.f32.mrb[173].mxu0 }
 0x38e   : > { %v3677_v26 = vadd.f32 %v3676_v6, %v15784_v34  ;;  %v3678_v29 = vpop.f32.mrb[174].mxu0  ;;  %4412 = vmatprep.mubr.bf16.mxu1 %v4032_v36 }
 0x38f   : > { %v3679_v61 = vadd.f32 %v3678_v29, %v15780_v13  ;;  %v3680_v51 = vpop.f32.mrb[175].mxu0  ;;  %4413 = vmatmul.mubr.bf16.gmra.mrb[168].mxu1 %v4031_v14  ;;  %v3927_v0 = vmax.f32 %v3675_v5, 0.0 }
 0x390   : > { %v3681_v8 = vadd.f32 %v3680_v51, %v15784_v34  ;;  %v3928_v42 = vmax.f32 %v3677_v26, 0.0 }
 0x391   : > { %v3929_v45 = vmax.f32 %v3679_v61, 0.0 }
 0x392   : > { %v3930_v22 = vmax.f32 %v3681_v8, 0.0  ;;  %v13740_v8 = vld [vmem:[%s18728_s0 + $0x320] ss:$8 sps:$4 sm:$0xff]  }
 0x393   : > { %v4033_v24 = vpack.c.bf16 %v3929_v45, %v3927_v0  ;;  %5785 = vmatpush1.bf16.msra.mxu1 %v13740_v8 }
 0x394   : > { %v3684_v16 = vpop.f32.mrb[176].mxu0  ;;  %v4034_v10 = vpack.c.bf16 %v3930_v22, %v3928_v42 }
 0x395   : > { %v3685_v50 = vadd.f32 %v3684_v16, %v15780_v13  ;;  %v3686_v39 = vpop.f32.mrb[177].mxu0 }
 0x396   : > { %v3687_v49 = vadd.f32 %v3686_v39, %v15784_v34  ;;  %v3688_v32 = vpop.f32.mrb[178].mxu0  ;;  %4422 = vmatprep.mubr.bf16.mxu1 %v4034_v10 }
 0x397   : > { %v3689_v25 = vadd.f32 %v3688_v32, %v15780_v13  ;;  %v3690_v33 = vpop.f32.mrb[179].mxu0  ;;  %4423 = vmatmul.mubr.bf16.gmra.mrb[172].mxu1 %v4033_v24  ;;  %v3931_v60 = vmax.f32 %v3685_v50, 0.0 }
 0x398   : > { %v3691_v47 = vadd.f32 %v3690_v33, %v15784_v34  ;;  %v3932_v14 = vmax.f32 %v3687_v49, 0.0 }
 0x399   : > { %v3933_v23 = vmax.f32 %v3689_v25, 0.0 }
 0x39a   : > { %v3934_v57 = vmax.f32 %v3691_v47, 0.0 }
 0x39b   : > { %v4035_v36 = vpack.c.bf16 %v3933_v23, %v3931_v60 }
 0x39c   : > { %v3694_v5 = vpop.f32.mrb[180].mxu0  ;;  %v4036_v6 = vpack.c.bf16 %v3934_v57, %v3932_v14 }
 0x39d   : > { %v3695_v26 = vadd.f32 %v3694_v5, %v15780_v13  ;;  %v3696_v29 = vpop.f32.mrb[181].mxu0 }
 0x39e   : > { %v3697_v61 = vadd.f32 %v3696_v29, %v15784_v34  ;;  %v3698_v51 = vpop.f32.mrb[182].mxu0  ;;  %4432 = vmatprep.mubr.bf16.mxu1 %v4036_v6 }
 0x39f   : > { %v3699_v17 = vadd.f32 %v3698_v51, %v15780_v13  ;;  %v3700_v0 = vpop.f32.mrb[183].mxu0  ;;  %4433 = vmatmul.mubr.bf16.gmra.mrb[176].mxu1 %v4035_v36  ;;  %v3935_v42 = vmax.f32 %v3695_v26, 0.0 }
 0x3a0   : > { %v3701_v45 = vadd.f32 %v3700_v0, %v15784_v34  ;;  %v3936_v24 = vmax.f32 %v3697_v61, 0.0  ;;  %v13745_v0 = vld [vmem:[%s18728_s0 + $0x334] ss:$8 sps:$4 sm:$0xff]  }
 0x3a1   : > { %v3937_v22 = vmax.f32 %v3699_v17, 0.0  ;;  %v13743_v17 = vld [vmem:[%s18728_s0 + $0x330] ss:$8 sps:$4 sm:$0xff]   ;;  %5786 = vmatprep.subr.bf16.mxu1 %v13745_v0 }
 0x3a2   : > { %v3938_v16 = vmax.f32 %v3701_v45, 0.0  ;;  %5787 = vmatpush1.bf16.msra.mxu1 %v13743_v17 }
 0x3a3   : > { %v4037_v10 = vpack.c.bf16 %v3937_v22, %v3935_v42 }
 0x3a4   : > { %v3704_v50 = vpop.f32.mrb[184].mxu0  ;;  %v4038_v39 = vpack.c.bf16 %v3938_v16, %v3936_v24 }
 0x3a5   : > { %v3705_v49 = vadd.f32 %v3704_v50, %v15780_v13  ;;  %v3706_v32 = vpop.f32.mrb[185].mxu0 }
 0x3a6   : > { %v3707_v25 = vadd.f32 %v3706_v32, %v15784_v34  ;;  %v3708_v33 = vpop.f32.mrb[186].mxu0  ;;  %4442 = vmatprep.mubr.bf16.mxu1 %v4038_v39 }
 0x3a7   : > { %v3709_v47 = vadd.f32 %v3708_v33, %v15780_v13  ;;  %v3710_v60 = vpop.f32.mrb[187].mxu0  ;;  %4443 = vmatmul.mubr.bf16.gmra.mrb[180].mxu1 %v4037_v10  ;;  %v3939_v14 = vmax.f32 %v3705_v49, 0.0 }
 0x3a8   : > { %v3711_v23 = vadd.f32 %v3710_v60, %v15784_v34  ;;  %v3940_v36 = vmax.f32 %v3707_v25, 0.0 }
 0x3a9   : > { %v3941_v57 = vmax.f32 %v3709_v47, 0.0 }
 0x3aa   : > { %v3942_v5 = vmax.f32 %v3711_v23, 0.0 }
 0x3ab   : > { %v4039_v6 = vpack.c.bf16 %v3941_v57, %v3939_v14 }
 0x3ac   : > { %v3714_v26 = vpop.f32.mrb[188].mxu0  ;;  %v4040_v29 = vpack.c.bf16 %v3942_v5, %v3940_v36 }
 0x3ad   : > { %v3715_v61 = vadd.f32 %v3714_v26, %v15780_v13  ;;  %v3716_v51 = vpop.f32.mrb[189].mxu0 }
 0x3ae   : > { %v3717_v8 = vadd.f32 %v3716_v51, %v15784_v34  ;;  %v3718_v30 = vpop.f32.mrb[190].mxu0  ;;  %4452 = vmatprep.mubr.bf16.mxu1 %v4040_v29 }
 0x3af   : > { %v3719_v45 = vadd.f32 %v3718_v30, %v15780_v13  ;;  %v3720_v42 = vpop.f32.mrb[191].mxu0  ;;  %4453 = vmatmul.mubr.bf16.gmra.mrb[184].mxu1 %v4039_v6  ;;  %v3943_v24 = vmax.f32 %v3715_v61, 0.0 }
 0x3b0   : > { %v3721_v22 = vadd.f32 %v3720_v42, %v15784_v34  ;;  %v3944_v10 = vmax.f32 %v3717_v8, 0.0  ;;  %v13748_v42 = vld [vmem:[%s18728_s0 + $0x344] ss:$8 sps:$4 sm:$0xff]  }
 0x3b1   : > { %v3945_v16 = vmax.f32 %v3719_v45, 0.0  ;;  %v13746_v45 = vld [vmem:[%s18728_s0 + $0x340] ss:$8 sps:$4 sm:$0xff]   ;;  %5788 = vmatprep.subr.bf16.mxu1 %v13748_v42 }
 0x3b2   : > { %v3946_v50 = vmax.f32 %v3721_v22, 0.0  ;;  %5789 = vmatpush1.bf16.msra.mxu1 %v13746_v45 }
 0x3b3   : > { %v4041_v39 = vpack.c.bf16 %v3945_v16, %v3943_v24 }
 0x3b4   : > { %v3724_v49 = vpop.f32.mrb[192].mxu0  ;;  %v4042_v32 = vpack.c.bf16 %v3946_v50, %v3944_v10 }
 0x3b5   : > { %v3725_v25 = vadd.f32 %v3724_v49, %v15780_v13  ;;  %v3726_v33 = vpop.f32.mrb[193].mxu0 }
 0x3b6   : > { %v3727_v47 = vadd.f32 %v3726_v33, %v15784_v34  ;;  %v3728_v60 = vpop.f32.mrb[194].mxu0  ;;  %4462 = vmatprep.mubr.bf16.mxu1 %v4042_v32 }
 0x3b7   : > { %v3729_v23 = vadd.f32 %v3728_v60, %v15780_v13  ;;  %v3730_v14 = vpop.f32.mrb[195].mxu0  ;;  %4463 = vmatmul.mubr.bf16.gmra.mrb[188].mxu1 %v4041_v39  ;;  %v3947_v36 = vmax.f32 %v3725_v25, 0.0 }
 0x3b8   : > { %v3731_v57 = vadd.f32 %v3730_v14, %v15784_v34  ;;  %v3948_v6 = vmax.f32 %v3727_v47, 0.0 }
 0x3b9   : > { %v3949_v5 = vmax.f32 %v3729_v23, 0.0 }
 0x3ba   : > { %v3950_v26 = vmax.f32 %v3731_v57, 0.0 }
 0x3bb   : > { %v4043_v29 = vpack.c.bf16 %v3949_v5, %v3947_v36 }
 0x3bc   : > { %v3734_v61 = vpop.f32.mrb[196].mxu0  ;;  %v4044_v51 = vpack.c.bf16 %v3950_v26, %v3948_v6 }
 0x3bd   : > { %v3735_v8 = vadd.f32 %v3734_v61, %v15780_v13  ;;  %v3736_v30 = vpop.f32.mrb[197].mxu0 }
 0x3be   : > { %v3737_v17 = vadd.f32 %v3736_v30, %v15784_v34  ;;  %v3738_v0 = vpop.f32.mrb[198].mxu0  ;;  %4472 = vmatprep.mubr.bf16.mxu1 %v4044_v51 }
 0x3bf   : > { %v3739_v22 = vadd.f32 %v3738_v0, %v15780_v13  ;;  %v3740_v24 = vpop.f32.mrb[199].mxu0  ;;  %4473 = vmatmul.mubr.bf16.gmra.mrb[192].mxu1 %v4043_v29  ;;  %v3951_v10 = vmax.f32 %v3735_v8, 0.0 }
 0x3c0   : > { %v3741_v16 = vadd.f32 %v3740_v24, %v15784_v34  ;;  %v3952_v39 = vmax.f32 %v3737_v17, 0.0  ;;  %v13751_v24 = vld [vmem:[%s18728_s0 + $0x354] ss:$8 sps:$4 sm:$0xff]  }
 0x3c1   : > { %v3953_v50 = vmax.f32 %v3739_v22, 0.0  ;;  %v13749_v22 = vld [vmem:[%s18728_s0 + $0x350] ss:$8 sps:$4 sm:$0xff]   ;;  %5790 = vmatprep.subr.bf16.mxu1 %v13751_v24 }
 0x3c2   : > { %v3954_v49 = vmax.f32 %v3741_v16, 0.0  ;;  %5791 = vmatpush1.bf16.msra.mxu1 %v13749_v22 }
 0x3c3   : > { %v4045_v32 = vpack.c.bf16 %v3953_v50, %v3951_v10 }
 0x3c4   : > { %v3744_v25 = vpop.f32.mrb[200].mxu0  ;;  %v4046_v33 = vpack.c.bf16 %v3954_v49, %v3952_v39 }
 0x3c5   : > { %v3745_v47 = vadd.f32 %v3744_v25, %v15780_v13  ;;  %v3746_v60 = vpop.f32.mrb[201].mxu0 }
 0x3c6   : > { %v3747_v23 = vadd.f32 %v3746_v60, %v15784_v34  ;;  %v3748_v14 = vpop.f32.mrb[202].mxu0  ;;  %4482 = vmatprep.mubr.bf16.mxu1 %v4046_v33 }
 0x3c7   : > { %v3749_v57 = vadd.f32 %v3748_v14, %v15780_v13  ;;  %v3750_v36 = vpop.f32.mrb[203].mxu0  ;;  %4483 = vmatmul.mubr.bf16.gmra.mrb[196].mxu1 %v4045_v32  ;;  %v3955_v6 = vmax.f32 %v3745_v47, 0.0 }
 0x3c8   : > { %v3751_v5 = vadd.f32 %v3750_v36, %v15784_v34  ;;  %v3956_v29 = vmax.f32 %v3747_v23, 0.0 }
 0x3c9   : > { %v3957_v26 = vmax.f32 %v3749_v57, 0.0 }
 0x3ca   : > { %v3958_v61 = vmax.f32 %v3751_v5, 0.0 }
 0x3cb   : > { %v4047_v51 = vpack.c.bf16 %v3957_v26, %v3955_v6 }
 0x3cc   : > { %v3754_v8 = vpop.f32.mrb[204].mxu0  ;;  %v4048_v30 = vpack.c.bf16 %v3958_v61, %v3956_v29 }
 0x3cd   : > { %v3755_v17 = vadd.f32 %v3754_v8, %v15780_v13  ;;  %v3756_v0 = vpop.f32.mrb[205].mxu0 }
 0x3ce   : > { %v3757_v45 = vadd.f32 %v3756_v0, %v15784_v34  ;;  %v3758_v42 = vpop.f32.mrb[206].mxu0  ;;  %4492 = vmatprep.mubr.bf16.mxu1 %v4048_v30 }
 0x3cf   : > { %v3759_v16 = vadd.f32 %v3758_v42, %v15780_v13  ;;  %v3760_v10 = vpop.f32.mrb[207].mxu0  ;;  %4493 = vmatmul.mubr.bf16.gmra.mrb[200].mxu1 %v4047_v51  ;;  %v3959_v39 = vmax.f32 %v3755_v17, 0.0 }
 0x3d0   : > { %v3761_v50 = vadd.f32 %v3760_v10, %v15784_v34  ;;  %v3960_v32 = vmax.f32 %v3757_v45, 0.0  ;;  %v13754_v10 = vld [vmem:[%s18728_s0 + $0x364] ss:$8 sps:$4 sm:$0xff]  }
 0x3d1   : > { %v3961_v49 = vmax.f32 %v3759_v16, 0.0  ;;  %v13752_v16 = vld [vmem:[%s18728_s0 + $0x360] ss:$8 sps:$4 sm:$0xff]   ;;  %5792 = vmatprep.subr.bf16.mxu1 %v13754_v10 }
 0x3d2   : > { %v3962_v25 = vmax.f32 %v3761_v50, 0.0  ;;  %5793 = vmatpush1.bf16.msra.mxu1 %v13752_v16 }
 0x3d3   : > { %v4049_v33 = vpack.c.bf16 %v3961_v49, %v3959_v39 }
 0x3d4   : > { %v3764_v47 = vpop.f32.mrb[208].mxu0  ;;  %v4050_v60 = vpack.c.bf16 %v3962_v25, %v3960_v32 }
 0x3d5   : > { %v3765_v23 = vadd.f32 %v3764_v47, %v15780_v13  ;;  %v3766_v14 = vpop.f32.mrb[209].mxu0 }
 0x3d6   : > { %v3767_v57 = vadd.f32 %v3766_v14, %v15784_v34  ;;  %v3768_v36 = vpop.f32.mrb[210].mxu0  ;;  %4502 = vmatprep.mubr.bf16.mxu1 %v4050_v60 }
 0x3d7   : > { %v3769_v5 = vadd.f32 %v3768_v36, %v15780_v13  ;;  %v3770_v6 = vpop.f32.mrb[211].mxu0  ;;  %4503 = vmatmul.mubr.bf16.gmra.mrb[204].mxu1 %v4049_v33  ;;  %v3963_v29 = vmax.f32 %v3765_v23, 0.0 }
 0x3d8   : > { %v3771_v26 = vadd.f32 %v3770_v6, %v15784_v34  ;;  %v3964_v51 = vmax.f32 %v3767_v57, 0.0 }
 0x3d9   : > { %v3965_v61 = vmax.f32 %v3769_v5, 0.0 }
 0x3da   : > { %v3966_v8 = vmax.f32 %v3771_v26, 0.0 }
 0x3db   : > { %v4051_v30 = vpack.c.bf16 %v3965_v61, %v3963_v29 }
 0x3dc   : > { %v3774_v17 = vpop.f32.mrb[212].mxu0  ;;  %v4052_v0 = vpack.c.bf16 %v3966_v8, %v3964_v51 }
 0x3dd   : > { %v3775_v45 = vadd.f32 %v3774_v17, %v15780_v13  ;;  %v3776_v42 = vpop.f32.mrb[213].mxu0 }
 0x3de   : > { %v3777_v22 = vadd.f32 %v3776_v42, %v15784_v34  ;;  %v3778_v24 = vpop.f32.mrb[214].mxu0  ;;  %4512 = vmatprep.mubr.bf16.mxu1 %v4052_v0 }
 0x3df   : > { %v3779_v50 = vadd.f32 %v3778_v24, %v15780_v13  ;;  %v3780_v39 = vpop.f32.mrb[215].mxu0  ;;  %4513 = vmatmul.mubr.bf16.gmra.mrb[208].mxu1 %v4051_v30  ;;  %v3967_v32 = vmax.f32 %v3775_v45, 0.0 }
 0x3e0   : > { %v3781_v49 = vadd.f32 %v3780_v39, %v15784_v34  ;;  %v3968_v33 = vmax.f32 %v3777_v22, 0.0  ;;  %v13757_v39 = vld [vmem:[%s18728_s0 + $0x374] ss:$8 sps:$4 sm:$0xff]  }
 0x3e1   : > { %v3969_v25 = vmax.f32 %v3779_v50, 0.0  ;;  %v13755_v50 = vld [vmem:[%s18728_s0 + $0x370] ss:$8 sps:$4 sm:$0xff]   ;;  %5794 = vmatprep.subr.bf16.mxu1 %v13757_v39 }
 0x3e2   : > { %v3970_v47 = vmax.f32 %v3781_v49, 0.0  ;;  %5795 = vmatpush1.bf16.msra.mxu1 %v13755_v50 }
 0x3e3   : > { %v4053_v60 = vpack.c.bf16 %v3969_v25, %v3967_v32 }
 0x3e4   : > { %v3784_v23 = vpop.f32.mrb[216].mxu0  ;;  %v4054_v14 = vpack.c.bf16 %v3970_v47, %v3968_v33 }
 0x3e5   : > { %v3785_v57 = vadd.f32 %v3784_v23, %v15780_v13  ;;  %v3786_v36 = vpop.f32.mrb[217].mxu0 }
 0x3e6   : > { %v3787_v5 = vadd.f32 %v3786_v36, %v15784_v34  ;;  %v3788_v6 = vpop.f32.mrb[218].mxu0  ;;  %4522 = vmatprep.mubr.bf16.mxu1 %v4054_v14 }
 0x3e7   : > { %v3789_v26 = vadd.f32 %v3788_v6, %v15780_v13  ;;  %v3790_v29 = vpop.f32.mrb[219].mxu0  ;;  %4523 = vmatmul.mubr.bf16.gmra.mrb[212].mxu1 %v4053_v60  ;;  %v3971_v51 = vmax.f32 %v3785_v57, 0.0 }
 0x3e8   : > { %v3791_v61 = vadd.f32 %v3790_v29, %v15784_v34  ;;  %v3972_v30 = vmax.f32 %v3787_v5, 0.0 }
 0x3e9   : > { %v3973_v8 = vmax.f32 %v3789_v26, 0.0 }
 0x3ea   : > { %v3974_v17 = vmax.f32 %v3791_v61, 0.0 }
 0x3eb   : > { %v4055_v0 = vpack.c.bf16 %v3973_v8, %v3971_v51 }
 0x3ec   : > { %v3794_v45 = vpop.f32.mrb[220].mxu0  ;;  %v4056_v42 = vpack.c.bf16 %v3974_v17, %v3972_v30 }
 0x3ed   : > { %v3795_v22 = vadd.f32 %v3794_v45, %v15780_v13  ;;  %v3796_v24 = vpop.f32.mrb[221].mxu0 }
 0x3ee   : > { %v3797_v16 = vadd.f32 %v3796_v24, %v15784_v34  ;;  %v3798_v10 = vpop.f32.mrb[222].mxu0  ;;  %4532 = vmatprep.mubr.bf16.mxu1 %v4056_v42 }
 0x3ef   : > { %v3799_v49 = vadd.f32 %v3798_v10, %v15780_v13  ;;  %v3800_v32 = vpop.f32.mrb[223].mxu0  ;;  %4533 = vmatmul.mubr.bf16.gmra.mrb[216].mxu1 %v4055_v0  ;;  %v3975_v33 = vmax.f32 %v3795_v22, 0.0 }
 0x3f0   : > { %v3801_v25 = vadd.f32 %v3800_v32, %v15784_v34  ;;  %v3976_v60 = vmax.f32 %v3797_v16, 0.0  ;;  %v13760_v32 = vld [vmem:[%s18728_s0 + $0x384] ss:$8 sps:$4 sm:$0xff]  }
 0x3f1   : > { %v3977_v47 = vmax.f32 %v3799_v49, 0.0  ;;  %v13758_v49 = vld [vmem:[%s18728_s0 + $0x380] ss:$8 sps:$4 sm:$0xff]   ;;  %5796 = vmatprep.subr.bf16.mxu1 %v13760_v32 }
 0x3f2   : > { %v3978_v23 = vmax.f32 %v3801_v25, 0.0  ;;  %5797 = vmatpush1.bf16.msra.mxu1 %v13758_v49 }
 0x3f3   : > { %v4057_v14 = vpack.c.bf16 %v3977_v47, %v3975_v33 }
 0x3f4   : > { %v3804_v57 = vpop.f32.mrb[224].mxu0  ;;  %v4058_v36 = vpack.c.bf16 %v3978_v23, %v3976_v60 }
 0x3f5   : > { %v3805_v5 = vadd.f32 %v3804_v57, %v15780_v13  ;;  %v3806_v6 = vpop.f32.mrb[225].mxu0 }
 0x3f6   : > { %v3807_v26 = vadd.f32 %v3806_v6, %v15784_v34  ;;  %v3808_v29 = vpop.f32.mrb[226].mxu0  ;;  %4542 = vmatprep.mubr.bf16.mxu1 %v4058_v36 }
 0x3f7   : > { %v3809_v61 = vadd.f32 %v3808_v29, %v15780_v13  ;;  %v3810_v51 = vpop.f32.mrb[227].mxu0  ;;  %4543 = vmatmul.mubr.bf16.gmra.mrb[220].mxu1 %v4057_v14  ;;  %v3979_v30 = vmax.f32 %v3805_v5, 0.0 }
 0x3f8   : > { %v3811_v8 = vadd.f32 %v3810_v51, %v15784_v34  ;;  %v3980_v0 = vmax.f32 %v3807_v26, 0.0 }
 0x3f9   : > { %v3981_v17 = vmax.f32 %v3809_v61, 0.0 }
 0x3fa   : > { %v3982_v45 = vmax.f32 %v3811_v8, 0.0 }
 0x3fb   : > { %v4059_v42 = vpack.c.bf16 %v3981_v17, %v3979_v30 }
 0x3fc   : > { %v3814_v22 = vpop.f32.mrb[228].mxu0  ;;  %v4060_v24 = vpack.c.bf16 %v3982_v45, %v3980_v0 }
 0x3fd   : > { %v3815_v16 = vadd.f32 %v3814_v22, %v15780_v13  ;;  %v3816_v10 = vpop.f32.mrb[229].mxu0 }
 0x3fe   : > { %v3817_v50 = vadd.f32 %v3816_v10, %v15784_v34  ;;  %v3818_v39 = vpop.f32.mrb[230].mxu0  ;;  %4552 = vmatprep.mubr.bf16.mxu1 %v4060_v24 }
 0x3ff   : > { %v3819_v25 = vadd.f32 %v3818_v39, %v15780_v13  ;;  %v3820_v33 = vpop.f32.mrb[231].mxu0  ;;  %4553 = vmatmul.mubr.bf16.gmra.mrb[224].mxu1 %v4059_v42  ;;  %v3983_v60 = vmax.f32 %v3815_v16, 0.0 }
 0x400   : > { %v3821_v47 = vadd.f32 %v3820_v33, %v15784_v34  ;;  %v3984_v14 = vmax.f32 %v3817_v50, 0.0  ;;  %v4108_v50 = vld [vmem:[%s18733_s5] sm:$0x3]  ;;  %v13761_v33 = vld [vmem:[%s18728_s0 + $0x390] ss:$8 sps:$4 sm:$0xff]  }
 0x401   : > { %v3985_v23 = vmax.f32 %v3819_v25, 0.0 }
 0x402   : > { %v3986_v57 = vmax.f32 %v3821_v47, 0.0  ;;  %v13763_v47 = vld [vmem:[%s18728_s0 + $0x394] ss:$8 sps:$4 sm:$0xff]  }
 0x403   : > { %v4061_v36 = vpack.c.bf16 %v3985_v23, %v3983_v60  ;;  %5798 = vmatprep.subr.bf16.mxu1 %v13763_v47 }
 0x404   : > { %v3824_v5 = vpop.f32.mrb[232].mxu0  ;;  %v4062_v6 = vpack.c.bf16 %v3986_v57, %v3984_v14  ;;  %v16010_v14 = vrot.slane %v4108_v50, %v15253_v58  ;;  %5799 = vmatpush1.bf16.msra.mxu1 %v13761_v33 }
 0x405   : > { %v3825_v26 = vadd.f32 %v3824_v5, %v15780_v13  ;;  %v3826_v29 = vpop.f32.mrb[233].mxu0 }
 0x406   : > { %v3827_v61 = vadd.f32 %v3826_v29, %v15784_v34  ;;  %v3828_v51 = vpop.f32.mrb[234].mxu0  ;;  %4562 = vmatprep.mubr.bf16.mxu1 %v4062_v6 }
 0x407   : > { %v3829_v8 = vadd.f32 %v3828_v51, %v15780_v13  ;;  %v3830_v30 = vpop.f32.mrb[235].mxu0  ;;  %4563 = vmatmul.mubr.bf16.gmra.mrb[228].mxu1 %v4061_v36  ;;  %v3987_v0 = vmax.f32 %v3825_v26, 0.0  ;;  %v16014_v36 = vrot.slane %v4108_v50, %v15258_v27 }
 0x408   : > { %v3831_v17 = vadd.f32 %v3830_v30, %v15784_v34  ;;  %v3988_v42 = vmax.f32 %v3827_v61, 0.0 }
 0x409   : > { %v3989_v45 = vmax.f32 %v3829_v8, 0.0 }
 0x40a   : > { %v3990_v22 = vmax.f32 %v3831_v17, 0.0 }
 0x40b   : > { %v4063_v24 = vpack.c.bf16 %v3989_v45, %v3987_v0 }
 0x40c   : > { %v3834_v16 = vpop.f32.mrb[236].mxu0  ;;  %v4064_v10 = vpack.c.bf16 %v3990_v22, %v3988_v42 }
 0x40d   : > { %v3835_v39 = vadd.f32 %v3834_v16, %v15780_v13  ;;  %v3836_v49 = vpop.f32.mrb[237].mxu0 }
 0x40e   : > { %v3837_v32 = vadd.f32 %v3836_v49, %v15784_v34  ;;  %v3838_v25 = vpop.f32.mrb[238].mxu0  ;;  %4572 = vmatprep.mubr.bf16.mxu1 %v4064_v10 }
 0x40f   : > { %v3839_v60 = vadd.f32 %v3838_v25, %v15780_v13  ;;  %v3840_v23 = vpop.f32.mrb[239].mxu0  ;;  %4573 = vmatmul.mubr.bf16.gmra.mrb[232].mxu1 %v4063_v24  ;;  %v3991_v5 = vmax.f32 %v3835_v39, 0.0 }
 0x410   : > { %v3841_v57 = vadd.f32 %v3840_v23, %v15784_v34  ;;  %v3992_v26 = vmax.f32 %v3837_v32, 0.0 }
 0x411   : > { %v3993_v6 = vmax.f32 %v3839_v60, 0.0 }
 0x412   : > { %v3994_v29 = vmax.f32 %v3841_v57, 0.0  ;;  %v4314_v61 = vpop.f32.mrb[128].mxu1 }
 0x413   : > { %v4315_v51 = vadd.f32 %v4314_v61, %v16010_v14  ;;  %v4316_v8 = vpop.f32.mrb[129].mxu1  ;;  %v4065_v30 = vpack.c.bf16 %v3993_v6, %v3991_v5 }
 0x414   : > { %v4317_v17 = vadd.f32 %v4316_v8, %v16014_v36  ;;  %v3844_v0 = vpop.f32.mrb[240].mxu0  ;;  %v4318_v45 = vpop.f32.mrb[130].mxu1  ;;  %v4066_v42 = vpack.c.bf16 %v3994_v29, %v3992_v26 }
 0x415   : > { %v3845_v22 = vadd.f32 %v3844_v0, %v15780_v13  ;;  %v4319_v24 = vadd.f32 %v4318_v45, %v16010_v14  ;;  %v3846_v16 = vpop.f32.mrb[241].mxu0  ;;  %v4320_v10 = vpop.f32.mrb[131].mxu1  ;;  %v4633_v32 = vmax.f32 %v4315_v51, 0.0 }
 0x416   : > { %v3847_v50 = vadd.f32 %v3846_v16, %v15784_v34  ;;  %v4321_v39 = vadd.f32 %v4320_v10, %v16014_v36  ;;  %v3848_v49 = vpop.f32.mrb[242].mxu0  ;;  %4582 = vmatprep.mubr.bf16.mxu1 %v4066_v42  ;;  %v4634_v60 = vmax.f32 %v4317_v17, 0.0 }
 0x417   : > { %v4635_v25 = vmax.f32 %v4319_v24, 0.0  ;;  %v3849_v33 = vadd.f32 %v3848_v49, %v15780_v13  ;;  %v3850_v47 = vpop.f32.mrb[243].mxu0  ;;  %4583 = vmatmul.mubr.bf16.gmra.mrb[236].mxu1 %v4065_v30  ;;  %v3995_v5 = vmax.f32 %v3845_v22, 0.0 }
 0x418   : > { %v4636_v23 = vmax.f32 %v4321_v39, 0.0  ;;  %v3851_v57 = vadd.f32 %v3850_v47, %v15784_v34  ;;  %v3996_v29 = vmax.f32 %v3847_v50, 0.0  ;;  %v13766_v47 = vld [vmem:[%s18728_s0 + $0x3a4] ss:$8 sps:$4 sm:$0xff]  }
 0x419   : > { %v4761_v6 = vpack.c.bf16 %v4635_v25, %v4633_v32  ;;  %v3997_v26 = vmax.f32 %v3849_v33, 0.0  ;;  %v13764_v33 = vld [vmem:[%s18728_s0 + $0x3a0] ss:$8 sps:$4 sm:$0xff]   ;;  %5800 = vmatprep.subr.bf16.mxu1 %v13766_v47 }
 0x41a   : > { %v3998_v61 = vmax.f32 %v3851_v57, 0.0  ;;  %v4324_v8 = vpop.f32.mrb[132].mxu1  ;;  %v4762_v0 = vpack.c.bf16 %v4636_v23, %v4634_v60  ;;  %5801 = vmatpush1.bf16.msra.mxu1 %v13764_v33 }
 0x41b   : > { %v4325_v45 = vadd.f32 %v4324_v8, %v16010_v14  ;;  %v4326_v42 = vpop.f32.mrb[133].mxu1  ;;  %v4067_v51 = vpack.c.bf16 %v3997_v26, %v3995_v5 }
 0x41c   : > { %v4327_v24 = vadd.f32 %v4326_v42, %v16014_v36  ;;  %v3854_v16 = vpop.f32.mrb[244].mxu0  ;;  %v4328_v10 = vpop.f32.mrb[134].mxu1  ;;  %5062 = vmatprep.mubr.bf16.mxu0 %v4762_v0  ;;  %v4068_v30 = vpack.c.bf16 %v3998_v61, %v3996_v29 }
 0x41d   : > { %v3855_v17 = vadd.f32 %v3854_v16, %v15780_v13  ;;  %v4329_v22 = vadd.f32 %v4328_v10, %v16010_v14  ;;  %v3856_v39 = vpop.f32.mrb[245].mxu0  ;;  %v4330_v49 = vpop.f32.mrb[135].mxu1  ;;  %5063 = vmatmul.mubr.bf16.vlgmr.msra.gmra.mrb[0].mxu0 %v4761_v6  ;;  %v4637_v60 = vmax.f32 %v4325_v45, 0.0 }
 0x41e   : > { %v3857_v50 = vadd.f32 %v3856_v39, %v15784_v34  ;;  %v4331_v32 = vadd.f32 %v4330_v49, %v16014_v36  ;;  %v3858_v25 = vpop.f32.mrb[246].mxu0  ;;  %4592 = vmatprep.mubr.bf16.mxu1 %v4068_v30  ;;  %v4638_v6 = vmax.f32 %v4327_v24, 0.0 }
 0x41f   : > { %v4639_v23 = vmax.f32 %v4329_v22, 0.0  ;;  %v3859_v57 = vadd.f32 %v3858_v25, %v15780_v13  ;;  %v3860_v5 = vpop.f32.mrb[247].mxu0  ;;  %4593 = vmatmul.mubr.bf16.gmra.mrb[240].mxu1 %v4067_v51  ;;  %v3999_v61 = vmax.f32 %v3855_v17, 0.0 }
 0x420   : > { %v4640_v26 = vmax.f32 %v4331_v32, 0.0  ;;  %v3861_v29 = vadd.f32 %v3860_v5, %v15784_v34  ;;  %v4000_v42 = vmax.f32 %v3857_v50, 0.0 }
 0x421   : > { %v4763_v8 = vpack.c.bf16 %v4639_v23, %v4637_v60  ;;  %v4001_v0 = vmax.f32 %v3859_v57, 0.0 }
 0x422   : > { %v4002_v16 = vmax.f32 %v3861_v29, 0.0  ;;  %v4334_v10 = vpop.f32.mrb[136].mxu1  ;;  %v4764_v30 = vpack.c.bf16 %v4640_v26, %v4638_v6 }
 0x423   : > { %v4335_v45 = vadd.f32 %v4334_v10, %v16010_v14  ;;  %v4336_v22 = vpop.f32.mrb[137].mxu1  ;;  %v4069_v39 = vpack.c.bf16 %v4001_v0, %v3999_v61 }
 0x424   : > { %v4337_v49 = vadd.f32 %v4336_v22, %v16014_v36  ;;  %v3864_v51 = vpop.f32.mrb[248].mxu0  ;;  %v4338_v24 = vpop.f32.mrb[138].mxu1  ;;  %5072 = vmatprep.mubr.bf16.mxu0 %v4764_v30  ;;  %v4070_v32 = vpack.c.bf16 %v4002_v16, %v4000_v42 }
 0x425   : > { %v3865_v25 = vadd.f32 %v3864_v51, %v15780_v13  ;;  %v4339_v17 = vadd.f32 %v4338_v24, %v16010_v14  ;;  %v3866_v47 = vpop.f32.mrb[249].mxu0  ;;  %v4340_v33 = vpop.f32.mrb[139].mxu1  ;;  %5073 = vmatmul.mubr.bf16.gmra.mrb[4].mxu0 %v4763_v8  ;;  %v4641_v57 = vmax.f32 %v4335_v45, 0.0 }
 0x426   : > { %v3867_v50 = vadd.f32 %v3866_v47, %v15784_v34  ;;  %v4341_v60 = vadd.f32 %v4340_v33, %v16014_v36  ;;  %v3868_v23 = vpop.f32.mrb[250].mxu0  ;;  %4602 = vmatprep.mubr.bf16.mxu1 %v4070_v32  ;;  %v4642_v29 = vmax.f32 %v4337_v49, 0.0 }
 0x427   : > { %v4643_v5 = vmax.f32 %v4339_v17, 0.0  ;;  %v3869_v6 = vadd.f32 %v3868_v23, %v15780_v13  ;;  %v3870_v26 = vpop.f32.mrb[251].mxu0  ;;  %4603 = vmatmul.mubr.bf16.gmra.mrb[244].mxu1 %v4069_v39  ;;  %v4003_v42 = vmax.f32 %v3865_v25, 0.0 }
 0x428   : > { %v4644_v61 = vmax.f32 %v4341_v60, 0.0  ;;  %v3871_v0 = vadd.f32 %v3870_v26, %v15784_v34  ;;  %v4004_v8 = vmax.f32 %v3867_v50, 0.0  ;;  %v13769_v26 = vld [vmem:[%s18728_s0 + $0x3b4] ss:$8 sps:$4 sm:$0xff]  }
 0x429   : > { %v4765_v16 = vpack.c.bf16 %v4643_v5, %v4641_v57  ;;  %v4005_v10 = vmax.f32 %v3869_v6, 0.0  ;;  %v13767_v6 = vld [vmem:[%s18728_s0 + $0x3b0] ss:$8 sps:$4 sm:$0xff]   ;;  %5802 = vmatprep.subr.bf16.mxu1 %v13769_v26 }
 0x42a   : > { %v4006_v30 = vmax.f32 %v3871_v0, 0.0  ;;  %v4344_v22 = vpop.f32.mrb[140].mxu1  ;;  %v4766_v51 = vpack.c.bf16 %v4644_v61, %v4642_v29  ;;  %5803 = vmatpush1.bf16.msra.mxu1 %v13767_v6 }
 0x42b   : > { %v4345_v24 = vadd.f32 %v4344_v22, %v16010_v14  ;;  %v4346_v32 = vpop.f32.mrb[141].mxu1  ;;  %v4071_v45 = vpack.c.bf16 %v4005_v10, %v4003_v42 }
 0x42c   : > { %v4347_v17 = vadd.f32 %v4346_v32, %v16014_v36  ;;  %v3874_v47 = vpop.f32.mrb[252].mxu0  ;;  %v4348_v33 = vpop.f32.mrb[142].mxu1  ;;  %5082 = vmatprep.mubr.bf16.mxu0 %v4766_v51  ;;  %v4072_v39 = vpack.c.bf16 %v4006_v30, %v4004_v8 }
 0x42d   : > { %v3875_v49 = vadd.f32 %v3874_v47, %v15780_v13  ;;  %v4349_v25 = vadd.f32 %v4348_v33, %v16010_v14  ;;  %v3876_v60 = vpop.f32.mrb[253].mxu0  ;;  %v4350_v23 = vpop.f32.mrb[143].mxu1  ;;  %5083 = vmatmul.mubr.bf16.gmra.mrb[8].mxu0 %v4765_v16  ;;  %v4645_v29 = vmax.f32 %v4345_v24, 0.0 }
 0x42e   : > { %v3877_v50 = vadd.f32 %v3876_v60, %v15784_v34  ;;  %v4351_v57 = vadd.f32 %v4350_v23, %v16014_v36  ;;  %v3878_v5 = vpop.f32.mrb[254].mxu0  ;;  %4612 = vmatprep.mubr.bf16.mxu1 %v4072_v39  ;;  %v4646_v16 = vmax.f32 %v4347_v17, 0.0 }
 0x42f   : > { %v4647_v61 = vmax.f32 %v4349_v25, 0.0  ;;  %v3879_v0 = vadd.f32 %v3878_v5, %v15780_v13  ;;  %v3880_v42 = vpop.f32.mrb[255].mxu0  ;;  %4613 = vmatmul.mubr.bf16.gmra.mrb[248].mxu1 %v4071_v45  ;;  %v4007_v30 = vmax.f32 %v3875_v49, 0.0 }
 0x430   : > { %v4648_v10 = vmax.f32 %v4351_v57, 0.0  ;;  %v3881_v8 = vadd.f32 %v3880_v42, %v15784_v34  ;;  %v4008_v32 = vmax.f32 %v3877_v50, 0.0 }
 0x431   : > { %v4767_v22 = vpack.c.bf16 %v4647_v61, %v4645_v29  ;;  %v4009_v51 = vmax.f32 %v3879_v0, 0.0 }
 0x432   : > { %v4010_v47 = vmax.f32 %v3881_v8, 0.0  ;;  %v4354_v33 = vpop.f32.mrb[144].mxu1  ;;  %v4768_v39 = vpack.c.bf16 %v4648_v10, %v4646_v16 }
 0x433   : > { %v4355_v24 = vadd.f32 %v4354_v33, %v16010_v14  ;;  %v4356_v25 = vpop.f32.mrb[145].mxu1  ;;  %v4073_v60 = vpack.c.bf16 %v4009_v51, %v4007_v30  ;;  %v13770_v51 = vld [vmem:[%s18728_s0 + $0x3c0] ss:$8 sps:$4 sm:$0xff]  }
 0x434   : > { %v4357_v13 = vadd.f32 %v4356_v25, %v16014_v36  ;;  %v4358_v45 = vpop.f32.mrb[146].mxu1  ;;  %5092 = vmatprep.mubr.bf16.mxu0 %v4768_v39  ;;  %v4074_v17 = vpack.c.bf16 %v4010_v47, %v4008_v32  ;;  %v13772_v32 = vld [vmem:[%s18728_s0 + $0x3c4] ss:$8 sps:$4 sm:$0xff]  }
 0x435   : > { %v4359_v34 = vadd.f32 %v4358_v45, %v16010_v14  ;;  %v4360_v23 = vpop.f32.mrb[147].mxu1  ;;  %5093 = vmatmul.mubr.bf16.gmra.mrb[12].mxu0 %v4767_v22  ;;  %v4649_v50 = vmax.f32 %v4355_v24, 0.0  ;;  %5804 = vmatprep.subr.bf16.mxu1 %v13772_v32 }
 0x436   : > { %v4361_v49 = vadd.f32 %v4360_v23, %v16014_v36  ;;  %4622 = vmatprep.mubr.bf16.mxu1 %v4074_v17  ;;  %v4650_v5 = vmax.f32 %v4357_v13, 0.0  ;;  %5805 = vmatpush1.bf16.msra.mxu1 %v13770_v51 }
 0x437   : > { %v4651_v57 = vmax.f32 %v4359_v34, 0.0  ;;  %4623 = vmatmul.mubr.bf16.gmra.mrb[252].mxu1 %v4073_v60 }
 0x438   : > { %v4652_v6 = vmax.f32 %v4361_v49, 0.0 }
 0x439   : > { %v4769_v26 = vpack.c.bf16 %v4651_v57, %v4649_v50 }
 0x43a   : > { %v4364_v29 = vpop.f32.mrb[148].mxu1  ;;  %v4770_v61 = vpack.c.bf16 %v4652_v6, %v4650_v5 }
 0x43b   : > { %v4365_v0 = vadd.f32 %v4364_v29, %v16010_v14  ;;  %v4366_v42 = vpop.f32.mrb[149].mxu1 }
 0x43c   : > { %v4367_v16 = vadd.f32 %v4366_v42, %v16014_v36  ;;  %v4368_v10 = vpop.f32.mrb[150].mxu1  ;;  %5102 = vmatprep.mubr.bf16.mxu0 %v4770_v61 }
 0x43d   : > { %v4369_v8 = vadd.f32 %v4368_v10, %v16010_v14  ;;  %v4370_v30 = vpop.f32.mrb[151].mxu1  ;;  %5103 = vmatmul.mubr.bf16.gmra.mrb[16].mxu0 %v4769_v26  ;;  %v4653_v47 = vmax.f32 %v4365_v0, 0.0 }
 0x43e   : > { %v4371_v22 = vadd.f32 %v4370_v30, %v16014_v36  ;;  %v4654_v39 = vmax.f32 %v4367_v16, 0.0 }
 0x43f   : > { %v4655_v33 = vmax.f32 %v4369_v8, 0.0 }
 0x440   : > { %v4656_v24 = vmax.f32 %v4371_v22, 0.0 }
 0x441   : > { %v4771_v25 = vpack.c.bf16 %v4655_v33, %v4653_v47  ;;  %v13773_v47 = vld [vmem:[%s18728_s0 + $0x3d0] ss:$8 sps:$4 sm:$0xff]   ;;  %v13775_v33 = vld [vmem:[%s18728_s0 + $0x3d4] ss:$8 sps:$4 sm:$0xff]  }
 0x442   : > { %v4374_v60 = vpop.f32.mrb[152].mxu1  ;;  %v4772_v13 = vpack.c.bf16 %v4656_v24, %v4654_v39  ;;  %5806 = vmatprep.subr.bf16.mxu1 %v13775_v33 }
 0x443   : > { %v4375_v45 = vadd.f32 %v4374_v60, %v16010_v14  ;;  %v4376_v17 = vpop.f32.mrb[153].mxu1  ;;  %5807 = vmatpush1.bf16.msra.mxu1 %v13773_v47 }
 0x444   : > { %v4377_v34 = vadd.f32 %v4376_v17, %v16014_v36  ;;  %v4378_v23 = vpop.f32.mrb[154].mxu1  ;;  %5112 = vmatprep.mubr.bf16.mxu0 %v4772_v13 }
 0x445   : > { %v4379_v49 = vadd.f32 %v4378_v23, %v16010_v14  ;;  %v4380_v50 = vpop.f32.mrb[155].mxu1  ;;  %5113 = vmatmul.mubr.bf16.gmra.mrb[20].mxu0 %v4771_v25  ;;  %v4657_v5 = vmax.f32 %v4375_v45, 0.0 }
 0x446   : > { %v4381_v57 = vadd.f32 %v4380_v50, %v16014_v36  ;;  %v4658_v26 = vmax.f32 %v4377_v34, 0.0 }
 0x447   : > { %v4659_v6 = vmax.f32 %v4379_v49, 0.0 }
 0x448   : > { %v4660_v29 = vmax.f32 %v4381_v57, 0.0 }
 0x449   : > { %v4773_v61 = vpack.c.bf16 %v4659_v6, %v4657_v5 }
 0x44a   : > { %v4384_v0 = vpop.f32.mrb[156].mxu1  ;;  %v4774_v42 = vpack.c.bf16 %v4660_v29, %v4658_v26 }
 0x44b   : > { %v4385_v16 = vadd.f32 %v4384_v0, %v16010_v14  ;;  %v4386_v10 = vpop.f32.mrb[157].mxu1 }
 0x44c   : > { %v4387_v8 = vadd.f32 %v4386_v10, %v16014_v36  ;;  %v4388_v30 = vpop.f32.mrb[158].mxu1  ;;  %5122 = vmatprep.mubr.bf16.mxu0 %v4774_v42 }
 0x44d   : > { %v4389_v22 = vadd.f32 %v4388_v30, %v16010_v14  ;;  %v4390_v51 = vpop.f32.mrb[159].mxu1  ;;  %5123 = vmatmul.mubr.bf16.gmra.mrb[24].mxu0 %v4773_v61  ;;  %v4661_v39 = vmax.f32 %v4385_v16, 0.0 }
 0x44e   : > { %v4391_v32 = vadd.f32 %v4390_v51, %v16014_v36  ;;  %v4662_v25 = vmax.f32 %v4387_v8, 0.0 }
 0x44f   : > { %v4663_v24 = vmax.f32 %v4389_v22, 0.0 }
 0x450   : > { %v4664_v60 = vmax.f32 %v4391_v32, 0.0 }
 0x451   : > { %v4775_v13 = vpack.c.bf16 %v4663_v24, %v4661_v39  ;;  %v13776_v39 = vld [vmem:[%s18728_s0 + $0x3e0] ss:$8 sps:$4 sm:$0xff]   ;;  %v13778_v24 = vld [vmem:[%s18728_s0 + $0x3e4] ss:$8 sps:$4 sm:$0xff]  }
 0x452   : > { %v4394_v45 = vpop.f32.mrb[160].mxu1  ;;  %v4776_v17 = vpack.c.bf16 %v4664_v60, %v4662_v25  ;;  %5808 = vmatprep.subr.bf16.mxu1 %v13778_v24 }
 0x453   : > { %v4395_v34 = vadd.f32 %v4394_v45, %v16010_v14  ;;  %v4396_v23 = vpop.f32.mrb[161].mxu1  ;;  %5809 = vmatpush1.bf16.msra.mxu1 %v13776_v39 }
 0x454   : > { %v4397_v49 = vadd.f32 %v4396_v23, %v16014_v36  ;;  %v4398_v50 = vpop.f32.mrb[162].mxu1  ;;  %5132 = vmatprep.mubr.bf16.mxu0 %v4776_v17 }
 0x455   : > { %v4399_v57 = vadd.f32 %v4398_v50, %v16010_v14  ;;  %v4400_v5 = vpop.f32.mrb[163].mxu1  ;;  %5133 = vmatmul.mubr.bf16.gmra.mrb[28].mxu0 %v4775_v13  ;;  %v4665_v26 = vmax.f32 %v4395_v34, 0.0 }
 0x456   : > { %v4401_v6 = vadd.f32 %v4400_v5, %v16014_v36  ;;  %v4666_v61 = vmax.f32 %v4397_v49, 0.0 }
 0x457   : > { %v4667_v29 = vmax.f32 %v4399_v57, 0.0 }
 0x458   : > { %v4668_v0 = vmax.f32 %v4401_v6, 0.0 }
 0x459   : > { %v4777_v42 = vpack.c.bf16 %v4667_v29, %v4665_v26 }
 0x45a   : > { %v4404_v16 = vpop.f32.mrb[164].mxu1  ;;  %v4778_v10 = vpack.c.bf16 %v4668_v0, %v4666_v61 }
 0x45b   : > { %v4405_v8 = vadd.f32 %v4404_v16, %v16010_v14  ;;  %v4406_v30 = vpop.f32.mrb[165].mxu1 }
 0x45c   : > { %v4407_v22 = vadd.f32 %v4406_v30, %v16014_v36  ;;  %v4408_v51 = vpop.f32.mrb[166].mxu1  ;;  %5142 = vmatprep.mubr.bf16.mxu0 %v4778_v10 }
 0x45d   : > { %v4409_v32 = vadd.f32 %v4408_v51, %v16010_v14  ;;  %v4410_v47 = vpop.f32.mrb[167].mxu1  ;;  %5143 = vmatmul.mubr.bf16.gmra.mrb[32].mxu0 %v4777_v42  ;;  %v4669_v25 = vmax.f32 %v4405_v8, 0.0 }
 0x45e   : > { %v4411_v33 = vadd.f32 %v4410_v47, %v16014_v36  ;;  %v4670_v13 = vmax.f32 %v4407_v22, 0.0 }
 0x45f   : > { %v4671_v60 = vmax.f32 %v4409_v32, 0.0 }
 0x460   : > { %v4672_v45 = vmax.f32 %v4411_v33, 0.0 }
 0x461   : > { %v4779_v17 = vpack.c.bf16 %v4671_v60, %v4669_v25  ;;  %v13779_v25 = vld [vmem:[%s18728_s0 + $0x3f0] ss:$8 sps:$4 sm:$0xff]   ;;  %v13781_v60 = vld [vmem:[%s18728_s0 + $0x3f4] ss:$8 sps:$4 sm:$0xff]  }
 0x462   : > { %v4414_v34 = vpop.f32.mrb[168].mxu1  ;;  %v4780_v23 = vpack.c.bf16 %v4672_v45, %v4670_v13  ;;  %5810 = vmatprep.subr.bf16.mxu1 %v13781_v60 }
 0x463   : > { %v4415_v49 = vadd.f32 %v4414_v34, %v16010_v14  ;;  %v4416_v50 = vpop.f32.mrb[169].mxu1  ;;  %5811 = vmatpush1.bf16.msra.mxu1 %v13779_v25 }
 0x464   : > { %v4417_v57 = vadd.f32 %v4416_v50, %v16014_v36  ;;  %v4418_v5 = vpop.f32.mrb[170].mxu1  ;;  %5152 = vmatprep.mubr.bf16.mxu0 %v4780_v23 }
 0x465   : > { %v4419_v6 = vadd.f32 %v4418_v5, %v16010_v14  ;;  %v4420_v26 = vpop.f32.mrb[171].mxu1  ;;  %5153 = vmatmul.mubr.bf16.gmra.mrb[36].mxu0 %v4779_v17  ;;  %v4673_v61 = vmax.f32 %v4415_v49, 0.0 }
 0x466   : > { %v4421_v29 = vadd.f32 %v4420_v26, %v16014_v36  ;;  %v4674_v42 = vmax.f32 %v4417_v57, 0.0 }
 0x467   : > { %v4675_v0 = vmax.f32 %v4419_v6, 0.0 }
 0x468   : > { %v4676_v16 = vmax.f32 %v4421_v29, 0.0 }
 0x469   : > { %v4781_v10 = vpack.c.bf16 %v4675_v0, %v4673_v61 }
 0x46a   : > { %v4424_v8 = vpop.f32.mrb[172].mxu1  ;;  %v4782_v30 = vpack.c.bf16 %v4676_v16, %v4674_v42 }
 0x46b   : > { %v4425_v22 = vadd.f32 %v4424_v8, %v16010_v14  ;;  %v4426_v51 = vpop.f32.mrb[173].mxu1 }
 0x46c   : > { %v4427_v32 = vadd.f32 %v4426_v51, %v16014_v36  ;;  %v4428_v47 = vpop.f32.mrb[174].mxu1  ;;  %5162 = vmatprep.mubr.bf16.mxu0 %v4782_v30 }
 0x46d   : > { %v4429_v33 = vadd.f32 %v4428_v47, %v16010_v14  ;;  %v4430_v39 = vpop.f32.mrb[175].mxu1  ;;  %5163 = vmatmul.mubr.bf16.gmra.mrb[40].mxu0 %v4781_v10  ;;  %v4677_v13 = vmax.f32 %v4425_v22, 0.0 }
 0x46e   : > { %v4431_v24 = vadd.f32 %v4430_v39, %v16014_v36  ;;  %v4678_v17 = vmax.f32 %v4427_v32, 0.0 }
 0x46f   : > { %v4679_v45 = vmax.f32 %v4429_v33, 0.0 }
 0x470   : > { %v4680_v34 = vmax.f32 %v4431_v24, 0.0 }
 0x471   : > { %v4783_v23 = vpack.c.bf16 %v4679_v45, %v4677_v13 }
 0x472   : > { %v4434_v49 = vpop.f32.mrb[176].mxu1  ;;  %v4784_v50 = vpack.c.bf16 %v4680_v34, %v4678_v17  ;;  %v13784_v17 = vld [vmem:[%s18728_s0 + $0x404] ss:$8 sps:$4 sm:$0xff]  }
 0x473   : > { %v4435_v57 = vadd.f32 %v4434_v49, %v16010_v14  ;;  %v4436_v5 = vpop.f32.mrb[177].mxu1  ;;  %6518 = vmatprep.subr.bf16.mxu1 %v13784_v17 }
 0x474   : > { %v4437_v6 = vadd.f32 %v4436_v5, %v16014_v36  ;;  %v4438_v26 = vpop.f32.mrb[178].mxu1  ;;  %5172 = vmatprep.mubr.bf16.mxu0 %v4784_v50 }
 0x475   : > { %v4439_v29 = vadd.f32 %v4438_v26, %v16010_v14  ;;  %v4440_v61 = vpop.f32.mrb[179].mxu1  ;;  %5173 = vmatmul.mubr.bf16.gmra.mrb[44].mxu0 %v4783_v23  ;;  %v4681_v42 = vmax.f32 %v4435_v57, 0.0 }
 0x476   : > { %v4441_v0 = vadd.f32 %v4440_v61, %v16014_v36  ;;  %v4682_v10 = vmax.f32 %v4437_v6, 0.0 }
 0x477   : > { %v4683_v16 = vmax.f32 %v4439_v29, 0.0 }
 0x478   : > { %v4684_v8 = vmax.f32 %v4441_v0, 0.0 }
 0x479   : > { %v4785_v30 = vpack.c.bf16 %v4683_v16, %v4681_v42 }
 0x47a   : > { %v4444_v22 = vpop.f32.mrb[180].mxu1  ;;  %v4786_v51 = vpack.c.bf16 %v4684_v8, %v4682_v10 }
 0x47b   : > { %v4445_v32 = vadd.f32 %v4444_v22, %v16010_v14  ;;  %v4446_v47 = vpop.f32.mrb[181].mxu1 }
 0x47c   : > { %v4447_v33 = vadd.f32 %v4446_v47, %v16014_v36  ;;  %v4448_v39 = vpop.f32.mrb[182].mxu1  ;;  %5182 = vmatprep.mubr.bf16.mxu0 %v4786_v51 }
 0x47d   : > { %v4449_v24 = vadd.f32 %v4448_v39, %v16010_v14  ;;  %v4450_v25 = vpop.f32.mrb[183].mxu1  ;;  %5183 = vmatmul.mubr.bf16.gmra.mrb[48].mxu0 %v4785_v30  ;;  %v4685_v13 = vmax.f32 %v4445_v32, 0.0 }
 0x47e   : > { %v4451_v60 = vadd.f32 %v4450_v25, %v16014_v36  ;;  %v4686_v34 = vmax.f32 %v4447_v33, 0.0 }
 0x47f   : > { %v4687_v45 = vmax.f32 %v4449_v24, 0.0 }
 0x480   : > { %v4688_v23 = vmax.f32 %v4451_v60, 0.0 }
 0x481   : > { %v4787_v49 = vpack.c.bf16 %v4687_v45, %v4685_v13 }
 0x482   : > { %v4454_v50 = vpop.f32.mrb[184].mxu1  ;;  %v4788_v57 = vpack.c.bf16 %v4688_v23, %v4686_v34 }
 0x483   : > { %v4455_v5 = vadd.f32 %v4454_v50, %v16010_v14  ;;  %v4456_v6 = vpop.f32.mrb[185].mxu1 }
 0x484   : > { %v4457_v26 = vadd.f32 %v4456_v6, %v16014_v36  ;;  %v4458_v29 = vpop.f32.mrb[186].mxu1  ;;  %5192 = vmatprep.mubr.bf16.mxu0 %v4788_v57 }
 0x485   : > { %v4459_v61 = vadd.f32 %v4458_v29, %v16010_v14  ;;  %v4460_v0 = vpop.f32.mrb[187].mxu1  ;;  %5193 = vmatmul.mubr.bf16.gmra.mrb[52].mxu0 %v4787_v49  ;;  %v4689_v16 = vmax.f32 %v4455_v5, 0.0 }
 0x486   : > { %v4461_v42 = vadd.f32 %v4460_v0, %v16014_v36  ;;  %v4690_v8 = vmax.f32 %v4457_v26, 0.0 }
 0x487   : > { %v4691_v10 = vmax.f32 %v4459_v61, 0.0 }
 0x488   : > { %v4692_v30 = vmax.f32 %v4461_v42, 0.0 }
 0x489   : > { %v4789_v22 = vpack.c.bf16 %v4691_v10, %v4689_v16 }
 0x48a   : > { %v4464_v51 = vpop.f32.mrb[188].mxu1  ;;  %v4790_v32 = vpack.c.bf16 %v4692_v30, %v4690_v8 }
 0x48b   : > { %v4465_v47 = vadd.f32 %v4464_v51, %v16010_v14  ;;  %v4466_v33 = vpop.f32.mrb[189].mxu1 }
 0x48c   : > { %v4467_v39 = vadd.f32 %v4466_v33, %v16014_v36  ;;  %v4468_v24 = vpop.f32.mrb[190].mxu1  ;;  %5202 = vmatprep.mubr.bf16.mxu0 %v4790_v32 }
 0x48d   : > { %v4469_v25 = vadd.f32 %v4468_v24, %v16010_v14  ;;  %v4470_v60 = vpop.f32.mrb[191].mxu1  ;;  %5203 = vmatmul.mubr.bf16.gmra.mrb[56].mxu0 %v4789_v22  ;;  %v4693_v45 = vmax.f32 %v4465_v47, 0.0 }
 0x48e   : > { %v4471_v13 = vadd.f32 %v4470_v60, %v16014_v36  ;;  %v4694_v34 = vmax.f32 %v4467_v39, 0.0 }
 0x48f   : > { %v4695_v17 = vmax.f32 %v4469_v25, 0.0 }
 0x490   : > { %v4696_v23 = vmax.f32 %v4471_v13, 0.0 }
 0x491   : > { %v4791_v49 = vpack.c.bf16 %v4695_v17, %v4693_v45 }
 0x492   : > { %v4474_v50 = vpop.f32.mrb[192].mxu1  ;;  %v4792_v57 = vpack.c.bf16 %v4696_v23, %v4694_v34 }
 0x493   : > { %v4475_v5 = vadd.f32 %v4474_v50, %v16010_v14  ;;  %v4476_v6 = vpop.f32.mrb[193].mxu1 }
 0x494   : > { %v4477_v26 = vadd.f32 %v4476_v6, %v16014_v36  ;;  %v4478_v29 = vpop.f32.mrb[194].mxu1  ;;  %5212 = vmatprep.mubr.bf16.mxu0 %v4792_v57 }
 0x495   : > { %v4479_v61 = vadd.f32 %v4478_v29, %v16010_v14  ;;  %v4480_v0 = vpop.f32.mrb[195].mxu1  ;;  %5213 = vmatmul.mubr.bf16.gmra.mrb[60].mxu0 %v4791_v49  ;;  %v4697_v16 = vmax.f32 %v4475_v5, 0.0 }
 0x496   : > { %v4481_v42 = vadd.f32 %v4480_v0, %v16014_v36  ;;  %v4698_v8 = vmax.f32 %v4477_v26, 0.0 }
 0x497   : > { %v4699_v10 = vmax.f32 %v4479_v61, 0.0 }
 0x498   : > { %v4700_v30 = vmax.f32 %v4481_v42, 0.0 }
 0x499   : > { %v4793_v22 = vpack.c.bf16 %v4699_v10, %v4697_v16 }
 0x49a   : > { %v4484_v51 = vpop.f32.mrb[196].mxu1  ;;  %v4794_v32 = vpack.c.bf16 %v4700_v30, %v4698_v8 }
 0x49b   : > { %v4485_v47 = vadd.f32 %v4484_v51, %v16010_v14  ;;  %v4486_v33 = vpop.f32.mrb[197].mxu1 }
 0x49c   : > { %v4487_v39 = vadd.f32 %v4486_v33, %v16014_v36  ;;  %v4488_v24 = vpop.f32.mrb[198].mxu1  ;;  %5222 = vmatprep.mubr.bf16.mxu0 %v4794_v32 }
 0x49d   : > { %v4489_v25 = vadd.f32 %v4488_v24, %v16010_v14  ;;  %v4490_v60 = vpop.f32.mrb[199].mxu1  ;;  %5223 = vmatmul.mubr.bf16.gmra.mrb[64].mxu0 %v4793_v22  ;;  %v4701_v45 = vmax.f32 %v4485_v47, 0.0 }
 0x49e   : > { %v4491_v13 = vadd.f32 %v4490_v60, %v16014_v36  ;;  %v4702_v34 = vmax.f32 %v4487_v39, 0.0 }
 0x49f   : > { %v4703_v17 = vmax.f32 %v4489_v25, 0.0 }
 0x4a0   : > { %v4704_v23 = vmax.f32 %v4491_v13, 0.0 }
 0x4a1   : > { %v4795_v49 = vpack.c.bf16 %v4703_v17, %v4701_v45 }
 0x4a2   : > { %v4494_v50 = vpop.f32.mrb[200].mxu1  ;;  %v4796_v57 = vpack.c.bf16 %v4704_v23, %v4702_v34 }
 0x4a3   : > { %v4495_v5 = vadd.f32 %v4494_v50, %v16010_v14  ;;  %v4496_v6 = vpop.f32.mrb[201].mxu1 }
 0x4a4   : > { %v4497_v26 = vadd.f32 %v4496_v6, %v16014_v36  ;;  %v4498_v29 = vpop.f32.mrb[202].mxu1  ;;  %5232 = vmatprep.mubr.bf16.mxu0 %v4796_v57 }
 0x4a5   : > { %v4499_v61 = vadd.f32 %v4498_v29, %v16010_v14  ;;  %v4500_v0 = vpop.f32.mrb[203].mxu1  ;;  %5233 = vmatmul.mubr.bf16.gmra.mrb[68].mxu0 %v4795_v49  ;;  %v4705_v16 = vmax.f32 %v4495_v5, 0.0 }
 0x4a6   : > { %v4501_v42 = vadd.f32 %v4500_v0, %v16014_v36  ;;  %v4706_v8 = vmax.f32 %v4497_v26, 0.0 }
 0x4a7   : > { %v4707_v10 = vmax.f32 %v4499_v61, 0.0 }
 0x4a8   : > { %v4708_v30 = vmax.f32 %v4501_v42, 0.0 }
 0x4a9   : > { %v4797_v22 = vpack.c.bf16 %v4707_v10, %v4705_v16 }
 0x4aa   : > { %v4504_v51 = vpop.f32.mrb[204].mxu1  ;;  %v4798_v32 = vpack.c.bf16 %v4708_v30, %v4706_v8 }
 0x4ab   : > { %v4505_v47 = vadd.f32 %v4504_v51, %v16010_v14  ;;  %v4506_v33 = vpop.f32.mrb[205].mxu1 }
 0x4ac   : > { %v4507_v39 = vadd.f32 %v4506_v33, %v16014_v36  ;;  %v4508_v24 = vpop.f32.mrb[206].mxu1  ;;  %5242 = vmatprep.mubr.bf16.mxu0 %v4798_v32 }
 0x4ad   : > { %v4509_v25 = vadd.f32 %v4508_v24, %v16010_v14  ;;  %v4510_v60 = vpop.f32.mrb[207].mxu1  ;;  %5243 = vmatmul.mubr.bf16.gmra.mrb[72].mxu0 %v4797_v22  ;;  %v4709_v45 = vmax.f32 %v4505_v47, 0.0 }
 0x4ae   : > { %v4511_v13 = vadd.f32 %v4510_v60, %v16014_v36  ;;  %v4710_v34 = vmax.f32 %v4507_v39, 0.0 }
 0x4af   : > { %v4711_v17 = vmax.f32 %v4509_v25, 0.0 }
 0x4b0   : > { %v4712_v23 = vmax.f32 %v4511_v13, 0.0 }
 0x4b1   : > { %v4799_v49 = vpack.c.bf16 %v4711_v17, %v4709_v45 }
 0x4b2   : > { %v4514_v50 = vpop.f32.mrb[208].mxu1  ;;  %v4800_v57 = vpack.c.bf16 %v4712_v23, %v4710_v34 }
 0x4b3   : > { %v4515_v5 = vadd.f32 %v4514_v50, %v16010_v14  ;;  %v4516_v6 = vpop.f32.mrb[209].mxu1 }
 0x4b4   : > { %v4517_v26 = vadd.f32 %v4516_v6, %v16014_v36  ;;  %v4518_v29 = vpop.f32.mrb[210].mxu1  ;;  %5252 = vmatprep.mubr.bf16.mxu0 %v4800_v57 }
 0x4b5   : > { %v4519_v61 = vadd.f32 %v4518_v29, %v16010_v14  ;;  %v4520_v0 = vpop.f32.mrb[211].mxu1  ;;  %5253 = vmatmul.mubr.bf16.gmra.mrb[76].mxu0 %v4799_v49  ;;  %v4713_v16 = vmax.f32 %v4515_v5, 0.0 }
 0x4b6   : > { %v4521_v42 = vadd.f32 %v4520_v0, %v16014_v36  ;;  %v4714_v8 = vmax.f32 %v4517_v26, 0.0 }
 0x4b7   : > { %v4715_v10 = vmax.f32 %v4519_v61, 0.0 }
 0x4b8   : > { %v4716_v30 = vmax.f32 %v4521_v42, 0.0 }
 0x4b9   : > { %v4801_v22 = vpack.c.bf16 %v4715_v10, %v4713_v16 }
 0x4ba   : > { %v4524_v51 = vpop.f32.mrb[212].mxu1  ;;  %v4802_v32 = vpack.c.bf16 %v4716_v30, %v4714_v8 }
 0x4bb   : > { %v4525_v47 = vadd.f32 %v4524_v51, %v16010_v14  ;;  %v4526_v33 = vpop.f32.mrb[213].mxu1 }
 0x4bc   : > { %v4527_v39 = vadd.f32 %v4526_v33, %v16014_v36  ;;  %v4528_v24 = vpop.f32.mrb[214].mxu1  ;;  %5262 = vmatprep.mubr.bf16.mxu0 %v4802_v32 }
 0x4bd   : > { %v4529_v25 = vadd.f32 %v4528_v24, %v16010_v14  ;;  %v4530_v60 = vpop.f32.mrb[215].mxu1  ;;  %5263 = vmatmul.mubr.bf16.gmra.mrb[80].mxu0 %v4801_v22  ;;  %v4717_v45 = vmax.f32 %v4525_v47, 0.0 }
 0x4be   : > { %v4531_v13 = vadd.f32 %v4530_v60, %v16014_v36  ;;  %v4718_v34 = vmax.f32 %v4527_v39, 0.0 }
 0x4bf   : > { %v4719_v17 = vmax.f32 %v4529_v25, 0.0 }
 0x4c0   : > { %v4720_v23 = vmax.f32 %v4531_v13, 0.0 }
 0x4c1   : > { %v4803_v49 = vpack.c.bf16 %v4719_v17, %v4717_v45 }
 0x4c2   : > { %v4534_v50 = vpop.f32.mrb[216].mxu1  ;;  %v4804_v57 = vpack.c.bf16 %v4720_v23, %v4718_v34 }
 0x4c3   : > { %v4535_v5 = vadd.f32 %v4534_v50, %v16010_v14  ;;  %v4536_v6 = vpop.f32.mrb[217].mxu1 }
 0x4c4   : > { %v4537_v26 = vadd.f32 %v4536_v6, %v16014_v36  ;;  %v4538_v29 = vpop.f32.mrb[218].mxu1  ;;  %5272 = vmatprep.mubr.bf16.mxu0 %v4804_v57 }
 0x4c5   : > { %v4539_v61 = vadd.f32 %v4538_v29, %v16010_v14  ;;  %v4540_v0 = vpop.f32.mrb[219].mxu1  ;;  %5273 = vmatmul.mubr.bf16.gmra.mrb[84].mxu0 %v4803_v49  ;;  %v4721_v16 = vmax.f32 %v4535_v5, 0.0 }
 0x4c6   : > { %v4541_v42 = vadd.f32 %v4540_v0, %v16014_v36  ;;  %v4722_v8 = vmax.f32 %v4537_v26, 0.0 }
 0x4c7   : > { %v4723_v10 = vmax.f32 %v4539_v61, 0.0 }
 0x4c8   : > { %v4724_v30 = vmax.f32 %v4541_v42, 0.0 }
 0x4c9   : > { %v4805_v22 = vpack.c.bf16 %v4723_v10, %v4721_v16 }
 0x4ca   : > { %v4544_v51 = vpop.f32.mrb[220].mxu1  ;;  %v4806_v32 = vpack.c.bf16 %v4724_v30, %v4722_v8 }
 0x4cb   : > { %v4545_v47 = vadd.f32 %v4544_v51, %v16010_v14  ;;  %v4546_v33 = vpop.f32.mrb[221].mxu1 }
 0x4cc   : > { %v4547_v39 = vadd.f32 %v4546_v33, %v16014_v36  ;;  %v4548_v24 = vpop.f32.mrb[222].mxu1  ;;  %5282 = vmatprep.mubr.bf16.mxu0 %v4806_v32 }
 0x4cd   : > { %v4549_v25 = vadd.f32 %v4548_v24, %v16010_v14  ;;  %v4550_v60 = vpop.f32.mrb[223].mxu1  ;;  %5283 = vmatmul.mubr.bf16.gmra.mrb[88].mxu0 %v4805_v22  ;;  %v4725_v45 = vmax.f32 %v4545_v47, 0.0 }
 0x4ce   : > { %v4551_v13 = vadd.f32 %v4550_v60, %v16014_v36  ;;  %v4726_v34 = vmax.f32 %v4547_v39, 0.0 }
 0x4cf   : > { %v4727_v17 = vmax.f32 %v4549_v25, 0.0 }
 0x4d0   : > { %v4728_v23 = vmax.f32 %v4551_v13, 0.0 }
 0x4d1   : > { %v4807_v49 = vpack.c.bf16 %v4727_v17, %v4725_v45 }
 0x4d2   : > { %v4554_v50 = vpop.f32.mrb[224].mxu1  ;;  %v4808_v57 = vpack.c.bf16 %v4728_v23, %v4726_v34 }
 0x4d3   : > { %v4555_v5 = vadd.f32 %v4554_v50, %v16010_v14  ;;  %v4556_v6 = vpop.f32.mrb[225].mxu1 }
 0x4d4   : > { %v4557_v26 = vadd.f32 %v4556_v6, %v16014_v36  ;;  %v4558_v29 = vpop.f32.mrb[226].mxu1  ;;  %5292 = vmatprep.mubr.bf16.mxu0 %v4808_v57 }
 0x4d5   : > { %v4559_v61 = vadd.f32 %v4558_v29, %v16010_v14  ;;  %v4560_v0 = vpop.f32.mrb[227].mxu1  ;;  %5293 = vmatmul.mubr.bf16.gmra.mrb[92].mxu0 %v4807_v49  ;;  %v4729_v16 = vmax.f32 %v4555_v5, 0.0 }
 0x4d6   : > { %v4561_v42 = vadd.f32 %v4560_v0, %v16014_v36  ;;  %v4730_v8 = vmax.f32 %v4557_v26, 0.0 }
 0x4d7   : > { %v4731_v10 = vmax.f32 %v4559_v61, 0.0 }
 0x4d8   : > { %v4732_v30 = vmax.f32 %v4561_v42, 0.0 }
 0x4d9   : > { %v4809_v22 = vpack.c.bf16 %v4731_v10, %v4729_v16 }
 0x4da   : > { %v4564_v51 = vpop.f32.mrb[228].mxu1  ;;  %v4810_v32 = vpack.c.bf16 %v4732_v30, %v4730_v8 }
 0x4db   : > { %v4565_v47 = vadd.f32 %v4564_v51, %v16010_v14  ;;  %v4566_v33 = vpop.f32.mrb[229].mxu1 }
 0x4dc   : > { %v4567_v39 = vadd.f32 %v4566_v33, %v16014_v36  ;;  %v4568_v24 = vpop.f32.mrb[230].mxu1  ;;  %5302 = vmatprep.mubr.bf16.mxu0 %v4810_v32 }
 0x4dd   : > { %v4569_v25 = vadd.f32 %v4568_v24, %v16010_v14  ;;  %v4570_v60 = vpop.f32.mrb[231].mxu1  ;;  %5303 = vmatmul.mubr.bf16.gmra.mrb[96].mxu0 %v4809_v22  ;;  %v4733_v45 = vmax.f32 %v4565_v47, 0.0  ;;  %v4858_v47 = vld [vmem:[%s18690_s6] sm:$0x3] }
 0x4de   : > { %v4571_v13 = vadd.f32 %v4570_v60, %v16014_v36  ;;  %v4734_v34 = vmax.f32 %v4567_v39, 0.0 }
 0x4df   : > { %v4735_v17 = vmax.f32 %v4569_v25, 0.0 }
 0x4e0   : > { %v4736_v23 = vmax.f32 %v4571_v13, 0.0 }
 0x4e1   : > { %v4811_v49 = vpack.c.bf16 %v4735_v17, %v4733_v45  ;;  %v16186_v45 = vrot.slane %v4858_v47, %v15253_v58 }
 0x4e2   : > { %v4574_v50 = vpop.f32.mrb[232].mxu1  ;;  %v4812_v57 = vpack.c.bf16 %v4736_v23, %v4734_v34  ;;  %v16190_v34 = vrot.slane %v4858_v47, %v15258_v27 }
 0x4e3   : > { %v4575_v5 = vadd.f32 %v4574_v50, %v16010_v14  ;;  %v4576_v6 = vpop.f32.mrb[233].mxu1 }
 0x4e4   : > { %v4577_v26 = vadd.f32 %v4576_v6, %v16014_v36  ;;  %v4578_v29 = vpop.f32.mrb[234].mxu1  ;;  %5312 = vmatprep.mubr.bf16.mxu0 %v4812_v57 }
 0x4e5   : > { %v4579_v61 = vadd.f32 %v4578_v29, %v16010_v14  ;;  %v4580_v0 = vpop.f32.mrb[235].mxu1  ;;  %5313 = vmatmul.mubr.bf16.gmra.mrb[100].mxu0 %v4811_v49  ;;  %v4737_v16 = vmax.f32 %v4575_v5, 0.0 }
 0x4e6   : > { %v4581_v42 = vadd.f32 %v4580_v0, %v16014_v36  ;;  %v4738_v8 = vmax.f32 %v4577_v26, 0.0 }
 0x4e7   : > { %v4739_v10 = vmax.f32 %v4579_v61, 0.0 }
 0x4e8   : > { %v4740_v30 = vmax.f32 %v4581_v42, 0.0 }
 0x4e9   : > { %v4813_v22 = vpack.c.bf16 %v4739_v10, %v4737_v16 }
 0x4ea   : > { %v4584_v51 = vpop.f32.mrb[236].mxu1  ;;  %v4814_v32 = vpack.c.bf16 %v4740_v30, %v4738_v8 }
 0x4eb   : > { %v4585_v33 = vadd.f32 %v4584_v51, %v16010_v14  ;;  %v4586_v39 = vpop.f32.mrb[237].mxu1 }
 0x4ec   : > { %v4587_v24 = vadd.f32 %v4586_v39, %v16014_v36  ;;  %v4588_v25 = vpop.f32.mrb[238].mxu1  ;;  %5322 = vmatprep.mubr.bf16.mxu0 %v4814_v32 }
 0x4ed   : > { %v4589_v60 = vadd.f32 %v4588_v25, %v16010_v14  ;;  %v4590_v13 = vpop.f32.mrb[239].mxu1  ;;  %5323 = vmatmul.mubr.bf16.gmra.mrb[104].mxu0 %v4813_v22  ;;  %v4741_v23 = vmax.f32 %v4585_v33, 0.0 }
 0x4ee   : > { %v4591_v17 = vadd.f32 %v4590_v13, %v16014_v36  ;;  %v4742_v50 = vmax.f32 %v4587_v24, 0.0 }
 0x4ef   : > { %v4743_v49 = vmax.f32 %v4589_v60, 0.0 }
 0x4f0   : > { %v4744_v57 = vmax.f32 %v4591_v17, 0.0  ;;  %v5064_v5 = vpop.f32.mrb[0].mxu0 }
 0x4f1   : > { %v4815_v6 = vpack.c.bf16 %v4743_v49, %v4741_v23  ;;  %v5065_v26 = vadd.f32 %v5064_v5, %v16186_v45  ;;  %v5066_v29 = vpop.f32.mrb[1].mxu0 }
 0x4f2   : > { %v5067_v61 = vadd.f32 %v5066_v29, %v16190_v34  ;;  %v4594_v0 = vpop.f32.mrb[240].mxu1  ;;  %v5068_v42 = vpop.f32.mrb[2].mxu0  ;;  %v4816_v16 = vpack.c.bf16 %v4744_v57, %v4742_v50 }
 0x4f3   : > { %v4595_v10 = vadd.f32 %v4594_v0, %v16010_v14  ;;  %v5069_v8 = vadd.f32 %v5068_v42, %v16186_v45  ;;  %v4596_v30 = vpop.f32.mrb[241].mxu1  ;;  %v5070_v22 = vpop.f32.mrb[3].mxu0  ;;  %v5383_v33 = vmax.f32 %v5065_v26, 0.0  ;;  %v13782_v26 = vld [vmem:[%s18728_s0 + $0x400] ss:$8 sps:$4 sm:$0xff]  }
 0x4f4   : > { %v4597_v51 = vadd.f32 %v4596_v30, %v16014_v36  ;;  %v5071_v32 = vadd.f32 %v5070_v22, %v16190_v34  ;;  %v4598_v47 = vpop.f32.mrb[242].mxu1  ;;  %5332 = vmatprep.mubr.bf16.mxu0 %v4816_v16  ;;  %v5384_v60 = vmax.f32 %v5067_v61, 0.0 }
 0x4f5   : > { %v5385_v39 = vmax.f32 %v5069_v8, 0.0  ;;  %v4599_v24 = vadd.f32 %v4598_v47, %v16010_v14  ;;  %v4600_v25 = vpop.f32.mrb[243].mxu1  ;;  %5333 = vmatmul.mubr.bf16.gmra.mrb[108].mxu0 %v4815_v6  ;;  %v4745_v23 = vmax.f32 %v4595_v10, 0.0  ;;  %v13787_v6 = vld [vmem:[%s18728_s0 + $0x414] ss:$8 sps:$4 sm:$0xff]  }
 0x4f6   : > { %v5386_v13 = vmax.f32 %v5071_v32, 0.0  ;;  %v4601_v17 = vadd.f32 %v4600_v25, %v16014_v36  ;;  %v4746_v57 = vmax.f32 %v4597_v51, 0.0 }
 0x4f7   : > { %v5511_v49 = vpack.c.bf16 %v5385_v39, %v5383_v33  ;;  %v4747_v50 = vmax.f32 %v4599_v24, 0.0 }
 0x4f8   : > { %v4748_v5 = vmax.f32 %v4601_v17, 0.0  ;;  %v5074_v29 = vpop.f32.mrb[4].mxu0  ;;  %v5512_v0 = vpack.c.bf16 %v5386_v13, %v5384_v60  ;;  %v13785_v60 = vld [vmem:[%s18728_s0 + $0x410] ss:$8 sps:$4 sm:$0xff]  }
 0x4f9   : > { %v4817_v42 = vpack.c.bf16 %v4747_v50, %v4745_v23  ;;  %v5075_v16 = vadd.f32 %v5074_v29, %v16186_v45  ;;  %v5076_v8 = vpop.f32.mrb[5].mxu0 }
 0x4fa   : > { %v5077_v61 = vadd.f32 %v5076_v8, %v16190_v34  ;;  %v4604_v10 = vpop.f32.mrb[244].mxu1  ;;  %v5078_v30 = vpop.f32.mrb[6].mxu0  ;;  %5812 = vmatprep.mubr.bf16.mxu1 %v5512_v0  ;;  %v4818_v22 = vpack.c.bf16 %v4748_v5, %v4746_v57 }
 0x4fb   : > { %v4605_v51 = vadd.f32 %v4604_v10, %v16010_v14  ;;  %v5079_v32 = vadd.f32 %v5078_v30, %v16186_v45  ;;  %v4606_v47 = vpop.f32.mrb[245].mxu1  ;;  %v5080_v33 = vpop.f32.mrb[7].mxu0  ;;  %5813 = vmatmul.mubr.bf16.vlgmr.msra.gmra.mrb[128].mxu1 %v5511_v49  ;;  %v5387_v13 = vmax.f32 %v5075_v16, 0.0  ;;  %v13790_v49 = vld [vmem:[%s18728_s0 + $0x424] ss:$8 sps:$4 sm:$0xff]  }
 0x4fc   : > { %v4607_v39 = vadd.f32 %v4606_v47, %v16014_v36  ;;  %v5081_v24 = vadd.f32 %v5080_v33, %v16190_v34  ;;  %v4608_v25 = vpop.f32.mrb[246].mxu1  ;;  %5342 = vmatprep.mubr.bf16.mxu0 %v4818_v22  ;;  %6519 = vmatpush1.bf16.msra.mxu1 %v13782_v26  ;;  %v5388_v57 = vmax.f32 %v5077_v61, 0.0  ;;  %v13793_v61 = vld [vmem:[%s18728_s0 + $0x434] ss:$8 sps:$4 sm:$0xff]  }
 0x4fd   : > { %v5389_v17 = vmax.f32 %v5079_v32, 0.0  ;;  %v4609_v23 = vadd.f32 %v4608_v25, %v16010_v14  ;;  %v4610_v50 = vpop.f32.mrb[247].mxu1  ;;  %5343 = vmatmul.mubr.bf16.gmra.mrb[112].mxu0 %v4817_v42  ;;  %6520 = vmatprep.subr.bf16.mxu1 %v13787_v6  ;;  %v4749_v0 = vmax.f32 %v4605_v51, 0.0  ;;  %v13788_v42 = vld [vmem:[%s18728_s0 + $0x420] ss:$8 sps:$4 sm:$0xff]  }
 0x4fe   : > { %v5390_v5 = vmax.f32 %v5081_v24, 0.0  ;;  %v4611_v29 = vadd.f32 %v4610_v50, %v16014_v36  ;;  %v4750_v10 = vmax.f32 %v4607_v39, 0.0 }
 0x4ff   : > { %v5513_v26 = vpack.c.bf16 %v5389_v17, %v5387_v13  ;;  %v4751_v8 = vmax.f32 %v4609_v23, 0.0 }
 0x500   : > { %v4752_v30 = vmax.f32 %v4611_v29, 0.0  ;;  %v5084_v16 = vpop.f32.mrb[8].mxu0  ;;  %v5514_v22 = vpack.c.bf16 %v5390_v5, %v5388_v57  ;;  %6521 = vmatpush1.bf16.msra.mxu1 %v13785_v60  ;;  %v13791_v57 = vld [vmem:[%s18728_s0 + $0x430] ss:$8 sps:$4 sm:$0xff]  }
 0x501   : > { %v4819_v6 = vpack.c.bf16 %v4751_v8, %v4749_v0  ;;  %v5085_v32 = vadd.f32 %v5084_v16, %v16186_v45  ;;  %v5086_v47 = vpop.f32.mrb[9].mxu0  ;;  %6522 = vmatprep.subr.bf16.mxu1 %v13790_v49 }
 0x502   : > { %v5087_v51 = vadd.f32 %v5086_v47, %v16190_v34  ;;  %v4614_v33 = vpop.f32.mrb[248].mxu1  ;;  %v5088_v39 = vpop.f32.mrb[10].mxu0  ;;  %5822 = vmatprep.mubr.bf16.mxu1 %v5514_v22  ;;  %v4820_v24 = vpack.c.bf16 %v4752_v30, %v4750_v10 }
 0x503   : > { %v4615_v25 = vadd.f32 %v4614_v33, %v16010_v14  ;;  %v5089_v60 = vadd.f32 %v5088_v39, %v16186_v45  ;;  %v4616_v13 = vpop.f32.mrb[249].mxu1  ;;  %v5090_v17 = vpop.f32.mrb[11].mxu0  ;;  %5823 = vmatmul.mubr.bf16.gmra.mrb[132].mxu1 %v5513_v26  ;;  %v5391_v5 = vmax.f32 %v5085_v32, 0.0  ;;  %v13796_v26 = vld [vmem:[%s18728_s0 + $0x444] ss:$8 sps:$4 sm:$0xff]  }
 0x504   : > { %v4617_v23 = vadd.f32 %v4616_v13, %v16014_v36  ;;  %v5091_v50 = vadd.f32 %v5090_v17, %v16190_v34  ;;  %v4618_v49 = vpop.f32.mrb[250].mxu1  ;;  %5352 = vmatprep.mubr.bf16.mxu0 %v4820_v24  ;;  %6523 = vmatpush1.bf16.msra.mxu1 %v13788_v42  ;;  %v5392_v10 = vmax.f32 %v5087_v51, 0.0  ;;  %v13799_v51 = vld [vmem:[%s18728_s0 + $0x454] ss:$8 sps:$4 sm:$0xff]  }
 0x505   : > { %v5393_v29 = vmax.f32 %v5089_v60, 0.0  ;;  %v4619_v0 = vadd.f32 %v4618_v49, %v16010_v14  ;;  %v4620_v8 = vpop.f32.mrb[251].mxu1  ;;  %5353 = vmatmul.mubr.bf16.gmra.mrb[116].mxu0 %v4819_v6  ;;  %6524 = vmatprep.subr.bf16.mxu1 %v13793_v61  ;;  %v4753_v22 = vmax.f32 %v4615_v25, 0.0  ;;  %v13794_v6 = vld [vmem:[%s18728_s0 + $0x440] ss:$8 sps:$4 sm:$0xff]  }
 0x506   : > { %v5394_v30 = vmax.f32 %v5091_v50, 0.0  ;;  %v4621_v16 = vadd.f32 %v4620_v8, %v16014_v36  ;;  %v4754_v33 = vmax.f32 %v4617_v23, 0.0 }
 0x507   : > { %v5515_v42 = vpack.c.bf16 %v5393_v29, %v5391_v5  ;;  %v4755_v47 = vmax.f32 %v4619_v0, 0.0 }
 0x508   : > { %v4756_v39 = vmax.f32 %v4621_v16, 0.0  ;;  %v5094_v32 = vpop.f32.mrb[12].mxu0  ;;  %v5516_v24 = vpack.c.bf16 %v5394_v30, %v5392_v10  ;;  %6525 = vmatpush1.bf16.msra.mxu1 %v13791_v57  ;;  %v13797_v10 = vld [vmem:[%s18728_s0 + $0x450] ss:$8 sps:$4 sm:$0xff]  }
 0x509   : > { %v4821_v61 = vpack.c.bf16 %v4755_v47, %v4753_v22  ;;  %v5095_v60 = vadd.f32 %v5094_v32, %v16186_v45  ;;  %v5096_v13 = vpop.f32.mrb[13].mxu0  ;;  %6526 = vmatprep.subr.bf16.mxu1 %v13796_v26 }
 0x50a   : > { %v5097_v25 = vadd.f32 %v5096_v13, %v16190_v34  ;;  %v4624_v17 = vpop.f32.mrb[252].mxu1  ;;  %v5098_v23 = vpop.f32.mrb[14].mxu0  ;;  %5832 = vmatprep.mubr.bf16.mxu1 %v5516_v24  ;;  %v4822_v50 = vpack.c.bf16 %v4756_v39, %v4754_v33 }
 0x50b   : > { %v4625_v49 = vadd.f32 %v4624_v17, %v16010_v14  ;;  %v5099_v57 = vadd.f32 %v5098_v23, %v16186_v45  ;;  %v4626_v5 = vpop.f32.mrb[253].mxu1  ;;  %v5100_v29 = vpop.f32.mrb[15].mxu0  ;;  %5833 = vmatmul.mubr.bf16.gmra.mrb[136].mxu1 %v5515_v42  ;;  %v5395_v30 = vmax.f32 %v5095_v60, 0.0  ;;  %v13802_v42 = vld [vmem:[%s18728_s0 + $0x464] ss:$8 sps:$4 sm:$0xff]  }
 0x50c   : > { %v4627_v0 = vadd.f32 %v4626_v5, %v16014_v36  ;;  %v5101_v8 = vadd.f32 %v5100_v29, %v16190_v34  ;;  %v4628_v26 = vpop.f32.mrb[254].mxu1  ;;  %5362 = vmatprep.mubr.bf16.mxu0 %v4822_v50  ;;  %6527 = vmatpush1.bf16.msra.mxu1 %v13794_v6  ;;  %v5396_v33 = vmax.f32 %v5097_v25, 0.0 }
 0x50d   : > { %v5397_v16 = vmax.f32 %v5099_v57, 0.0  ;;  %v4629_v22 = vadd.f32 %v4628_v26, %v16010_v14  ;;  %v4630_v47 = vpop.f32.mrb[255].mxu1  ;;  %5363 = vmatmul.mubr.bf16.gmra.mrb[120].mxu0 %v4821_v61  ;;  %6528 = vmatprep.subr.bf16.mxu1 %v13799_v51  ;;  %v4757_v24 = vmax.f32 %v4625_v49, 0.0  ;;  %v13800_v14 = vld [vmem:[%s18728_s0 + $0x460] ss:$8 sps:$4 sm:$0xff]  }
 0x50e   : > { %v5398_v39 = vmax.f32 %v5101_v8, 0.0  ;;  %v4631_v32 = vadd.f32 %v4630_v47, %v16014_v36  ;;  %v4758_v17 = vmax.f32 %v4627_v0, 0.0  ;;  %v13805_v36 = vld [vmem:[%s18728_s0 + $0x474] ss:$8 sps:$4 sm:$0xff]   ;;  %v13803_v26 = vld [vmem:[%s18728_s0 + $0x470] ss:$8 sps:$4 sm:$0xff]  }
 0x50f   : > { %v5517_v6 = vpack.c.bf16 %v5397_v16, %v5395_v30  ;;  %v4759_v13 = vmax.f32 %v4629_v22, 0.0  ;;  %v13808_v16 = vld [vmem:[%s18728_s0 + $0x484] ss:$8 sps:$4 sm:$0xff]  }
 0x510   : > { %v4760_v23 = vmax.f32 %v4631_v32, 0.0  ;;  %v5104_v60 = vpop.f32.mrb[16].mxu0  ;;  %v5518_v50 = vpack.c.bf16 %v5398_v39, %v5396_v33  ;;  %6529 = vmatpush1.bf16.msra.mxu1 %v13797_v10  ;;  %v13806_v32 = vld [vmem:[%s18728_s0 + $0x480] ss:$8 sps:$4 sm:$0xff]  }
 0x511   : > { %v4823_v61 = vpack.c.bf16 %v4759_v13, %v4757_v24  ;;  %v5105_v51 = vadd.f32 %v5104_v60, %v16186_v45  ;;  %v5106_v57 = vpop.f32.mrb[17].mxu0  ;;  %6530 = vmatprep.subr.bf16.mxu1 %v13802_v42  ;;  %v13811_v13 = vld [vmem:[%s18728_s0 + $0x494] ss:$8 sps:$4 sm:$0xff]  }
 0x512   : > { %v5107_v25 = vadd.f32 %v5106_v57, %v16190_v34  ;;  %v5108_v49 = vpop.f32.mrb[18].mxu0  ;;  %5842 = vmatprep.mubr.bf16.mxu1 %v5518_v50  ;;  %v4824_v5 = vpack.c.bf16 %v4760_v23, %v4758_v17 }
 0x513   : > { %v5109_v29 = vadd.f32 %v5108_v49, %v16186_v45  ;;  %v5110_v0 = vpop.f32.mrb[19].mxu0  ;;  %5843 = vmatmul.mubr.bf16.gmra.mrb[140].mxu1 %v5517_v6  ;;  %v5399_v10 = vmax.f32 %v5105_v51, 0.0 }
 0x514   : > { %v5111_v8 = vadd.f32 %v5110_v0, %v16190_v34  ;;  %5372 = vmatprep.mubr.bf16.mxu0 %v4824_v5  ;;  %6531 = vmatpush1.bf16.msra.mxu1 %v13800_v14  ;;  %v5400_v22 = vmax.f32 %v5107_v25, 0.0  ;;  %v13814_v5 = vld [vmem:[%s18728_s0 + $0x4a4] ss:$8 sps:$4 sm:$0xff]  }
 0x515   : > { %v5401_v30 = vmax.f32 %v5109_v29, 0.0  ;;  %5373 = vmatmul.mubr.bf16.gmra.mrb[124].mxu0 %v4823_v61  ;;  %6532 = vmatprep.subr.bf16.mxu1 %v13805_v36  ;;  %v13809_v61 = vld [vmem:[%s18728_s0 + $0x490] ss:$8 sps:$4 sm:$0xff]  }
 0x516   : > { %v5402_v47 = vmax.f32 %v5111_v8, 0.0  ;;  %v13812_v8 = vld [vmem:[%s18728_s0 + $0x4a0] ss:$8 sps:$4 sm:$0xff]  }
 0x517   : > { %v5519_v42 = vpack.c.bf16 %v5401_v30, %v5399_v10 }
 0x518   : > { %v5114_v33 = vpop.f32.mrb[20].mxu0  ;;  %v5520_v39 = vpack.c.bf16 %v5402_v47, %v5400_v22  ;;  %6533 = vmatpush1.bf16.msra.mxu1 %v13803_v26 }
 0x519   : > { %v5115_v24 = vadd.f32 %v5114_v33, %v16186_v45  ;;  %v5116_v6 = vpop.f32.mrb[21].mxu0  ;;  %6534 = vmatprep.subr.bf16.mxu1 %v13808_v16 }
 0x51a   : > { %v5117_v17 = vadd.f32 %v5116_v6, %v16190_v34  ;;  %v5118_v23 = vpop.f32.mrb[22].mxu0  ;;  %5852 = vmatprep.mubr.bf16.mxu1 %v5520_v39 }
 0x51b   : > { %v5119_v60 = vadd.f32 %v5118_v23, %v16186_v45  ;;  %v5120_v50 = vpop.f32.mrb[23].mxu0  ;;  %5853 = vmatmul.mubr.bf16.gmra.mrb[144].mxu1 %v5519_v42  ;;  %v5403_v51 = vmax.f32 %v5115_v24, 0.0 }
 0x51c   : > { %v5121_v14 = vadd.f32 %v5120_v50, %v16190_v34  ;;  %6535 = vmatpush1.bf16.msra.mxu1 %v13806_v32  ;;  %v5404_v36 = vmax.f32 %v5117_v17, 0.0 }
 0x51d   : > { %v5405_v57 = vmax.f32 %v5119_v60, 0.0  ;;  %6536 = vmatprep.subr.bf16.mxu1 %v13811_v13 }
 0x51e   : > { %v5406_v25 = vmax.f32 %v5121_v14, 0.0 }
 0x51f   : > { %v5521_v49 = vpack.c.bf16 %v5405_v57, %v5403_v51 }
 0x520   : > { %v5124_v29 = vpop.f32.mrb[24].mxu0  ;;  %v5522_v0 = vpack.c.bf16 %v5406_v25, %v5404_v36  ;;  %6537 = vmatpush1.bf16.msra.mxu1 %v13809_v61 }
 0x521   : > { %v5125_v26 = vadd.f32 %v5124_v29, %v16186_v45  ;;  %v5126_v10 = vpop.f32.mrb[25].mxu0  ;;  %6538 = vmatprep.subr.bf16.mxu1 %v13814_v5 }
 0x522   : > { %v5127_v30 = vadd.f32 %v5126_v10, %v16190_v34  ;;  %v5128_v16 = vpop.f32.mrb[26].mxu0  ;;  %5862 = vmatprep.mubr.bf16.mxu1 %v5522_v0  ;;  %v13815_v0 = vld [vmem:[%s18728_s0 + $0x4b0] ss:$8 sps:$4 sm:$0xff]  }
 0x523   : > { %v5129_v22 = vadd.f32 %v5128_v16, %v16186_v45  ;;  %v5130_v47 = vpop.f32.mrb[27].mxu0  ;;  %5863 = vmatmul.mubr.bf16.gmra.mrb[148].mxu1 %v5521_v49  ;;  %v5407_v33 = vmax.f32 %v5125_v26, 0.0 }
 0x524   : > { %v5131_v42 = vadd.f32 %v5130_v47, %v16190_v34  ;;  %6539 = vmatpush1.bf16.msra.mxu1 %v13812_v8  ;;  %v5408_v32 = vmax.f32 %v5127_v30, 0.0  ;;  %v13817_v8 = vld [vmem:[%s18728_s0 + $0x4b4] ss:$8 sps:$4 sm:$0xff]  }
 0x525   : > { %v5409_v39 = vmax.f32 %v5129_v22, 0.0  ;;  %6540 = vmatprep.subr.bf16.mxu1 %v13817_v8 }
 0x526   : > { %v5410_v24 = vmax.f32 %v5131_v42, 0.0 }
 0x527   : > { %v5523_v6 = vpack.c.bf16 %v5409_v39, %v5407_v33 }
 0x528   : > { %v5134_v13 = vpop.f32.mrb[28].mxu0  ;;  %v5524_v17 = vpack.c.bf16 %v5410_v24, %v5408_v32  ;;  %6541 = vmatpush1.bf16.msra.mxu1 %v13815_v0 }
 0x529   : > { %v5135_v23 = vadd.f32 %v5134_v13, %v16186_v45  ;;  %v5136_v60 = vpop.f32.mrb[29].mxu0 }
 0x52a   : > { %v5137_v50 = vadd.f32 %v5136_v60, %v16190_v34  ;;  %v5138_v14 = vpop.f32.mrb[30].mxu0  ;;  %5872 = vmatprep.mubr.bf16.mxu1 %v5524_v17 }
 0x52b   : > { %v5139_v61 = vadd.f32 %v5138_v14, %v16186_v45  ;;  %v5140_v51 = vpop.f32.mrb[31].mxu0  ;;  %5873 = vmatmul.mubr.bf16.gmra.mrb[152].mxu1 %v5523_v6  ;;  %v5411_v36 = vmax.f32 %v5135_v23, 0.0 }
 0x52c   : > { %v5141_v57 = vadd.f32 %v5140_v51, %v16190_v34  ;;  %v5412_v49 = vmax.f32 %v5137_v50, 0.0 }
 0x52d   : > { %v5413_v25 = vmax.f32 %v5139_v61, 0.0 }
 0x52e   : > { %v5414_v5 = vmax.f32 %v5141_v57, 0.0 }
 0x52f   : > { %v5525_v29 = vpack.c.bf16 %v5413_v25, %v5411_v36 }
 0x530   : > { %v5144_v26 = vpop.f32.mrb[32].mxu0  ;;  %v5526_v10 = vpack.c.bf16 %v5414_v5, %v5412_v49 }
 0x531   : > { %v5145_v30 = vadd.f32 %v5144_v26, %v16186_v45  ;;  %v5146_v16 = vpop.f32.mrb[33].mxu0  ;;  %v13818_v26 = vld [vmem:[%s18728_s0 + $0x4c0] ss:$8 sps:$4 sm:$0xff]  }
 0x532   : > { %v5147_v22 = vadd.f32 %v5146_v16, %v16190_v34  ;;  %v5148_v47 = vpop.f32.mrb[34].mxu0  ;;  %5882 = vmatprep.mubr.bf16.mxu1 %v5526_v10  ;;  %v13820_v10 = vld [vmem:[%s18728_s0 + $0x4c4] ss:$8 sps:$4 sm:$0xff]  }
 0x533   : > { %v5149_v42 = vadd.f32 %v5148_v47, %v16186_v45  ;;  %v5150_v33 = vpop.f32.mrb[35].mxu0  ;;  %5883 = vmatmul.mubr.bf16.gmra.mrb[156].mxu1 %v5525_v29  ;;  %v5415_v32 = vmax.f32 %v5145_v30, 0.0  ;;  %6542 = vmatprep.subr.bf16.mxu1 %v13820_v10 }
 0x534   : > { %v5151_v39 = vadd.f32 %v5150_v33, %v16190_v34  ;;  %v5416_v6 = vmax.f32 %v5147_v22, 0.0  ;;  %6543 = vmatpush1.bf16.msra.mxu1 %v13818_v26 }
 0x535   : > { %v5417_v24 = vmax.f32 %v5149_v42, 0.0 }
 0x536   : > { %v5418_v13 = vmax.f32 %v5151_v39, 0.0 }
 0x537   : > { %v5527_v17 = vpack.c.bf16 %v5417_v24, %v5415_v32 }
 0x538   : > { %v5154_v23 = vpop.f32.mrb[36].mxu0  ;;  %v5528_v60 = vpack.c.bf16 %v5418_v13, %v5416_v6 }
 0x539   : > { %v5155_v50 = vadd.f32 %v5154_v23, %v16186_v45  ;;  %v5156_v14 = vpop.f32.mrb[37].mxu0 }
 0x53a   : > { %v5157_v61 = vadd.f32 %v5156_v14, %v16190_v34  ;;  %v5158_v51 = vpop.f32.mrb[38].mxu0  ;;  %5892 = vmatprep.mubr.bf16.mxu1 %v5528_v60 }
 0x53b   : > { %v5159_v57 = vadd.f32 %v5158_v51, %v16186_v45  ;;  %v5160_v36 = vpop.f32.mrb[39].mxu0  ;;  %5893 = vmatmul.mubr.bf16.gmra.mrb[160].mxu1 %v5527_v17  ;;  %v5419_v49 = vmax.f32 %v5155_v50, 0.0 }
 0x53c   : > { %v5161_v25 = vadd.f32 %v5160_v36, %v16190_v34  ;;  %v5420_v29 = vmax.f32 %v5157_v61, 0.0 }
 0x53d   : > { %v5421_v5 = vmax.f32 %v5159_v57, 0.0 }
 0x53e   : > { %v5422_v0 = vmax.f32 %v5161_v25, 0.0 }
 0x53f   : > { %v5529_v8 = vpack.c.bf16 %v5421_v5, %v5419_v49 }
 0x540   : > { %v5164_v30 = vpop.f32.mrb[40].mxu0  ;;  %v5530_v16 = vpack.c.bf16 %v5422_v0, %v5420_v29 }
 0x541   : > { %v5165_v22 = vadd.f32 %v5164_v30, %v16186_v45  ;;  %v5166_v47 = vpop.f32.mrb[41].mxu0  ;;  %v13821_v30 = vld [vmem:[%s18728_s0 + $0x4d0] ss:$8 sps:$4 sm:$0xff]  }
 0x542   : > { %v5167_v42 = vadd.f32 %v5166_v47, %v16190_v34  ;;  %v5168_v33 = vpop.f32.mrb[42].mxu0  ;;  %5902 = vmatprep.mubr.bf16.mxu1 %v5530_v16  ;;  %v13823_v16 = vld [vmem:[%s18728_s0 + $0x4d4] ss:$8 sps:$4 sm:$0xff]  }
 0x543   : > { %v5169_v39 = vadd.f32 %v5168_v33, %v16186_v45  ;;  %v5170_v32 = vpop.f32.mrb[43].mxu0  ;;  %5903 = vmatmul.mubr.bf16.gmra.mrb[164].mxu1 %v5529_v8  ;;  %v5423_v6 = vmax.f32 %v5165_v22, 0.0  ;;  %6544 = vmatprep.subr.bf16.mxu1 %v13823_v16 }
 0x544   : > { %v5171_v24 = vadd.f32 %v5170_v32, %v16190_v34  ;;  %v5424_v17 = vmax.f32 %v5167_v42, 0.0  ;;  %6545 = vmatpush1.bf16.msra.mxu1 %v13821_v30 }
 0x545   : > { %v5425_v13 = vmax.f32 %v5169_v39, 0.0 }
 0x546   : > { %v5426_v23 = vmax.f32 %v5171_v24, 0.0 }
 0x547   : > { %v5531_v60 = vpack.c.bf16 %v5425_v13, %v5423_v6 }
 0x548   : > { %v5174_v50 = vpop.f32.mrb[44].mxu0  ;;  %v5532_v14 = vpack.c.bf16 %v5426_v23, %v5424_v17 }
 0x549   : > { %v5175_v61 = vadd.f32 %v5174_v50, %v16186_v45  ;;  %v5176_v51 = vpop.f32.mrb[45].mxu0 }
 0x54a   : > { %v5177_v57 = vadd.f32 %v5176_v51, %v16190_v34  ;;  %v5178_v36 = vpop.f32.mrb[46].mxu0  ;;  %5912 = vmatprep.mubr.bf16.mxu1 %v5532_v14 }
 0x54b   : > { %v5179_v25 = vadd.f32 %v5178_v36, %v16186_v45  ;;  %v5180_v49 = vpop.f32.mrb[47].mxu0  ;;  %5913 = vmatmul.mubr.bf16.gmra.mrb[168].mxu1 %v5531_v60  ;;  %v5427_v29 = vmax.f32 %v5175_v61, 0.0 }
 0x54c   : > { %v5181_v5 = vadd.f32 %v5180_v49, %v16190_v34  ;;  %v5428_v8 = vmax.f32 %v5177_v57, 0.0 }
 0x54d   : > { %v5429_v0 = vmax.f32 %v5179_v25, 0.0 }
 0x54e   : > { %v5430_v26 = vmax.f32 %v5181_v5, 0.0 }
 0x54f   : > { %v5533_v10 = vpack.c.bf16 %v5429_v0, %v5427_v29 }
 0x550   : > { %v5184_v22 = vpop.f32.mrb[48].mxu0  ;;  %v5534_v47 = vpack.c.bf16 %v5430_v26, %v5428_v8  ;;  %v13824_v8 = vld [vmem:[%s18728_s0 + $0x500] ss:$8 sps:$4 sm:$0xff]   ;;  %v13826_v26 = vld [vmem:[%s18728_s0 + $0x504] ss:$8 sps:$4 sm:$0xff]  }
 0x551   : > { %v5185_v42 = vadd.f32 %v5184_v22, %v16186_v45  ;;  %v5186_v33 = vpop.f32.mrb[49].mxu0  ;;  %7536 = vmatprep.subr.bf16.mxu0 %v13826_v26 }
 0x552   : > { %v5187_v39 = vadd.f32 %v5186_v33, %v16190_v34  ;;  %v5188_v32 = vpop.f32.mrb[50].mxu0  ;;  %5922 = vmatprep.mubr.bf16.mxu1 %v5534_v47  ;;  %7537 = vmatpush1.bf16.msra.mxu0 %v13824_v8  ;;  %v13829_v33 = vld [vmem:[%s18728_s0 + $0x4e4] ss:$8 sps:$4 sm:$0xff]  }
 0x553   : > { %v5189_v24 = vadd.f32 %v5188_v32, %v16186_v45  ;;  %v5190_v6 = vpop.f32.mrb[51].mxu0  ;;  %5923 = vmatmul.mubr.bf16.gmra.mrb[172].mxu1 %v5533_v10  ;;  %v5431_v17 = vmax.f32 %v5185_v42, 0.0  ;;  %v13827_v42 = vld [vmem:[%s18728_s0 + $0x4e0] ss:$8 sps:$4 sm:$0xff]   ;;  %6546 = vmatprep.subr.bf16.mxu1 %v13829_v33 }
 0x554   : > { %v5191_v13 = vadd.f32 %v5190_v6, %v16190_v34  ;;  %v5432_v60 = vmax.f32 %v5187_v39, 0.0  ;;  %6547 = vmatpush1.bf16.msra.mxu1 %v13827_v42 }
 0x555   : > { %v5433_v23 = vmax.f32 %v5189_v24, 0.0 }
 0x556   : > { %v5434_v50 = vmax.f32 %v5191_v13, 0.0 }
 0x557   : > { %v5535_v14 = vpack.c.bf16 %v5433_v23, %v5431_v17 }
 0x558   : > { %v5194_v61 = vpop.f32.mrb[52].mxu0  ;;  %v5536_v51 = vpack.c.bf16 %v5434_v50, %v5432_v60 }
 0x559   : > { %v5195_v57 = vadd.f32 %v5194_v61, %v16186_v45  ;;  %v5196_v36 = vpop.f32.mrb[53].mxu0 }
 0x55a   : > { %v5197_v25 = vadd.f32 %v5196_v36, %v16190_v34  ;;  %v5198_v49 = vpop.f32.mrb[54].mxu0  ;;  %5932 = vmatprep.mubr.bf16.mxu1 %v5536_v51 }
 0x55b   : > { %v5199_v5 = vadd.f32 %v5198_v49, %v16186_v45  ;;  %v5200_v29 = vpop.f32.mrb[55].mxu0  ;;  %5933 = vmatmul.mubr.bf16.gmra.mrb[176].mxu1 %v5535_v14  ;;  %v5435_v10 = vmax.f32 %v5195_v57, 0.0 }
 0x55c   : > { %v5201_v0 = vadd.f32 %v5200_v29, %v16190_v34  ;;  %v5436_v16 = vmax.f32 %v5197_v25, 0.0 }
 0x55d   : > { %v5437_v30 = vmax.f32 %v5199_v5, 0.0 }
 0x55e   : > { %v5438_v22 = vmax.f32 %v5201_v0, 0.0 }
 0x55f   : > { %v5537_v47 = vpack.c.bf16 %v5437_v30, %v5435_v10 }
 0x560   : > { %v5204_v39 = vpop.f32.mrb[56].mxu0  ;;  %v5538_v32 = vpack.c.bf16 %v5438_v22, %v5436_v16  ;;  %v13830_v16 = vld [vmem:[%s18728_s0 + $0x510] ss:$8 sps:$4 sm:$0xff]   ;;  %v13832_v22 = vld [vmem:[%s18728_s0 + $0x514] ss:$8 sps:$4 sm:$0xff]  }
 0x561   : > { %v5205_v24 = vadd.f32 %v5204_v39, %v16186_v45  ;;  %v5206_v6 = vpop.f32.mrb[57].mxu0  ;;  %7538 = vmatprep.subr.bf16.mxu0 %v13832_v22 }
 0x562   : > { %v5207_v13 = vadd.f32 %v5206_v6, %v16190_v34  ;;  %v5208_v17 = vpop.f32.mrb[58].mxu0  ;;  %5942 = vmatprep.mubr.bf16.mxu1 %v5538_v32  ;;  %7539 = vmatpush1.bf16.msra.mxu0 %v13830_v16  ;;  %v13835_v6 = vld [vmem:[%s18728_s0 + $0x4f4] ss:$8 sps:$4 sm:$0xff]  }
 0x563   : > { %v5209_v23 = vadd.f32 %v5208_v17, %v16186_v45  ;;  %v5210_v60 = vpop.f32.mrb[59].mxu0  ;;  %5943 = vmatmul.mubr.bf16.gmra.mrb[180].mxu1 %v5537_v47  ;;  %v5439_v14 = vmax.f32 %v5205_v24, 0.0  ;;  %v13833_v24 = vld [vmem:[%s18728_s0 + $0x4f0] ss:$8 sps:$4 sm:$0xff]   ;;  %6548 = vmatprep.subr.bf16.mxu1 %v13835_v6 }
 0x564   : > { %v5211_v50 = vadd.f32 %v5210_v60, %v16190_v34  ;;  %v5440_v51 = vmax.f32 %v5207_v13, 0.0  ;;  %6549 = vmatpush1.bf16.msra.mxu1 %v13833_v24 }
 0x565   : > { %v5441_v61 = vmax.f32 %v5209_v23, 0.0 }
 0x566   : > { %v5442_v57 = vmax.f32 %v5211_v50, 0.0 }
 0x567   : > { %v5539_v36 = vpack.c.bf16 %v5441_v61, %v5439_v14 }
 0x568   : > { %v5214_v25 = vpop.f32.mrb[60].mxu0  ;;  %v5540_v49 = vpack.c.bf16 %v5442_v57, %v5440_v51 }
 0x569   : > { %v5215_v5 = vadd.f32 %v5214_v25, %v16186_v45  ;;  %v5216_v29 = vpop.f32.mrb[61].mxu0 }
 0x56a   : > { %v5217_v0 = vadd.f32 %v5216_v29, %v16190_v34  ;;  %v5218_v8 = vpop.f32.mrb[62].mxu0  ;;  %5952 = vmatprep.mubr.bf16.mxu1 %v5540_v49 }
 0x56b   : > { %v5219_v26 = vadd.f32 %v5218_v8, %v16186_v45  ;;  %v5220_v10 = vpop.f32.mrb[63].mxu0  ;;  %5953 = vmatmul.mubr.bf16.gmra.mrb[184].mxu1 %v5539_v36  ;;  %v5443_v47 = vmax.f32 %v5215_v5, 0.0 }
 0x56c   : > { %v5221_v30 = vadd.f32 %v5220_v10, %v16190_v34  ;;  %v5444_v33 = vmax.f32 %v5217_v0, 0.0 }
 0x56d   : > { %v5445_v42 = vmax.f32 %v5219_v26, 0.0 }
 0x56e   : > { %v5446_v39 = vmax.f32 %v5221_v30, 0.0 }
 0x56f   : > { %v5541_v32 = vpack.c.bf16 %v5445_v42, %v5443_v47 }
 0x570   : > { %v5224_v13 = vpop.f32.mrb[64].mxu0  ;;  %v5542_v17 = vpack.c.bf16 %v5446_v39, %v5444_v33  ;;  %v13836_v33 = vld [vmem:[%s18728_s0 + $0x520] ss:$8 sps:$4 sm:$0xff]   ;;  %v13838_v39 = vld [vmem:[%s18728_s0 + $0x524] ss:$8 sps:$4 sm:$0xff]  }
 0x571   : > { %v5225_v23 = vadd.f32 %v5224_v13, %v16186_v45  ;;  %v5226_v60 = vpop.f32.mrb[65].mxu0  ;;  %7540 = vmatprep.subr.bf16.mxu0 %v13838_v39 }
 0x572   : > { %v5227_v50 = vadd.f32 %v5226_v60, %v16190_v34  ;;  %v5228_v14 = vpop.f32.mrb[66].mxu0  ;;  %5962 = vmatprep.mubr.bf16.mxu1 %v5542_v17  ;;  %7541 = vmatpush1.bf16.msra.mxu0 %v13836_v33 }
 0x573   : > { %v5229_v61 = vadd.f32 %v5228_v14, %v16186_v45  ;;  %v5230_v51 = vpop.f32.mrb[67].mxu0  ;;  %5963 = vmatmul.mubr.bf16.gmra.mrb[188].mxu1 %v5541_v32  ;;  %v5447_v36 = vmax.f32 %v5225_v23, 0.0 }
 0x574   : > { %v5231_v57 = vadd.f32 %v5230_v51, %v16190_v34  ;;  %v5448_v49 = vmax.f32 %v5227_v50, 0.0 }
 0x575   : > { %v5449_v25 = vmax.f32 %v5229_v61, 0.0 }
 0x576   : > { %v5450_v5 = vmax.f32 %v5231_v57, 0.0 }
 0x577   : > { %v5543_v29 = vpack.c.bf16 %v5449_v25, %v5447_v36 }
 0x578   : > { %v5234_v0 = vpop.f32.mrb[68].mxu0  ;;  %v5544_v8 = vpack.c.bf16 %v5450_v5, %v5448_v49 }
 0x579   : > { %v5235_v26 = vadd.f32 %v5234_v0, %v16186_v45  ;;  %v5236_v10 = vpop.f32.mrb[69].mxu0 }
 0x57a   : > { %v5237_v30 = vadd.f32 %v5236_v10, %v16190_v34  ;;  %v5238_v16 = vpop.f32.mrb[70].mxu0  ;;  %5972 = vmatprep.mubr.bf16.mxu1 %v5544_v8 }
 0x57b   : > { %v5239_v22 = vadd.f32 %v5238_v16, %v16186_v45  ;;  %v5240_v47 = vpop.f32.mrb[71].mxu0  ;;  %5973 = vmatmul.mubr.bf16.gmra.mrb[192].mxu1 %v5543_v29  ;;  %v5451_v32 = vmax.f32 %v5235_v26, 0.0 }
 0x57c   : > { %v5241_v42 = vadd.f32 %v5240_v47, %v16190_v34  ;;  %v5452_v6 = vmax.f32 %v5237_v30, 0.0 }
 0x57d   : > { %v5453_v24 = vmax.f32 %v5239_v22, 0.0 }
 0x57e   : > { %v5454_v13 = vmax.f32 %v5241_v42, 0.0 }
 0x57f   : > { %v5545_v17 = vpack.c.bf16 %v5453_v24, %v5451_v32  ;;  %v13839_v32 = vld [vmem:[%s18728_s0 + $0x530] ss:$8 sps:$4 sm:$0xff]   ;;  %v13841_v24 = vld [vmem:[%s18728_s0 + $0x534] ss:$8 sps:$4 sm:$0xff]  }
 0x580   : > { %v5244_v23 = vpop.f32.mrb[72].mxu0  ;;  %v5546_v60 = vpack.c.bf16 %v5454_v13, %v5452_v6  ;;  %7542 = vmatprep.subr.bf16.mxu0 %v13841_v24 }
 0x581   : > { %v5245_v50 = vadd.f32 %v5244_v23, %v16186_v45  ;;  %v5246_v14 = vpop.f32.mrb[73].mxu0  ;;  %7543 = vmatpush1.bf16.msra.mxu0 %v13839_v32 }
 0x582   : > { %v5247_v61 = vadd.f32 %v5246_v14, %v16190_v34  ;;  %v5248_v51 = vpop.f32.mrb[74].mxu0  ;;  %5982 = vmatprep.mubr.bf16.mxu1 %v5546_v60 }
 0x583   : > { %v5249_v57 = vadd.f32 %v5248_v51, %v16186_v45  ;;  %v5250_v36 = vpop.f32.mrb[75].mxu0  ;;  %5983 = vmatmul.mubr.bf16.gmra.mrb[196].mxu1 %v5545_v17  ;;  %v5455_v49 = vmax.f32 %v5245_v50, 0.0 }
 0x584   : > { %v5251_v25 = vadd.f32 %v5250_v36, %v16190_v34  ;;  %v5456_v29 = vmax.f32 %v5247_v61, 0.0 }
 0x585   : > { %v5457_v5 = vmax.f32 %v5249_v57, 0.0 }
 0x586   : > { %v5458_v0 = vmax.f32 %v5251_v25, 0.0 }
 0x587   : > { %v5547_v8 = vpack.c.bf16 %v5457_v5, %v5455_v49 }
 0x588   : > { %v5254_v26 = vpop.f32.mrb[76].mxu0  ;;  %v5548_v10 = vpack.c.bf16 %v5458_v0, %v5456_v29 }
 0x589   : > { %v5255_v30 = vadd.f32 %v5254_v26, %v16186_v45  ;;  %v5256_v16 = vpop.f32.mrb[77].mxu0 }
 0x58a   : > { %v5257_v22 = vadd.f32 %v5256_v16, %v16190_v34  ;;  %v5258_v47 = vpop.f32.mrb[78].mxu0  ;;  %5992 = vmatprep.mubr.bf16.mxu1 %v5548_v10 }
 0x58b   : > { %v5259_v42 = vadd.f32 %v5258_v47, %v16186_v45  ;;  %v5260_v33 = vpop.f32.mrb[79].mxu0  ;;  %5993 = vmatmul.mubr.bf16.gmra.mrb[200].mxu1 %v5547_v8  ;;  %v5459_v6 = vmax.f32 %v5255_v30, 0.0 }
 0x58c   : > { %v5261_v39 = vadd.f32 %v5260_v33, %v16190_v34  ;;  %v5460_v17 = vmax.f32 %v5257_v22, 0.0 }
 0x58d   : > { %v5461_v13 = vmax.f32 %v5259_v42, 0.0 }
 0x58e   : > { %v5462_v23 = vmax.f32 %v5261_v39, 0.0 }
 0x58f   : > { %v5549_v60 = vpack.c.bf16 %v5461_v13, %v5459_v6  ;;  %v13842_v6 = vld [vmem:[%s18728_s0 + $0x540] ss:$8 sps:$4 sm:$0xff]   ;;  %v13844_v13 = vld [vmem:[%s18728_s0 + $0x544] ss:$8 sps:$4 sm:$0xff]  }
 0x590   : > { %v5264_v50 = vpop.f32.mrb[80].mxu0  ;;  %v5550_v14 = vpack.c.bf16 %v5462_v23, %v5460_v17  ;;  %7544 = vmatprep.subr.bf16.mxu0 %v13844_v13 }
 0x591   : > { %v5265_v61 = vadd.f32 %v5264_v50, %v16186_v45  ;;  %v5266_v51 = vpop.f32.mrb[81].mxu0  ;;  %7545 = vmatpush1.bf16.msra.mxu0 %v13842_v6 }
 0x592   : > { %v5267_v57 = vadd.f32 %v5266_v51, %v16190_v34  ;;  %v5268_v36 = vpop.f32.mrb[82].mxu0  ;;  %6002 = vmatprep.mubr.bf16.mxu1 %v5550_v14 }
 0x593   : > { %v5269_v25 = vadd.f32 %v5268_v36, %v16186_v45  ;;  %v5270_v49 = vpop.f32.mrb[83].mxu0  ;;  %6003 = vmatmul.mubr.bf16.gmra.mrb[204].mxu1 %v5549_v60  ;;  %v5463_v29 = vmax.f32 %v5265_v61, 0.0 }
 0x594   : > { %v5271_v5 = vadd.f32 %v5270_v49, %v16190_v34  ;;  %v5464_v8 = vmax.f32 %v5267_v57, 0.0 }
 0x595   : > { %v5465_v0 = vmax.f32 %v5269_v25, 0.0 }
 0x596   : > { %v5466_v26 = vmax.f32 %v5271_v5, 0.0 }
 0x597   : > { %v5551_v10 = vpack.c.bf16 %v5465_v0, %v5463_v29 }
 0x598   : > { %v5274_v30 = vpop.f32.mrb[84].mxu0  ;;  %v5552_v16 = vpack.c.bf16 %v5466_v26, %v5464_v8 }
 0x599   : > { %v5275_v22 = vadd.f32 %v5274_v30, %v16186_v45  ;;  %v5276_v47 = vpop.f32.mrb[85].mxu0 }
 0x59a   : > { %v5277_v42 = vadd.f32 %v5276_v47, %v16190_v34  ;;  %v5278_v33 = vpop.f32.mrb[86].mxu0  ;;  %6012 = vmatprep.mubr.bf16.mxu1 %v5552_v16 }
 0x59b   : > { %v5279_v39 = vadd.f32 %v5278_v33, %v16186_v45  ;;  %v5280_v32 = vpop.f32.mrb[87].mxu0  ;;  %6013 = vmatmul.mubr.bf16.gmra.mrb[208].mxu1 %v5551_v10  ;;  %v5467_v17 = vmax.f32 %v5275_v22, 0.0 }
 0x59c   : > { %v5281_v24 = vadd.f32 %v5280_v32, %v16190_v34  ;;  %v5468_v60 = vmax.f32 %v5277_v42, 0.0 }
 0x59d   : > { %v5469_v23 = vmax.f32 %v5279_v39, 0.0 }
 0x59e   : > { %v5470_v50 = vmax.f32 %v5281_v24, 0.0 }
 0x59f   : > { %v5553_v14 = vpack.c.bf16 %v5469_v23, %v5467_v17  ;;  %v13845_v17 = vld [vmem:[%s18728_s0 + $0x550] ss:$8 sps:$4 sm:$0xff]   ;;  %v13847_v23 = vld [vmem:[%s18728_s0 + $0x554] ss:$8 sps:$4 sm:$0xff]  }
 0x5a0   : > { %v5284_v61 = vpop.f32.mrb[88].mxu0  ;;  %v5554_v51 = vpack.c.bf16 %v5470_v50, %v5468_v60  ;;  %7546 = vmatprep.subr.bf16.mxu0 %v13847_v23 }
 0x5a1   : > { %v5285_v57 = vadd.f32 %v5284_v61, %v16186_v45  ;;  %v5286_v36 = vpop.f32.mrb[89].mxu0  ;;  %7547 = vmatpush1.bf16.msra.mxu0 %v13845_v17 }
 0x5a2   : > { %v5287_v25 = vadd.f32 %v5286_v36, %v16190_v34  ;;  %v5288_v49 = vpop.f32.mrb[90].mxu0  ;;  %6022 = vmatprep.mubr.bf16.mxu1 %v5554_v51 }
 0x5a3   : > { %v5289_v5 = vadd.f32 %v5288_v49, %v16186_v45  ;;  %v5290_v29 = vpop.f32.mrb[91].mxu0  ;;  %6023 = vmatmul.mubr.bf16.gmra.mrb[212].mxu1 %v5553_v14  ;;  %v5471_v8 = vmax.f32 %v5285_v57, 0.0 }
 0x5a4   : > { %v5291_v0 = vadd.f32 %v5290_v29, %v16190_v34  ;;  %v5472_v10 = vmax.f32 %v5287_v25, 0.0 }
 0x5a5   : > { %v5473_v26 = vmax.f32 %v5289_v5, 0.0 }
 0x5a6   : > { %v5474_v30 = vmax.f32 %v5291_v0, 0.0 }
 0x5a7   : > { %v5555_v16 = vpack.c.bf16 %v5473_v26, %v5471_v8 }
 0x5a8   : > { %v5294_v22 = vpop.f32.mrb[92].mxu0  ;;  %v5556_v47 = vpack.c.bf16 %v5474_v30, %v5472_v10 }
 0x5a9   : > { %v5295_v42 = vadd.f32 %v5294_v22, %v16186_v45  ;;  %v5296_v33 = vpop.f32.mrb[93].mxu0 }
 0x5aa   : > { %v5297_v39 = vadd.f32 %v5296_v33, %v16190_v34  ;;  %v5298_v32 = vpop.f32.mrb[94].mxu0  ;;  %6032 = vmatprep.mubr.bf16.mxu1 %v5556_v47 }
 0x5ab   : > { %v5299_v24 = vadd.f32 %v5298_v32, %v16186_v45  ;;  %v5300_v6 = vpop.f32.mrb[95].mxu0  ;;  %6033 = vmatmul.mubr.bf16.gmra.mrb[216].mxu1 %v5555_v16  ;;  %v5475_v60 = vmax.f32 %v5295_v42, 0.0 }
 0x5ac   : > { %v5301_v13 = vadd.f32 %v5300_v6, %v16190_v34  ;;  %v5476_v14 = vmax.f32 %v5297_v39, 0.0 }
 0x5ad   : > { %v5477_v50 = vmax.f32 %v5299_v24, 0.0 }
 0x5ae   : > { %v5478_v61 = vmax.f32 %v5301_v13, 0.0 }
 0x5af   : > { %v5557_v51 = vpack.c.bf16 %v5477_v50, %v5475_v60  ;;  %v13848_v60 = vld [vmem:[%s18728_s0 + $0x560] ss:$8 sps:$4 sm:$0xff]   ;;  %v13850_v50 = vld [vmem:[%s18728_s0 + $0x564] ss:$8 sps:$4 sm:$0xff]  }
 0x5b0   : > { %v5304_v57 = vpop.f32.mrb[96].mxu0  ;;  %v5558_v36 = vpack.c.bf16 %v5478_v61, %v5476_v14  ;;  %7548 = vmatprep.subr.bf16.mxu0 %v13850_v50 }
 0x5b1   : > { %v5305_v25 = vadd.f32 %v5304_v57, %v16186_v45  ;;  %v5306_v49 = vpop.f32.mrb[97].mxu0  ;;  %7549 = vmatpush1.bf16.msra.mxu0 %v13848_v60 }
 0x5b2   : > { %v5307_v5 = vadd.f32 %v5306_v49, %v16190_v34  ;;  %v5308_v29 = vpop.f32.mrb[98].mxu0  ;;  %6042 = vmatprep.mubr.bf16.mxu1 %v5558_v36 }
 0x5b3   : > { %v5309_v0 = vadd.f32 %v5308_v29, %v16186_v45  ;;  %v5310_v8 = vpop.f32.mrb[99].mxu0  ;;  %6043 = vmatmul.mubr.bf16.gmra.mrb[220].mxu1 %v5557_v51  ;;  %v5479_v10 = vmax.f32 %v5305_v25, 0.0 }
 0x5b4   : > { %v5311_v26 = vadd.f32 %v5310_v8, %v16190_v34  ;;  %v5480_v16 = vmax.f32 %v5307_v5, 0.0 }
 0x5b5   : > { %v5481_v30 = vmax.f32 %v5309_v0, 0.0 }
 0x5b6   : > { %v5482_v22 = vmax.f32 %v5311_v26, 0.0 }
 0x5b7   : > { %v5559_v47 = vpack.c.bf16 %v5481_v30, %v5479_v10 }
 0x5b8   : > { %v5314_v42 = vpop.f32.mrb[100].mxu0  ;;  %v5560_v33 = vpack.c.bf16 %v5482_v22, %v5480_v16 }
 0x5b9   : > { %v5315_v39 = vadd.f32 %v5314_v42, %v16186_v45  ;;  %v5316_v32 = vpop.f32.mrb[101].mxu0 }
 0x5ba   : > { %v5317_v24 = vadd.f32 %v5316_v32, %v16190_v34  ;;  %v5318_v6 = vpop.f32.mrb[102].mxu0  ;;  %6052 = vmatprep.mubr.bf16.mxu1 %v5560_v33 }
 0x5bb   : > { %v5319_v13 = vadd.f32 %v5318_v6, %v16186_v45  ;;  %v5320_v17 = vpop.f32.mrb[103].mxu0  ;;  %6053 = vmatmul.mubr.bf16.gmra.mrb[224].mxu1 %v5559_v47  ;;  %v5483_v14 = vmax.f32 %v5315_v39, 0.0 }
 0x5bc   : > { %v5321_v23 = vadd.f32 %v5320_v17, %v16190_v34  ;;  %v5484_v51 = vmax.f32 %v5317_v24, 0.0  ;;  %v5608_v24 = vld [vmem:[%s18691_s7] sm:$0x3] }
 0x5bd   : > { %v5485_v61 = vmax.f32 %v5319_v13, 0.0 }
 0x5be   : > { %v5486_v57 = vmax.f32 %v5321_v23, 0.0 }
 0x5bf   : > { %v5561_v36 = vpack.c.bf16 %v5485_v61, %v5483_v14  ;;  %v16458_v14 = vrot.slane %v5608_v24, %v15253_v58 }
 0x5c0   : > { %v5324_v25 = vpop.f32.mrb[104].mxu0  ;;  %v5562_v49 = vpack.c.bf16 %v5486_v57, %v5484_v51  ;;  %v16462_v51 = vrot.slane %v5608_v24, %v15258_v27  ;;  %v13851_v57 = vld [vmem:[%s18728_s0 + $0x570] ss:$8 sps:$4 sm:$0xff]  }
 0x5c1   : > { %v5325_v5 = vadd.f32 %v5324_v25, %v16186_v45  ;;  %v5326_v29 = vpop.f32.mrb[105].mxu0 }
 0x5c2   : > { %v5327_v0 = vadd.f32 %v5326_v29, %v16190_v34  ;;  %v5328_v8 = vpop.f32.mrb[106].mxu0  ;;  %6062 = vmatprep.mubr.bf16.mxu1 %v5562_v49 }
 0x5c3   : > { %v5329_v26 = vadd.f32 %v5328_v8, %v16186_v45  ;;  %v5330_v10 = vpop.f32.mrb[107].mxu0  ;;  %6063 = vmatmul.mubr.bf16.gmra.mrb[228].mxu1 %v5561_v36  ;;  %v5487_v16 = vmax.f32 %v5325_v5, 0.0  ;;  %v13853_v36 = vld [vmem:[%s18728_s0 + $0x574] ss:$8 sps:$4 sm:$0xff]  }
 0x5c4   : > { %v5331_v30 = vadd.f32 %v5330_v10, %v16190_v34  ;;  %v5488_v47 = vmax.f32 %v5327_v0, 0.0  ;;  %7550 = vmatprep.subr.bf16.mxu0 %v13853_v36 }
 0x5c5   : > { %v5489_v22 = vmax.f32 %v5329_v26, 0.0  ;;  %7551 = vmatpush1.bf16.msra.mxu0 %v13851_v57 }
 0x5c6   : > { %v5490_v42 = vmax.f32 %v5331_v30, 0.0 }
 0x5c7   : > { %v5563_v33 = vpack.c.bf16 %v5489_v22, %v5487_v16 }
 0x5c8   : > { %v5334_v39 = vpop.f32.mrb[108].mxu0  ;;  %v5564_v32 = vpack.c.bf16 %v5490_v42, %v5488_v47 }
 0x5c9   : > { %v5335_v6 = vadd.f32 %v5334_v39, %v16186_v45  ;;  %v5336_v13 = vpop.f32.mrb[109].mxu0 }
 0x5ca   : > { %v5337_v17 = vadd.f32 %v5336_v13, %v16190_v34  ;;  %v5338_v23 = vpop.f32.mrb[110].mxu0  ;;  %6072 = vmatprep.mubr.bf16.mxu1 %v5564_v32 }
 0x5cb   : > { %v5339_v60 = vadd.f32 %v5338_v23, %v16186_v45  ;;  %v5340_v50 = vpop.f32.mrb[111].mxu0  ;;  %6073 = vmatmul.mubr.bf16.gmra.mrb[232].mxu1 %v5563_v33  ;;  %v5491_v25 = vmax.f32 %v5335_v6, 0.0 }
 0x5cc   : > { %v5341_v61 = vadd.f32 %v5340_v50, %v16190_v34  ;;  %v5492_v5 = vmax.f32 %v5337_v17, 0.0 }
 0x5cd   : > { %v5493_v49 = vmax.f32 %v5339_v60, 0.0 }
 0x5ce   : > { %v5494_v29 = vmax.f32 %v5341_v61, 0.0  ;;  %v5814_v0 = vpop.f32.mrb[128].mxu1 }
 0x5cf   : > { %v5565_v8 = vpack.c.bf16 %v5493_v49, %v5491_v25  ;;  %v5815_v26 = vadd.f32 %v5814_v0, %v16458_v14  ;;  %v5816_v10 = vpop.f32.mrb[129].mxu1 }
 0x5d0   : > { %v5817_v30 = vadd.f32 %v5816_v10, %v16462_v51  ;;  %v5344_v16 = vpop.f32.mrb[112].mxu0  ;;  %v5818_v22 = vpop.f32.mrb[130].mxu1  ;;  %v5566_v47 = vpack.c.bf16 %v5494_v29, %v5492_v5 }
 0x5d1   : > { %v5345_v42 = vadd.f32 %v5344_v16, %v16186_v45  ;;  %v5819_v33 = vadd.f32 %v5818_v22, %v16458_v14  ;;  %v5346_v39 = vpop.f32.mrb[113].mxu0  ;;  %v5820_v32 = vpop.f32.mrb[131].mxu1  ;;  %v6133_v17 = vmax.f32 %v5815_v26, 0.0 }
 0x5d2   : > { %v5347_v24 = vadd.f32 %v5346_v39, %v16190_v34  ;;  %v5821_v6 = vadd.f32 %v5820_v32, %v16462_v51  ;;  %v5348_v13 = vpop.f32.mrb[114].mxu0  ;;  %6082 = vmatprep.mubr.bf16.mxu1 %v5566_v47  ;;  %v6134_v61 = vmax.f32 %v5817_v30, 0.0 }
 0x5d3   : > { %v6135_v23 = vmax.f32 %v5819_v33, 0.0  ;;  %v5349_v60 = vadd.f32 %v5348_v13, %v16186_v45  ;;  %v5350_v50 = vpop.f32.mrb[115].mxu0  ;;  %6083 = vmatmul.mubr.bf16.gmra.mrb[236].mxu1 %v5565_v8  ;;  %v5495_v25 = vmax.f32 %v5345_v42, 0.0 }
 0x5d4   : > { %v6136_v57 = vmax.f32 %v5821_v6, 0.0  ;;  %v5351_v36 = vadd.f32 %v5350_v50, %v16190_v34  ;;  %v5496_v29 = vmax.f32 %v5347_v24, 0.0 }
 0x5d5   : > { %v16478_v49 = vpack.c.bf16 %v6135_v23, %v6133_v17  ;;  %v5497_v5 = vmax.f32 %v5349_v60, 0.0 }
 0x5d6   : > { %v5498_v0 = vmax.f32 %v5351_v36, 0.0  ;;  %v5824_v10 = vpop.f32.mrb[132].mxu1  ;;  %v16480_v16 = vpack.c.bf16 %v6136_v57, %v6134_v61 }
 0x5d7   : > { %v5567_v22 = vpack.c.bf16 %v5497_v5, %v5495_v25  ;;  %v5825_v26 = vadd.f32 %v5824_v10, %v16458_v14  ;;  %v5826_v47 = vpop.f32.mrb[133].mxu1 }
 0x5d8   : > { %v5827_v33 = vadd.f32 %v5826_v47, %v16462_v51  ;;  %v5354_v8 = vpop.f32.mrb[116].mxu0  ;;  %v5828_v30 = vpop.f32.mrb[134].mxu1  ;;  %v5568_v39 = vpack.c.bf16 %v5498_v0, %v5496_v29  ;;  %v13854_v29 = vld [vmem:[%s18728_s0 + $0x580] ss:$8 sps:$4 sm:$0xff]   ;;  %v13856_v0 = vld [vmem:[%s18728_s0 + $0x584] ss:$8 sps:$4 sm:$0xff]  }
 0x5d9   : > { %v5355_v32 = vadd.f32 %v5354_v8, %v16186_v45  ;;  %v5829_v42 = vadd.f32 %v5828_v30, %v16458_v14  ;;  %v5356_v6 = vpop.f32.mrb[117].mxu0  ;;  %v5830_v13 = vpop.f32.mrb[135].mxu1  ;;  %v6137_v60 = vmax.f32 %v5825_v26, 0.0  ;;  %7552 = vmatprep.subr.bf16.mxu0 %v13856_v0 }
 0x5da   : > { %v5357_v24 = vadd.f32 %v5356_v6, %v16190_v34  ;;  %v5831_v17 = vadd.f32 %v5830_v13, %v16462_v51  ;;  %v5358_v23 = vpop.f32.mrb[118].mxu0  ;;  %6092 = vmatprep.mubr.bf16.mxu1 %v5568_v39  ;;  %v6138_v36 = vmax.f32 %v5827_v33, 0.0  ;;  %7553 = vmatpush1.bf16.msra.mxu0 %v13854_v29 }
 0x5db   : > { %v6139_v50 = vmax.f32 %v5829_v42, 0.0  ;;  %v5359_v61 = vadd.f32 %v5358_v23, %v16186_v45  ;;  %v5360_v57 = vpop.f32.mrb[119].mxu0  ;;  %6093 = vmatmul.mubr.bf16.gmra.mrb[240].mxu1 %v5567_v22  ;;  %v5499_v10 = vmax.f32 %v5355_v32, 0.0 }
 0x5dc   : > { %v6140_v25 = vmax.f32 %v5831_v17, 0.0  ;;  %v5361_v5 = vadd.f32 %v5360_v57, %v16190_v34  ;;  %v5500_v8 = vmax.f32 %v5357_v24, 0.0 }
 0x5dd   : > { %v5501_v47 = vmax.f32 %v5359_v61, 0.0  ;;  %v16496_v26 = vpack.c.bf16 %v6139_v50, %v6137_v60 }
 0x5de   : > { %v5502_v30 = vmax.f32 %v5361_v5, 0.0  ;;  %v5834_v39 = vpop.f32.mrb[136].mxu1  ;;  %v16498_v22 = vpack.c.bf16 %v6140_v25, %v6138_v36 }
 0x5df   : > { %v5569_v33 = vpack.c.bf16 %v5501_v47, %v5499_v10  ;;  %v5835_v42 = vadd.f32 %v5834_v39, %v16458_v14  ;;  %v5836_v6 = vpop.f32.mrb[137].mxu1 }
 0x5e0   : > { %v5837_v13 = vadd.f32 %v5836_v6, %v16462_v51  ;;  %v5364_v17 = vpop.f32.mrb[120].mxu0  ;;  %v5838_v23 = vpop.f32.mrb[138].mxu1  ;;  %v5570_v57 = vpack.c.bf16 %v5502_v30, %v5500_v8 }
 0x5e1   : > { %v5365_v32 = vadd.f32 %v5364_v17, %v16186_v45  ;;  %v5839_v60 = vadd.f32 %v5838_v23, %v16458_v14  ;;  %v5366_v24 = vpop.f32.mrb[121].mxu0  ;;  %v5840_v50 = vpop.f32.mrb[139].mxu1  ;;  %v6141_v5 = vmax.f32 %v5835_v42, 0.0 }
 0x5e2   : > { %v5367_v61 = vadd.f32 %v5366_v24, %v16190_v34  ;;  %v5841_v36 = vadd.f32 %v5840_v50, %v16462_v51  ;;  %v5368_v25 = vpop.f32.mrb[122].mxu0  ;;  %6102 = vmatprep.mubr.bf16.mxu1 %v5570_v57  ;;  %v6142_v47 = vmax.f32 %v5837_v13, 0.0 }
 0x5e3   : > { %v6143_v0 = vmax.f32 %v5839_v60, 0.0  ;;  %v5369_v29 = vadd.f32 %v5368_v25, %v16186_v45  ;;  %v5370_v10 = vpop.f32.mrb[123].mxu0  ;;  %6103 = vmatmul.mubr.bf16.gmra.mrb[244].mxu1 %v5569_v33  ;;  %v5503_v39 = vmax.f32 %v5365_v32, 0.0 }
 0x5e4   : > { %v6144_v8 = vmax.f32 %v5841_v36, 0.0  ;;  %v5371_v30 = vadd.f32 %v5370_v10, %v16190_v34  ;;  %v5504_v23 = vmax.f32 %v5367_v61, 0.0 }
 0x5e5   : > { %v5505_v6 = vmax.f32 %v5369_v29, 0.0  ;;  %v16508_v17 = vpack.c.bf16 %v6143_v0, %v6141_v5 }
 0x5e6   : > { %v5506_v24 = vmax.f32 %v5371_v30, 0.0  ;;  %v5844_v35 = vpop.f32.mrb[140].mxu1  ;;  %v16510_v50 = vpack.c.bf16 %v6144_v8, %v6142_v47 }
 0x5e7   : > { %v5571_v57 = vpack.c.bf16 %v5505_v6, %v5503_v39  ;;  %v5845_v42 = vadd.f32 %v5844_v35, %v16458_v14  ;;  %v5846_v60 = vpop.f32.mrb[141].mxu1 }
 0x5e8   : > { %v5847_v25 = vadd.f32 %v5846_v60, %v16462_v51  ;;  %v5374_v33 = vpop.f32.mrb[124].mxu0  ;;  %v5848_v13 = vpop.f32.mrb[142].mxu1  ;;  %v5572_v36 = vpack.c.bf16 %v5506_v24, %v5504_v23  ;;  %v13857_v60 = vld [vmem:[%s18728_s0 + $0x590] ss:$8 sps:$4 sm:$0xff]  }
 0x5e9   : > { %v5375_v10 = vadd.f32 %v5374_v33, %v16186_v45  ;;  %v5849_v32 = vadd.f32 %v5848_v13, %v16458_v14  ;;  %v5376_v5 = vpop.f32.mrb[125].mxu0  ;;  %v5850_v0 = vpop.f32.mrb[143].mxu1  ;;  %v6145_v8 = vmax.f32 %v5845_v42, 0.0  ;;  %v13859_v33 = vld [vmem:[%s18728_s0 + $0x594] ss:$8 sps:$4 sm:$0xff]  }
 0x5ea   : > { %v5377_v61 = vadd.f32 %v5376_v5, %v16190_v34  ;;  %v5851_v29 = vadd.f32 %v5850_v0, %v16462_v51  ;;  %v5378_v47 = vpop.f32.mrb[126].mxu0  ;;  %6112 = vmatprep.mubr.bf16.mxu1 %v5572_v36  ;;  %v6146_v6 = vmax.f32 %v5847_v25, 0.0  ;;  %7554 = vmatprep.subr.bf16.mxu0 %v13859_v33 }
 0x5eb   : > { %v6147_v35 = vmax.f32 %v5849_v32, 0.0  ;;  %v5379_v30 = vadd.f32 %v5378_v47, %v16186_v45  ;;  %v5380_v39 = vpop.f32.mrb[127].mxu0  ;;  %6113 = vmatmul.mubr.bf16.gmra.mrb[248].mxu1 %v5571_v57  ;;  %v5507_v13 = vmax.f32 %v5375_v10, 0.0  ;;  %7555 = vmatpush1.bf16.msra.mxu0 %v13857_v60 }
 0x5ec   : > { %v6148_v23 = vmax.f32 %v5851_v29, 0.0  ;;  %v5381_v24 = vadd.f32 %v5380_v39, %v16190_v34  ;;  %v5508_v32 = vmax.f32 %v5377_v61, 0.0 }
 0x5ed   : > { %v5509_v36 = vmax.f32 %v5379_v30, 0.0  ;;  %v16526_v42 = vpack.c.bf16 %v6147_v35, %v6145_v8 }
 0x5ee   : > { %v5510_v45 = vmax.f32 %v5381_v24, 0.0  ;;  %v5854_v5 = vpop.f32.mrb[144].mxu1  ;;  %v16528_v57 = vpack.c.bf16 %v6148_v23, %v6146_v6 }
 0x5ef   : > { %v5573_v25 = vpack.c.bf16 %v5509_v36, %v5507_v13  ;;  %v5855_v34 = vadd.f32 %v5854_v5, %v16458_v14  ;;  %v5856_v0 = vpop.f32.mrb[145].mxu1 }
 0x5f0   : > { %v5857_v29 = vadd.f32 %v5856_v0, %v16462_v51  ;;  %v5858_v47 = vpop.f32.mrb[146].mxu1  ;;  %v5574_v39 = vpack.c.bf16 %v5510_v45, %v5508_v32 }
 0x5f1   : > { %v5859_v10 = vadd.f32 %v5858_v47, %v16458_v14  ;;  %v5860_v30 = vpop.f32.mrb[147].mxu1  ;;  %v6149_v61 = vmax.f32 %v5855_v34, 0.0 }
 0x5f2   : > { %v5861_v8 = vadd.f32 %v5860_v30, %v16462_v51  ;;  %6122 = vmatprep.mubr.bf16.mxu1 %v5574_v39  ;;  %v6150_v6 = vmax.f32 %v5857_v29, 0.0  ;;  %v13860_v39 = vld [vmem:[%s18728_s0 + $0x5a0] ss:$8 sps:$4 sm:$0xff]  }
 0x5f3   : > { %v6151_v35 = vmax.f32 %v5859_v10, 0.0  ;;  %6123 = vmatmul.mubr.bf16.gmra.mrb[252].mxu1 %v5573_v25  ;;  %v13862_v10 = vld [vmem:[%s18728_s0 + $0x5a4] ss:$8 sps:$4 sm:$0xff]  }
 0x5f4   : > { %v6152_v23 = vmax.f32 %v5861_v8, 0.0  ;;  %6550 = vmatprep.mubr.bf16.mxu1 %v16480_v16  ;;  %7556 = vmatprep.subr.bf16.mxu0 %v13862_v10 }
 0x5f5   : > { %v16535_v24 = vpack.c.bf16 %v6151_v35, %v6149_v61  ;;  %7557 = vmatpush1.bf16.msra.mxu0 %v13860_v39 }
 0x5f6   : > { %v5864_v60 = vpop.f32.mrb[148].mxu1  ;;  %v16537_v33 = vpack.c.bf16 %v6152_v23, %v6150_v6 }
 0x5f7   : > { %v5865_v13 = vadd.f32 %v5864_v60, %v16458_v14  ;;  %v5866_v36 = vpop.f32.mrb[149].mxu1 }
 0x5f8   : > { %v5867_v32 = vadd.f32 %v5866_v36, %v16462_v51  ;;  %v5868_v45 = vpop.f32.mrb[150].mxu1 }
 0x5f9   : > { %v5869_v5 = vadd.f32 %v5868_v45, %v16458_v14  ;;  %v5870_v34 = vpop.f32.mrb[151].mxu1  ;;  %v6153_v0 = vmax.f32 %v5865_v13, 0.0 }
 0x5fa   : > { %v5871_v25 = vadd.f32 %v5870_v34, %v16462_v51  ;;  %v6154_v16 = vmax.f32 %v5867_v32, 0.0 }
 0x5fb   : > { %v6155_v29 = vmax.f32 %v5869_v5, 0.0  ;;  %6551 = vmatmul.mubr.bf16.vlgmr.msra.gmra.mrb[0].mxu1 %v16478_v49 }
 0x5fc   : > { %v6156_v47 = vmax.f32 %v5871_v25, 0.0  ;;  %6560 = vmatprep.mubr.bf16.mxu1 %v16498_v22 }
 0x5fd   : > { %v16551_v30 = vpack.c.bf16 %v6155_v29, %v6153_v0 }
 0x5fe   : > { %v5874_v8 = vpop.f32.mrb[152].mxu1  ;;  %v16553_v61 = vpack.c.bf16 %v6156_v47, %v6154_v16 }
 0x5ff   : > { %v5875_v49 = vadd.f32 %v5874_v8, %v16458_v14  ;;  %v5876_v35 = vpop.f32.mrb[153].mxu1 }
 0x600   : > { %v5877_v22 = vadd.f32 %v5876_v35, %v16462_v51  ;;  %v5878_v6 = vpop.f32.mrb[154].mxu1 }
 0x601   : > { %v5879_v23 = vadd.f32 %v5878_v6, %v16458_v14  ;;  %v5880_v60 = vpop.f32.mrb[155].mxu1  ;;  %v6157_v36 = vmax.f32 %v5875_v49, 0.0  ;;  %v13863_v6 = vld [vmem:[%s18728_s0 + $0x5b0] ss:$8 sps:$4 sm:$0xff]  }
 0x602   : > { %v5881_v13 = vadd.f32 %v5880_v60, %v16462_v51  ;;  %v6158_v45 = vmax.f32 %v5877_v22, 0.0 }
 0x603   : > { %v6159_v32 = vmax.f32 %v5879_v23, 0.0  ;;  %6561 = vmatmul.mubr.bf16.gmra.mrb[4].mxu1 %v16496_v26  ;;  %v13865_v23 = vld [vmem:[%s18728_s0 + $0x5b4] ss:$8 sps:$4 sm:$0xff]  }
 0x604   : > { %v6160_v5 = vmax.f32 %v5881_v13, 0.0  ;;  %6570 = vmatprep.mubr.bf16.mxu1 %v16510_v50  ;;  %7558 = vmatprep.subr.bf16.mxu0 %v13865_v23 }
 0x605   : > { %v16561_v34 = vpack.c.bf16 %v6159_v32, %v6157_v36  ;;  %7559 = vmatpush1.bf16.msra.mxu0 %v13863_v6 }
 0x606   : > { %v5884_v25 = vpop.f32.mrb[156].mxu1  ;;  %v16563_v0 = vpack.c.bf16 %v6160_v5, %v6158_v45 }
 0x607   : > { %v5885_v29 = vadd.f32 %v5884_v25, %v16458_v14  ;;  %v5886_v16 = vpop.f32.mrb[157].mxu1 }
 0x608   : > { %v5887_v47 = vadd.f32 %v5886_v16, %v16462_v51  ;;  %v5888_v39 = vpop.f32.mrb[158].mxu1 }
 0x609   : > { %v5889_v10 = vadd.f32 %v5888_v39, %v16458_v14  ;;  %v5890_v8 = vpop.f32.mrb[159].mxu1  ;;  %v6161_v49 = vmax.f32 %v5885_v29, 0.0 }
 0x60a   : > { %v5891_v26 = vadd.f32 %v5890_v8, %v16462_v51  ;;  %v6162_v50 = vmax.f32 %v5887_v47, 0.0 }
 0x60b   : > { %v6163_v35 = vmax.f32 %v5889_v10, 0.0  ;;  %6571 = vmatmul.mubr.bf16.gmra.mrb[8].mxu1 %v16508_v17 }
 0x60c   : > { %v6164_v22 = vmax.f32 %v5891_v26, 0.0  ;;  %6580 = vmatprep.mubr.bf16.mxu1 %v16528_v57 }
 0x60d   : > { %v16577_v60 = vpack.c.bf16 %v6163_v35, %v6161_v49 }
 0x60e   : > { %v5894_v13 = vpop.f32.mrb[160].mxu1  ;;  %v16579_v36 = vpack.c.bf16 %v6164_v22, %v6162_v50 }
 0x60f   : > { %v5895_v17 = vadd.f32 %v5894_v13, %v16458_v14  ;;  %v5896_v32 = vpop.f32.mrb[161].mxu1 }
 0x610   : > { %v5897_v57 = vadd.f32 %v5896_v32, %v16462_v51  ;;  %v5898_v45 = vpop.f32.mrb[162].mxu1 }
 0x611   : > { %v5899_v5 = vadd.f32 %v5898_v45, %v16458_v14  ;;  %v5900_v25 = vpop.f32.mrb[163].mxu1  ;;  %v6165_v16 = vmax.f32 %v5895_v17, 0.0  ;;  %v13866_v45 = vld [vmem:[%s18728_s0 + $0x5c0] ss:$8 sps:$4 sm:$0xff]  }
 0x612   : > { %v5901_v29 = vadd.f32 %v5900_v25, %v16462_v51  ;;  %v6166_v39 = vmax.f32 %v5897_v57, 0.0 }
 0x613   : > { %v6167_v47 = vmax.f32 %v5899_v5, 0.0  ;;  %6581 = vmatmul.mubr.bf16.gmra.mrb[12].mxu1 %v16526_v42  ;;  %v13868_v5 = vld [vmem:[%s18728_s0 + $0x5c4] ss:$8 sps:$4 sm:$0xff]  }
 0x614   : > { %v6168_v10 = vmax.f32 %v5901_v29, 0.0  ;;  %6590 = vmatprep.mubr.bf16.mxu1 %v16537_v33  ;;  %7560 = vmatprep.subr.bf16.mxu0 %v13868_v5 }
 0x615   : > { %v16587_v8 = vpack.c.bf16 %v6167_v47, %v6165_v16  ;;  %7561 = vmatpush1.bf16.msra.mxu0 %v13866_v45 }
 0x616   : > { %v5904_v26 = vpop.f32.mrb[164].mxu1  ;;  %v16589_v49 = vpack.c.bf16 %v6168_v10, %v6166_v39 }
 0x617   : > { %v5905_v35 = vadd.f32 %v5904_v26, %v16458_v14  ;;  %v5906_v50 = vpop.f32.mrb[165].mxu1 }
 0x618   : > { %v5907_v22 = vadd.f32 %v5906_v50, %v16462_v51  ;;  %v5908_v6 = vpop.f32.mrb[166].mxu1 }
 0x619   : > { %v5909_v23 = vadd.f32 %v5908_v6, %v16458_v14  ;;  %v5910_v13 = vpop.f32.mrb[167].mxu1  ;;  %v6169_v17 = vmax.f32 %v5905_v35, 0.0 }
 0x61a   : > { %v5911_v42 = vadd.f32 %v5910_v13, %v16462_v51  ;;  %v6170_v33 = vmax.f32 %v5907_v22, 0.0 }
 0x61b   : > { %v6171_v32 = vmax.f32 %v5909_v23, 0.0  ;;  %6591 = vmatmul.mubr.bf16.gmra.mrb[16].mxu1 %v16535_v24 }
 0x61c   : > { %v6172_v57 = vmax.f32 %v5911_v42, 0.0  ;;  %6600 = vmatprep.mubr.bf16.mxu1 %v16553_v61 }
 0x61d   : > { %v16603_v25 = vpack.c.bf16 %v6171_v32, %v6169_v17 }
 0x61e   : > { %v5914_v29 = vpop.f32.mrb[168].mxu1  ;;  %v16605_v16 = vpack.c.bf16 %v6172_v57, %v6170_v33 }
 0x61f   : > { %v5915_v24 = vadd.f32 %v5914_v29, %v16458_v14  ;;  %v5916_v47 = vpop.f32.mrb[169].mxu1 }
 0x620   : > { %v5917_v61 = vadd.f32 %v5916_v47, %v16462_v51  ;;  %v5918_v39 = vpop.f32.mrb[170].mxu1 }
 0x621   : > { %v5919_v10 = vadd.f32 %v5918_v39, %v16458_v14  ;;  %v5920_v26 = vpop.f32.mrb[171].mxu1  ;;  %v6173_v50 = vmax.f32 %v5915_v24, 0.0  ;;  %v13869_v39 = vld [vmem:[%s18728_s0 + $0x5d0] ss:$8 sps:$4 sm:$0xff]  }
 0x622   : > { %v5921_v35 = vadd.f32 %v5920_v26, %v16462_v51  ;;  %v6174_v6 = vmax.f32 %v5917_v61, 0.0 }
 0x623   : > { %v6175_v22 = vmax.f32 %v5919_v10, 0.0  ;;  %6601 = vmatmul.mubr.bf16.gmra.mrb[20].mxu1 %v16551_v30  ;;  %v13871_v10 = vld [vmem:[%s18728_s0 + $0x5d4] ss:$8 sps:$4 sm:$0xff]  }
 0x624   : > { %v6176_v23 = vmax.f32 %v5921_v35, 0.0  ;;  %6610 = vmatprep.mubr.bf16.mxu1 %v16563_v0  ;;  %7562 = vmatprep.subr.bf16.mxu0 %v13871_v10 }
 0x625   : > { %v16613_v13 = vpack.c.bf16 %v6175_v22, %v6173_v50  ;;  %7563 = vmatpush1.bf16.msra.mxu0 %v13869_v39 }
 0x626   : > { %v5924_v42 = vpop.f32.mrb[172].mxu1  ;;  %v16615_v17 = vpack.c.bf16 %v6176_v23, %v6174_v6 }
 0x627   : > { %v5925_v32 = vadd.f32 %v5924_v42, %v16458_v14  ;;  %v5926_v33 = vpop.f32.mrb[173].mxu1 }
 0x628   : > { %v5927_v57 = vadd.f32 %v5926_v33, %v16462_v51  ;;  %v5928_v45 = vpop.f32.mrb[174].mxu1 }
 0x629   : > { %v5929_v5 = vadd.f32 %v5928_v45, %v16458_v14  ;;  %v5930_v29 = vpop.f32.mrb[175].mxu1  ;;  %v6177_v24 = vmax.f32 %v5925_v32, 0.0 }
 0x62a   : > { %v5931_v30 = vadd.f32 %v5930_v29, %v16462_v51  ;;  %v6178_v0 = vmax.f32 %v5927_v57, 0.0 }
 0x62b   : > { %v6179_v47 = vmax.f32 %v5929_v5, 0.0  ;;  %6611 = vmatmul.mubr.bf16.gmra.mrb[24].mxu1 %v16561_v34 }
 0x62c   : > { %v6180_v61 = vmax.f32 %v5931_v30, 0.0  ;;  %6620 = vmatprep.mubr.bf16.mxu1 %v16579_v36 }
 0x62d   : > { %v16629_v26 = vpack.c.bf16 %v6179_v47, %v6177_v24 }
 0x62e   : > { %v5934_v35 = vpop.f32.mrb[176].mxu1  ;;  %v16631_v50 = vpack.c.bf16 %v6180_v61, %v6178_v0 }
 0x62f   : > { %v5935_v34 = vadd.f32 %v5934_v35, %v16458_v14  ;;  %v5936_v22 = vpop.f32.mrb[177].mxu1 }
 0x630   : > { %v5937_v36 = vadd.f32 %v5936_v22, %v16462_v51  ;;  %v5938_v6 = vpop.f32.mrb[178].mxu1 }
 0x631   : > { %v5939_v23 = vadd.f32 %v5938_v6, %v16458_v14  ;;  %v5940_v42 = vpop.f32.mrb[179].mxu1  ;;  %v6181_v33 = vmax.f32 %v5935_v34, 0.0  ;;  %v13872_v6 = vld [vmem:[%s18728_s0 + $0x5e0] ss:$8 sps:$4 sm:$0xff]  }
 0x632   : > { %v5941_v32 = vadd.f32 %v5940_v42, %v16462_v51  ;;  %v6182_v45 = vmax.f32 %v5937_v36, 0.0 }
 0x633   : > { %v6183_v57 = vmax.f32 %v5939_v23, 0.0  ;;  %6621 = vmatmul.mubr.bf16.gmra.mrb[28].mxu1 %v16577_v60  ;;  %v13874_v23 = vld [vmem:[%s18728_s0 + $0x5e4] ss:$8 sps:$4 sm:$0xff]  }
 0x634   : > { %v6184_v5 = vmax.f32 %v5941_v32, 0.0  ;;  %6630 = vmatprep.mubr.bf16.mxu1 %v16589_v49  ;;  %7564 = vmatprep.subr.bf16.mxu0 %v13874_v23 }
 0x635   : > { %v16639_v29 = vpack.c.bf16 %v6183_v57, %v6181_v33  ;;  %7565 = vmatpush1.bf16.msra.mxu0 %v13872_v6 }
 0x636   : > { %v5944_v30 = vpop.f32.mrb[180].mxu1  ;;  %v16641_v24 = vpack.c.bf16 %v6184_v5, %v6182_v45 }
 0x637   : > { %v5945_v47 = vadd.f32 %v5944_v30, %v16458_v14  ;;  %v5946_v0 = vpop.f32.mrb[181].mxu1 }
 0x638   : > { %v5947_v61 = vadd.f32 %v5946_v0, %v16462_v51  ;;  %v5948_v39 = vpop.f32.mrb[182].mxu1 }
 0x639   : > { %v5949_v10 = vadd.f32 %v5948_v39, %v16458_v14  ;;  %v5950_v35 = vpop.f32.mrb[183].mxu1  ;;  %v6185_v34 = vmax.f32 %v5945_v47, 0.0 }
 0x63a   : > { %v5951_v60 = vadd.f32 %v5950_v35, %v16462_v51  ;;  %v6186_v49 = vmax.f32 %v5947_v61, 0.0 }
 0x63b   : > { %v6187_v22 = vmax.f32 %v5949_v10, 0.0  ;;  %6631 = vmatmul.mubr.bf16.gmra.mrb[32].mxu1 %v16587_v8 }
 0x63c   : > { %v6188_v36 = vmax.f32 %v5951_v60, 0.0  ;;  %6640 = vmatprep.mubr.bf16.mxu1 %v16605_v16 }
 0x63d   : > { %v16655_v42 = vpack.c.bf16 %v6187_v22, %v6185_v34 }
 0x63e   : > { %v5954_v32 = vpop.f32.mrb[184].mxu1  ;;  %v16657_v33 = vpack.c.bf16 %v6188_v36, %v6186_v49 }
 0x63f   : > { %v5955_v8 = vadd.f32 %v5954_v32, %v16458_v14  ;;  %v5956_v57 = vpop.f32.mrb[185].mxu1 }
 0x640   : > { %v5957_v16 = vadd.f32 %v5956_v57, %v16462_v51  ;;  %v5958_v45 = vpop.f32.mrb[186].mxu1 }
 0x641   : > { %v5959_v5 = vadd.f32 %v5958_v45, %v16458_v14  ;;  %v5960_v30 = vpop.f32.mrb[187].mxu1  ;;  %v6189_v0 = vmax.f32 %v5955_v8, 0.0  ;;  %v13875_v45 = vld [vmem:[%s18728_s0 + $0x5f0] ss:$8 sps:$4 sm:$0xff]  }
 0x642   : > { %v5961_v47 = vadd.f32 %v5960_v30, %v16462_v51  ;;  %v6190_v39 = vmax.f32 %v5957_v16, 0.0 }
 0x643   : > { %v6191_v61 = vmax.f32 %v5959_v5, 0.0  ;;  %6641 = vmatmul.mubr.bf16.gmra.mrb[36].mxu1 %v16603_v25  ;;  %v13877_v5 = vld [vmem:[%s18728_s0 + $0x5f4] ss:$8 sps:$4 sm:$0xff]  }
 0x644   : > { %v6192_v10 = vmax.f32 %v5961_v47, 0.0  ;;  %6650 = vmatprep.mubr.bf16.mxu1 %v16615_v17  ;;  %7566 = vmatprep.subr.bf16.mxu0 %v13877_v5 }
 0x645   : > { %v16665_v35 = vpack.c.bf16 %v6191_v61, %v6189_v0  ;;  %7567 = vmatpush1.bf16.msra.mxu0 %v13875_v45 }
 0x646   : > { %v5964_v60 = vpop.f32.mrb[188].mxu1  ;;  %v16667_v34 = vpack.c.bf16 %v6192_v10, %v6190_v39 }
 0x647   : > { %v5965_v22 = vadd.f32 %v5964_v60, %v16458_v14  ;;  %v5966_v49 = vpop.f32.mrb[189].mxu1 }
 0x648   : > { %v5967_v36 = vadd.f32 %v5966_v49, %v16462_v51  ;;  %v5968_v6 = vpop.f32.mrb[190].mxu1 }
 0x649   : > { %v5969_v23 = vadd.f32 %v5968_v6, %v16458_v14  ;;  %v5970_v32 = vpop.f32.mrb[191].mxu1  ;;  %v6193_v8 = vmax.f32 %v5965_v22, 0.0 }
 0x64a   : > { %v5971_v25 = vadd.f32 %v5970_v32, %v16462_v51  ;;  %v6194_v17 = vmax.f32 %v5967_v36, 0.0 }
 0x64b   : > { %v6195_v57 = vmax.f32 %v5969_v23, 0.0  ;;  %6651 = vmatmul.mubr.bf16.gmra.mrb[40].mxu1 %v16613_v13 }
 0x64c   : > { %v6196_v16 = vmax.f32 %v5971_v25, 0.0  ;;  %6660 = vmatprep.mubr.bf16.mxu1 %v16631_v50 }
 0x64d   : > { %v16681_v30 = vpack.c.bf16 %v6195_v57, %v6193_v8 }
 0x64e   : > { %v5974_v47 = vpop.f32.mrb[192].mxu1  ;;  %v16683_v0 = vpack.c.bf16 %v6196_v16, %v6194_v17 }
 0x64f   : > { %v5975_v13 = vadd.f32 %v5974_v47, %v16458_v14  ;;  %v5976_v61 = vpop.f32.mrb[193].mxu1 }
 0x650   : > { %v5977_v50 = vadd.f32 %v5976_v61, %v16462_v51  ;;  %v5978_v39 = vpop.f32.mrb[194].mxu1 }
 0x651   : > { %v5979_v10 = vadd.f32 %v5978_v39, %v16458_v14  ;;  %v5980_v60 = vpop.f32.mrb[195].mxu1  ;;  %v6197_v49 = vmax.f32 %v5975_v13, 0.0 }
 0x652   : > { %v5981_v22 = vadd.f32 %v5980_v60, %v16462_v51  ;;  %v6198_v6 = vmax.f32 %v5977_v50, 0.0 }
 0x653   : > { %v6199_v36 = vmax.f32 %v5979_v10, 0.0  ;;  %6661 = vmatmul.mubr.bf16.gmra.mrb[44].mxu1 %v16629_v26  ;;  %v13880_v10 = vld [vmem:[%s18728_s0 + $0x604] ss:$8 sps:$4 sm:$0xff]  }
 0x654   : > { %v6200_v23 = vmax.f32 %v5981_v22, 0.0  ;;  %6670 = vmatprep.mubr.bf16.mxu1 %v16641_v24  ;;  %8286 = vmatprep.subr.bf16.mxu0 %v13880_v10 }
 0x655   : > { %v16691_v32 = vpack.c.bf16 %v6199_v36, %v6197_v49 }
 0x656   : > { %v5984_v25 = vpop.f32.mrb[196].mxu1  ;;  %v6294_v8 = vpack.c.bf16 %v6200_v23, %v6198_v6 }
 0x657   : > { %v5985_v57 = vadd.f32 %v5984_v25, %v16458_v14  ;;  %v5986_v17 = vpop.f32.mrb[197].mxu1 }
 0x658   : > { %v5987_v16 = vadd.f32 %v5986_v17, %v16462_v51  ;;  %v5988_v45 = vpop.f32.mrb[198].mxu1 }
 0x659   : > { %v5989_v5 = vadd.f32 %v5988_v45, %v16458_v14  ;;  %v5990_v47 = vpop.f32.mrb[199].mxu1  ;;  %v6201_v26 = vmax.f32 %v5985_v57, 0.0 }
 0x65a   : > { %v5991_v13 = vadd.f32 %v5990_v47, %v16462_v51  ;;  %v6202_v24 = vmax.f32 %v5987_v16, 0.0 }
 0x65b   : > { %v6203_v61 = vmax.f32 %v5989_v5, 0.0  ;;  %6671 = vmatmul.mubr.bf16.gmra.mrb[48].mxu1 %v16639_v29 }
 0x65c   : > { %v6204_v50 = vmax.f32 %v5991_v13, 0.0  ;;  %6680 = vmatprep.mubr.bf16.mxu1 %v16657_v33 }
 0x65d   : > { %v16699_v39 = vpack.c.bf16 %v6203_v61, %v6201_v26 }
 0x65e   : > { %v5994_v60 = vpop.f32.mrb[200].mxu1  ;;  %v6296_v22 = vpack.c.bf16 %v6204_v50, %v6202_v24 }
 0x65f   : > { %v5995_v49 = vadd.f32 %v5994_v60, %v16458_v14  ;;  %v5996_v36 = vpop.f32.mrb[201].mxu1 }
 0x660   : > { %v5997_v6 = vadd.f32 %v5996_v36, %v16462_v51  ;;  %v5998_v23 = vpop.f32.mrb[202].mxu1 }
 0x661   : > { %v5999_v29 = vadd.f32 %v5998_v23, %v16458_v14  ;;  %v6000_v25 = vpop.f32.mrb[203].mxu1  ;;  %v6205_v57 = vmax.f32 %v5995_v49, 0.0 }
 0x662   : > { %v6001_v33 = vadd.f32 %v6000_v25, %v16462_v51  ;;  %v6206_v16 = vmax.f32 %v5997_v6, 0.0 }
 0x663   : > { %v6207_v17 = vmax.f32 %v5999_v29, 0.0  ;;  %6681 = vmatmul.mubr.bf16.gmra.mrb[52].mxu1 %v16655_v42 }
 0x664   : > { %v6208_v45 = vmax.f32 %v6001_v33, 0.0  ;;  %6690 = vmatprep.mubr.bf16.mxu1 %v16667_v34 }
 0x665   : > { %v16710_v5 = vpack.c.bf16 %v6207_v17, %v6205_v57 }
 0x666   : > { %v6004_v47 = vpop.f32.mrb[204].mxu1  ;;  %v6298_v13 = vpack.c.bf16 %v6208_v45, %v6206_v16 }
 0x667   : > { %v6005_v26 = vadd.f32 %v6004_v47, %v16458_v14  ;;  %v6006_v61 = vpop.f32.mrb[205].mxu1 }
 0x668   : > { %v6007_v24 = vadd.f32 %v6006_v61, %v16462_v51  ;;  %v6008_v50 = vpop.f32.mrb[206].mxu1 }
 0x669   : > { %v6009_v10 = vadd.f32 %v6008_v50, %v16458_v14  ;;  %v6010_v60 = vpop.f32.mrb[207].mxu1  ;;  %v6209_v42 = vmax.f32 %v6005_v26, 0.0 }
 0x66a   : > { %v6011_v49 = vadd.f32 %v6010_v60, %v16462_v51  ;;  %v6210_v34 = vmax.f32 %v6007_v24, 0.0 }
 0x66b   : > { %v6211_v36 = vmax.f32 %v6009_v10, 0.0  ;;  %6691 = vmatmul.mubr.bf16.gmra.mrb[56].mxu1 %v16665_v35 }
 0x66c   : > { %v6212_v6 = vmax.f32 %v6011_v49, 0.0  ;;  %6700 = vmatprep.mubr.bf16.mxu1 %v16683_v0 }
 0x66d   : > { %v16718_v23 = vpack.c.bf16 %v6211_v36, %v6209_v42 }
 0x66e   : > { %v6014_v29 = vpop.f32.mrb[208].mxu1  ;;  %v6300_v25 = vpack.c.bf16 %v6212_v6, %v6210_v34 }
 0x66f   : > { %v6015_v33 = vadd.f32 %v6014_v29, %v16458_v14  ;;  %v6016_v57 = vpop.f32.mrb[209].mxu1 }
 0x670   : > { %v6017_v17 = vadd.f32 %v6016_v57, %v16462_v51  ;;  %v6018_v16 = vpop.f32.mrb[210].mxu1 }
 0x671   : > { %v6019_v45 = vadd.f32 %v6018_v16, %v16458_v14  ;;  %v6020_v47 = vpop.f32.mrb[211].mxu1  ;;  %v6213_v35 = vmax.f32 %v6015_v33, 0.0 }
 0x672   : > { %v6021_v26 = vadd.f32 %v6020_v47, %v16462_v51  ;;  %v6214_v0 = vmax.f32 %v6017_v17, 0.0 }
 0x673   : > { %v6215_v61 = vmax.f32 %v6019_v45, 0.0  ;;  %6701 = vmatmul.mubr.bf16.gmra.mrb[60].mxu1 %v16681_v30 }
 0x674   : > { %v6216_v24 = vmax.f32 %v6021_v26, 0.0  ;;  %6710 = vmatprep.mubr.bf16.mxu1 %v6294_v8 }
 0x675   : > { %v16725_v50 = vpack.c.bf16 %v6215_v61, %v6213_v35 }
 0x676   : > { %v6024_v10 = vpop.f32.mrb[212].mxu1  ;;  %v6302_v60 = vpack.c.bf16 %v6216_v24, %v6214_v0 }
 0x677   : > { %v6025_v49 = vadd.f32 %v6024_v10, %v16458_v14  ;;  %v6026_v42 = vpop.f32.mrb[213].mxu1 }
 0x678   : > { %v6027_v36 = vadd.f32 %v6026_v42, %v16462_v51  ;;  %v6028_v34 = vpop.f32.mrb[214].mxu1 }
 0x679   : > { %v6029_v6 = vadd.f32 %v6028_v34, %v16458_v14  ;;  %v6030_v29 = vpop.f32.mrb[215].mxu1  ;;  %v6217_v57 = vmax.f32 %v6025_v49, 0.0 }
 0x67a   : > { %v6031_v33 = vadd.f32 %v6030_v29, %v16462_v51  ;;  %v6218_v8 = vmax.f32 %v6027_v36, 0.0 }
 0x67b   : > { %v6219_v30 = vmax.f32 %v6029_v6, 0.0  ;;  %6711 = vmatmul.mubr.bf16.gmra.mrb[64].mxu1 %v16691_v32 }
 0x67c   : > { %v6220_v17 = vmax.f32 %v6031_v33, 0.0  ;;  %6720 = vmatprep.mubr.bf16.mxu1 %v6296_v22 }
 0x67d   : > { %v16732_v16 = vpack.c.bf16 %v6219_v30, %v6217_v57 }
 0x67e   : > { %v6034_v45 = vpop.f32.mrb[216].mxu1  ;;  %v6304_v47 = vpack.c.bf16 %v6220_v17, %v6218_v8 }
 0x67f   : > { %v6035_v26 = vadd.f32 %v6034_v45, %v16458_v14  ;;  %v6036_v35 = vpop.f32.mrb[217].mxu1 }
 0x680   : > { %v6037_v61 = vadd.f32 %v6036_v35, %v16462_v51  ;;  %v6038_v0 = vpop.f32.mrb[218].mxu1 }
 0x681   : > { %v6039_v24 = vadd.f32 %v6038_v0, %v16458_v14  ;;  %v6040_v10 = vpop.f32.mrb[219].mxu1  ;;  %v6221_v42 = vmax.f32 %v6035_v26, 0.0 }
 0x682   : > { %v6041_v49 = vadd.f32 %v6040_v10, %v16462_v51  ;;  %v6222_v22 = vmax.f32 %v6037_v61, 0.0 }
 0x683   : > { %v6223_v32 = vmax.f32 %v6039_v24, 0.0  ;;  %6721 = vmatmul.mubr.bf16.gmra.mrb[68].mxu1 %v16699_v39 }
 0x684   : > { %v6224_v36 = vmax.f32 %v6041_v49, 0.0  ;;  %6730 = vmatprep.mubr.bf16.mxu1 %v6298_v13 }
 0x685   : > { %v16739_v34 = vpack.c.bf16 %v6223_v32, %v6221_v42 }
 0x686   : > { %v6044_v6 = vpop.f32.mrb[220].mxu1  ;;  %v6306_v29 = vpack.c.bf16 %v6224_v36, %v6222_v22 }
 0x687   : > { %v6045_v33 = vadd.f32 %v6044_v6, %v16458_v14  ;;  %v6046_v57 = vpop.f32.mrb[221].mxu1 }
 0x688   : > { %v6047_v30 = vadd.f32 %v6046_v57, %v16462_v51  ;;  %v6048_v8 = vpop.f32.mrb[222].mxu1 }
 0x689   : > { %v6049_v17 = vadd.f32 %v6048_v8, %v16458_v14  ;;  %v6050_v45 = vpop.f32.mrb[223].mxu1  ;;  %v6225_v35 = vmax.f32 %v6045_v33, 0.0 }
 0x68a   : > { %v6051_v26 = vadd.f32 %v6050_v45, %v16462_v51  ;;  %v6226_v13 = vmax.f32 %v6047_v30, 0.0 }
 0x68b   : > { %v6227_v39 = vmax.f32 %v6049_v17, 0.0  ;;  %6731 = vmatmul.mubr.bf16.gmra.mrb[72].mxu1 %v16710_v5 }
 0x68c   : > { %v6228_v61 = vmax.f32 %v6051_v26, 0.0  ;;  %6740 = vmatprep.mubr.bf16.mxu1 %v6300_v25 }
 0x68d   : > { %v16746_v0 = vpack.c.bf16 %v6227_v39, %v6225_v35 }
 0x68e   : > { %v6054_v24 = vpop.f32.mrb[224].mxu1  ;;  %v6308_v10 = vpack.c.bf16 %v6228_v61, %v6226_v13 }
 0x68f   : > { %v6055_v49 = vadd.f32 %v6054_v24, %v16458_v14  ;;  %v6056_v42 = vpop.f32.mrb[225].mxu1 }
 0x690   : > { %v6057_v32 = vadd.f32 %v6056_v42, %v16462_v51  ;;  %v6058_v22 = vpop.f32.mrb[226].mxu1 }
 0x691   : > { %v6059_v36 = vadd.f32 %v6058_v22, %v16458_v14  ;;  %v6060_v6 = vpop.f32.mrb[227].mxu1  ;;  %v6229_v57 = vmax.f32 %v6055_v49, 0.0 }
 0x692   : > { %v6061_v33 = vadd.f32 %v6060_v6, %v16462_v51  ;;  %v6230_v25 = vmax.f32 %v6057_v32, 0.0 }
 0x693   : > { %v6231_v5 = vmax.f32 %v6059_v36, 0.0  ;;  %6741 = vmatmul.mubr.bf16.gmra.mrb[76].mxu1 %v16718_v23 }
 0x694   : > { %v6232_v30 = vmax.f32 %v6061_v33, 0.0  ;;  %6750 = vmatprep.mubr.bf16.mxu1 %v6302_v60 }
 0x695   : > { %v16753_v8 = vpack.c.bf16 %v6231_v5, %v6229_v57 }
 0x696   : > { %v6064_v17 = vpop.f32.mrb[228].mxu1  ;;  %v6310_v45 = vpack.c.bf16 %v6232_v30, %v6230_v25 }
 0x697   : > { %v6065_v26 = vadd.f32 %v6064_v17, %v16458_v14  ;;  %v6066_v35 = vpop.f32.mrb[229].mxu1 }
 0x698   : > { %v6067_v39 = vadd.f32 %v6066_v35, %v16462_v51  ;;  %v6068_v13 = vpop.f32.mrb[230].mxu1 }
 0x699   : > { %v6069_v61 = vadd.f32 %v6068_v13, %v16458_v14  ;;  %v6070_v24 = vpop.f32.mrb[231].mxu1  ;;  %v6233_v42 = vmax.f32 %v6065_v26, 0.0 }
 0x69a   : > { %v6071_v49 = vadd.f32 %v6070_v24, %v16462_v51  ;;  %v6234_v60 = vmax.f32 %v6067_v39, 0.0 }
 0x69b   : > { %v6235_v23 = vmax.f32 %v6069_v61, 0.0  ;;  %6751 = vmatmul.mubr.bf16.gmra.mrb[80].mxu1 %v16725_v50 }
 0x69c   : > { %v6236_v32 = vmax.f32 %v6071_v49, 0.0  ;;  %6760 = vmatprep.mubr.bf16.mxu1 %v6304_v47 }
 0x69d   : > { %v16760_v22 = vpack.c.bf16 %v6235_v23, %v6233_v42 }
 0x69e   : > { %v6074_v36 = vpop.f32.mrb[232].mxu1  ;;  %v6312_v6 = vpack.c.bf16 %v6236_v32, %v6234_v60 }
 0x69f   : > { %v6075_v33 = vadd.f32 %v6074_v36, %v16458_v14  ;;  %v6076_v57 = vpop.f32.mrb[233].mxu1 }
 0x6a0   : > { %v6077_v5 = vadd.f32 %v6076_v57, %v16462_v51  ;;  %v6078_v25 = vpop.f32.mrb[234].mxu1 }
 0x6a1   : > { %v6079_v30 = vadd.f32 %v6078_v25, %v16458_v14  ;;  %v6080_v17 = vpop.f32.mrb[235].mxu1  ;;  %v6237_v35 = vmax.f32 %v6075_v33, 0.0 }
 0x6a2   : > { %v6081_v26 = vadd.f32 %v6080_v17, %v16462_v51  ;;  %v6238_v47 = vmax.f32 %v6077_v5, 0.0 }
 0x6a3   : > { %v6239_v50 = vmax.f32 %v6079_v30, 0.0  ;;  %6761 = vmatmul.mubr.bf16.gmra.mrb[84].mxu1 %v16732_v16 }
 0x6a4   : > { %v6240_v39 = vmax.f32 %v6081_v26, 0.0  ;;  %6770 = vmatprep.mubr.bf16.mxu1 %v6306_v29 }
 0x6a5   : > { %v16767_v13 = vpack.c.bf16 %v6239_v50, %v6237_v35 }
 0x6a6   : > { %v6084_v61 = vpop.f32.mrb[236].mxu1  ;;  %v6314_v24 = vpack.c.bf16 %v6240_v39, %v6238_v47 }
 0x6a7   : > { %v6085_v49 = vadd.f32 %v6084_v61, %v16458_v14  ;;  %v6086_v42 = vpop.f32.mrb[237].mxu1 }
 0x6a8   : > { %v6087_v23 = vadd.f32 %v6086_v42, %v16462_v51  ;;  %v6088_v60 = vpop.f32.mrb[238].mxu1 }
 0x6a9   : > { %v6089_v32 = vadd.f32 %v6088_v60, %v16458_v14  ;;  %v6090_v36 = vpop.f32.mrb[239].mxu1  ;;  %v6241_v57 = vmax.f32 %v6085_v49, 0.0 }
 0x6aa   : > { %v6091_v33 = vadd.f32 %v6090_v36, %v16462_v51  ;;  %v6242_v29 = vmax.f32 %v6087_v23, 0.0 }
 0x6ab   : > { %v6243_v16 = vmax.f32 %v6089_v32, 0.0  ;;  %6771 = vmatmul.mubr.bf16.gmra.mrb[88].mxu1 %v16739_v34 }
 0x6ac   : > { %v6244_v5 = vmax.f32 %v6091_v33, 0.0  ;;  %6780 = vmatprep.mubr.bf16.mxu1 %v6308_v10 }
 0x6ad   : > { %v16774_v25 = vpack.c.bf16 %v6243_v16, %v6241_v57 }
 0x6ae   : > { %v6094_v30 = vpop.f32.mrb[240].mxu1  ;;  %v6316_v17 = vpack.c.bf16 %v6244_v5, %v6242_v29 }
 0x6af   : > { %v6095_v26 = vadd.f32 %v6094_v30, %v16458_v14  ;;  %v6096_v35 = vpop.f32.mrb[241].mxu1 }
 0x6b0   : > { %v6097_v50 = vadd.f32 %v6096_v35, %v16462_v51  ;;  %v6098_v47 = vpop.f32.mrb[242].mxu1 }
 0x6b1   : > { %v6099_v39 = vadd.f32 %v6098_v47, %v16458_v14  ;;  %v6100_v61 = vpop.f32.mrb[243].mxu1  ;;  %v6245_v42 = vmax.f32 %v6095_v26, 0.0 }
 0x6b2   : > { %v6101_v49 = vadd.f32 %v6100_v61, %v16462_v51  ;;  %v6246_v10 = vmax.f32 %v6097_v50, 0.0 }
 0x6b3   : > { %v6247_v34 = vmax.f32 %v6099_v39, 0.0  ;;  %6781 = vmatmul.mubr.bf16.gmra.mrb[92].mxu1 %v16746_v0 }
 0x6b4   : > { %v6248_v23 = vmax.f32 %v6101_v49, 0.0  ;;  %6790 = vmatprep.mubr.bf16.mxu1 %v6310_v45 }
 0x6b5   : > { %v16781_v60 = vpack.c.bf16 %v6247_v34, %v6245_v42 }
 0x6b6   : > { %v6104_v32 = vpop.f32.mrb[244].mxu1  ;;  %v16783_v36 = vpack.c.bf16 %v6248_v23, %v6246_v10 }
 0x6b7   : > { %v6105_v33 = vadd.f32 %v6104_v32, %v16458_v14  ;;  %v6106_v57 = vpop.f32.mrb[245].mxu1 }
 0x6b8   : > { %v6107_v16 = vadd.f32 %v6106_v57, %v16462_v51  ;;  %v6108_v29 = vpop.f32.mrb[246].mxu1 }
 0x6b9   : > { %v6109_v5 = vadd.f32 %v6108_v29, %v16458_v14  ;;  %v6110_v30 = vpop.f32.mrb[247].mxu1  ;;  %v6249_v0 = vmax.f32 %v6105_v33, 0.0 }
 0x6ba   : > { %v6111_v26 = vadd.f32 %v6110_v30, %v16462_v51  ;;  %v6250_v45 = vmax.f32 %v6107_v16, 0.0 }
 0x6bb   : > { %v6251_v35 = vmax.f32 %v6109_v5, 0.0  ;;  %6791 = vmatmul.mubr.bf16.gmra.mrb[96].mxu1 %v16753_v8 }
 0x6bc   : > { %v6252_v50 = vmax.f32 %v6111_v26, 0.0  ;;  %6800 = vmatprep.mubr.bf16.mxu1 %v6312_v6 }
 0x6bd   : > { %v16790_v47 = vpack.c.bf16 %v6251_v35, %v6249_v0 }
 0x6be   : > { %v6114_v39 = vpop.f32.mrb[248].mxu1  ;;  %v16792_v61 = vpack.c.bf16 %v6252_v50, %v6250_v45  ;;  %v6999_v50 = vld [vmem:[%s18692_s8] sm:$0x3] }
 0x6bf   : > { %v6115_v49 = vadd.f32 %v6114_v39, %v16458_v14  ;;  %v6116_v42 = vpop.f32.mrb[249].mxu1 }
 0x6c0   : > { %v6117_v34 = vadd.f32 %v6116_v42, %v16462_v51  ;;  %v6118_v10 = vpop.f32.mrb[250].mxu1 }
 0x6c1   : > { %v6119_v23 = vadd.f32 %v6118_v10, %v16458_v14  ;;  %v6120_v32 = vpop.f32.mrb[251].mxu1  ;;  %v6253_v8 = vmax.f32 %v6115_v49, 0.0 }
 0x6c2   : > { %v6121_v33 = vadd.f32 %v6120_v32, %v16462_v51  ;;  %v6254_v6 = vmax.f32 %v6117_v34, 0.0  ;;  %v16812_v34 = vrot.slane %v6999_v50, %v15253_v58  ;;  %v16815_v32 = vrot.slane %v6999_v50, %v15258_v27 }
 0x6c3   : > { %v6255_v57 = vmax.f32 %v6119_v23, 0.0  ;;  %6801 = vmatmul.mubr.bf16.gmra.mrb[100].mxu1 %v16760_v22 }
 0x6c4   : > { %v6256_v16 = vmax.f32 %v6121_v33, 0.0  ;;  %6810 = vmatprep.mubr.bf16.mxu1 %v6314_v24 }
 0x6c5   : > { %v16799_v29 = vpack.c.bf16 %v6255_v57, %v6253_v8 }
 0x6c6   : > { %v6124_v5 = vpop.f32.mrb[252].mxu1  ;;  %v16801_v30 = vpack.c.bf16 %v6256_v16, %v6254_v6 }
 0x6c7   : > { %v6125_v26 = vadd.f32 %v6124_v5, %v16458_v14  ;;  %v6126_v0 = vpop.f32.mrb[253].mxu1 }
 0x6c8   : > { %v6127_v35 = vadd.f32 %v6126_v0, %v16462_v51  ;;  %v6128_v45 = vpop.f32.mrb[254].mxu1 }
 0x6c9   : > { %v6129_v22 = vadd.f32 %v6128_v45, %v16458_v14  ;;  %v6130_v39 = vpop.f32.mrb[255].mxu1  ;;  %v6257_v49 = vmax.f32 %v6125_v26, 0.0 }
 0x6ca   : > { %v6131_v24 = vadd.f32 %v6130_v39, %v16462_v51  ;;  %v6258_v10 = vmax.f32 %v6127_v35, 0.0 }
 0x6cb   : > { %v6259_v42 = vmax.f32 %v6129_v22, 0.0  ;;  %6811 = vmatmul.mubr.bf16.gmra.mrb[104].mxu1 %v16767_v13 }
 0x6cc   : > { %v6260_v23 = vmax.f32 %v6131_v24, 0.0  ;;  %6820 = vmatprep.mubr.bf16.mxu1 %v6316_v17  ;;  %v13878_v24 = vld [vmem:[%s18728_s0 + $0x600] ss:$8 sps:$4 sm:$0xff]  }
 0x6cd   : > { %v16817_v33 = vpack.c.bf16 %v6259_v42, %v6257_v49 }
 0x6ce   : > { %v6552_v8 = vpop.f32.mrb[0].mxu1  ;;  %v16819_v14 = vpack.c.bf16 %v6260_v23, %v6258_v10  ;;  %v13883_v10 = vld [vmem:[%s18728_s0 + $0x614] ss:$8 sps:$4 sm:$0xff]  }
 0x6cf   : > { %v7011_v51 = vadd.f32 %v16812_v34, %v6552_v8  ;;  %v6554_v57 = vpop.f32.mrb[1].mxu1 }
 0x6d0   : > { %v7012_v6 = vadd.f32 %v16815_v32, %v6554_v57  ;;  %v6556_v13 = vpop.f32.mrb[2].mxu1  ;;  %v13881_v57 = vld [vmem:[%s18728_s0 + $0x610] ss:$8 sps:$4 sm:$0xff]  }
 0x6d1   : > { %v7013_v16 = vadd.f32 %v16812_v34, %v6556_v13  ;;  %v6558_v5 = vpop.f32.mrb[3].mxu1  ;;  %v7139_v17 = vmax.f32 %v7011_v51, 0.0 }
 0x6d2   : > { %v7014_v26 = vadd.f32 %v16815_v32, %v6558_v5  ;;  %v7140_v35 = vmax.f32 %v7012_v6, 0.0 }
 0x6d3   : > { %v7141_v0 = vmax.f32 %v7013_v16, 0.0  ;;  %6821 = vmatmul.mubr.bf16.gmra.mrb[108].mxu1 %v16774_v25  ;;  %v13886_v16 = vld [vmem:[%s18728_s0 + $0x624] ss:$8 sps:$4 sm:$0xff]  }
 0x6d4   : > { %v7142_v45 = vmax.f32 %v7014_v26, 0.0  ;;  %6830 = vmatprep.mubr.bf16.mxu1 %v16783_v36 }
 0x6d5   : > { %v7267_v50 = vpack.c.bf16 %v7141_v0, %v7139_v17 }
 0x6d6   : > { %v6562_v22 = vpop.f32.mrb[4].mxu1  ;;  %v7268_v39 = vpack.c.bf16 %v7142_v45, %v7140_v35  ;;  %v13884_v45 = vld [vmem:[%s18728_s0 + $0x620] ss:$8 sps:$4 sm:$0xff]  }
 0x6d7   : > { %v7015_v49 = vadd.f32 %v16812_v34, %v6562_v22  ;;  %v6564_v42 = vpop.f32.mrb[5].mxu1  ;;  %v13889_v22 = vld [vmem:[%s18728_s0 + $0x634] ss:$8 sps:$4 sm:$0xff]  }
 0x6d8   : > { %v7016_v25 = vadd.f32 %v16815_v32, %v6564_v42  ;;  %v6566_v23 = vpop.f32.mrb[6].mxu1  ;;  %7568 = vmatprep.mubr.bf16.mxu0 %v7268_v39 }
 0x6d9   : > { %v7017_v36 = vadd.f32 %v16812_v34, %v6566_v23  ;;  %v6568_v8 = vpop.f32.mrb[7].mxu1  ;;  %7569 = vmatmul.mubr.bf16.vlgmr.msra.gmra.mrb[128].mxu0 %v7267_v50  ;;  %v7143_v6 = vmax.f32 %v7015_v49, 0.0 }
 0x6da   : > { %v7018_v51 = vadd.f32 %v16815_v32, %v6568_v8  ;;  %8287 = vmatpush1.bf16.msra.mxu0 %v13878_v24  ;;  %v7144_v5 = vmax.f32 %v7016_v25, 0.0 }
 0x6db   : > { %v7145_v13 = vmax.f32 %v7017_v36, 0.0  ;;  %6831 = vmatmul.mubr.bf16.gmra.mrb[112].mxu1 %v16781_v60  ;;  %8288 = vmatprep.subr.bf16.mxu0 %v13883_v10  ;;  %v13887_v10 = vld [vmem:[%s18728_s0 + $0x630] ss:$8 sps:$4 sm:$0xff]   ;;  %v13892_v36 = vld [vmem:[%s18728_s0 + $0x644] ss:$8 sps:$4 sm:$0xff]  }
 0x6dc   : > { %v7146_v26 = vmax.f32 %v7018_v51, 0.0  ;;  %6840 = vmatprep.mubr.bf16.mxu1 %v16792_v61 }
 0x6dd   : > { %v7269_v17 = vpack.c.bf16 %v7145_v13, %v7143_v6 }
 0x6de   : > { %v6572_v0 = vpop.f32.mrb[8].mxu1  ;;  %v7270_v35 = vpack.c.bf16 %v7146_v26, %v7144_v5  ;;  %8289 = vmatpush1.bf16.msra.mxu0 %v13881_v57  ;;  %v13895_v26 = vld [vmem:[%s18728_s0 + $0x654] ss:$8 sps:$4 sm:$0xff]  }
 0x6df   : > { %v7019_v50 = vadd.f32 %v16812_v34, %v6572_v0  ;;  %v6574_v60 = vpop.f32.mrb[9].mxu1  ;;  %8290 = vmatprep.subr.bf16.mxu0 %v13886_v16  ;;  %v13890_v16 = vld [vmem:[%s18728_s0 + $0x640] ss:$8 sps:$4 sm:$0xff]  }
 0x6e0   : > { %v7020_v39 = vadd.f32 %v16815_v32, %v6574_v60  ;;  %v6576_v24 = vpop.f32.mrb[10].mxu1  ;;  %7578 = vmatprep.mubr.bf16.mxu0 %v7270_v35 }
 0x6e1   : > { %v7021_v61 = vadd.f32 %v16812_v34, %v6576_v24  ;;  %v6578_v49 = vpop.f32.mrb[11].mxu1  ;;  %7579 = vmatmul.mubr.bf16.gmra.mrb[132].mxu0 %v7269_v17  ;;  %v7147_v25 = vmax.f32 %v7019_v50, 0.0  ;;  %v13893_v50 = vld [vmem:[%s18728_s0 + $0x650] ss:$8 sps:$4 sm:$0xff]  }
 0x6e2   : > { %v7022_v42 = vadd.f32 %v16815_v32, %v6578_v49  ;;  %8291 = vmatpush1.bf16.msra.mxu0 %v13884_v45  ;;  %v7148_v8 = vmax.f32 %v7020_v39, 0.0  ;;  %v13898_v39 = vld [vmem:[%s18728_s0 + $0x664] ss:$8 sps:$4 sm:$0xff]  }
 0x6e3   : > { %v7149_v23 = vmax.f32 %v7021_v61, 0.0  ;;  %6841 = vmatmul.mubr.bf16.gmra.mrb[116].mxu1 %v16790_v47  ;;  %8292 = vmatprep.subr.bf16.mxu0 %v13889_v22 }
 0x6e4   : > { %v7150_v51 = vmax.f32 %v7022_v42, 0.0  ;;  %6850 = vmatprep.mubr.bf16.mxu1 %v16801_v30 }
 0x6e5   : > { %v7271_v57 = vpack.c.bf16 %v7149_v23, %v7147_v25  ;;  %v13896_v25 = vld [vmem:[%s18728_s0 + $0x660] ss:$8 sps:$4 sm:$0xff]  }
 0x6e6   : > { %v6582_v6 = vpop.f32.mrb[12].mxu1  ;;  %v7272_v13 = vpack.c.bf16 %v7150_v51, %v7148_v8  ;;  %8293 = vmatpush1.bf16.msra.mxu0 %v13887_v10 }
 0x6e7   : > { %v7023_v5 = vadd.f32 %v16812_v34, %v6582_v6  ;;  %v6584_v47 = vpop.f32.mrb[13].mxu1  ;;  %8294 = vmatprep.subr.bf16.mxu0 %v13892_v36  ;;  %v13901_v36 = vld [vmem:[%s18728_s0 + $0x674] ss:$8 sps:$4 sm:$0xff]  }
 0x6e8   : > { %v7024_v17 = vadd.f32 %v16815_v32, %v6584_v47  ;;  %v6586_v0 = vpop.f32.mrb[14].mxu1  ;;  %7588 = vmatprep.mubr.bf16.mxu0 %v7272_v13  ;;  %v13899_v13 = vld [vmem:[%s18728_s0 + $0x670] ss:$8 sps:$4 sm:$0xff]   ;;  %v13904_v47 = vld [vmem:[%s18728_s0 + $0x684] ss:$8 sps:$4 sm:$0xff]  }
 0x6e9   : > { %v7025_v30 = vadd.f32 %v16812_v34, %v6586_v0  ;;  %v6588_v35 = vpop.f32.mrb[15].mxu1  ;;  %7589 = vmatmul.mubr.bf16.gmra.mrb[136].mxu0 %v7271_v57  ;;  %v7151_v60 = vmax.f32 %v7023_v5, 0.0 }
 0x6ea   : > { %v7026_v45 = vadd.f32 %v16815_v32, %v6588_v35  ;;  %8295 = vmatpush1.bf16.msra.mxu0 %v13890_v16  ;;  %v7152_v24 = vmax.f32 %v7024_v17, 0.0 }
 0x6eb   : > { %v7153_v22 = vmax.f32 %v7025_v30, 0.0  ;;  %6851 = vmatmul.mubr.bf16.gmra.mrb[120].mxu1 %v16799_v29  ;;  %8296 = vmatprep.subr.bf16.mxu0 %v13895_v26 }
 0x6ec   : > { %v7154_v61 = vmax.f32 %v7026_v45, 0.0  ;;  %6860 = vmatprep.mubr.bf16.mxu1 %v16819_v14  ;;  %v13902_v45 = vld [vmem:[%s18728_s0 + $0x680] ss:$8 sps:$4 sm:$0xff]  }
 0x6ed   : > { %v7273_v49 = vpack.c.bf16 %v7153_v22, %v7151_v60 }
 0x6ee   : > { %v6592_v42 = vpop.f32.mrb[16].mxu1  ;;  %v7274_v10 = vpack.c.bf16 %v7154_v61, %v7152_v24  ;;  %8297 = vmatpush1.bf16.msra.mxu0 %v13893_v50 }
 0x6ef   : > { %v7027_v23 = vadd.f32 %v16812_v34, %v6592_v42  ;;  %v6594_v29 = vpop.f32.mrb[17].mxu1  ;;  %8298 = vmatprep.subr.bf16.mxu0 %v13898_v39  ;;  %v13905_v42 = vld [vmem:[%s18728_s0 + $0x690] ss:$8 sps:$4 sm:$0xff]  }
 0x6f0   : > { %v7028_v8 = vadd.f32 %v16815_v32, %v6594_v29  ;;  %v6596_v51 = vpop.f32.mrb[18].mxu1  ;;  %7598 = vmatprep.mubr.bf16.mxu0 %v7274_v10 }
 0x6f1   : > { %v7029_v14 = vadd.f32 %v16812_v34, %v6596_v51  ;;  %v6598_v57 = vpop.f32.mrb[19].mxu1  ;;  %7599 = vmatmul.mubr.bf16.gmra.mrb[140].mxu0 %v7273_v49  ;;  %v7155_v16 = vmax.f32 %v7027_v23, 0.0 }
 0x6f2   : > { %v7030_v6 = vadd.f32 %v16815_v32, %v6598_v57  ;;  %8299 = vmatpush1.bf16.msra.mxu0 %v13896_v25  ;;  %v7156_v26 = vmax.f32 %v7028_v8, 0.0  ;;  %v13910_v8 = vld [vmem:[%s18728_s0 + $0x6a4] ss:$8 sps:$4 sm:$0xff]   ;;  %v13908_v57 = vld [vmem:[%s18728_s0 + $0x6a0] ss:$8 sps:$4 sm:$0xff]  }
 0x6f3   : > { %v7157_v5 = vmax.f32 %v7029_v14, 0.0  ;;  %6861 = vmatmul.mubr.bf16.gmra.mrb[124].mxu1 %v16817_v33  ;;  %8300 = vmatprep.subr.bf16.mxu0 %v13901_v36  ;;  %v13907_v33 = vld [vmem:[%s18728_s0 + $0x694] ss:$8 sps:$4 sm:$0xff]  }
 0x6f4   : > { %v7158_v17 = vmax.f32 %v7030_v6, 0.0 }
 0x6f5   : > { %v7275_v0 = vpack.c.bf16 %v7157_v5, %v7155_v16 }
 0x6f6   : > { %v6602_v30 = vpop.f32.mrb[20].mxu1  ;;  %v7276_v35 = vpack.c.bf16 %v7158_v17, %v7156_v26  ;;  %8301 = vmatpush1.bf16.msra.mxu0 %v13899_v13 }
 0x6f7   : > { %v7031_v50 = vadd.f32 %v16812_v34, %v6602_v30  ;;  %v6604_v60 = vpop.f32.mrb[21].mxu1  ;;  %8302 = vmatprep.subr.bf16.mxu0 %v13904_v47 }
 0x6f8   : > { %v7032_v22 = vadd.f32 %v16815_v32, %v6604_v60  ;;  %v6606_v39 = vpop.f32.mrb[22].mxu1  ;;  %7608 = vmatprep.mubr.bf16.mxu0 %v7276_v35 }
 0x6f9   : > { %v7033_v24 = vadd.f32 %v16812_v34, %v6606_v39  ;;  %v6608_v61 = vpop.f32.mrb[23].mxu1  ;;  %7609 = vmatmul.mubr.bf16.gmra.mrb[144].mxu0 %v7275_v0  ;;  %v7159_v10 = vmax.f32 %v7031_v50, 0.0 }
 0x6fa   : > { %v7034_v49 = vadd.f32 %v16815_v32, %v6608_v61  ;;  %8303 = vmatpush1.bf16.msra.mxu0 %v13902_v45  ;;  %v7160_v23 = vmax.f32 %v7032_v22, 0.0 }
 0x6fb   : > { %v7161_v25 = vmax.f32 %v7033_v24, 0.0  ;;  %8304 = vmatprep.subr.bf16.mxu0 %v13907_v33 }
 0x6fc   : > { %v7162_v29 = vmax.f32 %v7034_v49, 0.0 }
 0x6fd   : > { %v7277_v36 = vpack.c.bf16 %v7161_v25, %v7159_v10 }
 0x6fe   : > { %v6612_v51 = vpop.f32.mrb[24].mxu1  ;;  %v7278_v14 = vpack.c.bf16 %v7162_v29, %v7160_v23  ;;  %8305 = vmatpush1.bf16.msra.mxu0 %v13905_v42 }
 0x6ff   : > { %v7035_v6 = vadd.f32 %v16812_v34, %v6612_v51  ;;  %v6614_v13 = vpop.f32.mrb[25].mxu1  ;;  %8306 = vmatprep.subr.bf16.mxu0 %v13910_v8  ;;  %v13911_v51 = vld [vmem:[%s18728_s0 + $0x6b0] ss:$8 sps:$4 sm:$0xff]  }
 0x700   : > { %v7036_v16 = vadd.f32 %v16815_v32, %v6614_v13  ;;  %v6616_v5 = vpop.f32.mrb[26].mxu1  ;;  %7618 = vmatprep.mubr.bf16.mxu0 %v7278_v14  ;;  %v13913_v14 = vld [vmem:[%s18728_s0 + $0x6b4] ss:$8 sps:$4 sm:$0xff]  }
 0x701   : > { %v7037_v47 = vadd.f32 %v16812_v34, %v6616_v5  ;;  %v6618_v26 = vpop.f32.mrb[27].mxu1  ;;  %7619 = vmatmul.mubr.bf16.gmra.mrb[148].mxu0 %v7277_v36  ;;  %v7163_v0 = vmax.f32 %v7035_v6, 0.0 }
 0x702   : > { %v7038_v17 = vadd.f32 %v16815_v32, %v6618_v26  ;;  %8307 = vmatpush1.bf16.msra.mxu0 %v13908_v57  ;;  %v7164_v35 = vmax.f32 %v7036_v16, 0.0 }
 0x703   : > { %v7165_v30 = vmax.f32 %v7037_v47, 0.0  ;;  %8308 = vmatprep.subr.bf16.mxu0 %v13913_v14  ;;  %v13914_v14 = vld [vmem:[%s18728_s0 + $0x6c0] ss:$8 sps:$4 sm:$0xff]  }
 0x704   : > { %v7166_v45 = vmax.f32 %v7038_v17, 0.0 }
 0x705   : > { %v7279_v50 = vpack.c.bf16 %v7165_v30, %v7163_v0 }
 0x706   : > { %v6622_v60 = vpop.f32.mrb[28].mxu1  ;;  %v7280_v33 = vpack.c.bf16 %v7166_v45, %v7164_v35  ;;  %8309 = vmatpush1.bf16.msra.mxu0 %v13911_v51 }
 0x707   : > { %v7039_v22 = vadd.f32 %v16812_v34, %v6622_v60  ;;  %v6624_v39 = vpop.f32.mrb[29].mxu1 }
 0x708   : > { %v7040_v24 = vadd.f32 %v16815_v32, %v6624_v39  ;;  %v6626_v61 = vpop.f32.mrb[30].mxu1  ;;  %7628 = vmatprep.mubr.bf16.mxu0 %v7280_v33 }
 0x709   : > { %v7041_v49 = vadd.f32 %v16812_v34, %v6626_v61  ;;  %v6628_v42 = vpop.f32.mrb[31].mxu1  ;;  %7629 = vmatmul.mubr.bf16.gmra.mrb[152].mxu0 %v7279_v50  ;;  %v7167_v25 = vmax.f32 %v7039_v22, 0.0 }
 0x70a   : > { %v7042_v10 = vadd.f32 %v16815_v32, %v6628_v42  ;;  %v7168_v29 = vmax.f32 %v7040_v24, 0.0 }
 0x70b   : > { %v7169_v23 = vmax.f32 %v7041_v49, 0.0 }
 0x70c   : > { %v7170_v36 = vmax.f32 %v7042_v10, 0.0 }
 0x70d   : > { %v7281_v8 = vpack.c.bf16 %v7169_v23, %v7167_v25 }
 0x70e   : > { %v6632_v57 = vpop.f32.mrb[32].mxu1  ;;  %v7282_v6 = vpack.c.bf16 %v7170_v36, %v7168_v29 }
 0x70f   : > { %v7043_v13 = vadd.f32 %v16812_v34, %v6632_v57  ;;  %v6634_v16 = vpop.f32.mrb[33].mxu1  ;;  %v13916_v57 = vld [vmem:[%s18728_s0 + $0x6c4] ss:$8 sps:$4 sm:$0xff]  }
 0x710   : > { %v7044_v5 = vadd.f32 %v16815_v32, %v6634_v16  ;;  %v6636_v47 = vpop.f32.mrb[34].mxu1  ;;  %7638 = vmatprep.mubr.bf16.mxu0 %v7282_v6  ;;  %8310 = vmatprep.subr.bf16.mxu0 %v13916_v57  ;;  %v13917_v57 = vld [vmem:[%s18728_s0 + $0x6d0] ss:$8 sps:$4 sm:$0xff]  }
 0x711   : > { %v7045_v26 = vadd.f32 %v16812_v34, %v6636_v47  ;;  %v6638_v17 = vpop.f32.mrb[35].mxu1  ;;  %7639 = vmatmul.mubr.bf16.gmra.mrb[156].mxu0 %v7281_v8  ;;  %v7171_v30 = vmax.f32 %v7043_v13, 0.0 }
 0x712   : > { %v7046_v0 = vadd.f32 %v16815_v32, %v6638_v17  ;;  %v7172_v45 = vmax.f32 %v7044_v5, 0.0  ;;  %8311 = vmatpush1.bf16.msra.mxu0 %v13914_v14 }
 0x713   : > { %v7173_v35 = vmax.f32 %v7045_v26, 0.0 }
 0x714   : > { %v7174_v50 = vmax.f32 %v7046_v0, 0.0 }
 0x715   : > { %v7283_v60 = vpack.c.bf16 %v7173_v35, %v7171_v30 }
 0x716   : > { %v6642_v33 = vpop.f32.mrb[36].mxu1  ;;  %v7284_v22 = vpack.c.bf16 %v7174_v50, %v7172_v45 }
 0x717   : > { %v7047_v39 = vadd.f32 %v16812_v34, %v6642_v33  ;;  %v6644_v24 = vpop.f32.mrb[37].mxu1 }
 0x718   : > { %v7048_v61 = vadd.f32 %v16815_v32, %v6644_v24  ;;  %v6646_v49 = vpop.f32.mrb[38].mxu1  ;;  %7648 = vmatprep.mubr.bf16.mxu0 %v7284_v22 }
 0x719   : > { %v7049_v42 = vadd.f32 %v16812_v34, %v6646_v49  ;;  %v6648_v10 = vpop.f32.mrb[39].mxu1  ;;  %7649 = vmatmul.mubr.bf16.gmra.mrb[160].mxu0 %v7283_v60  ;;  %v7175_v23 = vmax.f32 %v7047_v39, 0.0 }
 0x71a   : > { %v7050_v25 = vadd.f32 %v16815_v32, %v6648_v10  ;;  %v7176_v36 = vmax.f32 %v7048_v61, 0.0 }
 0x71b   : > { %v7177_v29 = vmax.f32 %v7049_v42, 0.0 }
 0x71c   : > { %v7178_v8 = vmax.f32 %v7050_v25, 0.0 }
 0x71d   : > { %v7285_v51 = vpack.c.bf16 %v7177_v29, %v7175_v23 }
 0x71e   : > { %v6652_v6 = vpop.f32.mrb[40].mxu1  ;;  %v7286_v13 = vpack.c.bf16 %v7178_v8, %v7176_v36 }
 0x71f   : > { %v7051_v16 = vadd.f32 %v16812_v34, %v6652_v6  ;;  %v6654_v5 = vpop.f32.mrb[41].mxu1  ;;  %v13919_v6 = vld [vmem:[%s18728_s0 + $0x6d4] ss:$8 sps:$4 sm:$0xff]  }
 0x720   : > { %v7052_v47 = vadd.f32 %v16815_v32, %v6654_v5  ;;  %v6656_v26 = vpop.f32.mrb[42].mxu1  ;;  %7658 = vmatprep.mubr.bf16.mxu0 %v7286_v13  ;;  %8312 = vmatprep.subr.bf16.mxu0 %v13919_v6 }
 0x721   : > { %v7053_v17 = vadd.f32 %v16812_v34, %v6656_v26  ;;  %v6658_v0 = vpop.f32.mrb[43].mxu1  ;;  %7659 = vmatmul.mubr.bf16.gmra.mrb[164].mxu0 %v7285_v51  ;;  %v7179_v35 = vmax.f32 %v7051_v16, 0.0 }
 0x722   : > { %v7054_v30 = vadd.f32 %v16815_v32, %v6658_v0  ;;  %v7180_v50 = vmax.f32 %v7052_v47, 0.0  ;;  %8313 = vmatpush1.bf16.msra.mxu0 %v13917_v57 }
 0x723   : > { %v7181_v45 = vmax.f32 %v7053_v17, 0.0 }
 0x724   : > { %v7182_v60 = vmax.f32 %v7054_v30, 0.0 }
 0x725   : > { %v7287_v33 = vpack.c.bf16 %v7181_v45, %v7179_v35 }
 0x726   : > { %v6662_v22 = vpop.f32.mrb[44].mxu1  ;;  %v7288_v39 = vpack.c.bf16 %v7182_v60, %v7180_v50 }
 0x727   : > { %v7055_v24 = vadd.f32 %v16812_v34, %v6662_v22  ;;  %v6664_v61 = vpop.f32.mrb[45].mxu1 }
 0x728   : > { %v7056_v49 = vadd.f32 %v16815_v32, %v6664_v61  ;;  %v6666_v42 = vpop.f32.mrb[46].mxu1  ;;  %7668 = vmatprep.mubr.bf16.mxu0 %v7288_v39 }
 0x729   : > { %v7057_v10 = vadd.f32 %v16812_v34, %v6666_v42  ;;  %v6668_v25 = vpop.f32.mrb[47].mxu1  ;;  %7669 = vmatmul.mubr.bf16.gmra.mrb[168].mxu0 %v7287_v33  ;;  %v7183_v29 = vmax.f32 %v7055_v24, 0.0 }
 0x72a   : > { %v7058_v23 = vadd.f32 %v16815_v32, %v6668_v25  ;;  %v7184_v8 = vmax.f32 %v7056_v49, 0.0 }
 0x72b   : > { %v7185_v36 = vmax.f32 %v7057_v10, 0.0 }
 0x72c   : > { %v7186_v51 = vmax.f32 %v7058_v23, 0.0 }
 0x72d   : > { %v7289_v14 = vpack.c.bf16 %v7185_v36, %v7183_v29 }
 0x72e   : > { %v6672_v13 = vpop.f32.mrb[48].mxu1  ;;  %v7290_v16 = vpack.c.bf16 %v7186_v51, %v7184_v8  ;;  %v13920_v51 = vld [vmem:[%s18695_s11] ss:$8 sps:$4 sm:$0xff]  }
 0x72f   : > { %v7059_v5 = vadd.f32 %v16812_v34, %v6672_v13  ;;  %v6674_v47 = vpop.f32.mrb[49].mxu1 }
 0x730   : > { %v7060_v26 = vadd.f32 %v16815_v32, %v6674_v47  ;;  %v6676_v17 = vpop.f32.mrb[50].mxu1  ;;  %7678 = vmatprep.mubr.bf16.mxu0 %v7290_v16  ;;  %v13923_v16 = vld [vmem:[%s18728_s0 + $0x6e0] ss:$8 sps:$4 sm:$0xff]  }
 0x731   : > { %v7061_v0 = vadd.f32 %v16812_v34, %v6676_v17  ;;  %v6678_v30 = vpop.f32.mrb[51].mxu1  ;;  %7679 = vmatmul.mubr.bf16.gmra.mrb[172].mxu0 %v7289_v14  ;;  %v7187_v45 = vmax.f32 %v7059_v5, 0.0  ;;  %v13922_v14 = vld [vmem:[%s18695_s11 + $0x4] ss:$8 sps:$4 sm:$0xff]  }
 0x732   : > { %v7062_v35 = vadd.f32 %v16815_v32, %v6678_v30  ;;  %v7188_v60 = vmax.f32 %v7060_v26, 0.0  ;;  %9023 = vmatprep.subr.bf16.mxu1 %v13922_v14  ;;  %v13925_v5 = vld [vmem:[%s18728_s0 + $0x6e4] ss:$8 sps:$4 sm:$0xff]  }
 0x733   : > { %v7189_v50 = vmax.f32 %v7061_v0, 0.0  ;;  %9024 = vmatpush1.bf16.msra.mxu1 %v13920_v51  ;;  %8314 = vmatprep.subr.bf16.mxu0 %v13925_v5 }
 0x734   : > { %v7190_v33 = vmax.f32 %v7062_v35, 0.0  ;;  %8315 = vmatpush1.bf16.msra.mxu0 %v13923_v16 }
 0x735   : > { %v7291_v22 = vpack.c.bf16 %v7189_v50, %v7187_v45 }
 0x736   : > { %v6682_v39 = vpop.f32.mrb[52].mxu1  ;;  %v7292_v24 = vpack.c.bf16 %v7190_v33, %v7188_v60 }
 0x737   : > { %v7063_v61 = vadd.f32 %v16812_v34, %v6682_v39  ;;  %v6684_v49 = vpop.f32.mrb[53].mxu1 }
 0x738   : > { %v7064_v42 = vadd.f32 %v16815_v32, %v6684_v49  ;;  %v6686_v10 = vpop.f32.mrb[54].mxu1  ;;  %7688 = vmatprep.mubr.bf16.mxu0 %v7292_v24 }
 0x739   : > { %v7065_v25 = vadd.f32 %v16812_v34, %v6686_v10  ;;  %v6688_v23 = vpop.f32.mrb[55].mxu1  ;;  %7689 = vmatmul.mubr.bf16.gmra.mrb[176].mxu0 %v7291_v22  ;;  %v7191_v36 = vmax.f32 %v7063_v61, 0.0 }
 0x73a   : > { %v7066_v29 = vadd.f32 %v16815_v32, %v6688_v23  ;;  %v7192_v57 = vmax.f32 %v7064_v42, 0.0 }
 0x73b   : > { %v7193_v8 = vmax.f32 %v7065_v25, 0.0 }
 0x73c   : > { %v7194_v6 = vmax.f32 %v7066_v29, 0.0 }
 0x73d   : > { %v7293_v13 = vpack.c.bf16 %v7193_v8, %v7191_v36 }
 0x73e   : > { %v6692_v47 = vpop.f32.mrb[56].mxu1  ;;  %v7294_v26 = vpack.c.bf16 %v7194_v6, %v7192_v57  ;;  %v13926_v6 = vld [vmem:[%s18695_s11 + $0x10] ss:$8 sps:$4 sm:$0xff]  }
 0x73f   : > { %v7067_v17 = vadd.f32 %v16812_v34, %v6692_v47  ;;  %v6694_v0 = vpop.f32.mrb[57].mxu1 }
 0x740   : > { %v7068_v30 = vadd.f32 %v16815_v32, %v6694_v0  ;;  %v6696_v35 = vpop.f32.mrb[58].mxu1  ;;  %7698 = vmatprep.mubr.bf16.mxu0 %v7294_v26  ;;  %v13929_v26 = vld [vmem:[%s18728_s0 + $0x6f0] ss:$8 sps:$4 sm:$0xff]  }
 0x741   : > { %v7069_v45 = vadd.f32 %v16812_v34, %v6696_v35  ;;  %v6698_v50 = vpop.f32.mrb[59].mxu1  ;;  %7699 = vmatmul.mubr.bf16.gmra.mrb[180].mxu0 %v7293_v13  ;;  %v7195_v33 = vmax.f32 %v7067_v17, 0.0  ;;  %v13928_v13 = vld [vmem:[%s18695_s11 + $0x14] ss:$8 sps:$4 sm:$0xff]  }
 0x742   : > { %v7070_v60 = vadd.f32 %v16815_v32, %v6698_v50  ;;  %v7196_v39 = vmax.f32 %v7068_v30, 0.0  ;;  %9025 = vmatprep.subr.bf16.mxu1 %v13928_v13  ;;  %v13931_v17 = vld [vmem:[%s18728_s0 + $0x6f4] ss:$8 sps:$4 sm:$0xff]  }
 0x743   : > { %v7197_v22 = vmax.f32 %v7069_v45, 0.0  ;;  %9026 = vmatpush1.bf16.msra.mxu1 %v13926_v6  ;;  %8316 = vmatprep.subr.bf16.mxu0 %v13931_v17 }
 0x744   : > { %v7198_v24 = vmax.f32 %v7070_v60, 0.0  ;;  %8317 = vmatpush1.bf16.msra.mxu0 %v13929_v26 }
 0x745   : > { %v7295_v61 = vpack.c.bf16 %v7197_v22, %v7195_v33 }
 0x746   : > { %v6702_v49 = vpop.f32.mrb[60].mxu1  ;;  %v7296_v42 = vpack.c.bf16 %v7198_v24, %v7196_v39 }
 0x747   : > { %v7071_v10 = vadd.f32 %v16812_v34, %v6702_v49  ;;  %v6704_v25 = vpop.f32.mrb[61].mxu1 }
 0x748   : > { %v7072_v23 = vadd.f32 %v16815_v32, %v6704_v25  ;;  %v6706_v29 = vpop.f32.mrb[62].mxu1  ;;  %7708 = vmatprep.mubr.bf16.mxu0 %v7296_v42 }
 0x749   : > { %v7073_v36 = vadd.f32 %v16812_v34, %v6706_v29  ;;  %v6708_v8 = vpop.f32.mrb[63].mxu1  ;;  %7709 = vmatmul.mubr.bf16.gmra.mrb[184].mxu0 %v7295_v61  ;;  %v7199_v14 = vmax.f32 %v7071_v10, 0.0 }
 0x74a   : > { %v7074_v51 = vadd.f32 %v16815_v32, %v6708_v8  ;;  %v7200_v16 = vmax.f32 %v7072_v23, 0.0 }
 0x74b   : > { %v7201_v57 = vmax.f32 %v7073_v36, 0.0 }
 0x74c   : > { %v7202_v5 = vmax.f32 %v7074_v51, 0.0 }
 0x74d   : > { %v7297_v47 = vpack.c.bf16 %v7201_v57, %v7199_v14 }
 0x74e   : > { %v6712_v0 = vpop.f32.mrb[64].mxu1  ;;  %v7298_v30 = vpack.c.bf16 %v7202_v5, %v7200_v16  ;;  %v13932_v5 = vld [vmem:[%s18695_s11 + $0x20] ss:$8 sps:$4 sm:$0xff]  }
 0x74f   : > { %v7075_v35 = vadd.f32 %v16812_v34, %v6712_v0  ;;  %v6714_v45 = vpop.f32.mrb[65].mxu1 }
 0x750   : > { %v7076_v50 = vadd.f32 %v16815_v32, %v6714_v45  ;;  %v6716_v60 = vpop.f32.mrb[66].mxu1  ;;  %7718 = vmatprep.mubr.bf16.mxu0 %v7298_v30 }
 0x751   : > { %v7077_v33 = vadd.f32 %v16812_v34, %v6716_v60  ;;  %v6718_v22 = vpop.f32.mrb[67].mxu1  ;;  %7719 = vmatmul.mubr.bf16.gmra.mrb[188].mxu0 %v7297_v47  ;;  %v7203_v24 = vmax.f32 %v7075_v35, 0.0  ;;  %v13934_v47 = vld [vmem:[%s18695_s11 + $0x24] ss:$8 sps:$4 sm:$0xff]  }
 0x752   : > { %v7078_v39 = vadd.f32 %v16815_v32, %v6718_v22  ;;  %v7204_v49 = vmax.f32 %v7076_v50, 0.0  ;;  %9027 = vmatprep.subr.bf16.mxu1 %v13934_v47  ;;  %v13935_v47 = vld [vmem:[%s18695_s11 + $0x30] ss:$8 sps:$4 sm:$0xff]  }
 0x753   : > { %v7205_v61 = vmax.f32 %v7077_v33, 0.0  ;;  %9028 = vmatpush1.bf16.msra.mxu1 %v13932_v5 }
 0x754   : > { %v7206_v42 = vmax.f32 %v7078_v39, 0.0 }
 0x755   : > { %v7299_v10 = vpack.c.bf16 %v7205_v61, %v7203_v24 }
 0x756   : > { %v6722_v25 = vpop.f32.mrb[68].mxu1  ;;  %v7300_v23 = vpack.c.bf16 %v7206_v42, %v7204_v49 }
 0x757   : > { %v7079_v29 = vadd.f32 %v16812_v34, %v6722_v25  ;;  %v6724_v36 = vpop.f32.mrb[69].mxu1 }
 0x758   : > { %v7080_v8 = vadd.f32 %v16815_v32, %v6724_v36  ;;  %v6726_v51 = vpop.f32.mrb[70].mxu1  ;;  %7728 = vmatprep.mubr.bf16.mxu0 %v7300_v23 }
 0x759   : > { %v7081_v14 = vadd.f32 %v16812_v34, %v6726_v51  ;;  %v6728_v57 = vpop.f32.mrb[71].mxu1  ;;  %7729 = vmatmul.mubr.bf16.gmra.mrb[192].mxu0 %v7299_v10  ;;  %v7207_v13 = vmax.f32 %v7079_v29, 0.0 }
 0x75a   : > { %v7082_v6 = vadd.f32 %v16815_v32, %v6728_v57  ;;  %v7208_v26 = vmax.f32 %v7080_v8, 0.0 }
 0x75b   : > { %v7209_v16 = vmax.f32 %v7081_v14, 0.0 }
 0x75c   : > { %v7210_v17 = vmax.f32 %v7082_v6, 0.0 }
 0x75d   : > { %v7301_v0 = vpack.c.bf16 %v7209_v16, %v7207_v13 }
 0x75e   : > { %v6732_v30 = vpop.f32.mrb[72].mxu1  ;;  %v7302_v35 = vpack.c.bf16 %v7210_v17, %v7208_v26  ;;  %v13937_v26 = vld [vmem:[%s18695_s11 + $0x34] ss:$8 sps:$4 sm:$0xff]  }
 0x75f   : > { %v7083_v45 = vadd.f32 %v16812_v34, %v6732_v30  ;;  %v6734_v50 = vpop.f32.mrb[73].mxu1  ;;  %9029 = vmatprep.subr.bf16.mxu1 %v13937_v26  ;;  %v13938_v26 = vld [vmem:[%s18695_s11 + $0x40] ss:$8 sps:$4 sm:$0xff]  }
 0x760   : > { %v7084_v60 = vadd.f32 %v16815_v32, %v6734_v50  ;;  %v6736_v33 = vpop.f32.mrb[74].mxu1  ;;  %7738 = vmatprep.mubr.bf16.mxu0 %v7302_v35  ;;  %9030 = vmatpush1.bf16.msra.mxu1 %v13935_v47 }
 0x761   : > { %v7085_v22 = vadd.f32 %v16812_v34, %v6736_v33  ;;  %v6738_v39 = vpop.f32.mrb[75].mxu1  ;;  %7739 = vmatmul.mubr.bf16.gmra.mrb[196].mxu0 %v7301_v0  ;;  %v7211_v61 = vmax.f32 %v7083_v45, 0.0 }
 0x762   : > { %v7086_v24 = vadd.f32 %v16815_v32, %v6738_v39  ;;  %v7212_v42 = vmax.f32 %v7084_v60, 0.0 }
 0x763   : > { %v7213_v49 = vmax.f32 %v7085_v22, 0.0 }
 0x764   : > { %v7214_v10 = vmax.f32 %v7086_v24, 0.0 }
 0x765   : > { %v7303_v25 = vpack.c.bf16 %v7213_v49, %v7211_v61 }
 0x766   : > { %v6742_v23 = vpop.f32.mrb[76].mxu1  ;;  %v7304_v29 = vpack.c.bf16 %v7214_v10, %v7212_v42 }
 0x767   : > { %v7087_v36 = vadd.f32 %v16812_v34, %v6742_v23  ;;  %v6744_v8 = vpop.f32.mrb[77].mxu1 }
 0x768   : > { %v7088_v51 = vadd.f32 %v16815_v32, %v6744_v8  ;;  %v6746_v14 = vpop.f32.mrb[78].mxu1  ;;  %7748 = vmatprep.mubr.bf16.mxu0 %v7304_v29 }
 0x769   : > { %v7089_v57 = vadd.f32 %v16812_v34, %v6746_v14  ;;  %v6748_v6 = vpop.f32.mrb[79].mxu1  ;;  %7749 = vmatmul.mubr.bf16.gmra.mrb[200].mxu0 %v7303_v25  ;;  %v7215_v16 = vmax.f32 %v7087_v36, 0.0 }
 0x76a   : > { %v7090_v13 = vadd.f32 %v16815_v32, %v6748_v6  ;;  %v7216_v17 = vmax.f32 %v7088_v51, 0.0 }
 0x76b   : > { %v7217_v5 = vmax.f32 %v7089_v57, 0.0 }
 0x76c   : > { %v7218_v0 = vmax.f32 %v7090_v13, 0.0 }
 0x76d   : > { %v7305_v30 = vpack.c.bf16 %v7217_v5, %v7215_v16 }
 0x76e   : > { %v6752_v35 = vpop.f32.mrb[80].mxu1  ;;  %v7306_v45 = vpack.c.bf16 %v7218_v0, %v7216_v17  ;;  %v13940_v17 = vld [vmem:[%s18695_s11 + $0x44] ss:$8 sps:$4 sm:$0xff]  }
 0x76f   : > { %v7091_v50 = vadd.f32 %v16812_v34, %v6752_v35  ;;  %v6754_v60 = vpop.f32.mrb[81].mxu1  ;;  %9031 = vmatprep.subr.bf16.mxu1 %v13940_v17  ;;  %v13941_v17 = vld [vmem:[%s18695_s11 + $0x50] ss:$8 sps:$4 sm:$0xff]  }
 0x770   : > { %v7092_v33 = vadd.f32 %v16815_v32, %v6754_v60  ;;  %v6756_v22 = vpop.f32.mrb[82].mxu1  ;;  %7758 = vmatprep.mubr.bf16.mxu0 %v7306_v45  ;;  %9032 = vmatpush1.bf16.msra.mxu1 %v13938_v26 }
 0x771   : > { %v7093_v39 = vadd.f32 %v16812_v34, %v6756_v22  ;;  %v6758_v24 = vpop.f32.mrb[83].mxu1  ;;  %7759 = vmatmul.mubr.bf16.gmra.mrb[204].mxu0 %v7305_v30  ;;  %v7219_v49 = vmax.f32 %v7091_v50, 0.0 }
 0x772   : > { %v7094_v61 = vadd.f32 %v16815_v32, %v6758_v24  ;;  %v7220_v10 = vmax.f32 %v7092_v33, 0.0 }
 0x773   : > { %v7221_v42 = vmax.f32 %v7093_v39, 0.0 }
 0x774   : > { %v7222_v25 = vmax.f32 %v7094_v61, 0.0 }
 0x775   : > { %v7307_v23 = vpack.c.bf16 %v7221_v42, %v7219_v49 }
 0x776   : > { %v6762_v29 = vpop.f32.mrb[84].mxu1  ;;  %v7308_v36 = vpack.c.bf16 %v7222_v25, %v7220_v10 }
 0x777   : > { %v7095_v8 = vadd.f32 %v16812_v34, %v6762_v29  ;;  %v6764_v51 = vpop.f32.mrb[85].mxu1 }
 0x778   : > { %v7096_v14 = vadd.f32 %v16815_v32, %v6764_v51  ;;  %v6766_v57 = vpop.f32.mrb[86].mxu1  ;;  %7768 = vmatprep.mubr.bf16.mxu0 %v7308_v36 }
 0x779   : > { %v7097_v6 = vadd.f32 %v16812_v34, %v6766_v57  ;;  %v6768_v13 = vpop.f32.mrb[87].mxu1  ;;  %7769 = vmatmul.mubr.bf16.gmra.mrb[208].mxu0 %v7307_v23  ;;  %v7223_v5 = vmax.f32 %v7095_v8, 0.0 }
 0x77a   : > { %v7098_v16 = vadd.f32 %v16815_v32, %v6768_v13  ;;  %v7224_v0 = vmax.f32 %v7096_v14, 0.0 }
 0x77b   : > { %v7225_v47 = vmax.f32 %v7097_v6, 0.0 }
 0x77c   : > { %v7226_v30 = vmax.f32 %v7098_v16, 0.0 }
 0x77d   : > { %v7309_v35 = vpack.c.bf16 %v7225_v47, %v7223_v5 }
 0x77e   : > { %v6772_v45 = vpop.f32.mrb[88].mxu1  ;;  %v7310_v50 = vpack.c.bf16 %v7226_v30, %v7224_v0  ;;  %v13943_v0 = vld [vmem:[%s18695_s11 + $0x54] ss:$8 sps:$4 sm:$0xff]  }
 0x77f   : > { %v7099_v60 = vadd.f32 %v16812_v34, %v6772_v45  ;;  %v6774_v33 = vpop.f32.mrb[89].mxu1  ;;  %9033 = vmatprep.subr.bf16.mxu1 %v13943_v0  ;;  %v13944_v0 = vld [vmem:[%s18695_s11 + $0x60] ss:$8 sps:$4 sm:$0xff]  }
 0x780   : > { %v7100_v22 = vadd.f32 %v16815_v32, %v6774_v33  ;;  %v6776_v39 = vpop.f32.mrb[90].mxu1  ;;  %7778 = vmatprep.mubr.bf16.mxu0 %v7310_v50  ;;  %9034 = vmatpush1.bf16.msra.mxu1 %v13941_v17 }
 0x781   : > { %v7101_v24 = vadd.f32 %v16812_v34, %v6776_v39  ;;  %v6778_v61 = vpop.f32.mrb[91].mxu1  ;;  %7779 = vmatmul.mubr.bf16.gmra.mrb[212].mxu0 %v7309_v35  ;;  %v7227_v42 = vmax.f32 %v7099_v60, 0.0 }
 0x782   : > { %v7102_v49 = vadd.f32 %v16815_v32, %v6778_v61  ;;  %v7228_v25 = vmax.f32 %v7100_v22, 0.0 }
 0x783   : > { %v7229_v10 = vmax.f32 %v7101_v24, 0.0 }
 0x784   : > { %v7230_v23 = vmax.f32 %v7102_v49, 0.0 }
 0x785   : > { %v7311_v29 = vpack.c.bf16 %v7229_v10, %v7227_v42 }
 0x786   : > { %v6782_v36 = vpop.f32.mrb[92].mxu1  ;;  %v7312_v8 = vpack.c.bf16 %v7230_v23, %v7228_v25 }
 0x787   : > { %v7103_v51 = vadd.f32 %v16812_v34, %v6782_v36  ;;  %v6784_v14 = vpop.f32.mrb[93].mxu1 }
 0x788   : > { %v7104_v57 = vadd.f32 %v16815_v32, %v6784_v14  ;;  %v6786_v6 = vpop.f32.mrb[94].mxu1  ;;  %7788 = vmatprep.mubr.bf16.mxu0 %v7312_v8 }
 0x789   : > { %v7105_v13 = vadd.f32 %v16812_v34, %v6786_v6  ;;  %v6788_v16 = vpop.f32.mrb[95].mxu1  ;;  %7789 = vmatmul.mubr.bf16.gmra.mrb[216].mxu0 %v7311_v29  ;;  %v7231_v47 = vmax.f32 %v7103_v51, 0.0 }
 0x78a   : > { %v7106_v5 = vadd.f32 %v16815_v32, %v6788_v16  ;;  %v7232_v30 = vmax.f32 %v7104_v57, 0.0 }
 0x78b   : > { %v7233_v26 = vmax.f32 %v7105_v13, 0.0 }
 0x78c   : > { %v7234_v35 = vmax.f32 %v7106_v5, 0.0 }
 0x78d   : > { %v7313_v45 = vpack.c.bf16 %v7233_v26, %v7231_v47 }
 0x78e   : > { %v6792_v50 = vpop.f32.mrb[96].mxu1  ;;  %v7314_v60 = vpack.c.bf16 %v7234_v35, %v7232_v30  ;;  %v13946_v30 = vld [vmem:[%s18695_s11 + $0x64] ss:$8 sps:$4 sm:$0xff]  }
 0x78f   : > { %v7107_v33 = vadd.f32 %v16812_v34, %v6792_v50  ;;  %v6794_v22 = vpop.f32.mrb[97].mxu1  ;;  %9035 = vmatprep.subr.bf16.mxu1 %v13946_v30 }
 0x790   : > { %v7108_v39 = vadd.f32 %v16815_v32, %v6794_v22  ;;  %v6796_v24 = vpop.f32.mrb[98].mxu1  ;;  %7798 = vmatprep.mubr.bf16.mxu0 %v7314_v60  ;;  %9036 = vmatpush1.bf16.msra.mxu1 %v13944_v0 }
 0x791   : > { %v7109_v61 = vadd.f32 %v16812_v34, %v6796_v24  ;;  %v6798_v49 = vpop.f32.mrb[99].mxu1  ;;  %7799 = vmatmul.mubr.bf16.gmra.mrb[220].mxu0 %v7313_v45  ;;  %v7235_v10 = vmax.f32 %v7107_v33, 0.0 }
 0x792   : > { %v7110_v42 = vadd.f32 %v16815_v32, %v6798_v49  ;;  %v7236_v23 = vmax.f32 %v7108_v39, 0.0 }
 0x793   : > { %v7237_v25 = vmax.f32 %v7109_v61, 0.0 }
 0x794   : > { %v7238_v29 = vmax.f32 %v7110_v42, 0.0 }
 0x795   : > { %v7315_v36 = vpack.c.bf16 %v7237_v25, %v7235_v10 }
 0x796   : > { %v6802_v8 = vpop.f32.mrb[100].mxu1  ;;  %v7316_v51 = vpack.c.bf16 %v7238_v29, %v7236_v23 }
 0x797   : > { %v7111_v14 = vadd.f32 %v16812_v34, %v6802_v8  ;;  %v6804_v57 = vpop.f32.mrb[101].mxu1 }
 0x798   : > { %v7112_v6 = vadd.f32 %v16815_v32, %v6804_v57  ;;  %v6806_v13 = vpop.f32.mrb[102].mxu1  ;;  %7808 = vmatprep.mubr.bf16.mxu0 %v7316_v51  ;;  %v7364_v57 = vld [vmem:[%s18693_s9] sm:$0x3] }
 0x799   : > { %v7113_v16 = vadd.f32 %v16812_v34, %v6806_v13  ;;  %v6808_v5 = vpop.f32.mrb[103].mxu1  ;;  %7809 = vmatmul.mubr.bf16.gmra.mrb[224].mxu0 %v7315_v36  ;;  %v7239_v26 = vmax.f32 %v7111_v14, 0.0  ;;  %v17084_v30 = vrot.slane %v7364_v57, %v15258_v27 }
 0x79a   : > { %v7114_v47 = vadd.f32 %v16815_v32, %v6808_v5  ;;  %v7240_v35 = vmax.f32 %v7112_v6, 0.0 }
 0x79b   : > { %v7241_v17 = vmax.f32 %v7113_v16, 0.0 }
 0x79c   : > { %v7242_v45 = vmax.f32 %v7114_v47, 0.0 }
 0x79d   : > { %v7317_v50 = vpack.c.bf16 %v7241_v17, %v7239_v26  ;;  %v17080_v17 = vrot.slane %v7364_v57, %v15253_v58 }
 0x79e   : > { %v6812_v60 = vpop.f32.mrb[104].mxu1  ;;  %v7318_v33 = vpack.c.bf16 %v7242_v45, %v7240_v35 }
 0x79f   : > { %v7115_v22 = vadd.f32 %v16812_v34, %v6812_v60  ;;  %v6814_v39 = vpop.f32.mrb[105].mxu1  ;;  %v13949_v60 = vld [vmem:[%s18695_s11 + $0x74] ss:$8 sps:$4 sm:$0xff]  }
 0x7a0   : > { %v7116_v24 = vadd.f32 %v16815_v32, %v6814_v39  ;;  %v6816_v61 = vpop.f32.mrb[106].mxu1  ;;  %7818 = vmatprep.mubr.bf16.mxu0 %v7318_v33  ;;  %9037 = vmatprep.subr.bf16.mxu1 %v13949_v60 }
 0x7a1   : > { %v7117_v49 = vadd.f32 %v16812_v34, %v6816_v61  ;;  %v6818_v42 = vpop.f32.mrb[107].mxu1  ;;  %7819 = vmatmul.mubr.bf16.gmra.mrb[228].mxu0 %v7317_v50  ;;  %v7243_v25 = vmax.f32 %v7115_v22, 0.0  ;;  %v13947_v50 = vld [vmem:[%s18695_s11 + $0x70] ss:$8 sps:$4 sm:$0xff]  }
 0x7a2   : > { %v7118_v10 = vadd.f32 %v16815_v32, %v6818_v42  ;;  %v7244_v29 = vmax.f32 %v7116_v24, 0.0  ;;  %9038 = vmatpush1.bf16.msra.mxu1 %v13947_v50 }
 0x7a3   : > { %v7245_v23 = vmax.f32 %v7117_v49, 0.0 }
 0x7a4   : > { %v7246_v36 = vmax.f32 %v7118_v10, 0.0 }
 0x7a5   : > { %v7319_v8 = vpack.c.bf16 %v7245_v23, %v7243_v25 }
 0x7a6   : > { %v6822_v51 = vpop.f32.mrb[108].mxu1  ;;  %v7320_v14 = vpack.c.bf16 %v7246_v36, %v7244_v29 }
 0x7a7   : > { %v7119_v6 = vadd.f32 %v16812_v34, %v6822_v51  ;;  %v6824_v13 = vpop.f32.mrb[109].mxu1 }
 0x7a8   : > { %v7120_v16 = vadd.f32 %v16815_v32, %v6824_v13  ;;  %v6826_v5 = vpop.f32.mrb[110].mxu1  ;;  %7828 = vmatprep.mubr.bf16.mxu0 %v7320_v14 }
 0x7a9   : > { %v7121_v47 = vadd.f32 %v16812_v34, %v6826_v5  ;;  %v6828_v26 = vpop.f32.mrb[111].mxu1  ;;  %7829 = vmatmul.mubr.bf16.gmra.mrb[232].mxu0 %v7319_v8  ;;  %v7247_v35 = vmax.f32 %v7119_v6, 0.0 }
 0x7aa   : > { %v7122_v0 = vadd.f32 %v16815_v32, %v6828_v26  ;;  %v7248_v33 = vmax.f32 %v7120_v16, 0.0 }
 0x7ab   : > { %v7249_v45 = vmax.f32 %v7121_v47, 0.0 }
 0x7ac   : > { %v7250_v22 = vmax.f32 %v7122_v0, 0.0  ;;  %v7570_v39 = vpop.f32.mrb[128].mxu0 }
 0x7ad   : > { %v7321_v24 = vpack.c.bf16 %v7249_v45, %v7247_v35  ;;  %v7571_v61 = vadd.f32 %v7570_v39, %v17080_v17  ;;  %v7572_v49 = vpop.f32.mrb[129].mxu0 }
 0x7ae   : > { %v7573_v42 = vadd.f32 %v7572_v49, %v17084_v30  ;;  %v6832_v10 = vpop.f32.mrb[112].mxu1  ;;  %v7574_v25 = vpop.f32.mrb[130].mxu0  ;;  %v7322_v23 = vpack.c.bf16 %v7250_v22, %v7248_v33 }
 0x7af   : > { %v7123_v29 = vadd.f32 %v16812_v34, %v6832_v10  ;;  %v7575_v36 = vadd.f32 %v7574_v25, %v17080_v17  ;;  %v6834_v8 = vpop.f32.mrb[113].mxu1  ;;  %v7576_v51 = vpop.f32.mrb[131].mxu0  ;;  %v7889_v13 = vmax.f32 %v7571_v61, 0.0 }
 0x7b0   : > { %v7124_v14 = vadd.f32 %v16815_v32, %v6834_v8  ;;  %v7577_v57 = vadd.f32 %v7576_v51, %v17084_v30  ;;  %v6836_v6 = vpop.f32.mrb[114].mxu1  ;;  %7838 = vmatprep.mubr.bf16.mxu0 %v7322_v23  ;;  %v7890_v26 = vmax.f32 %v7573_v42, 0.0 }
 0x7b1   : > { %v7891_v16 = vmax.f32 %v7575_v36, 0.0  ;;  %v7125_v5 = vadd.f32 %v16812_v34, %v6836_v6  ;;  %v6838_v47 = vpop.f32.mrb[115].mxu1  ;;  %7839 = vmatmul.mubr.bf16.gmra.mrb[236].mxu0 %v7321_v24  ;;  %v7251_v45 = vmax.f32 %v7123_v29, 0.0 }
 0x7b2   : > { %v7892_v0 = vmax.f32 %v7577_v57, 0.0  ;;  %v7126_v35 = vadd.f32 %v16815_v32, %v6838_v47  ;;  %v7252_v33 = vmax.f32 %v7124_v14, 0.0 }
 0x7b3   : > { %v17100_v50 = vpack.c.bf16 %v7891_v16, %v7889_v13  ;;  %v7253_v60 = vmax.f32 %v7125_v5, 0.0  ;;  %v17113_v16 = vld [vmem:[%s18696_s12] sm:$0xff]  }
 0x7b4   : > { %v7254_v22 = vmax.f32 %v7126_v35, 0.0  ;;  %v7580_v39 = vpop.f32.mrb[132].mxu0  ;;  %v17102_v49 = vpack.c.bf16 %v7892_v0, %v7890_v26  ;;  %12667 = vmatprep.subr.bf16.mxu0 %v17113_v16 }
 0x7b5   : > { %v7323_v10 = vpack.c.bf16 %v7253_v60, %v7251_v45  ;;  %v7581_v61 = vadd.f32 %v7580_v39, %v17080_v17  ;;  %v7582_v25 = vpop.f32.mrb[133].mxu0 }
 0x7b6   : > { %v7583_v23 = vadd.f32 %v7582_v25, %v17084_v30  ;;  %v6842_v24 = vpop.f32.mrb[116].mxu1  ;;  %v7584_v42 = vpop.f32.mrb[134].mxu0  ;;  %v7324_v36 = vpack.c.bf16 %v7254_v22, %v7252_v33  ;;  %v13951_v25 = vld [vmem:[%s18695_s11 + $0x80] ss:$8 sps:$4 sm:$0xff]  }
 0x7b7   : > { %v7127_v8 = vadd.f32 %v16812_v34, %v6842_v24  ;;  %v7585_v29 = vadd.f32 %v7584_v42, %v17080_v17  ;;  %v6844_v51 = vpop.f32.mrb[117].mxu1  ;;  %v7586_v57 = vpop.f32.mrb[135].mxu0  ;;  %v7893_v5 = vmax.f32 %v7581_v61, 0.0  ;;  %v13953_v61 = vld [vmem:[%s18695_s11 + $0x84] ss:$8 sps:$4 sm:$0xff]  }
 0x7b8   : > { %v7128_v14 = vadd.f32 %v16815_v32, %v6844_v51  ;;  %v7587_v6 = vadd.f32 %v7586_v57, %v17084_v30  ;;  %v6846_v13 = vpop.f32.mrb[118].mxu1  ;;  %7848 = vmatprep.mubr.bf16.mxu0 %v7324_v36  ;;  %v7894_v35 = vmax.f32 %v7583_v23, 0.0  ;;  %9039 = vmatprep.subr.bf16.mxu1 %v13953_v61 }
 0x7b9   : > { %v7895_v47 = vmax.f32 %v7585_v29, 0.0  ;;  %v7129_v26 = vadd.f32 %v16812_v34, %v6846_v13  ;;  %v6848_v0 = vpop.f32.mrb[119].mxu1  ;;  %7849 = vmatmul.mubr.bf16.gmra.mrb[240].mxu0 %v7323_v10  ;;  %v7255_v33 = vmax.f32 %v7127_v8, 0.0  ;;  %9040 = vmatpush1.bf16.msra.mxu1 %v13951_v25 }
 0x7ba   : > { %v7896_v45 = vmax.f32 %v7587_v6, 0.0  ;;  %v7130_v60 = vadd.f32 %v16815_v32, %v6848_v0  ;;  %v7256_v24 = vmax.f32 %v7128_v14, 0.0 }
 0x7bb   : > { %v17118_v22 = vpack.c.bf16 %v7895_v47, %v7893_v5  ;;  %v7257_v39 = vmax.f32 %v7129_v26, 0.0 }
 0x7bc   : > { %v7258_v10 = vmax.f32 %v7130_v60, 0.0  ;;  %v7590_v23 = vpop.f32.mrb[136].mxu0  ;;  %v17126_v42 = vpack.c.bf16 %v7896_v45, %v7894_v35 }
 0x7bd   : > { %v7325_v36 = vpack.c.bf16 %v7257_v39, %v7255_v33  ;;  %v7591_v29 = vadd.f32 %v7590_v23, %v17080_v17  ;;  %v7592_v8 = vpop.f32.mrb[137].mxu0 }
 0x7be   : > { %v7593_v51 = vadd.f32 %v7592_v8, %v17084_v30  ;;  %v6852_v57 = vpop.f32.mrb[120].mxu1  ;;  %v7594_v6 = vpop.f32.mrb[138].mxu0  ;;  %v7326_v13 = vpack.c.bf16 %v7258_v10, %v7256_v24 }
 0x7bf   : > { %v7131_v5 = vadd.f32 %v16812_v34, %v6852_v57  ;;  %v7595_v47 = vadd.f32 %v7594_v6, %v17080_v17  ;;  %v6854_v14 = vpop.f32.mrb[121].mxu1  ;;  %v7596_v26 = vpop.f32.mrb[139].mxu0  ;;  %v7897_v60 = vmax.f32 %v7591_v29, 0.0 }
 0x7c0   : > { %v7132_v0 = vadd.f32 %v16815_v32, %v6854_v14  ;;  %v7597_v35 = vadd.f32 %v7596_v26, %v17084_v30  ;;  %v6856_v45 = vpop.f32.mrb[122].mxu1  ;;  %7858 = vmatprep.mubr.bf16.mxu0 %v7326_v13  ;;  %v7898_v24 = vmax.f32 %v7593_v51, 0.0 }
 0x7c1   : > { %v7899_v33 = vmax.f32 %v7595_v47, 0.0  ;;  %v7133_v39 = vadd.f32 %v16812_v34, %v6856_v45  ;;  %v6858_v61 = vpop.f32.mrb[123].mxu1  ;;  %7859 = vmatmul.mubr.bf16.gmra.mrb[244].mxu0 %v7325_v36  ;;  %v7259_v23 = vmax.f32 %v7131_v5, 0.0 }
 0x7c2   : > { %v7900_v25 = vmax.f32 %v7597_v35, 0.0  ;;  %v7134_v10 = vadd.f32 %v16815_v32, %v6858_v61  ;;  %v7260_v6 = vmax.f32 %v7132_v0, 0.0 }
 0x7c3   : > { %v17136_v8 = vpack.c.bf16 %v7899_v33, %v7897_v60  ;;  %v7261_v57 = vmax.f32 %v7133_v39, 0.0 }
 0x7c4   : > { %v7262_v14 = vmax.f32 %v7134_v10, 0.0  ;;  %v7600_v3 = vpop.f32.mrb[140].mxu0  ;;  %v17138_v26 = vpack.c.bf16 %v7900_v25, %v7898_v24 }
 0x7c5   : > { %v7327_v13 = vpack.c.bf16 %v7261_v57, %v7259_v23  ;;  %v7601_v29 = vadd.f32 %v7600_v3, %v17080_v17  ;;  %v7602_v47 = vpop.f32.mrb[141].mxu0 }
 0x7c6   : > { %v7603_v45 = vadd.f32 %v7602_v47, %v17084_v30  ;;  %v6862_v36 = vpop.f32.mrb[124].mxu1  ;;  %v7604_v51 = vpop.f32.mrb[142].mxu0  ;;  %v7328_v35 = vpack.c.bf16 %v7262_v14, %v7260_v6 }
 0x7c7   : > { %v7135_v61 = vadd.f32 %v16812_v34, %v6862_v36  ;;  %v7605_v5 = vadd.f32 %v7604_v51, %v17080_v17  ;;  %v6864_v60 = vpop.f32.mrb[125].mxu1  ;;  %v7606_v33 = vpop.f32.mrb[143].mxu0  ;;  %v7901_v25 = vmax.f32 %v7601_v29, 0.0  ;;  %v13956_v29 = vld [vmem:[%s18695_s11 + $0x94] ss:$8 sps:$4 sm:$0xff]  }
 0x7c8   : > { %v7136_v0 = vadd.f32 %v16815_v32, %v6864_v60  ;;  %v7607_v39 = vadd.f32 %v7606_v33, %v17084_v30  ;;  %v6866_v24 = vpop.f32.mrb[126].mxu1  ;;  %7868 = vmatprep.mubr.bf16.mxu0 %v7328_v35  ;;  %v7902_v57 = vmax.f32 %v7603_v45, 0.0  ;;  %v13954_v60 = vld [vmem:[%s18695_s11 + $0x90] ss:$8 sps:$4 sm:$0xff]   ;;  %9041 = vmatprep.subr.bf16.mxu1 %v13956_v29 }
 0x7c9   : > { %v7903_v3 = vmax.f32 %v7605_v5, 0.0  ;;  %v7137_v10 = vadd.f32 %v16812_v34, %v6866_v24  ;;  %v6868_v23 = vpop.f32.mrb[127].mxu1  ;;  %7869 = vmatmul.mubr.bf16.gmra.mrb[248].mxu0 %v7327_v13  ;;  %v7263_v47 = vmax.f32 %v7135_v61, 0.0  ;;  %9042 = vmatpush1.bf16.msra.mxu1 %v13954_v60 }
 0x7ca   : > { %v7904_v6 = vmax.f32 %v7607_v39, 0.0  ;;  %v7138_v14 = vadd.f32 %v16815_v32, %v6868_v23  ;;  %v7264_v35 = vmax.f32 %v7136_v0, 0.0 }
 0x7cb   : > { %v17148_v36 = vpack.c.bf16 %v7903_v3, %v7901_v25  ;;  %v7265_v51 = vmax.f32 %v7137_v10, 0.0 }
 0x7cc   : > { %v7266_v34 = vmax.f32 %v7138_v14, 0.0  ;;  %v7610_v5 = vpop.f32.mrb[144].mxu0  ;;  %v17156_v13 = vpack.c.bf16 %v7904_v6, %v7902_v57 }
 0x7cd   : > { %v7329_v45 = vpack.c.bf16 %v7265_v51, %v7263_v47  ;;  %v7611_v32 = vadd.f32 %v7610_v5, %v17080_v17  ;;  %v7612_v61 = vpop.f32.mrb[145].mxu0 }
 0x7ce   : > { %v7613_v33 = vadd.f32 %v7612_v61, %v17084_v30  ;;  %v7614_v39 = vpop.f32.mrb[146].mxu0  ;;  %v7330_v24 = vpack.c.bf16 %v7266_v34, %v7264_v35 }
 0x7cf   : > { %v7615_v25 = vadd.f32 %v7614_v39, %v17080_v17  ;;  %v7616_v3 = vpop.f32.mrb[147].mxu0  ;;  %v7905_v0 = vmax.f32 %v7611_v32, 0.0 }
 0x7d0   : > { %v7617_v10 = vadd.f32 %v7616_v3, %v17084_v30  ;;  %7878 = vmatprep.mubr.bf16.mxu0 %v7330_v24  ;;  %v7906_v57 = vmax.f32 %v7613_v33, 0.0  ;;  %v13959_v3 = vld [vmem:[%s18695_s11 + $0xa4] ss:$8 sps:$4 sm:$0xff]  }
 0x7d1   : > { %v7907_v23 = vmax.f32 %v7615_v25, 0.0  ;;  %7879 = vmatmul.mubr.bf16.gmra.mrb[252].mxu0 %v7329_v45  ;;  %v13957_v25 = vld [vmem:[%s18695_s11 + $0xa0] ss:$8 sps:$4 sm:$0xff]   ;;  %9043 = vmatprep.subr.bf16.mxu1 %v13959_v3 }
 0x7d2   : > { %v7908_v6 = vmax.f32 %v7617_v10, 0.0  ;;  %8318 = vmatprep.mubr.bf16.mxu0 %v17102_v49  ;;  %9044 = vmatpush1.bf16.msra.mxu1 %v13957_v25 }
 0x7d3   : > { %v17163_v14 = vpack.c.bf16 %v7907_v23, %v7905_v0 }
 0x7d4   : > { %v7620_v47 = vpop.f32.mrb[148].mxu0  ;;  %v17165_v51 = vpack.c.bf16 %v7908_v6, %v7906_v57 }
 0x7d5   : > { %v7621_v60 = vadd.f32 %v7620_v47, %v17080_v17  ;;  %v7622_v29 = vpop.f32.mrb[149].mxu0 }
 0x7d6   : > { %v7623_v35 = vadd.f32 %v7622_v29, %v17084_v30  ;;  %v7624_v34 = vpop.f32.mrb[150].mxu0 }
 0x7d7   : > { %v7625_v5 = vadd.f32 %v7624_v34, %v17080_v17  ;;  %v7626_v32 = vpop.f32.mrb[151].mxu0  ;;  %v7909_v61 = vmax.f32 %v7621_v60, 0.0 }
 0x7d8   : > { %v7627_v45 = vadd.f32 %v7626_v32, %v17084_v30  ;;  %v7910_v49 = vmax.f32 %v7623_v35, 0.0  ;;  %v13960_v32 = vld [vmem:[%s18696_s12 + $0x8] sm:$0xff]  }
 0x7d9   : > { %v7911_v33 = vmax.f32 %v7625_v5, 0.0  ;;  %8319 = vmatmul.mubr.bf16.vlgmr.msra.gmra.mrb[0].mxu0 %v17100_v50 }
 0x7da   : > { %v7912_v39 = vmax.f32 %v7627_v45, 0.0  ;;  %8328 = vmatprep.mubr.bf16.mxu0 %v17126_v42  ;;  %12668 = vmatpush3.bf16.msra.mxu0 %v17113_v16 }
 0x7db   : > { %v17174_v24 = vpack.c.bf16 %v7911_v33, %v7909_v61  ;;  %12669 = vmatprep.subr.bf16.mxu0 %v13960_v32 }
 0x7dc   : > { %v7630_v10 = vpop.f32.mrb[152].mxu0  ;;  %v17182_v0 = vpack.c.bf16 %v7912_v39, %v7910_v49 }
 0x7dd   : > { %v7631_v50 = vadd.f32 %v7630_v10, %v17080_v17  ;;  %v7632_v23 = vpop.f32.mrb[153].mxu0 }
 0x7de   : > { %v7633_v42 = vadd.f32 %v7632_v23, %v17084_v30  ;;  %v7634_v16 = vpop.f32.mrb[154].mxu0  ;;  %12670 = vmatpush3.bf16.msra.mxu0 %v13960_v32 }
 0x7df   : > { %v7635_v57 = vadd.f32 %v7634_v16, %v17080_v17  ;;  %v7636_v6 = vpop.f32.mrb[155].mxu0  ;;  %v7913_v60 = vmax.f32 %v7631_v50, 0.0 }
 0x7e0   : > { %v7637_v47 = vadd.f32 %v7636_v6, %v17084_v30  ;;  %v7914_v35 = vmax.f32 %v7633_v42, 0.0  ;;  %v13963_v6 = vld [vmem:[%s18695_s11 + $0xb4] ss:$8 sps:$4 sm:$0xff]  }
 0x7e1   : > { %v7915_v29 = vmax.f32 %v7635_v57, 0.0  ;;  %8329 = vmatmul.mubr.bf16.gmra.mrb[4].mxu0 %v17118_v22  ;;  %v13961_v57 = vld [vmem:[%s18695_s11 + $0xb0] ss:$8 sps:$4 sm:$0xff]   ;;  %9045 = vmatprep.subr.bf16.mxu1 %v13963_v6 }
 0x7e2   : > { %v7916_v34 = vmax.f32 %v7637_v47, 0.0  ;;  %8338 = vmatprep.mubr.bf16.mxu0 %v17138_v26  ;;  %9046 = vmatpush1.bf16.msra.mxu1 %v13961_v57 }
 0x7e3   : > { %v17190_v5 = vpack.c.bf16 %v7915_v29, %v7913_v60 }
 0x7e4   : > { %v7640_v45 = vpop.f32.mrb[156].mxu0  ;;  %v17195_v61 = vpack.c.bf16 %v7916_v34, %v7914_v35 }
 0x7e5   : > { %v7641_v33 = vadd.f32 %v7640_v45, %v17080_v17  ;;  %v7642_v49 = vpop.f32.mrb[157].mxu0 }
 0x7e6   : > { %v7643_v39 = vadd.f32 %v7642_v49, %v17084_v30  ;;  %v7644_v22 = vpop.f32.mrb[158].mxu0 }
 0x7e7   : > { %v7645_v25 = vadd.f32 %v7644_v22, %v17080_v17  ;;  %v7646_v26 = vpop.f32.mrb[159].mxu0  ;;  %v7917_v10 = vmax.f32 %v7641_v33, 0.0 }
 0x7e8   : > { %v7647_v3 = vadd.f32 %v7646_v26, %v17084_v30  ;;  %v7918_v23 = vmax.f32 %v7643_v39, 0.0 }
 0x7e9   : > { %v7919_v50 = vmax.f32 %v7645_v25, 0.0  ;;  %8339 = vmatmul.mubr.bf16.gmra.mrb[8].mxu0 %v17136_v8 }
 0x7ea   : > { %v7920_v42 = vmax.f32 %v7647_v3, 0.0  ;;  %8348 = vmatprep.mubr.bf16.mxu0 %v17156_v13 }
 0x7eb   : > { %v17203_v16 = vpack.c.bf16 %v7919_v50, %v7917_v10 }
 0x7ec   : > { %v7650_v47 = vpop.f32.mrb[160].mxu0  ;;  %v17211_v60 = vpack.c.bf16 %v7920_v42, %v7918_v23 }
 0x7ed   : > { %v7651_v29 = vadd.f32 %v7650_v47, %v17080_v17  ;;  %v7652_v8 = vpop.f32.mrb[161].mxu0 }
 0x7ee   : > { %v7653_v35 = vadd.f32 %v7652_v8, %v17084_v30  ;;  %v7654_v13 = vpop.f32.mrb[162].mxu0 }
 0x7ef   : > { %v7655_v34 = vadd.f32 %v7654_v13, %v17080_v17  ;;  %v7656_v32 = vpop.f32.mrb[163].mxu0  ;;  %v7921_v33 = vmax.f32 %v7651_v29, 0.0  ;;  %v13964_v13 = vld [vmem:[%s18695_s11 + $0xc0] ss:$8 sps:$4 sm:$0xff]  }
 0x7f0   : > { %v7657_v45 = vadd.f32 %v7656_v32, %v17084_v30  ;;  %v7922_v39 = vmax.f32 %v7653_v35, 0.0 }
 0x7f1   : > { %v7923_v49 = vmax.f32 %v7655_v34, 0.0  ;;  %8349 = vmatmul.mubr.bf16.gmra.mrb[12].mxu0 %v17148_v36  ;;  %v13966_v34 = vld [vmem:[%s18695_s11 + $0xc4] ss:$8 sps:$4 sm:$0xff]  }
 0x7f2   : > { %v7924_v22 = vmax.f32 %v7657_v45, 0.0  ;;  %8358 = vmatprep.mubr.bf16.mxu0 %v17165_v51  ;;  %9047 = vmatprep.subr.bf16.mxu1 %v13966_v34 }
 0x7f3   : > { %v17219_v25 = vpack.c.bf16 %v7923_v49, %v7921_v33  ;;  %9048 = vmatpush1.bf16.msra.mxu1 %v13964_v13 }
 0x7f4   : > { %v7660_v26 = vpop.f32.mrb[164].mxu0  ;;  %v17221_v3 = vpack.c.bf16 %v7924_v22, %v7922_v39 }
 0x7f5   : > { %v7661_v10 = vadd.f32 %v7660_v26, %v17080_v17  ;;  %v7662_v50 = vpop.f32.mrb[165].mxu0 }
 0x7f6   : > { %v7663_v23 = vadd.f32 %v7662_v50, %v17084_v30  ;;  %v7664_v42 = vpop.f32.mrb[166].mxu0 }
 0x7f7   : > { %v7665_v57 = vadd.f32 %v7664_v42, %v17080_v17  ;;  %v7666_v6 = vpop.f32.mrb[167].mxu0  ;;  %v7925_v47 = vmax.f32 %v7661_v10, 0.0 }
 0x7f8   : > { %v7667_v36 = vadd.f32 %v7666_v6, %v17084_v30  ;;  %v7926_v51 = vmax.f32 %v7663_v23, 0.0 }
 0x7f9   : > { %v7927_v29 = vmax.f32 %v7665_v57, 0.0  ;;  %8359 = vmatmul.mubr.bf16.gmra.mrb[16].mxu0 %v17163_v14 }
 0x7fa   : > { %v7928_v8 = vmax.f32 %v7667_v36, 0.0  ;;  %8368 = vmatprep.mubr.bf16.mxu0 %v17182_v0 }
 0x7fb   : > { %v17229_v35 = vpack.c.bf16 %v7927_v29, %v7925_v47 }
 0x7fc   : > { %v7670_v32 = vpop.f32.mrb[168].mxu0  ;;  %v17237_v45 = vpack.c.bf16 %v7928_v8, %v7926_v51 }
 0x7fd   : > { %v7671_v33 = vadd.f32 %v7670_v32, %v17080_v17  ;;  %v7672_v14 = vpop.f32.mrb[169].mxu0 }
 0x7fe   : > { %v7673_v49 = vadd.f32 %v7672_v14, %v17084_v30  ;;  %v7674_v0 = vpop.f32.mrb[170].mxu0 }
 0x7ff   : > { %v7675_v39 = vadd.f32 %v7674_v0, %v17080_v17  ;;  %v7676_v22 = vpop.f32.mrb[171].mxu0  ;;  %v7929_v10 = vmax.f32 %v7671_v33, 0.0  ;;  %v13967_v0 = vld [vmem:[%s18695_s11 + $0xd0] ss:$8 sps:$4 sm:$0xff]  }
 0x800   : > { %v7677_v26 = vadd.f32 %v7676_v22, %v17084_v30  ;;  %v7930_v23 = vmax.f32 %v7673_v49, 0.0  ;;  %v13970_v22 = vld [vmem:[%s18696_s12 + $0x10] sm:$0xff]  }
 0x801   : > { %v7931_v50 = vmax.f32 %v7675_v39, 0.0  ;;  %8369 = vmatmul.mubr.bf16.gmra.mrb[20].mxu0 %v17174_v24  ;;  %v13969_v39 = vld [vmem:[%s18695_s11 + $0xd4] ss:$8 sps:$4 sm:$0xff]   ;;  %12671 = vmatprep.subr.bf16.mxu0 %v13970_v22 }
 0x802   : > { %v7932_v42 = vmax.f32 %v7677_v26, 0.0  ;;  %8378 = vmatprep.mubr.bf16.mxu0 %v17195_v61  ;;  %9049 = vmatprep.subr.bf16.mxu1 %v13969_v39 }
 0x803   : > { %v17245_v57 = vpack.c.bf16 %v7931_v50, %v7929_v10  ;;  %9050 = vmatpush1.bf16.msra.mxu1 %v13967_v0  ;;  %12672 = vmatpush3.bf16.msra.mxu0 %v13970_v22 }
 0x804   : > { %v7680_v6 = vpop.f32.mrb[172].mxu0  ;;  %v17247_v36 = vpack.c.bf16 %v7932_v42, %v7930_v23 }
 0x805   : > { %v7681_v47 = vadd.f32 %v7680_v6, %v17080_v17  ;;  %v7682_v29 = vpop.f32.mrb[173].mxu0 }
 0x806   : > { %v7683_v51 = vadd.f32 %v7682_v29, %v17084_v30  ;;  %v7684_v8 = vpop.f32.mrb[174].mxu0 }
 0x807   : > { %v7685_v13 = vadd.f32 %v7684_v8, %v17080_v17  ;;  %v7686_v34 = vpop.f32.mrb[175].mxu0  ;;  %v7933_v32 = vmax.f32 %v7681_v47, 0.0 }
 0x808   : > { %v7687_v24 = vadd.f32 %v7686_v34, %v17084_v30  ;;  %v7934_v61 = vmax.f32 %v7683_v51, 0.0 }
 0x809   : > { %v7935_v33 = vmax.f32 %v7685_v13, 0.0  ;;  %8379 = vmatmul.mubr.bf16.gmra.mrb[24].mxu0 %v17190_v5 }
 0x80a   : > { %v7936_v14 = vmax.f32 %v7687_v24, 0.0  ;;  %8388 = vmatprep.mubr.bf16.mxu0 %v17211_v60 }
 0x80b   : > { %v17255_v49 = vpack.c.bf16 %v7935_v33, %v7933_v32 }
 0x80c   : > { %v7690_v26 = vpop.f32.mrb[176].mxu0  ;;  %v17266_v5 = vpack.c.bf16 %v7936_v14, %v7934_v61 }
 0x80d   : > { %v7691_v10 = vadd.f32 %v7690_v26, %v17080_v17  ;;  %v7692_v60 = vpop.f32.mrb[177].mxu0 }
 0x80e   : > { %v7693_v50 = vadd.f32 %v7692_v60, %v17084_v30  ;;  %v7694_v23 = vpop.f32.mrb[178].mxu0 }
 0x80f   : > { %v7695_v42 = vadd.f32 %v7694_v23, %v17080_v17  ;;  %v7696_v6 = vpop.f32.mrb[179].mxu0  ;;  %v7937_v29 = vmax.f32 %v7691_v10, 0.0  ;;  %v13971_v23 = vld [vmem:[%s18695_s11 + $0xe0] ss:$8 sps:$4 sm:$0xff]  }
 0x810   : > { %v7697_v47 = vadd.f32 %v7696_v6, %v17084_v30  ;;  %v7938_v8 = vmax.f32 %v7693_v50, 0.0 }
 0x811   : > { %v7939_v51 = vmax.f32 %v7695_v42, 0.0  ;;  %8389 = vmatmul.mubr.bf16.gmra.mrb[28].mxu0 %v17203_v16  ;;  %v13973_v42 = vld [vmem:[%s18695_s11 + $0xe4] ss:$8 sps:$4 sm:$0xff]  }
 0x812   : > { %v7940_v13 = vmax.f32 %v7697_v47, 0.0  ;;  %8398 = vmatprep.mubr.bf16.mxu0 %v17221_v3  ;;  %9051 = vmatprep.subr.bf16.mxu1 %v13973_v42 }
 0x813   : > { %v17274_v34 = vpack.c.bf16 %v7939_v51, %v7937_v29  ;;  %9052 = vmatpush1.bf16.msra.mxu1 %v13971_v23 }
 0x814   : > { %v7700_v24 = vpop.f32.mrb[180].mxu0  ;;  %v17276_v32 = vpack.c.bf16 %v7940_v13, %v7938_v8 }
 0x815   : > { %v7701_v33 = vadd.f32 %v7700_v24, %v17080_v17  ;;  %v7702_v61 = vpop.f32.mrb[181].mxu0 }
 0x816   : > { %v7703_v14 = vadd.f32 %v7702_v61, %v17084_v30  ;;  %v7704_v0 = vpop.f32.mrb[182].mxu0 }
 0x817   : > { %v7705_v39 = vadd.f32 %v7704_v0, %v17080_v17  ;;  %v7706_v22 = vpop.f32.mrb[183].mxu0  ;;  %v7941_v26 = vmax.f32 %v7701_v33, 0.0 }
 0x818   : > { %v7707_v16 = vadd.f32 %v7706_v22, %v17084_v30  ;;  %v7942_v3 = vmax.f32 %v7703_v14, 0.0 }
 0x819   : > { %v7943_v10 = vmax.f32 %v7705_v39, 0.0  ;;  %8399 = vmatmul.mubr.bf16.gmra.mrb[32].mxu0 %v17219_v25 }
 0x81a   : > { %v7944_v60 = vmax.f32 %v7707_v16, 0.0  ;;  %8408 = vmatprep.mubr.bf16.mxu0 %v17237_v45 }
 0x81b   : > { %v17284_v50 = vpack.c.bf16 %v7943_v10, %v7941_v26 }
 0x81c   : > { %v7710_v6 = vpop.f32.mrb[184].mxu0  ;;  %v17292_v47 = vpack.c.bf16 %v7944_v60, %v7942_v3 }
 0x81d   : > { %v7711_v29 = vadd.f32 %v7710_v6, %v17080_v17  ;;  %v7712_v25 = vpop.f32.mrb[185].mxu0 }
 0x81e   : > { %v7713_v51 = vadd.f32 %v7712_v25, %v17084_v30  ;;  %v7714_v45 = vpop.f32.mrb[186].mxu0 }
 0x81f   : > { %v7715_v8 = vadd.f32 %v7714_v45, %v17080_v17  ;;  %v7716_v13 = vpop.f32.mrb[187].mxu0  ;;  %v7945_v33 = vmax.f32 %v7711_v29, 0.0  ;;  %v13974_v45 = vld [vmem:[%s18695_s11 + $0xf0] ss:$8 sps:$4 sm:$0xff]  }
 0x820   : > { %v7717_v24 = vadd.f32 %v7716_v13, %v17084_v30  ;;  %v7946_v14 = vmax.f32 %v7713_v51, 0.0 }
 0x821   : > { %v7947_v61 = vmax.f32 %v7715_v8, 0.0  ;;  %8409 = vmatmul.mubr.bf16.gmra.mrb[36].mxu0 %v17229_v35  ;;  %v13976_v8 = vld [vmem:[%s18695_s11 + $0xf4] ss:$8 sps:$4 sm:$0xff]  }
 0x822   : > { %v7948_v0 = vmax.f32 %v7717_v24, 0.0  ;;  %8418 = vmatprep.mubr.bf16.mxu0 %v17247_v36  ;;  %9053 = vmatprep.subr.bf16.mxu1 %v13976_v8 }
 0x823   : > { %v17300_v39 = vpack.c.bf16 %v7947_v61, %v7945_v33  ;;  %9054 = vmatpush1.bf16.msra.mxu1 %v13974_v45 }
 0x824   : > { %v7720_v22 = vpop.f32.mrb[188].mxu0  ;;  %v17302_v16 = vpack.c.bf16 %v7948_v0, %v7946_v14 }
 0x825   : > { %v7721_v26 = vadd.f32 %v7720_v22, %v17080_v17  ;;  %v7722_v10 = vpop.f32.mrb[189].mxu0 }
 0x826   : > { %v7723_v3 = vadd.f32 %v7722_v10, %v17084_v30  ;;  %v7724_v60 = vpop.f32.mrb[190].mxu0 }
 0x827   : > { %v7725_v23 = vadd.f32 %v7724_v60, %v17080_v17  ;;  %v7726_v42 = vpop.f32.mrb[191].mxu0  ;;  %v7949_v6 = vmax.f32 %v7721_v26, 0.0 }
 0x828   : > { %v7727_v35 = vadd.f32 %v7726_v42, %v17084_v30  ;;  %v7950_v36 = vmax.f32 %v7723_v3, 0.0 }
 0x829   : > { %v7951_v29 = vmax.f32 %v7725_v23, 0.0  ;;  %8419 = vmatmul.mubr.bf16.gmra.mrb[40].mxu0 %v17245_v57 }
 0x82a   : > { %v7952_v25 = vmax.f32 %v7727_v35, 0.0  ;;  %8428 = vmatprep.mubr.bf16.mxu0 %v17266_v5 }
 0x82b   : > { %v17310_v51 = vpack.c.bf16 %v7951_v29, %v7949_v6 }
 0x82c   : > { %v7730_v13 = vpop.f32.mrb[192].mxu0  ;;  %v17318_v24 = vpack.c.bf16 %v7952_v25, %v7950_v36 }
 0x82d   : > { %v7731_v33 = vadd.f32 %v7730_v13, %v17080_v17  ;;  %v7732_v57 = vpop.f32.mrb[193].mxu0 }
 0x82e   : > { %v7733_v61 = vadd.f32 %v7732_v57, %v17084_v30  ;;  %v7734_v5 = vpop.f32.mrb[194].mxu0 }
 0x82f   : > { %v7735_v14 = vadd.f32 %v7734_v5, %v17080_v17  ;;  %v7736_v0 = vpop.f32.mrb[195].mxu0  ;;  %v7953_v26 = vmax.f32 %v7731_v33, 0.0 }
 0x830   : > { %v7737_v22 = vadd.f32 %v7736_v0, %v17084_v30  ;;  %v7954_v3 = vmax.f32 %v7733_v61, 0.0 }
 0x831   : > { %v7955_v10 = vmax.f32 %v7735_v14, 0.0  ;;  %8429 = vmatmul.mubr.bf16.gmra.mrb[44].mxu0 %v17255_v49 }
 0x832   : > { %v7956_v60 = vmax.f32 %v7737_v22, 0.0  ;;  %8438 = vmatprep.mubr.bf16.mxu0 %v17276_v32  ;;  %v13977_v32 = vld [vmem:[%s18696_s12 + $0x18] sm:$0xff]  }
 0x833   : > { %v17326_v23 = vpack.c.bf16 %v7955_v10, %v7953_v26  ;;  %12673 = vmatprep.subr.bf16.mxu0 %v13977_v32 }
 0x834   : > { %v7740_v42 = vpop.f32.mrb[196].mxu0  ;;  %v17328_v35 = vpack.c.bf16 %v7956_v60, %v7954_v3  ;;  %12674 = vmatpush3.bf16.msra.mxu0 %v13977_v32 }
 0x835   : > { %v7741_v6 = vadd.f32 %v7740_v42, %v17080_v17  ;;  %v7742_v29 = vpop.f32.mrb[197].mxu0 }
 0x836   : > { %v7743_v36 = vadd.f32 %v7742_v29, %v17084_v30  ;;  %v7744_v25 = vpop.f32.mrb[198].mxu0 }
 0x837   : > { %v7745_v45 = vadd.f32 %v7744_v25, %v17080_v17  ;;  %v7746_v8 = vpop.f32.mrb[199].mxu0  ;;  %v7957_v13 = vmax.f32 %v7741_v6, 0.0 }
 0x838   : > { %v7747_v49 = vadd.f32 %v7746_v8, %v17084_v30  ;;  %v7958_v57 = vmax.f32 %v7743_v36, 0.0 }
 0x839   : > { %v7959_v33 = vmax.f32 %v7745_v45, 0.0  ;;  %8439 = vmatmul.mubr.bf16.gmra.mrb[48].mxu0 %v17274_v34 }
 0x83a   : > { %v7960_v61 = vmax.f32 %v7747_v49, 0.0  ;;  %8448 = vmatprep.mubr.bf16.mxu0 %v17292_v47 }
 0x83b   : > { %v17339_v5 = vpack.c.bf16 %v7959_v33, %v7957_v13 }
 0x83c   : > { %v7750_v14 = vpop.f32.mrb[200].mxu0  ;;  %v17341_v0 = vpack.c.bf16 %v7960_v61, %v7958_v57 }
 0x83d   : > { %v7751_v22 = vadd.f32 %v7750_v14, %v17080_v17  ;;  %v7752_v26 = vpop.f32.mrb[201].mxu0 }
 0x83e   : > { %v7753_v10 = vadd.f32 %v7752_v26, %v17084_v30  ;;  %v7754_v3 = vpop.f32.mrb[202].mxu0 }
 0x83f   : > { %v7755_v60 = vadd.f32 %v7754_v3, %v17080_v17  ;;  %v7756_v34 = vpop.f32.mrb[203].mxu0  ;;  %v7961_v6 = vmax.f32 %v7751_v22, 0.0 }
 0x840   : > { %v7757_v42 = vadd.f32 %v7756_v34, %v17084_v30  ;;  %v7962_v29 = vmax.f32 %v7753_v10, 0.0 }
 0x841   : > { %v7963_v47 = vmax.f32 %v7755_v60, 0.0  ;;  %8449 = vmatmul.mubr.bf16.gmra.mrb[52].mxu0 %v17284_v50 }
 0x842   : > { %v7964_v36 = vmax.f32 %v7757_v42, 0.0  ;;  %8458 = vmatprep.mubr.bf16.mxu0 %v17302_v16 }
 0x843   : > { %v17349_v25 = vpack.c.bf16 %v7963_v47, %v7961_v6 }
 0x844   : > { %v7760_v45 = vpop.f32.mrb[204].mxu0  ;;  %v17351_v8 = vpack.c.bf16 %v7964_v36, %v7962_v29 }
 0x845   : > { %v7761_v49 = vadd.f32 %v7760_v45, %v17080_v17  ;;  %v7762_v32 = vpop.f32.mrb[205].mxu0 }
 0x846   : > { %v7763_v13 = vadd.f32 %v7762_v32, %v17084_v30  ;;  %v7764_v33 = vpop.f32.mrb[206].mxu0 }
 0x847   : > { %v7765_v57 = vadd.f32 %v7764_v33, %v17080_v17  ;;  %v7766_v61 = vpop.f32.mrb[207].mxu0  ;;  %v7965_v14 = vmax.f32 %v7761_v49, 0.0 }
 0x848   : > { %v7767_v50 = vadd.f32 %v7766_v61, %v17084_v30  ;;  %v7966_v16 = vmax.f32 %v7763_v13, 0.0 }
 0x849   : > { %v7967_v22 = vmax.f32 %v7765_v57, 0.0  ;;  %8459 = vmatmul.mubr.bf16.gmra.mrb[56].mxu0 %v17300_v39  ;;  %v13978_v39 = vld [vmem:[%s18696_s12 + $0x20] sm:$0xff]   ;;  %v13979_v57 = vld [vmem:[%s18696_s12 + $0x28] sm:$0x1f]  }
 0x84a   : > { %v7968_v26 = vmax.f32 %v7767_v50, 0.0  ;;  %8468 = vmatprep.mubr.bf16.mxu0 %v17318_v24  ;;  %12675 = vmatprep.subr.bf16.mxu0 %v13978_v39 }
 0x84b   : > { %v17359_v10 = vpack.c.bf16 %v7967_v22, %v7965_v14  ;;  %12676 = vmatpush3.bf16.msra.mxu0 %v13978_v39 }
 0x84c   : > { %v7770_v3 = vpop.f32.mrb[208].mxu0  ;;  %v17361_v60 = vpack.c.bf16 %v7968_v26, %v7966_v16  ;;  %13367 = vmatprep.subr.msk.bf16.mxu0 %vm1569_vm0, %v13979_v57 }
 0x84d   : > { %v7771_v34 = vadd.f32 %v7770_v3, %v17080_v17  ;;  %v7772_v42 = vpop.f32.mrb[209].mxu0 }
 0x84e   : > { %v7773_v6 = vadd.f32 %v7772_v42, %v17084_v30  ;;  %v7774_v47 = vpop.f32.mrb[210].mxu0 }
 0x84f   : > { %v7775_v29 = vadd.f32 %v7774_v47, %v17080_v17  ;;  %v7776_v36 = vpop.f32.mrb[211].mxu0  ;;  %v7969_v45 = vmax.f32 %v7771_v34, 0.0 }
 0x850   : > { %v7777_v24 = vadd.f32 %v7776_v36, %v17084_v30  ;;  %v7970_v32 = vmax.f32 %v7773_v6, 0.0 }
 0x851   : > { %v7971_v49 = vmax.f32 %v7775_v29, 0.0  ;;  %8469 = vmatmul.mubr.bf16.gmra.mrb[60].mxu0 %v17310_v51  ;;  %v9424_v51 = vsel %vm1569_vm0, %v13979_v57, 0 }
 0x852   : > { %v7972_v13 = vmax.f32 %v7777_v24, 0.0  ;;  %8478 = vmatprep.mubr.bf16.mxu0 %v17328_v35  ;;  %12678 = vmatpush3.bf16.msra.mxu0 %v9424_v51 }
 0x853   : > { %v17372_v33 = vpack.c.bf16 %v7971_v49, %v7969_v45 }
 0x854   : > { %v7780_v61 = vpop.f32.mrb[212].mxu0  ;;  %v17377_v50 = vpack.c.bf16 %v7972_v13, %v7970_v32 }
 0x855   : > { %v7781_v14 = vadd.f32 %v7780_v61, %v17080_v17  ;;  %v7782_v22 = vpop.f32.mrb[213].mxu0 }
 0x856   : > { %v7783_v16 = vadd.f32 %v7782_v22, %v17084_v30  ;;  %v7784_v35 = vpop.f32.mrb[214].mxu0 }
 0x857   : > { %v7785_v26 = vadd.f32 %v7784_v35, %v17080_v17  ;;  %v7786_v3 = vpop.f32.mrb[215].mxu0  ;;  %v7973_v42 = vmax.f32 %v7781_v14, 0.0 }
 0x858   : > { %v7787_v34 = vadd.f32 %v7786_v3, %v17084_v30  ;;  %v7974_v47 = vmax.f32 %v7783_v16, 0.0 }
 0x859   : > { %v7975_v6 = vmax.f32 %v7785_v26, 0.0  ;;  %8479 = vmatmul.mubr.bf16.gmra.mrb[64].mxu0 %v17326_v23 }
 0x85a   : > { %v7976_v29 = vmax.f32 %v7787_v34, 0.0  ;;  %8488 = vmatprep.mubr.bf16.mxu0 %v17341_v0 }
 0x85b   : > { %v17387_v36 = vpack.c.bf16 %v7975_v6, %v7973_v42 }
 0x85c   : > { %v7790_v39 = vpop.f32.mrb[216].mxu0  ;;  %v8060_v24 = vpack.c.bf16 %v7976_v29, %v7974_v47 }
 0x85d   : > { %v7791_v45 = vadd.f32 %v7790_v39, %v17080_v17  ;;  %v7792_v49 = vpop.f32.mrb[217].mxu0 }
 0x85e   : > { %v7793_v32 = vadd.f32 %v7792_v49, %v17084_v30  ;;  %v7794_v13 = vpop.f32.mrb[218].mxu0 }
 0x85f   : > { %v7795_v57 = vadd.f32 %v7794_v13, %v17080_v17  ;;  %v7796_v61 = vpop.f32.mrb[219].mxu0  ;;  %v7977_v23 = vmax.f32 %v7791_v45, 0.0 }
 0x860   : > { %v7797_v14 = vadd.f32 %v7796_v61, %v17084_v30  ;;  %v7978_v0 = vmax.f32 %v7793_v32, 0.0 }
 0x861   : > { %v7979_v22 = vmax.f32 %v7795_v57, 0.0  ;;  %8489 = vmatmul.mubr.bf16.gmra.mrb[68].mxu0 %v17339_v5 }
 0x862   : > { %v7980_v51 = vmax.f32 %v7797_v14, 0.0  ;;  %8498 = vmatprep.mubr.bf16.mxu0 %v17351_v8 }
 0x863   : > { %v17395_v16 = vpack.c.bf16 %v7979_v22, %v7977_v23 }
 0x864   : > { %v7800_v35 = vpop.f32.mrb[220].mxu0  ;;  %v8062_v26 = vpack.c.bf16 %v7980_v51, %v7978_v0 }
 0x865   : > { %v7801_v3 = vadd.f32 %v7800_v35, %v17080_v17  ;;  %v7802_v34 = vpop.f32.mrb[221].mxu0 }
 0x866   : > { %v7803_v42 = vadd.f32 %v7802_v34, %v17084_v30  ;;  %v7804_v6 = vpop.f32.mrb[222].mxu0 }
 0x867   : > { %v7805_v47 = vadd.f32 %v7804_v6, %v17080_v17  ;;  %v7806_v29 = vpop.f32.mrb[223].mxu0  ;;  %v7981_v5 = vmax.f32 %v7801_v3, 0.0 }
 0x868   : > { %v7807_v39 = vadd.f32 %v7806_v29, %v17084_v30  ;;  %v7982_v8 = vmax.f32 %v7803_v42, 0.0 }
 0x869   : > { %v7983_v45 = vmax.f32 %v7805_v47, 0.0  ;;  %8499 = vmatmul.mubr.bf16.gmra.mrb[72].mxu0 %v17349_v25 }
 0x86a   : > { %v7984_v49 = vmax.f32 %v7807_v39, 0.0  ;;  %8508 = vmatprep.mubr.bf16.mxu0 %v17361_v60 }
 0x86b   : > { %v17403_v32 = vpack.c.bf16 %v7983_v45, %v7981_v5 }
 0x86c   : > { %v7810_v13 = vpop.f32.mrb[224].mxu0  ;;  %v8064_v57 = vpack.c.bf16 %v7984_v49, %v7982_v8 }
 0x86d   : > { %v7811_v61 = vadd.f32 %v7810_v13, %v17080_v17  ;;  %v7812_v14 = vpop.f32.mrb[225].mxu0 }
 0x86e   : > { %v7813_v23 = vadd.f32 %v7812_v14, %v17084_v30  ;;  %v7814_v22 = vpop.f32.mrb[226].mxu0 }
 0x86f   : > { %v7815_v0 = vadd.f32 %v7814_v22, %v17080_v17  ;;  %v7816_v51 = vpop.f32.mrb[227].mxu0  ;;  %v7985_v25 = vmax.f32 %v7811_v61, 0.0 }
 0x870   : > { %v7817_v35 = vadd.f32 %v7816_v51, %v17084_v30  ;;  %v7986_v60 = vmax.f32 %v7813_v23, 0.0 }
 0x871   : > { %v7987_v3 = vmax.f32 %v7815_v0, 0.0  ;;  %8509 = vmatmul.mubr.bf16.gmra.mrb[76].mxu0 %v17359_v10 }
 0x872   : > { %v7988_v34 = vmax.f32 %v7817_v35, 0.0  ;;  %8518 = vmatprep.mubr.bf16.mxu0 %v17377_v50 }
 0x873   : > { %v17411_v42 = vpack.c.bf16 %v7987_v3, %v7985_v25 }
 0x874   : > { %v7820_v6 = vpop.f32.mrb[228].mxu0  ;;  %v8066_v47 = vpack.c.bf16 %v7988_v34, %v7986_v60 }
 0x875   : > { %v7821_v29 = vadd.f32 %v7820_v6, %v17080_v17  ;;  %v7822_v39 = vpop.f32.mrb[229].mxu0 }
 0x876   : > { %v7823_v5 = vadd.f32 %v7822_v39, %v17084_v30  ;;  %v7824_v45 = vpop.f32.mrb[230].mxu0 }
 0x877   : > { %v7825_v8 = vadd.f32 %v7824_v45, %v17080_v17  ;;  %v7826_v49 = vpop.f32.mrb[231].mxu0  ;;  %v7989_v10 = vmax.f32 %v7821_v29, 0.0 }
 0x878   : > { %v7827_v13 = vadd.f32 %v7826_v49, %v17084_v30  ;;  %v7990_v50 = vmax.f32 %v7823_v5, 0.0 }
 0x879   : > { %v7991_v61 = vmax.f32 %v7825_v8, 0.0  ;;  %8519 = vmatmul.mubr.bf16.gmra.mrb[80].mxu0 %v17372_v33 }
 0x87a   : > { %v7992_v14 = vmax.f32 %v7827_v13, 0.0  ;;  %8528 = vmatprep.mubr.bf16.mxu0 %v8060_v24 }
 0x87b   : > { %v17418_v23 = vpack.c.bf16 %v7991_v61, %v7989_v10 }
 0x87c   : > { %v7830_v22 = vpop.f32.mrb[232].mxu0  ;;  %v8068_v0 = vpack.c.bf16 %v7992_v14, %v7990_v50 }
 0x87d   : > { %v7831_v51 = vadd.f32 %v7830_v22, %v17080_v17  ;;  %v7832_v35 = vpop.f32.mrb[233].mxu0 }
 0x87e   : > { %v7833_v25 = vadd.f32 %v7832_v35, %v17084_v30  ;;  %v7834_v3 = vpop.f32.mrb[234].mxu0 }
 0x87f   : > { %v7835_v60 = vadd.f32 %v7834_v3, %v17080_v17  ;;  %v7836_v34 = vpop.f32.mrb[235].mxu0  ;;  %v7993_v29 = vmax.f32 %v7831_v51, 0.0 }
 0x880   : > { %v7837_v6 = vadd.f32 %v7836_v34, %v17084_v30  ;;  %v7994_v24 = vmax.f32 %v7833_v25, 0.0 }
 0x881   : > { %v7995_v33 = vmax.f32 %v7835_v60, 0.0  ;;  %8529 = vmatmul.mubr.bf16.gmra.mrb[84].mxu0 %v17387_v36 }
 0x882   : > { %v7996_v39 = vmax.f32 %v7837_v6, 0.0  ;;  %8538 = vmatprep.mubr.bf16.mxu0 %v8062_v26 }
 0x883   : > { %v17425_v5 = vpack.c.bf16 %v7995_v33, %v7993_v29 }
 0x884   : > { %v7840_v45 = vpop.f32.mrb[236].mxu0  ;;  %v8070_v8 = vpack.c.bf16 %v7996_v39, %v7994_v24 }
 0x885   : > { %v7841_v49 = vadd.f32 %v7840_v45, %v17080_v17  ;;  %v7842_v13 = vpop.f32.mrb[237].mxu0 }
 0x886   : > { %v7843_v10 = vadd.f32 %v7842_v13, %v17084_v30  ;;  %v7844_v61 = vpop.f32.mrb[238].mxu0 }
 0x887   : > { %v7845_v50 = vadd.f32 %v7844_v61, %v17080_v17  ;;  %v7846_v14 = vpop.f32.mrb[239].mxu0  ;;  %v7997_v51 = vmax.f32 %v7841_v49, 0.0 }
 0x888   : > { %v7847_v22 = vadd.f32 %v7846_v14, %v17084_v30  ;;  %v7998_v26 = vmax.f32 %v7843_v10, 0.0 }
 0x889   : > { %v7999_v36 = vmax.f32 %v7845_v50, 0.0  ;;  %8539 = vmatmul.mubr.bf16.gmra.mrb[88].mxu0 %v17395_v16 }
 0x88a   : > { %v8000_v35 = vmax.f32 %v7847_v22, 0.0  ;;  %8548 = vmatprep.mubr.bf16.mxu0 %v8064_v57 }
 0x88b   : > { %v17432_v25 = vpack.c.bf16 %v7999_v36, %v7997_v51 }
 0x88c   : > { %v7850_v3 = vpop.f32.mrb[240].mxu0  ;;  %v17434_v60 = vpack.c.bf16 %v8000_v35, %v7998_v26 }
 0x88d   : > { %v7851_v34 = vadd.f32 %v7850_v3, %v17080_v17  ;;  %v7852_v6 = vpop.f32.mrb[241].mxu0 }
 0x88e   : > { %v7853_v29 = vadd.f32 %v7852_v6, %v17084_v30  ;;  %v7854_v33 = vpop.f32.mrb[242].mxu0 }
 0x88f   : > { %v7855_v24 = vadd.f32 %v7854_v33, %v17080_v17  ;;  %v7856_v39 = vpop.f32.mrb[243].mxu0  ;;  %v8001_v16 = vmax.f32 %v7851_v34, 0.0 }
 0x890   : > { %v7857_v45 = vadd.f32 %v7856_v39, %v17084_v30  ;;  %v8002_v57 = vmax.f32 %v7853_v29, 0.0 }
 0x891   : > { %v8003_v49 = vmax.f32 %v7855_v24, 0.0  ;;  %8549 = vmatmul.mubr.bf16.gmra.mrb[92].mxu0 %v17403_v32  ;;  %v17452_v32 = vld [vmem:[%s18698_s14] sm:$0xff]  }
 0x892   : > { %v8004_v13 = vmax.f32 %v7857_v45, 0.0  ;;  %8558 = vmatprep.mubr.bf16.mxu0 %v8066_v47  ;;  %12743 = vmatprep.subr.bf16.mxu1 %v17452_v32 }
 0x893   : > { %v17441_v10 = vpack.c.bf16 %v8003_v49, %v8001_v16 }
 0x894   : > { %v7860_v61 = vpop.f32.mrb[244].mxu0  ;;  %v17443_v50 = vpack.c.bf16 %v8004_v13, %v8002_v57 }
 0x895   : > { %v7861_v14 = vadd.f32 %v7860_v61, %v17080_v17  ;;  %v7862_v22 = vpop.f32.mrb[245].mxu0 }
 0x896   : > { %v7863_v51 = vadd.f32 %v7862_v22, %v17084_v30  ;;  %v7864_v36 = vpop.f32.mrb[246].mxu0 }
 0x897   : > { %v7865_v26 = vadd.f32 %v7864_v36, %v17080_v17  ;;  %v7866_v35 = vpop.f32.mrb[247].mxu0  ;;  %v8005_v47 = vmax.f32 %v7861_v14, 0.0 }
 0x898   : > { %v7867_v3 = vadd.f32 %v7866_v35, %v17084_v30  ;;  %v8006_v6 = vmax.f32 %v7863_v51, 0.0 }
 0x899   : > { %v8007_v34 = vmax.f32 %v7865_v26, 0.0  ;;  %8559 = vmatmul.mubr.bf16.gmra.mrb[96].mxu0 %v17411_v42 }
 0x89a   : > { %v8008_v29 = vmax.f32 %v7867_v3, 0.0  ;;  %8568 = vmatprep.mubr.bf16.mxu0 %v8068_v0 }
 0x89b   : > { %v17456_v33 = vpack.c.bf16 %v8007_v34, %v8005_v47 }
 0x89c   : > { %v7870_v24 = vpop.f32.mrb[248].mxu0  ;;  %v17458_v39 = vpack.c.bf16 %v8008_v29, %v8006_v6  ;;  %v8114_v29 = vld [vmem:[%s18694_s10] sm:$0x3] }
 0x89d   : > { %v7871_v45 = vadd.f32 %v7870_v24, %v17080_v17  ;;  %v7872_v16 = vpop.f32.mrb[249].mxu0 }
 0x89e   : > { %v7873_v49 = vadd.f32 %v7872_v16, %v17084_v30  ;;  %v7874_v57 = vpop.f32.mrb[250].mxu0 }
 0x89f   : > { %v7875_v13 = vadd.f32 %v7874_v57, %v17080_v17  ;;  %v7876_v61 = vpop.f32.mrb[251].mxu0  ;;  %v8009_v14 = vmax.f32 %v7871_v45, 0.0 }
 0x8a0   : > { %v7877_v42 = vadd.f32 %v7876_v61, %v17084_v30  ;;  %v8010_v22 = vmax.f32 %v7873_v49, 0.0  ;;  %v17478_v49 = vrot.slane %v8114_v29, %v15253_v58  ;;  %v17482_v61 = vrot.slane %v8114_v29, %v15258_v27 }
 0x8a1   : > { %v8011_v0 = vmax.f32 %v7875_v13, 0.0  ;;  %8569 = vmatmul.mubr.bf16.gmra.mrb[100].mxu0 %v17418_v23 }
 0x8a2   : > { %v8012_v51 = vmax.f32 %v7877_v42, 0.0  ;;  %8578 = vmatprep.mubr.bf16.mxu0 %v8070_v8 }
 0x8a3   : > { %v17465_v36 = vpack.c.bf16 %v8011_v0, %v8009_v14 }
 0x8a4   : > { %v7880_v26 = vpop.f32.mrb[252].mxu0  ;;  %v17467_v35 = vpack.c.bf16 %v8012_v51, %v8010_v22 }
 0x8a5   : > { %v7881_v3 = vadd.f32 %v7880_v26, %v17080_v17  ;;  %v7882_v47 = vpop.f32.mrb[253].mxu0 }
 0x8a6   : > { %v7883_v34 = vadd.f32 %v7882_v47, %v17084_v30  ;;  %v7884_v6 = vpop.f32.mrb[254].mxu0 }
 0x8a7   : > { %v7885_v23 = vadd.f32 %v7884_v6, %v17080_v17  ;;  %v7886_v24 = vpop.f32.mrb[255].mxu0  ;;  %v8013_v45 = vmax.f32 %v7881_v3, 0.0 }
 0x8a8   : > { %v7887_v8 = vadd.f32 %v7886_v24, %v17084_v30  ;;  %v8014_v57 = vmax.f32 %v7883_v34, 0.0 }
 0x8a9   : > { %v8015_v16 = vmax.f32 %v7885_v23, 0.0  ;;  %8579 = vmatmul.mubr.bf16.gmra.mrb[104].mxu0 %v17425_v5 }
 0x8aa   : > { %v8016_v13 = vmax.f32 %v7887_v8, 0.0  ;;  %8588 = vmatprep.mubr.bf16.mxu0 %v17434_v60 }
 0x8ab   : > { %v17484_v42 = vpack.c.bf16 %v8015_v16, %v8013_v45 }
 0x8ac   : > { %v8320_v17 = vpop.f32.mrb[0].mxu0  ;;  %v17486_v14 = vpack.c.bf16 %v8016_v13, %v8014_v57 }
 0x8ad   : > { %v8321_v30 = vadd.f32 %v8320_v17, %v17478_v49  ;;  %v8322_v0 = vpop.f32.mrb[1].mxu0 }
 0x8ae   : > { %v8323_v5 = vadd.f32 %v8322_v0, %v17482_v61  ;;  %v8324_v22 = vpop.f32.mrb[2].mxu0 }
 0x8af   : > { %v8325_v58 = vadd.f32 %v8324_v22, %v17478_v49  ;;  %v8326_v51 = vpop.f32.mrb[3].mxu0  ;;  %v8639_v60 = vmax.f32 %v8321_v30, 0.0 }
 0x8b0   : > { %v8327_v26 = vadd.f32 %v8326_v51, %v17482_v61  ;;  %v8640_v27 = vmax.f32 %v8323_v5, 0.0 }
 0x8b1   : > { %v8641_v3 = vmax.f32 %v8325_v58, 0.0  ;;  %8589 = vmatmul.mubr.bf16.gmra.mrb[108].mxu0 %v17432_v25 }
 0x8b2   : > { %v8642_v47 = vmax.f32 %v8327_v26, 0.0  ;;  %8598 = vmatprep.mubr.bf16.mxu0 %v17443_v50  ;;  %v13981_v50 = vld [vmem:[%s18698_s14 + $0x8] sm:$0xff]  }
 0x8b3   : > { %v8767_v34 = vpack.c.bf16 %v8641_v3, %v8639_v60 }
 0x8b4   : > { %v8768_v6 = vpack.c.bf16 %v8642_v47, %v8640_v27  ;;  %v8330_v29 = vpop.f32.mrb[4].mxu0 }
 0x8b5   : > { %v8331_v23 = vadd.f32 %v8330_v29, %v17478_v49  ;;  %v8332_v24 = vpop.f32.mrb[5].mxu0 }
 0x8b6   : > { %v8333_v8 = vadd.f32 %v8332_v24, %v17482_v61  ;;  %v8334_v45 = vpop.f32.mrb[6].mxu0  ;;  %9055 = vmatprep.mubr.bf16.mxu1 %v8768_v6 }
 0x8b7   : > { %v8335_v16 = vadd.f32 %v8334_v45, %v17478_v49  ;;  %v8336_v57 = vpop.f32.mrb[7].mxu0  ;;  %9056 = vmatmul.mubr.bf16.vlgmr.msra.gmra.mrb[128].mxu1 %v8767_v34  ;;  %v8643_v13 = vmax.f32 %v8331_v23, 0.0 }
 0x8b8   : > { %v8337_v25 = vadd.f32 %v8336_v57, %v17482_v61  ;;  %12744 = vmatpush3.bf16.msra.mxu1 %v17452_v32  ;;  %v8644_v30 = vmax.f32 %v8333_v8, 0.0 }
 0x8b9   : > { %v8645_v17 = vmax.f32 %v8335_v16, 0.0  ;;  %8599 = vmatmul.mubr.bf16.gmra.mrb[112].mxu0 %v17441_v10  ;;  %12745 = vmatprep.subr.bf16.mxu1 %v13981_v50 }
 0x8ba   : > { %v8646_v0 = vmax.f32 %v8337_v25, 0.0  ;;  %8608 = vmatprep.mubr.bf16.mxu0 %v17458_v39 }
 0x8bb   : > { %v8769_v5 = vpack.c.bf16 %v8645_v17, %v8643_v13 }
 0x8bc   : > { %v8770_v22 = vpack.c.bf16 %v8646_v0, %v8644_v30  ;;  %v8340_v58 = vpop.f32.mrb[8].mxu0  ;;  %12746 = vmatpush3.bf16.msra.mxu1 %v13981_v50 }
 0x8bd   : > { %v8341_v51 = vadd.f32 %v8340_v58, %v17478_v49  ;;  %v8342_v32 = vpop.f32.mrb[9].mxu0 }
 0x8be   : > { %v8343_v26 = vadd.f32 %v8342_v32, %v17482_v61  ;;  %v8344_v60 = vpop.f32.mrb[10].mxu0  ;;  %9065 = vmatprep.mubr.bf16.mxu1 %v8770_v22 }
 0x8bf   : > { %v8345_v3 = vadd.f32 %v8344_v60, %v17478_v49  ;;  %v8346_v27 = vpop.f32.mrb[11].mxu0  ;;  %9066 = vmatmul.mubr.bf16.gmra.mrb[132].mxu1 %v8769_v5  ;;  %v8647_v47 = vmax.f32 %v8341_v51, 0.0 }
 0x8c0   : > { %v8347_v10 = vadd.f32 %v8346_v27, %v17482_v61  ;;  %v8648_v34 = vmax.f32 %v8343_v26, 0.0 }
 0x8c1   : > { %v8649_v39 = vmax.f32 %v8345_v3, 0.0  ;;  %8609 = vmatmul.mubr.bf16.gmra.mrb[116].mxu0 %v17456_v33 }
 0x8c2   : > { %v8650_v6 = vmax.f32 %v8347_v10, 0.0  ;;  %8618 = vmatprep.mubr.bf16.mxu0 %v17467_v35 }
 0x8c3   : > { %v8771_v29 = vpack.c.bf16 %v8649_v39, %v8647_v47 }
 0x8c4   : > { %v8772_v23 = vpack.c.bf16 %v8650_v6, %v8648_v34  ;;  %v8350_v24 = vpop.f32.mrb[12].mxu0 }
 0x8c5   : > { %v8351_v8 = vadd.f32 %v8350_v24, %v17478_v49  ;;  %v8352_v45 = vpop.f32.mrb[13].mxu0 }
 0x8c6   : > { %v8353_v16 = vadd.f32 %v8352_v45, %v17482_v61  ;;  %v8354_v57 = vpop.f32.mrb[14].mxu0  ;;  %9075 = vmatprep.mubr.bf16.mxu1 %v8772_v23 }
 0x8c7   : > { %v8355_v25 = vadd.f32 %v8354_v57, %v17478_v49  ;;  %v8356_v50 = vpop.f32.mrb[15].mxu0  ;;  %9076 = vmatmul.mubr.bf16.gmra.mrb[136].mxu1 %v8771_v29  ;;  %v8651_v13 = vmax.f32 %v8351_v8, 0.0 }
 0x8c8   : > { %v8357_v33 = vadd.f32 %v8356_v50, %v17482_v61  ;;  %v8652_v35 = vmax.f32 %v8353_v16, 0.0 }
 0x8c9   : > { %v8653_v17 = vmax.f32 %v8355_v25, 0.0  ;;  %8619 = vmatmul.mubr.bf16.gmra.mrb[120].mxu0 %v17465_v36 }
 0x8ca   : > { %v8654_v30 = vmax.f32 %v8357_v33, 0.0  ;;  %8628 = vmatprep.mubr.bf16.mxu0 %v17486_v14 }
 0x8cb   : > { %v8773_v0 = vpack.c.bf16 %v8653_v17, %v8651_v13 }
 0x8cc   : > { %v8774_v5 = vpack.c.bf16 %v8654_v30, %v8652_v35  ;;  %v8360_v22 = vpop.f32.mrb[16].mxu0 }
 0x8cd   : > { %v8361_v58 = vadd.f32 %v8360_v22, %v17478_v49  ;;  %v8362_v51 = vpop.f32.mrb[17].mxu0 }
 0x8ce   : > { %v8363_v32 = vadd.f32 %v8362_v51, %v17482_v61  ;;  %v8364_v26 = vpop.f32.mrb[18].mxu0  ;;  %9085 = vmatprep.mubr.bf16.mxu1 %v8774_v5 }
 0x8cf   : > { %v8365_v60 = vadd.f32 %v8364_v26, %v17478_v49  ;;  %v8366_v3 = vpop.f32.mrb[19].mxu0  ;;  %9086 = vmatmul.mubr.bf16.gmra.mrb[140].mxu1 %v8773_v0  ;;  %v8655_v27 = vmax.f32 %v8361_v58, 0.0 }
 0x8d0   : > { %v8367_v36 = vadd.f32 %v8366_v3, %v17482_v61  ;;  %v8656_v14 = vmax.f32 %v8363_v32, 0.0 }
 0x8d1   : > { %v8657_v10 = vmax.f32 %v8365_v60, 0.0  ;;  %8629 = vmatmul.mubr.bf16.gmra.mrb[124].mxu0 %v17484_v42 }
 0x8d2   : > { %v8658_v47 = vmax.f32 %v8367_v36, 0.0  ;;  %12679 = vmatprep.mubr.msk.bf16.mxu0 %vm1472_vm1, %v14854_v63  ;;  %v13982_v63 = vld [vmem:[%s18698_s14 + $0x10] sm:$0xff]  }
 0x8d3   : > { %v8775_v39 = vpack.c.bf16 %v8657_v10, %v8655_v27  ;;  %12747 = vmatprep.subr.bf16.mxu1 %v13982_v63 }
 0x8d4   : > { %v8776_v34 = vpack.c.bf16 %v8658_v47, %v8656_v14  ;;  %v8370_v6 = vpop.f32.mrb[20].mxu0  ;;  %12748 = vmatpush3.bf16.msra.mxu1 %v13982_v63 }
 0x8d5   : > { %v8371_v29 = vadd.f32 %v8370_v6, %v17478_v49  ;;  %v8372_v23 = vpop.f32.mrb[21].mxu0 }
 0x8d6   : > { %v8373_v24 = vadd.f32 %v8372_v23, %v17482_v61  ;;  %v8374_v8 = vpop.f32.mrb[22].mxu0  ;;  %9095 = vmatprep.mubr.bf16.mxu1 %v8776_v34 }
 0x8d7   : > { %v8375_v45 = vadd.f32 %v8374_v8, %v17478_v49  ;;  %v8376_v16 = vpop.f32.mrb[23].mxu0  ;;  %9096 = vmatmul.mubr.bf16.gmra.mrb[144].mxu1 %v8775_v39  ;;  %v8659_v57 = vmax.f32 %v8371_v29, 0.0 }
 0x8d8   : > { %v8377_v42 = vadd.f32 %v8376_v16, %v17482_v61  ;;  %v8660_v50 = vmax.f32 %v8373_v24, 0.0 }
 0x8d9   : > { %v8661_v25 = vmax.f32 %v8375_v45, 0.0  ;;  %12680 = vmatmul.mubr.msk.bf16.vlgmr.msra.gmra.mrb[128].mxu0 %vm1472_vm1, %v14875_v46 }
 0x8da   : > { %v8662_v33 = vmax.f32 %v8377_v42, 0.0  ;;  %12683 = vmatprep.mubr.msk.bf16.mxu0 %vm1472_vm1, %v14902_v2 }
 0x8db   : > { %v8777_v13 = vpack.c.bf16 %v8661_v25, %v8659_v57 }
 0x8dc   : > { %v8778_v17 = vpack.c.bf16 %v8662_v33, %v8660_v50  ;;  %v8380_v35 = vpop.f32.mrb[24].mxu0 }
 0x8dd   : > { %v8381_v30 = vadd.f32 %v8380_v35, %v17478_v49  ;;  %v8382_v0 = vpop.f32.mrb[25].mxu0 }
 0x8de   : > { %v8383_v5 = vadd.f32 %v8382_v0, %v17482_v61  ;;  %v8384_v22 = vpop.f32.mrb[26].mxu0  ;;  %9105 = vmatprep.mubr.bf16.mxu1 %v8778_v17 }
 0x8df   : > { %v8385_v58 = vadd.f32 %v8384_v22, %v17478_v49  ;;  %v8386_v46 = vpop.f32.mrb[27].mxu0  ;;  %9106 = vmatmul.mubr.bf16.gmra.mrb[148].mxu1 %v8777_v13  ;;  %v8663_v32 = vmax.f32 %v8381_v30, 0.0 }
 0x8e0   : > { %v8387_v51 = vadd.f32 %v8386_v46, %v17482_v61  ;;  %v8664_v26 = vmax.f32 %v8383_v5, 0.0 }
 0x8e1   : > { %v8665_v2 = vmax.f32 %v8385_v58, 0.0  ;;  %12684 = vmatmul.mubr.msk.bf16.gmra.mrb[132].mxu0 %vm1472_vm1, %v14923_v62 }
 0x8e2   : > { %v8666_v60 = vmax.f32 %v8387_v51, 0.0  ;;  %12687 = vmatprep.mubr.msk.bf16.mxu0 %vm1472_vm1, %v14944_v4 }
 0x8e3   : > { %v8779_v3 = vpack.c.bf16 %v8665_v2, %v8663_v32 }
 0x8e4   : > { %v8780_v36 = vpack.c.bf16 %v8666_v60, %v8664_v26  ;;  %v8390_v27 = vpop.f32.mrb[28].mxu0 }
 0x8e5   : > { %v8391_v10 = vadd.f32 %v8390_v27, %v17478_v49  ;;  %v8392_v14 = vpop.f32.mrb[29].mxu0 }
 0x8e6   : > { %v8393_v47 = vadd.f32 %v8392_v14, %v17482_v61  ;;  %v8394_v39 = vpop.f32.mrb[30].mxu0  ;;  %9115 = vmatprep.mubr.bf16.mxu1 %v8780_v36 }
 0x8e7   : > { %v8395_v34 = vadd.f32 %v8394_v39, %v17478_v49  ;;  %v8396_v6 = vpop.f32.mrb[31].mxu0  ;;  %9116 = vmatmul.mubr.bf16.gmra.mrb[152].mxu1 %v8779_v3  ;;  %v8667_v29 = vmax.f32 %v8391_v10, 0.0 }
 0x8e8   : > { %v8397_v62 = vadd.f32 %v8396_v6, %v17482_v61  ;;  %v8668_v4 = vmax.f32 %v8393_v47, 0.0 }
 0x8e9   : > { %v8669_v23 = vmax.f32 %v8395_v34, 0.0  ;;  %12688 = vmatmul.mubr.msk.bf16.gmra.mrb[136].mxu0 %vm1472_vm1, %v14965_v1 }
 0x8ea   : > { %v8670_v24 = vmax.f32 %v8397_v62, 0.0  ;;  %12691 = vmatprep.mubr.msk.bf16.mxu0 %vm1472_vm1, %v14977_v44 }
 0x8eb   : > { %v8781_v8 = vpack.c.bf16 %v8669_v23, %v8667_v29 }
 0x8ec   : > { %v8782_v45 = vpack.c.bf16 %v8670_v24, %v8668_v4  ;;  %v8400_v16 = vpop.f32.mrb[32].mxu0 }
 0x8ed   : > { %v8401_v42 = vadd.f32 %v8400_v16, %v17478_v49  ;;  %v8402_v63 = vpop.f32.mrb[33].mxu0 }
 0x8ee   : > { %v8403_v57 = vadd.f32 %v8402_v63, %v17482_v61  ;;  %v8404_v25 = vpop.f32.mrb[34].mxu0  ;;  %9125 = vmatprep.mubr.bf16.mxu1 %v8782_v45 }
 0x8ef   : > { %v8405_v50 = vadd.f32 %v8404_v25, %v17478_v49  ;;  %v8406_v33 = vpop.f32.mrb[35].mxu0  ;;  %9126 = vmatmul.mubr.bf16.gmra.mrb[156].mxu1 %v8781_v8  ;;  %v8671_v13 = vmax.f32 %v8401_v42, 0.0 }
 0x8f0   : > { %v8407_v1 = vadd.f32 %v8406_v33, %v17482_v61  ;;  %v8672_v44 = vmax.f32 %v8403_v57, 0.0 }
 0x8f1   : > { %v8673_v17 = vmax.f32 %v8405_v50, 0.0  ;;  %12692 = vmatmul.mubr.msk.bf16.gmra.mrb[140].mxu0 %vm1472_vm1, %v15000_v56 }
 0x8f2   : > { %v8674_v35 = vmax.f32 %v8407_v1, 0.0  ;;  %12695 = vmatprep.mubr.msk.bf16.mxu0 %vm1472_vm1, %v15009_v20  ;;  %v13983_v20 = vld [vmem:[%s18698_s14 + $0x18] sm:$0xff]  }
 0x8f3   : > { %v8783_v30 = vpack.c.bf16 %v8673_v17, %v8671_v13  ;;  %12749 = vmatprep.subr.bf16.mxu1 %v13983_v20 }
 0x8f4   : > { %v8784_v0 = vpack.c.bf16 %v8674_v35, %v8672_v44  ;;  %v8410_v5 = vpop.f32.mrb[36].mxu0  ;;  %12750 = vmatpush3.bf16.msra.mxu1 %v13983_v20 }
 0x8f5   : > { %v8411_v22 = vadd.f32 %v8410_v5, %v17478_v49  ;;  %v8412_v58 = vpop.f32.mrb[37].mxu0 }
 0x8f6   : > { %v8413_v46 = vadd.f32 %v8412_v58, %v17482_v61  ;;  %v8414_v51 = vpop.f32.mrb[38].mxu0  ;;  %9135 = vmatprep.mubr.bf16.mxu1 %v8784_v0 }
 0x8f7   : > { %v8415_v32 = vadd.f32 %v8414_v51, %v17478_v49  ;;  %v8416_v2 = vpop.f32.mrb[39].mxu0  ;;  %9136 = vmatmul.mubr.bf16.gmra.mrb[160].mxu1 %v8783_v30  ;;  %v8675_v26 = vmax.f32 %v8411_v22, 0.0 }
 0x8f8   : > { %v8417_v56 = vadd.f32 %v8416_v2, %v17482_v61  ;;  %v8676_v3 = vmax.f32 %v8413_v46, 0.0 }
 0x8f9   : > { %v8677_v60 = vmax.f32 %v8415_v32, 0.0  ;;  %12696 = vmatmul.mubr.msk.bf16.gmra.mrb[144].mxu0 %vm1472_vm1, %v15024_v31 }
 0x8fa   : > { %v8678_v36 = vmax.f32 %v8417_v56, 0.0  ;;  %12699 = vmatprep.mubr.msk.bf16.mxu0 %vm1472_vm1, %v15033_v38 }
 0x8fb   : > { %v8785_v27 = vpack.c.bf16 %v8677_v60, %v8675_v26 }
 0x8fc   : > { %v8786_v10 = vpack.c.bf16 %v8678_v36, %v8676_v3  ;;  %v8420_v14 = vpop.f32.mrb[40].mxu0 }
 0x8fd   : > { %v8421_v47 = vadd.f32 %v8420_v14, %v17478_v49  ;;  %v8422_v39 = vpop.f32.mrb[41].mxu0 }
 0x8fe   : > { %v8423_v34 = vadd.f32 %v8422_v39, %v17482_v61  ;;  %v8424_v6 = vpop.f32.mrb[42].mxu0  ;;  %9145 = vmatprep.mubr.bf16.mxu1 %v8786_v10 }
 0x8ff   : > { %v8425_v62 = vadd.f32 %v8424_v6, %v17478_v49  ;;  %v8426_v31 = vpop.f32.mrb[43].mxu0  ;;  %9146 = vmatmul.mubr.bf16.gmra.mrb[164].mxu1 %v8785_v27  ;;  %v8679_v23 = vmax.f32 %v8421_v47, 0.0 }
 0x900   : > { %v8427_v29 = vadd.f32 %v8426_v31, %v17482_v61  ;;  %v8680_v4 = vmax.f32 %v8423_v34, 0.0 }
 0x901   : > { %v8681_v38 = vmax.f32 %v8425_v62, 0.0  ;;  %12700 = vmatmul.mubr.msk.bf16.gmra.mrb[148].mxu0 %vm1472_vm1, %v15048_v41 }
 0x902   : > { %v8682_v24 = vmax.f32 %v8427_v29, 0.0  ;;  %12703 = vmatprep.mubr.msk.bf16.mxu0 %vm1472_vm1, %v15057_v7 }
 0x903   : > { %v8787_v8 = vpack.c.bf16 %v8681_v38, %v8679_v23 }
 0x904   : > { %v8788_v45 = vpack.c.bf16 %v8682_v24, %v8680_v4  ;;  %v8430_v16 = vpop.f32.mrb[44].mxu0 }
 0x905   : > { %v8431_v42 = vadd.f32 %v8430_v16, %v17478_v49  ;;  %v8432_v63 = vpop.f32.mrb[45].mxu0 }
 0x906   : > { %v8433_v57 = vadd.f32 %v8432_v63, %v17482_v61  ;;  %v8434_v25 = vpop.f32.mrb[46].mxu0  ;;  %9155 = vmatprep.mubr.bf16.mxu1 %v8788_v45 }
 0x907   : > { %v8435_v50 = vadd.f32 %v8434_v25, %v17478_v49  ;;  %v8436_v33 = vpop.f32.mrb[47].mxu0  ;;  %9156 = vmatmul.mubr.bf16.gmra.mrb[168].mxu1 %v8787_v8  ;;  %v8683_v1 = vmax.f32 %v8431_v42, 0.0 }
 0x908   : > { %v8437_v41 = vadd.f32 %v8436_v33, %v17482_v61  ;;  %v8684_v7 = vmax.f32 %v8433_v57, 0.0 }
 0x909   : > { %v8685_v13 = vmax.f32 %v8435_v50, 0.0  ;;  %12704 = vmatmul.mubr.msk.bf16.gmra.mrb[152].mxu0 %vm1472_vm1, %v15079_v52 }
 0x90a   : > { %v8686_v17 = vmax.f32 %v8437_v41, 0.0  ;;  %12707 = vmatprep.mubr.msk.bf16.mxu0 %vm1472_vm1, %v15089_v48 }
 0x90b   : > { %v8789_v44 = vpack.c.bf16 %v8685_v13, %v8683_v1 }
 0x90c   : > { %v8790_v35 = vpack.c.bf16 %v8686_v17, %v8684_v7  ;;  %v8440_v30 = vpop.f32.mrb[48].mxu0 }
 0x90d   : > { %v8441_v0 = vadd.f32 %v8440_v30, %v17478_v49  ;;  %v8442_v5 = vpop.f32.mrb[49].mxu0 }
 0x90e   : > { %v8443_v22 = vadd.f32 %v8442_v5, %v17482_v61  ;;  %v8444_v58 = vpop.f32.mrb[50].mxu0  ;;  %9165 = vmatprep.mubr.bf16.mxu1 %v8790_v35 }
 0x90f   : > { %v8445_v46 = vadd.f32 %v8444_v58, %v17478_v49  ;;  %v8446_v51 = vpop.f32.mrb[51].mxu0  ;;  %9166 = vmatmul.mubr.bf16.gmra.mrb[172].mxu1 %v8789_v44  ;;  %v8687_v32 = vmax.f32 %v8441_v0, 0.0 }
 0x910   : > { %v8447_v52 = vadd.f32 %v8446_v51, %v17482_v61  ;;  %v8688_v48 = vmax.f32 %v8443_v22, 0.0  ;;  %v13985_v22 = vld [vmem:[%s18698_s14 + $0x28] sm:$0xff]  }
 0x911   : > { %v8689_v2 = vmax.f32 %v8445_v46, 0.0  ;;  %12708 = vmatmul.mubr.msk.bf16.gmra.mrb[156].mxu0 %vm1472_vm1, %v15111_v19 }
 0x912   : > { %v8690_v56 = vmax.f32 %v8447_v52, 0.0  ;;  %12711 = vmatprep.mubr.msk.bf16.mxu0 %vm1472_vm1, %v15121_v53  ;;  %v13984_v53 = vld [vmem:[%s18698_s14 + $0x20] sm:$0xff]  }
 0x913   : > { %v8791_v20 = vpack.c.bf16 %v8689_v2, %v8687_v32  ;;  %12751 = vmatprep.subr.bf16.mxu1 %v13984_v53 }
 0x914   : > { %v8792_v26 = vpack.c.bf16 %v8690_v56, %v8688_v48  ;;  %v8450_v60 = vpop.f32.mrb[52].mxu0  ;;  %12752 = vmatpush3.bf16.msra.mxu1 %v13984_v53 }
 0x915   : > { %v8451_v3 = vadd.f32 %v8450_v60, %v17478_v49  ;;  %v8452_v36 = vpop.f32.mrb[53].mxu0  ;;  %12753 = vmatprep.subr.bf16.mxu1 %v13985_v22 }
 0x916   : > { %v8453_v27 = vadd.f32 %v8452_v36, %v17482_v61  ;;  %v8454_v10 = vpop.f32.mrb[54].mxu0  ;;  %9175 = vmatprep.mubr.bf16.mxu1 %v8792_v26 }
 0x917   : > { %v8455_v14 = vadd.f32 %v8454_v10, %v17478_v49  ;;  %v8456_v47 = vpop.f32.mrb[55].mxu0  ;;  %9176 = vmatmul.mubr.bf16.gmra.mrb[176].mxu1 %v8791_v20  ;;  %v8691_v39 = vmax.f32 %v8451_v3, 0.0 }
 0x918   : > { %v8457_v19 = vadd.f32 %v8456_v47, %v17482_v61  ;;  %v8692_v6 = vmax.f32 %v8453_v27, 0.0  ;;  %12754 = vmatpush3.bf16.msra.mxu1 %v13985_v22  ;;  %v13987_v27 = vld [vmem:[%s18698_s14 + $0x38] sm:$0xff]  }
 0x919   : > { %v8693_v34 = vmax.f32 %v8455_v14, 0.0  ;;  %12712 = vmatmul.mubr.msk.bf16.gmra.mrb[160].mxu0 %vm1472_vm1, %v15137_v11 }
 0x91a   : > { %v8694_v62 = vmax.f32 %v8457_v19, 0.0  ;;  %12715 = vmatprep.mubr.msk.bf16.mxu0 %vm1472_vm1, %v15147_v40 }
 0x91b   : > { %v8793_v31 = vpack.c.bf16 %v8693_v34, %v8691_v39 }
 0x91c   : > { %v8794_v29 = vpack.c.bf16 %v8694_v62, %v8692_v6  ;;  %v8460_v23 = vpop.f32.mrb[56].mxu0 }
 0x91d   : > { %v8461_v38 = vadd.f32 %v8460_v23, %v17478_v49  ;;  %v8462_v4 = vpop.f32.mrb[57].mxu0 }
 0x91e   : > { %v8463_v24 = vadd.f32 %v8462_v4, %v17482_v61  ;;  %v8464_v8 = vpop.f32.mrb[58].mxu0  ;;  %9185 = vmatprep.mubr.bf16.mxu1 %v8794_v29 }
 0x91f   : > { %v8465_v45 = vadd.f32 %v8464_v8, %v17478_v49  ;;  %v8466_v11 = vpop.f32.mrb[59].mxu0  ;;  %9186 = vmatmul.mubr.bf16.gmra.mrb[180].mxu1 %v8793_v31  ;;  %v8695_v42 = vmax.f32 %v8461_v38, 0.0 }
 0x920   : > { %v8467_v16 = vadd.f32 %v8466_v11, %v17482_v61  ;;  %v8696_v63 = vmax.f32 %v8463_v24, 0.0 }
 0x921   : > { %v8697_v40 = vmax.f32 %v8465_v45, 0.0  ;;  %12716 = vmatmul.mubr.msk.bf16.gmra.mrb[164].mxu0 %vm1472_vm1, %v15163_v15 }
 0x922   : > { %v8698_v57 = vmax.f32 %v8467_v16, 0.0  ;;  %12719 = vmatprep.mubr.msk.bf16.mxu0 %vm1472_vm1, %v15173_v55 }
 0x923   : > { %v8795_v25 = vpack.c.bf16 %v8697_v40, %v8695_v42 }
 0x924   : > { %v8796_v50 = vpack.c.bf16 %v8698_v57, %v8696_v63  ;;  %v8470_v33 = vpop.f32.mrb[60].mxu0 }
 0x925   : > { %v8471_v41 = vadd.f32 %v8470_v33, %v17478_v49  ;;  %v8472_v1 = vpop.f32.mrb[61].mxu0 }
 0x926   : > { %v8473_v13 = vadd.f32 %v8472_v1, %v17482_v61  ;;  %v8474_v7 = vpop.f32.mrb[62].mxu0  ;;  %9195 = vmatprep.mubr.bf16.mxu1 %v8796_v50 }
 0x927   : > { %v8475_v17 = vadd.f32 %v8474_v7, %v17478_v49  ;;  %v8476_v44 = vpop.f32.mrb[63].mxu0  ;;  %9196 = vmatmul.mubr.bf16.gmra.mrb[184].mxu1 %v8795_v25  ;;  %v8699_v35 = vmax.f32 %v8471_v41, 0.0 }
 0x928   : > { %v8477_v15 = vadd.f32 %v8476_v44, %v17482_v61  ;;  %v8700_v55 = vmax.f32 %v8473_v13, 0.0 }
 0x929   : > { %v8701_v30 = vmax.f32 %v8475_v17, 0.0  ;;  %12720 = vmatmul.mubr.msk.bf16.gmra.mrb[168].mxu0 %vm1472_vm1, %v15189_v28 }
 0x92a   : > { %v8702_v0 = vmax.f32 %v8477_v15, 0.0  ;;  %12723 = vmatprep.mubr.msk.bf16.mxu0 %vm1472_vm1, %v15199_v37  ;;  %v13986_v37 = vld [vmem:[%s18698_s14 + $0x30] sm:$0xff]  }
 0x92b   : > { %v8797_v5 = vpack.c.bf16 %v8701_v30, %v8699_v35  ;;  %12755 = vmatprep.subr.bf16.mxu1 %v13986_v37 }
 0x92c   : > { %v8798_v58 = vpack.c.bf16 %v8702_v0, %v8700_v55  ;;  %v8480_v46 = vpop.f32.mrb[64].mxu0  ;;  %12756 = vmatpush3.bf16.msra.mxu1 %v13986_v37  ;;  %v18734_v55 = vld [vmem:[#allocation7_spill] sm:$0xff]  ;;  %v18735_v37 = vld [vmem:[#allocation8_spill] sm:$0xff] }
 0x92d   : > { %v8481_v51 = vadd.f32 %v8480_v46, %v17478_v49  ;;  %v8482_v52 = vpop.f32.mrb[65].mxu0  ;;  %12757 = vmatprep.subr.bf16.mxu1 %v13987_v27 }
 0x92e   : > { %v8483_v32 = vadd.f32 %v8482_v52, %v17482_v61  ;;  %v8484_v2 = vpop.f32.mrb[66].mxu0  ;;  %9205 = vmatprep.mubr.bf16.mxu1 %v8798_v58 }
 0x92f   : > { %v8485_v28 = vadd.f32 %v8484_v2, %v17478_v49  ;;  %v8486_v48 = vpop.f32.mrb[67].mxu0  ;;  %9206 = vmatmul.mubr.bf16.gmra.mrb[188].mxu1 %v8797_v5  ;;  %v8703_v20 = vmax.f32 %v8481_v51, 0.0 }
 0x930   : > { %v8487_v56 = vadd.f32 %v8486_v48, %v17482_v61  ;;  %v8704_v60 = vmax.f32 %v8483_v32, 0.0  ;;  %12758 = vmatpush3.bf16.msra.mxu1 %v13987_v27 }
 0x931   : > { %v8705_v26 = vmax.f32 %v8485_v28, 0.0  ;;  %12724 = vmatmul.mubr.msk.bf16.gmra.mrb[172].mxu0 %vm1472_vm1, %v15215_v18 }
 0x932   : > { %v8706_v3 = vmax.f32 %v8487_v56, 0.0  ;;  %12727 = vmatprep.mubr.msk.bf16.mxu0 %vm1472_vm1, %v15225_v59 }
 0x933   : > { %v8799_v36 = vpack.c.bf16 %v8705_v26, %v8703_v20 }
 0x934   : > { %v8800_v10 = vpack.c.bf16 %v8706_v3, %v8704_v60  ;;  %v8490_v14 = vpop.f32.mrb[68].mxu0 }
 0x935   : > { %v8491_v47 = vadd.f32 %v8490_v14, %v17478_v49  ;;  %v8492_v19 = vpop.f32.mrb[69].mxu0 }
 0x936   : > { %v8493_v18 = vadd.f32 %v8492_v19, %v17482_v61  ;;  %v8494_v53 = vpop.f32.mrb[70].mxu0  ;;  %9215 = vmatprep.mubr.bf16.mxu1 %v8800_v10 }
 0x937   : > { %v8495_v39 = vadd.f32 %v8494_v53, %v17478_v49  ;;  %v8496_v59 = vpop.f32.mrb[71].mxu0  ;;  %9216 = vmatmul.mubr.bf16.gmra.mrb[192].mxu1 %v8799_v36  ;;  %v8707_v6 = vmax.f32 %v8491_v47, 0.0 }
 0x938   : > { %v8497_v34 = vadd.f32 %v8496_v59, %v17482_v61  ;;  %v8708_v31 = vmax.f32 %v8493_v18, 0.0 }
 0x939   : > { %v8709_v62 = vmax.f32 %v8495_v39, 0.0  ;;  %12728 = vmatmul.mubr.msk.bf16.gmra.mrb[176].mxu0 %vm1472_vm1, %v15241_v54 }
 0x93a   : > { %v8710_v29 = vmax.f32 %v8497_v34, 0.0  ;;  %12731 = vmatprep.mubr.msk.bf16.mxu0 %vm1472_vm1, %v15251_v43 }
 0x93b   : > { %v8801_v23 = vpack.c.bf16 %v8709_v62, %v8707_v6 }
 0x93c   : > { %v8802_v38 = vpack.c.bf16 %v8710_v29, %v8708_v31  ;;  %v8500_v4 = vpop.f32.mrb[72].mxu0 }
 0x93d   : > { %v8501_v24 = vadd.f32 %v8500_v4, %v17478_v49  ;;  %v8502_v8 = vpop.f32.mrb[73].mxu0 }
 0x93e   : > { %v8503_v45 = vadd.f32 %v8502_v8, %v17482_v61  ;;  %v8504_v11 = vpop.f32.mrb[74].mxu0  ;;  %9225 = vmatprep.mubr.bf16.mxu1 %v8802_v38 }
 0x93f   : > { %v8505_v16 = vadd.f32 %v8504_v11, %v17478_v49  ;;  %v8506_v42 = vpop.f32.mrb[75].mxu0  ;;  %9226 = vmatmul.mubr.bf16.gmra.mrb[196].mxu1 %v8801_v23  ;;  %v8711_v40 = vmax.f32 %v8501_v24, 0.0 }
 0x940   : > { %v8507_v54 = vadd.f32 %v8506_v42, %v17482_v61  ;;  %v8712_v43 = vmax.f32 %v8503_v45, 0.0 }
 0x941   : > { %v8713_v63 = vmax.f32 %v8505_v16, 0.0  ;;  %12732 = vmatmul.mubr.msk.bf16.gmra.mrb[180].mxu0 %vm1472_vm1, %v15281_v21 }
 0x942   : > { %v8714_v57 = vmax.f32 %v8507_v54, 0.0  ;;  %12735 = vmatprep.mubr.msk.bf16.mxu0 %vm1472_vm1, %v15299_v12 }
 0x943   : > { %v8803_v25 = vpack.c.bf16 %v8713_v63, %v8711_v40 }
 0x944   : > { %v8804_v50 = vpack.c.bf16 %v8714_v57, %v8712_v43  ;;  %v8510_v33 = vpop.f32.mrb[76].mxu0 }
 0x945   : > { %v8511_v41 = vadd.f32 %v8510_v33, %v17478_v49  ;;  %v8512_v1 = vpop.f32.mrb[77].mxu0 }
 0x946   : > { %v8513_v13 = vadd.f32 %v8512_v1, %v17482_v61  ;;  %v8514_v7 = vpop.f32.mrb[78].mxu0  ;;  %9235 = vmatprep.mubr.bf16.mxu1 %v8804_v50 }
 0x947   : > { %v8515_v17 = vadd.f32 %v8514_v7, %v17478_v49  ;;  %v8516_v44 = vpop.f32.mrb[79].mxu0  ;;  %9236 = vmatmul.mubr.bf16.gmra.mrb[200].mxu1 %v8803_v25  ;;  %v8715_v15 = vmax.f32 %v8511_v41, 0.0 }
 0x948   : > { %v8517_v21 = vadd.f32 %v8516_v44, %v17482_v61  ;;  %v8716_v12 = vmax.f32 %v8513_v13, 0.0 }
 0x949   : > { %v8717_v35 = vmax.f32 %v8515_v17, 0.0  ;;  %12736 = vmatmul.mubr.msk.bf16.gmra.mrb[184].mxu0 %vm1472_vm1, %v15323_v9 }
 0x94a   : > { %v8718_v30 = vmax.f32 %v8517_v21, 0.0  ;;  %12739 = vmatprep.mubr.msk.bf16.mxu0 %vm1472_vm1, %v18734_v55 }
 0x94b   : > { %v8805_v0 = vpack.c.bf16 %v8717_v35, %v8715_v15 }
 0x94c   : > { %v8806_v5 = vpack.c.bf16 %v8718_v30, %v8716_v12  ;;  %v8520_v22 = vpop.f32.mrb[80].mxu0 }
 0x94d   : > { %v8521_v58 = vadd.f32 %v8520_v22, %v17478_v49  ;;  %v8522_v46 = vpop.f32.mrb[81].mxu0 }
 0x94e   : > { %v8523_v51 = vadd.f32 %v8522_v46, %v17482_v61  ;;  %v8524_v52 = vpop.f32.mrb[82].mxu0  ;;  %9245 = vmatprep.mubr.bf16.mxu1 %v8806_v5 }
 0x94f   : > { %v8525_v32 = vadd.f32 %v8524_v52, %v17478_v49  ;;  %v8526_v2 = vpop.f32.mrb[83].mxu0  ;;  %9246 = vmatmul.mubr.bf16.gmra.mrb[204].mxu1 %v8805_v0  ;;  %v8719_v28 = vmax.f32 %v8521_v58, 0.0 }
 0x950   : > { %v8527_v9 = vadd.f32 %v8526_v2, %v17482_v61  ;;  %v8720_v56 = vmax.f32 %v8523_v51, 0.0 }
 0x951   : > { %v8721_v48 = vmax.f32 %v8525_v32, 0.0  ;;  %12740 = vmatmul.mubr.msk.bf16.gmra.mrb[188].mxu0 %vm1472_vm1, %v18735_v37 }
 0x952   : > { %v8722_v20 = vmax.f32 %v8527_v9, 0.0 }
 0x953   : > { %v8807_v26 = vpack.c.bf16 %v8721_v48, %v8719_v28 }
 0x954   : > { %v8808_v60 = vpack.c.bf16 %v8722_v20, %v8720_v56  ;;  %v8530_v3 = vpop.f32.mrb[84].mxu0 }
 0x955   : > { %v8531_v36 = vadd.f32 %v8530_v3, %v17478_v49  ;;  %v8532_v27 = vpop.f32.mrb[85].mxu0 }
 0x956   : > { %v8533_v10 = vadd.f32 %v8532_v27, %v17482_v61  ;;  %v8534_v14 = vpop.f32.mrb[86].mxu0  ;;  %9255 = vmatprep.mubr.bf16.mxu1 %v8808_v60 }
 0x957   : > { %v8535_v47 = vadd.f32 %v8534_v14, %v17478_v49  ;;  %v8536_v19 = vpop.f32.mrb[87].mxu0  ;;  %9256 = vmatmul.mubr.bf16.gmra.mrb[208].mxu1 %v8807_v26  ;;  %v8723_v53 = vmax.f32 %v8531_v36, 0.0 }
 0x958   : > { %v8537_v18 = vadd.f32 %v8536_v19, %v17482_v61  ;;  %v8724_v59 = vmax.f32 %v8533_v10, 0.0 }
 0x959   : > { %v8725_v39 = vmax.f32 %v8535_v47, 0.0 }
 0x95a   : > { %v8726_v34 = vmax.f32 %v8537_v18, 0.0 }
 0x95b   : > { %v8809_v6 = vpack.c.bf16 %v8725_v39, %v8723_v53 }
 0x95c   : > { %v8810_v62 = vpack.c.bf16 %v8726_v34, %v8724_v59  ;;  %v8540_v31 = vpop.f32.mrb[88].mxu0 }
 0x95d   : > { %v8541_v29 = vadd.f32 %v8540_v31, %v17478_v49  ;;  %v8542_v23 = vpop.f32.mrb[89].mxu0 }
 0x95e   : > { %v8543_v38 = vadd.f32 %v8542_v23, %v17482_v61  ;;  %v8544_v4 = vpop.f32.mrb[90].mxu0  ;;  %9265 = vmatprep.mubr.bf16.mxu1 %v8810_v62 }
 0x95f   : > { %v8545_v24 = vadd.f32 %v8544_v4, %v17478_v49  ;;  %v8546_v8 = vpop.f32.mrb[91].mxu0  ;;  %9266 = vmatmul.mubr.bf16.gmra.mrb[212].mxu1 %v8809_v6  ;;  %v8727_v11 = vmax.f32 %v8541_v29, 0.0 }
 0x960   : > { %v8547_v45 = vadd.f32 %v8546_v8, %v17482_v61  ;;  %v8728_v42 = vmax.f32 %v8543_v38, 0.0 }
 0x961   : > { %v8729_v16 = vmax.f32 %v8545_v24, 0.0 }
 0x962   : > { %v8730_v54 = vmax.f32 %v8547_v45, 0.0 }
 0x963   : > { %v8811_v40 = vpack.c.bf16 %v8729_v16, %v8727_v11 }
 0x964   : > { %v8812_v63 = vpack.c.bf16 %v8730_v54, %v8728_v42  ;;  %v8550_v43 = vpop.f32.mrb[92].mxu0 }
 0x965   : > { %v8551_v57 = vadd.f32 %v8550_v43, %v17478_v49  ;;  %v8552_v25 = vpop.f32.mrb[93].mxu0 }
 0x966   : > { %v8553_v50 = vadd.f32 %v8552_v25, %v17482_v61  ;;  %v8554_v33 = vpop.f32.mrb[94].mxu0  ;;  %9275 = vmatprep.mubr.bf16.mxu1 %v8812_v63 }
 0x967   : > { %v8555_v41 = vadd.f32 %v8554_v33, %v17478_v49  ;;  %v8556_v1 = vpop.f32.mrb[95].mxu0  ;;  %9276 = vmatmul.mubr.bf16.gmra.mrb[216].mxu1 %v8811_v40  ;;  %v8731_v7 = vmax.f32 %v8551_v57, 0.0 }
 0x968   : > { %v8557_v13 = vadd.f32 %v8556_v1, %v17482_v61  ;;  %v8732_v44 = vmax.f32 %v8553_v50, 0.0 }
 0x969   : > { %v8733_v17 = vmax.f32 %v8555_v41, 0.0 }
 0x96a   : > { %v8734_v21 = vmax.f32 %v8557_v13, 0.0 }
 0x96b   : > { %v8813_v15 = vpack.c.bf16 %v8733_v17, %v8731_v7 }
 0x96c   : > { %v8814_v35 = vpack.c.bf16 %v8734_v21, %v8732_v44  ;;  %v8560_v12 = vpop.f32.mrb[96].mxu0 }
 0x96d   : > { %v8561_v30 = vadd.f32 %v8560_v12, %v17478_v49  ;;  %v8562_v55 = vpop.f32.mrb[97].mxu0 }
 0x96e   : > { %v8563_v0 = vadd.f32 %v8562_v55, %v17482_v61  ;;  %v8564_v5 = vpop.f32.mrb[98].mxu0  ;;  %9285 = vmatprep.mubr.bf16.mxu1 %v8814_v35 }
 0x96f   : > { %v8565_v22 = vadd.f32 %v8564_v5, %v17478_v49  ;;  %v8566_v58 = vpop.f32.mrb[99].mxu0  ;;  %9286 = vmatmul.mubr.bf16.gmra.mrb[220].mxu1 %v8813_v15  ;;  %v8735_v51 = vmax.f32 %v8561_v30, 0.0 }
 0x970   : > { %v8567_v46 = vadd.f32 %v8566_v58, %v17482_v61  ;;  %v8736_v32 = vmax.f32 %v8563_v0, 0.0 }
 0x971   : > { %v8737_v52 = vmax.f32 %v8565_v22, 0.0 }
 0x972   : > { %v8738_v2 = vmax.f32 %v8567_v46, 0.0 }
 0x973   : > { %v8815_v9 = vpack.c.bf16 %v8737_v52, %v8735_v51 }
 0x974   : > { %v8816_v28 = vpack.c.bf16 %v8738_v2, %v8736_v32  ;;  %v8570_v48 = vpop.f32.mrb[100].mxu0 }
 0x975   : > { %v8571_v37 = vadd.f32 %v8570_v48, %v17478_v49  ;;  %v8572_v56 = vpop.f32.mrb[101].mxu0 }
 0x976   : > { %v8573_v20 = vadd.f32 %v8572_v56, %v17482_v61  ;;  %v8574_v26 = vpop.f32.mrb[102].mxu0  ;;  %9295 = vmatprep.mubr.bf16.mxu1 %v8816_v28 }
 0x977   : > { %v8575_v60 = vadd.f32 %v8574_v26, %v17478_v49  ;;  %v8576_v3 = vpop.f32.mrb[103].mxu0  ;;  %9296 = vmatmul.mubr.bf16.gmra.mrb[224].mxu1 %v8815_v9  ;;  %v8739_v27 = vmax.f32 %v8571_v37, 0.0 }
 0x978   : > { %v8577_v36 = vadd.f32 %v8576_v3, %v17482_v61  ;;  %v8740_v14 = vmax.f32 %v8573_v20, 0.0 }
 0x979   : > { %v8741_v10 = vmax.f32 %v8575_v60, 0.0 }
 0x97a   : > { %v8742_v47 = vmax.f32 %v8577_v36, 0.0 }
 0x97b   : > { %v8817_v19 = vpack.c.bf16 %v8741_v10, %v8739_v27 }
 0x97c   : > { %v8818_v18 = vpack.c.bf16 %v8742_v47, %v8740_v14  ;;  %v8580_v53 = vpop.f32.mrb[104].mxu0 }
 0x97d   : > { %v8581_v39 = vadd.f32 %v8580_v53, %v17478_v49  ;;  %v8582_v59 = vpop.f32.mrb[105].mxu0 }
 0x97e   : > { %v8583_v34 = vadd.f32 %v8582_v59, %v17482_v61  ;;  %v8584_v6 = vpop.f32.mrb[106].mxu0  ;;  %9305 = vmatprep.mubr.bf16.mxu1 %v8818_v18 }
 0x97f   : > { %v8585_v62 = vadd.f32 %v8584_v6, %v17478_v49  ;;  %v8586_v31 = vpop.f32.mrb[107].mxu0  ;;  %9306 = vmatmul.mubr.bf16.gmra.mrb[228].mxu1 %v8817_v19  ;;  %v8743_v23 = vmax.f32 %v8581_v39, 0.0 }
 0x980   : > { %v8587_v29 = vadd.f32 %v8586_v31, %v17482_v61  ;;  %v8744_v4 = vmax.f32 %v8583_v34, 0.0 }
 0x981   : > { %v8745_v38 = vmax.f32 %v8585_v62, 0.0 }
 0x982   : > { %v8746_v24 = vmax.f32 %v8587_v29, 0.0 }
 0x983   : > { %v8819_v8 = vpack.c.bf16 %v8745_v38, %v8743_v23 }
 0x984   : > { %v8820_v45 = vpack.c.bf16 %v8746_v24, %v8744_v4  ;;  %v8590_v11 = vpop.f32.mrb[108].mxu0 }
 0x985   : > { %v8591_v16 = vadd.f32 %v8590_v11, %v17478_v49  ;;  %v8592_v42 = vpop.f32.mrb[109].mxu0 }
 0x986   : > { %v8593_v54 = vadd.f32 %v8592_v42, %v17482_v61  ;;  %v8594_v40 = vpop.f32.mrb[110].mxu0  ;;  %9315 = vmatprep.mubr.bf16.mxu1 %v8820_v45 }
 0x987   : > { %v8595_v63 = vadd.f32 %v8594_v40, %v17478_v49  ;;  %v8596_v43 = vpop.f32.mrb[111].mxu0  ;;  %9316 = vmatmul.mubr.bf16.gmra.mrb[232].mxu1 %v8819_v8  ;;  %v8747_v25 = vmax.f32 %v8591_v16, 0.0 }
 0x988   : > { %v8597_v57 = vadd.f32 %v8596_v43, %v17482_v61  ;;  %v8748_v33 = vmax.f32 %v8593_v54, 0.0 }
 0x989   : > { %v8749_v50 = vmax.f32 %v8595_v63, 0.0 }
 0x98a   : > { %v8750_v41 = vmax.f32 %v8597_v57, 0.0  ;;  %v17695_v1 = vpop.f32.mrb[128].mxu1 }
 0x98b   : > { %v8821_v13 = vpack.c.bf16 %v8749_v50, %v8747_v25  ;;  %v17697_v7 = vpop.f32.mrb[129].mxu1 }
 0x98c   : > { %v8822_v17 = vpack.c.bf16 %v8750_v41, %v8748_v33  ;;  %v8600_v44 = vpop.f32.mrb[112].mxu0  ;;  %v17699_v21 = vpop.f32.mrb[130].mxu1 }
 0x98d   : > { %v8601_v15 = vadd.f32 %v8600_v44, %v17478_v49  ;;  %v8602_v35 = vpop.f32.mrb[113].mxu0  ;;  %v17702_v12 = vpop.f32.mrb[131].mxu1 }
 0x98e   : > { %v8603_v30 = vadd.f32 %v8602_v35, %v17482_v61  ;;  %v8604_v55 = vpop.f32.mrb[114].mxu0  ;;  %9325 = vmatprep.mubr.bf16.mxu1 %v8822_v17 }
 0x98f   : > { %v8605_v0 = vadd.f32 %v8604_v55, %v17478_v49  ;;  %v8606_v5 = vpop.f32.mrb[115].mxu0  ;;  %9326 = vmatmul.mubr.bf16.gmra.mrb[236].mxu1 %v8821_v13  ;;  %v8751_v58 = vmax.f32 %v8601_v15, 0.0 }
 0x990   : > { %v8607_v22 = vadd.f32 %v8606_v5, %v17482_v61  ;;  %v8752_v51 = vmax.f32 %v8603_v30, 0.0 }
 0x991   : > { %v8753_v46 = vmax.f32 %v8605_v0, 0.0 }
 0x992   : > { %v8754_v52 = vmax.f32 %v8607_v22, 0.0  ;;  %v17707_v32 = vpop.f32.mrb[132].mxu1 }
 0x993   : > { %v8823_v2 = vpack.c.bf16 %v8753_v46, %v8751_v58  ;;  %v17709_v9 = vpop.f32.mrb[133].mxu1 }
 0x994   : > { %v8824_v28 = vpack.c.bf16 %v8754_v52, %v8752_v51  ;;  %v8610_v48 = vpop.f32.mrb[116].mxu0  ;;  %v17711_v37 = vpop.f32.mrb[134].mxu1 }
 0x995   : > { %v8611_v56 = vadd.f32 %v8610_v48, %v17478_v49  ;;  %v8612_v20 = vpop.f32.mrb[117].mxu0  ;;  %v17714_v26 = vpop.f32.mrb[135].mxu1  ;;  %v17744_v48 = vld [vmem:[%s18697_s13] ss:$0 sm:$0xff] }
 0x996   : > { %v8613_v60 = vadd.f32 %v8612_v20, %v17482_v61  ;;  %v8614_v3 = vpop.f32.mrb[118].mxu0  ;;  %9335 = vmatprep.mubr.bf16.mxu1 %v8824_v28 }
 0x997   : > { %v8615_v36 = vadd.f32 %v8614_v3, %v17478_v49  ;;  %v8616_v27 = vpop.f32.mrb[119].mxu0  ;;  %9336 = vmatmul.mubr.bf16.gmra.mrb[240].mxu1 %v8823_v2  ;;  %v8755_v14 = vmax.f32 %v8611_v56, 0.0 }
 0x998   : > { %v8617_v10 = vadd.f32 %v8616_v27, %v17482_v61  ;;  %v8756_v19 = vmax.f32 %v8613_v60, 0.0 }
 0x999   : > { %v8757_v47 = vmax.f32 %v8615_v36, 0.0 }
 0x99a   : > { %v8758_v18 = vmax.f32 %v8617_v10, 0.0  ;;  %v17719_v53 = vpop.f32.mrb[136].mxu1 }
 0x99b   : > { %v8825_v39 = vpack.c.bf16 %v8757_v47, %v8755_v14  ;;  %v17721_v59 = vpop.f32.mrb[137].mxu1 }
 0x99c   : > { %v8826_v34 = vpack.c.bf16 %v8758_v18, %v8756_v19  ;;  %v8620_v6 = vpop.f32.mrb[120].mxu0  ;;  %v17723_v62 = vpop.f32.mrb[138].mxu1 }
 0x99d   : > { %v8621_v31 = vadd.f32 %v8620_v6, %v17478_v49  ;;  %v8622_v29 = vpop.f32.mrb[121].mxu0  ;;  %v17726_v23 = vpop.f32.mrb[139].mxu1 }
 0x99e   : > { %v8623_v38 = vadd.f32 %v8622_v29, %v17482_v61  ;;  %v8624_v4 = vpop.f32.mrb[122].mxu0  ;;  %9345 = vmatprep.mubr.bf16.mxu1 %v8826_v34 }
 0x99f   : > { %v8625_v24 = vadd.f32 %v8624_v4, %v17478_v49  ;;  %v8626_v8 = vpop.f32.mrb[123].mxu0  ;;  %9346 = vmatmul.mubr.bf16.gmra.mrb[244].mxu1 %v8825_v39  ;;  %v8759_v11 = vmax.f32 %v8621_v31, 0.0 }
 0x9a0   : > { %v8627_v45 = vadd.f32 %v8626_v8, %v17482_v61  ;;  %v8760_v42 = vmax.f32 %v8623_v38, 0.0 }
 0x9a1   : > { %v8761_v16 = vmax.f32 %v8625_v24, 0.0 }
 0x9a2   : > { %v8762_v54 = vmax.f32 %v8627_v45, 0.0  ;;  %v9087_v40 = vpop.f32.mrb[140].mxu1 }
 0x9a3   : > { %v8827_v63 = vpack.c.bf16 %v8761_v16, %v8759_v11  ;;  %v17731_v43 = vpop.f32.mrb[141].mxu1 }
 0x9a4   : > { %v8828_v57 = vpack.c.bf16 %v8762_v54, %v8760_v42  ;;  %v8630_v25 = vpop.f32.mrb[124].mxu0  ;;  %v9091_v50 = vpop.f32.mrb[142].mxu1 }
 0x9a5   : > { %v8631_v33 = vadd.f32 %v8630_v25, %v17478_v49  ;;  %v8632_v41 = vpop.f32.mrb[125].mxu0  ;;  %v17734_v13 = vpop.f32.mrb[143].mxu1 }
 0x9a6   : > { %v8633_v17 = vadd.f32 %v8632_v41, %v17482_v61  ;;  %v8634_v44 = vpop.f32.mrb[126].mxu0  ;;  %9355 = vmatprep.mubr.bf16.mxu1 %v8828_v57 }
 0x9a7   : > { %v8635_v15 = vadd.f32 %v8634_v44, %v17478_v49  ;;  %v8636_v35 = vpop.f32.mrb[127].mxu0  ;;  %9356 = vmatmul.mubr.bf16.gmra.mrb[248].mxu1 %v8827_v63  ;;  %v8763_v55 = vmax.f32 %v8631_v33, 0.0 }
 0x9a8   : > { %v8637_v30 = vadd.f32 %v8636_v35, %v17482_v61  ;;  %v8764_v5 = vmax.f32 %v8633_v17, 0.0 }
 0x9a9   : > { %v8765_v0 = vmax.f32 %v8635_v15, 0.0 }
 0x9aa   : > { %v8766_v22 = vmax.f32 %v8637_v30, 0.0  ;;  %v9097_v58 = vpop.f32.mrb[144].mxu1 }
 0x9ab   : > { %v8829_v46 = vpack.c.bf16 %v8765_v0, %v8763_v55  ;;  %v17739_v51 = vpop.f32.mrb[145].mxu1 }
 0x9ac   : > { %v8830_v52 = vpack.c.bf16 %v8766_v22, %v8764_v5  ;;  %v9101_v2 = vpop.f32.mrb[146].mxu1  ;;  %v12681_v28 = vpop.f32.mrb[128].mxu0 }
 0x9ad   : > { %v9717_v49 = vadd.f32 %v12681_v28, %v17707_v32  ;;  %v17747_v56 = vpop.f32.mrb[147].mxu1  ;;  %v9460_v61 = vpop.f32.mrb[129].mxu0 }
 0x9ae   : > { %v9715_v20 = vadd.f32 %v9460_v61, %v17695_v1  ;;  %9365 = vmatprep.mubr.bf16.mxu1 %v8830_v52  ;;  %v12682_v60 = vpop.f32.mrb[130].mxu0 }
 0x9af   : > { %v9788_v3 = vadd.f32 %v17744_v48, %v9717_v49  ;;  %v9718_v36 = vadd.f32 %v12682_v60, %v17711_v37  ;;  %9366 = vmatmul.mubr.bf16.gmra.mrb[252].mxu1 %v8829_v46  ;;  %v9463_v27 = vpop.f32.mrb[131].mxu0 }
 0x9b0   : > { %v9786_v10 = vadd.f32 %v17744_v48, %v9715_v20  ;;  %v9716_v14 = vadd.f32 %v9463_v27, %v17699_v21 }
 0x9b1   : > { %v9789_v47 = vadd.f32 %v17744_v48, %v9718_v36  ;;  %v9852_v18 = vmax.f32 %v9788_v3, 0.0 }
 0x9b2   : > { %v9787_v32 = vadd.f32 %v17744_v48, %v9716_v14  ;;  %v9107_v19 = vpop.f32.mrb[148].mxu1  ;;  %v9850_v34 = vmax.f32 %v9786_v10, 0.0 }
 0x9b3   : > { %v9853_v39 = vmax.f32 %v9789_v47, 0.0  ;;  %v17756_v1 = vpop.f32.mrb[149].mxu1 }
 0x9b4   : > { %v9851_v6 = vmax.f32 %v9787_v32, 0.0  ;;  %v9111_v31 = vpop.f32.mrb[150].mxu1  ;;  %v12685_v29 = vpop.f32.mrb[132].mxu0 }
 0x9b5   : > { %v9915_v37 = vpack.c.bf16 %v9853_v39, %v9852_v18  ;;  %v9721_v38 = vadd.f32 %v12685_v29, %v9087_v40  ;;  %v17758_v4 = vpop.f32.mrb[151].mxu1  ;;  %v9476_v24 = vpop.f32.mrb[133].mxu0 }
 0x9b6   : > { %v9719_v21 = vadd.f32 %v9476_v24, %v17719_v53  ;;  %v12686_v8 = vpop.f32.mrb[134].mxu0  ;;  %v9914_v45 = vpack.c.bf16 %v9851_v6, %v9850_v34 }
 0x9b7   : > { %v9792_v11 = vadd.f32 %v17744_v48, %v9721_v38  ;;  %v9722_v16 = vadd.f32 %v12686_v8, %v9091_v50  ;;  %v9479_v42 = vpop.f32.mrb[135].mxu0 }
 0x9b8   : > { %v9790_v54 = vadd.f32 %v17744_v48, %v9719_v21  ;;  %v9720_v63 = vadd.f32 %v9479_v42, %v17723_v62  ;;  %12759 = vmatprep.mubr.bf16.mxu1 %v9914_v45 }
 0x9b9   : > { %v9793_v57 = vadd.f32 %v17744_v48, %v9722_v16  ;;  %12760 = vmatmul.mubr.bf16.vlgmr.msra.gmra.mrb[0].mxu1 %v9915_v37  ;;  %v9856_v33 = vmax.f32 %v9792_v11, 0.0 }
 0x9ba   : > { %v9791_v40 = vadd.f32 %v17744_v48, %v9720_v63  ;;  %v9117_v25 = vpop.f32.mrb[152].mxu1  ;;  %v9854_v17 = vmax.f32 %v9790_v54, 0.0 }
 0x9bb   : > { %v9857_v41 = vmax.f32 %v9793_v57, 0.0  ;;  %v17766_v53 = vpop.f32.mrb[153].mxu1 }
 0x9bc   : > { %v9855_v44 = vmax.f32 %v9791_v40, 0.0  ;;  %v9121_v15 = vpop.f32.mrb[154].mxu1  ;;  %v12689_v50 = vpop.f32.mrb[136].mxu0 }
 0x9bd   : > { %v9917_v35 = vpack.c.bf16 %v9857_v41, %v9856_v33  ;;  %v9725_v30 = vadd.f32 %v12689_v50, %v9107_v19  ;;  %v17768_v55 = vpop.f32.mrb[155].mxu1  ;;  %v9492_v62 = vpop.f32.mrb[137].mxu0 }
 0x9be   : > { %v9723_v0 = vadd.f32 %v9492_v62, %v9097_v58  ;;  %v12690_v5 = vpop.f32.mrb[138].mxu0  ;;  %v9916_v22 = vpack.c.bf16 %v9855_v44, %v9854_v17 }
 0x9bf   : > { %v9796_v46 = vadd.f32 %v17744_v48, %v9725_v30  ;;  %v9726_v52 = vadd.f32 %v12690_v5, %v9111_v31  ;;  %v9495_v28 = vpop.f32.mrb[139].mxu0 }
 0x9c0   : > { %v9794_v49 = vadd.f32 %v17744_v48, %v9723_v0  ;;  %v9724_v61 = vadd.f32 %v9495_v28, %v9101_v2  ;;  %12763 = vmatprep.mubr.bf16.mxu1 %v9916_v22 }
 0x9c1   : > { %v9797_v20 = vadd.f32 %v17744_v48, %v9726_v52  ;;  %12764 = vmatmul.mubr.bf16.gmra.mrb[4].mxu1 %v9917_v35  ;;  %v9860_v36 = vmax.f32 %v9796_v46, 0.0 }
 0x9c2   : > { %v9795_v60 = vadd.f32 %v17744_v48, %v9724_v61  ;;  %v9127_v3 = vpop.f32.mrb[156].mxu1  ;;  %v9858_v58 = vmax.f32 %v9794_v49, 0.0 }
 0x9c3   : > { %v9861_v27 = vmax.f32 %v9797_v20, 0.0  ;;  %v17774_v10 = vpop.f32.mrb[157].mxu1 }
 0x9c4   : > { %v9859_v14 = vmax.f32 %v9795_v60, 0.0  ;;  %v9131_v47 = vpop.f32.mrb[158].mxu1  ;;  %v12693_v32 = vpop.f32.mrb[140].mxu0 }
 0x9c5   : > { %v9919_v19 = vpack.c.bf16 %v9861_v27, %v9860_v36  ;;  %v9729_v18 = vadd.f32 %v12693_v32, %v9127_v3  ;;  %v17776_v39 = vpop.f32.mrb[159].mxu1  ;;  %v9508_v2 = vpop.f32.mrb[141].mxu0 }
 0x9c6   : > { %v9727_v34 = vadd.f32 %v9508_v2, %v9117_v25  ;;  %v12694_v6 = vpop.f32.mrb[142].mxu0  ;;  %v9918_v31 = vpack.c.bf16 %v9859_v14, %v9858_v58 }
 0x9c7   : > { %v9800_v29 = vadd.f32 %v17744_v48, %v9729_v18  ;;  %v9730_v37 = vadd.f32 %v12694_v6, %v9131_v47  ;;  %v9511_v38 = vpop.f32.mrb[143].mxu0 }
 0x9c8   : > { %v9798_v24 = vadd.f32 %v17744_v48, %v9727_v34  ;;  %v9728_v21 = vadd.f32 %v9511_v38, %v9121_v15  ;;  %12767 = vmatprep.mubr.bf16.mxu1 %v9918_v31 }
 0x9c9   : > { %v9801_v8 = vadd.f32 %v17744_v48, %v9730_v37  ;;  %12768 = vmatmul.mubr.bf16.gmra.mrb[8].mxu1 %v9919_v19  ;;  %v9864_v16 = vmax.f32 %v9800_v29, 0.0 }
 0x9ca   : > { %v9799_v45 = vadd.f32 %v17744_v48, %v9728_v21  ;;  %v9137_v11 = vpop.f32.mrb[160].mxu1  ;;  %v9862_v63 = vmax.f32 %v9798_v24, 0.0 }
 0x9cb   : > { %v9865_v42 = vmax.f32 %v9801_v8, 0.0  ;;  %v17782_v54 = vpop.f32.mrb[161].mxu1 }
 0x9cc   : > { %v9863_v57 = vmax.f32 %v9799_v45, 0.0  ;;  %v9141_v40 = vpop.f32.mrb[162].mxu1  ;;  %v12697_v25 = vpop.f32.mrb[144].mxu0 }
 0x9cd   : > { %v9921_v33 = vpack.c.bf16 %v9865_v42, %v9864_v16  ;;  %v17784_v41 = vpop.f32.mrb[163].mxu1  ;;  %v9524_v17 = vpop.f32.mrb[145].mxu0 }
 0x9ce   : > { %v9731_v44 = vadd.f32 %v9524_v17, %v9137_v11  ;;  %v12698_v15 = vpop.f32.mrb[146].mxu0  ;;  %v9920_v50 = vpack.c.bf16 %v9863_v57, %v9862_v63 }
 0x9cf   : > { %v9527_v35 = vpop.f32.mrb[147].mxu0 }
 0x9d0   : > { %v9802_v30 = vadd.f32 %v17744_v48, %v9731_v44  ;;  %v9732_v62 = vadd.f32 %v9527_v35, %v9141_v40  ;;  %12771 = vmatprep.mubr.bf16.mxu1 %v9920_v50 }
 0x9d1   : > { %12772 = vmatmul.mubr.bf16.gmra.mrb[12].mxu1 %v9921_v33 }
 0x9d2   : > { %v9803_v0 = vadd.f32 %v17744_v48, %v9732_v62  ;;  %v9147_v5 = vpop.f32.mrb[164].mxu1  ;;  %v9866_v52 = vmax.f32 %v9802_v30, 0.0 }
 0x9d3   : > { %v9733_v22 = vadd.f32 %v12697_v25, %v9147_v5  ;;  %v17788_v46 = vpop.f32.mrb[165].mxu1 }
 0x9d4   : > { %v9867_v28 = vmax.f32 %v9803_v0, 0.0  ;;  %v9151_v49 = vpop.f32.mrb[166].mxu1  ;;  %v12701_v61 = vpop.f32.mrb[148].mxu0 }
 0x9d5   : > { %v9804_v20 = vadd.f32 %v17744_v48, %v9733_v22  ;;  %v9734_v60 = vadd.f32 %v12698_v15, %v9151_v49  ;;  %v17791_v3 = vpop.f32.mrb[167].mxu1  ;;  %v9540_v36 = vpop.f32.mrb[149].mxu0 }
 0x9d6   : > { %v9922_v27 = vpack.c.bf16 %v9867_v28, %v9866_v52  ;;  %v12702_v58 = vpop.f32.mrb[150].mxu0 }
 0x9d7   : > { %v9805_v14 = vadd.f32 %v17744_v48, %v9734_v60  ;;  %v9543_v47 = vpop.f32.mrb[151].mxu0  ;;  %v9868_v32 = vmax.f32 %v9804_v20, 0.0 }
 0x9d8   : > { %12775 = vmatprep.mubr.bf16.mxu1 %v9922_v27 }
 0x9d9   : > { %v9869_v19 = vmax.f32 %v9805_v14, 0.0 }
 0x9da   : > { %v9157_v18 = vpop.f32.mrb[168].mxu1 }
 0x9db   : > { %v9923_v2 = vpack.c.bf16 %v9869_v19, %v9868_v32  ;;  %v9735_v34 = vadd.f32 %v9540_v36, %v9157_v18  ;;  %v17794_v6 = vpop.f32.mrb[169].mxu1 }
 0x9dc   : > { %v9161_v31 = vpop.f32.mrb[170].mxu1  ;;  %v12705_v29 = vpop.f32.mrb[152].mxu0 }
 0x9dd   : > { %v9806_v37 = vadd.f32 %v17744_v48, %v9735_v34  ;;  %v9736_v38 = vadd.f32 %v9543_v47, %v9161_v31  ;;  %v17797_v24 = vpop.f32.mrb[171].mxu1  ;;  %12776 = vmatmul.mubr.bf16.gmra.mrb[16].mxu1 %v9923_v2  ;;  %v9556_v21 = vpop.f32.mrb[153].mxu0 }
 0x9de   : > { %v12706_v8 = vpop.f32.mrb[154].mxu0 }
 0x9df   : > { %v9807_v45 = vadd.f32 %v17744_v48, %v9736_v38  ;;  %v9559_v11 = vpop.f32.mrb[155].mxu0  ;;  %v9870_v16 = vmax.f32 %v9806_v37, 0.0 }
 0x9e1   : > { %v9871_v42 = vmax.f32 %v9807_v45, 0.0 }
 0x9e2   : > { %v9167_v63 = vpop.f32.mrb[172].mxu1 }
 0x9e3   : > { %v9737_v57 = vadd.f32 %v12701_v61, %v9167_v63  ;;  %v17800_v40 = vpop.f32.mrb[173].mxu1  ;;  %v9924_v25 = vpack.c.bf16 %v9871_v42, %v9870_v16 }
 0x9e4   : > { %v9171_v33 = vpop.f32.mrb[174].mxu1  ;;  %v17802_v17 = vpop.f32.mrb[156].mxu0 }
 0x9e5   : > { %v9808_v44 = vadd.f32 %v17744_v48, %v9737_v57  ;;  %v9738_v15 = vadd.f32 %v12702_v58, %v9171_v33  ;;  %v17805_v50 = vpop.f32.mrb[175].mxu1  ;;  %12779 = vmatprep.mubr.bf16.mxu1 %v9924_v25  ;;  %v9572_v35 = vpop.f32.mrb[157].mxu0  ;;  %v13988_v57 = vld [vmem:[%s18700_s16] sm:$0xff]  }
 0x9e6   : > { %v17807_v30 = vpop.f32.mrb[158].mxu0  ;;  %12823 = vmatprep.subr.bf16.mxu0 %v13988_v57 }
 0x9e7   : > { %v9809_v62 = vadd.f32 %v17744_v48, %v9738_v15  ;;  %v9575_v0 = vpop.f32.mrb[159].mxu0  ;;  %v9872_v5 = vmax.f32 %v9808_v44, 0.0  ;;  %12824 = vmatpush3.bf16.msra.mxu0 %v13988_v57 }
 0x9e9   : > { %v9873_v22 = vmax.f32 %v9809_v62, 0.0 }
 0x9ea   : > { %v9177_v52 = vpop.f32.mrb[176].mxu1 }
 0x9eb   : > { %v9925_v28 = vpack.c.bf16 %v9873_v22, %v9872_v5  ;;  %v9739_v49 = vadd.f32 %v9556_v21, %v9177_v52  ;;  %v17810_v61 = vpop.f32.mrb[177].mxu1 }
 0x9ec   : > { %18736 = vst [vmem:[#allocation7_spill] sm:$0xff] %v17810_v61  ;;  %v9181_v20 = vpop.f32.mrb[178].mxu1  ;;  %v17812_v60 = vpop.f32.mrb[160].mxu0 }
 0x9ed   : > { %v9810_v36 = vadd.f32 %v17744_v48, %v9739_v49  ;;  %v9740_v27 = vadd.f32 %v9559_v11, %v9181_v20  ;;  %v17815_v58 = vpop.f32.mrb[179].mxu1  ;;  %12780 = vmatmul.mubr.bf16.gmra.mrb[20].mxu1 %v9925_v28  ;;  %v17817_v14 = vpop.f32.mrb[161].mxu0 }
 0x9ee   : > { %18737 = vst [vmem:[#allocation8_spill] sm:$0xff] %v17815_v58  ;;  %v17819_v47 = vpop.f32.mrb[162].mxu0 }
 0x9ef   : > { %v9811_v32 = vadd.f32 %v17744_v48, %v9740_v27  ;;  %v17822_v19 = vpop.f32.mrb[163].mxu0  ;;  %v9874_v18 = vmax.f32 %v9810_v36, 0.0 }
 0x9f1   : > { %v9875_v2 = vmax.f32 %v9811_v32, 0.0 }
 0x9f2   : > { %v9187_v34 = vpop.f32.mrb[180].mxu1 }
 0x9f3   : > { %v9741_v31 = vadd.f32 %v12705_v29, %v9187_v34  ;;  %v17824_v37 = vpop.f32.mrb[181].mxu1  ;;  %v9926_v38 = vpack.c.bf16 %v9875_v2, %v9874_v18  ;;  %v13990_v18 = vld [vmem:[%s18700_s16 + $0x10] sm:$0xff]  }
 0x9f4   : > { %18738 = vst [vmem:[#allocation9_spill] sm:$0xff] %v17824_v37  ;;  %v9191_v21 = vpop.f32.mrb[182].mxu1  ;;  %v17826_v45 = vpop.f32.mrb[164].mxu0 }
 0x9f5   : > { %v9812_v11 = vadd.f32 %v17744_v48, %v9741_v31  ;;  %v9742_v16 = vadd.f32 %v12706_v8, %v9191_v21  ;;  %v17829_v42 = vpop.f32.mrb[183].mxu1  ;;  %12783 = vmatprep.mubr.bf16.mxu1 %v9926_v38  ;;  %v17831_v63 = vpop.f32.mrb[165].mxu0  ;;  %v13989_v8 = vld [vmem:[%s18700_s16 + $0x8] sm:$0xff]  }
 0x9f6   : > { %18739 = vst [vmem:[#allocation10_spill] sm:$0xff] %v17829_v42  ;;  %v17836_v25 = vpop.f32.mrb[166].mxu0  ;;  %12825 = vmatprep.subr.bf16.mxu0 %v13989_v8 }
 0x9f7   : > { %v9813_v29 = vadd.f32 %v17744_v48, %v9742_v16  ;;  %v17839_v33 = vpop.f32.mrb[167].mxu0  ;;  %v9876_v44 = vmax.f32 %v9812_v11, 0.0  ;;  %12826 = vmatpush3.bf16.msra.mxu0 %v13989_v8 }
 0x9f8   : > { %12827 = vmatprep.subr.bf16.mxu0 %v13990_v18 }
 0x9f9   : > { %v9877_v15 = vmax.f32 %v9813_v29, 0.0 }
 0x9fa   : > { %v9197_v62 = vpop.f32.mrb[184].mxu1 }
 0x9fb   : > { %v9927_v5 = vpack.c.bf16 %v9877_v15, %v9876_v44  ;;  %v9743_v22 = vadd.f32 %v9572_v35, %v9197_v62  ;;  %v17844_v52 = vpop.f32.mrb[185].mxu1  ;;  %12828 = vmatpush3.bf16.msra.mxu0 %v13990_v18 }
 0x9fc   : > { %18740 = vst [vmem:[#allocation11_spill] sm:$0xff] %v17844_v52  ;;  %v9201_v28 = vpop.f32.mrb[186].mxu1  ;;  %v17846_v49 = vpop.f32.mrb[168].mxu0 }
 0x9fd   : > { %v9814_v20 = vadd.f32 %v17744_v48, %v9743_v22  ;;  %v9744_v36 = vadd.f32 %v9575_v0, %v9201_v28  ;;  %v17849_v27 = vpop.f32.mrb[187].mxu1  ;;  %12784 = vmatmul.mubr.bf16.gmra.mrb[24].mxu1 %v9927_v5  ;;  %v17851_v32 = vpop.f32.mrb[169].mxu0  ;;  %v13991_v0 = vld [vmem:[%s18700_s16 + $0x18] sm:$0xff]  }
 0x9fe   : > { %18741 = vst [vmem:[#allocation12_spill] sm:$0xff] %v17849_v27  ;;  %v17856_v35 = vpop.f32.mrb[170].mxu0  ;;  %12829 = vmatprep.subr.bf16.mxu0 %v13991_v0 }
 0x9ff   : > { %v9815_v2 = vadd.f32 %v17744_v48, %v9744_v36  ;;  %v17859_v34 = vpop.f32.mrb[171].mxu0  ;;  %v9878_v31 = vmax.f32 %v9814_v20, 0.0  ;;  %12830 = vmatpush3.bf16.msra.mxu0 %v13991_v0 }
 0xa01   : > { %v9879_v38 = vmax.f32 %v9815_v2, 0.0 }
 0xa02   : > { %v9207_v21 = vpop.f32.mrb[188].mxu1 }
 0xa03   : > { %v9745_v11 = vadd.f32 %v17802_v17, %v9207_v21  ;;  %v17865_v16 = vpop.f32.mrb[189].mxu1  ;;  %v9928_v57 = vpack.c.bf16 %v9879_v38, %v9878_v31  ;;  %v13992_v17 = vld [vmem:[%s18700_s16 + $0x20] sm:$0xff]  }
 0xa04   : > { %18742 = vst [vmem:[#allocation13_spill] sm:$0xff] %v17865_v16  ;;  %v9211_v29 = vpop.f32.mrb[190].mxu1  ;;  %v17867_v44 = vpop.f32.mrb[172].mxu0  ;;  %12831 = vmatprep.subr.bf16.mxu0 %v13992_v17 }
 0xa05   : > { %v9816_v15 = vadd.f32 %v17744_v48, %v9745_v11  ;;  %v9746_v8 = vadd.f32 %v17807_v30, %v9211_v29  ;;  %v17871_v62 = vpop.f32.mrb[191].mxu1  ;;  %12787 = vmatprep.mubr.bf16.mxu1 %v9928_v57  ;;  %v17873_v5 = vpop.f32.mrb[173].mxu0  ;;  %12832 = vmatpush3.bf16.msra.mxu0 %v13992_v17  ;;  %v13993_v30 = vld [vmem:[%s18700_s16 + $0x28] sm:$0xff]  }
 0xa06   : > { %18743 = vst [vmem:[#allocation14_spill] sm:$0xff] %v17871_v62  ;;  %v17878_v22 = vpop.f32.mrb[174].mxu0  ;;  %12833 = vmatprep.subr.bf16.mxu0 %v13993_v30 }
 0xa07   : > { %v9817_v28 = vadd.f32 %v17744_v48, %v9746_v8  ;;  %v17881_v20 = vpop.f32.mrb[175].mxu0  ;;  %v9880_v36 = vmax.f32 %v9816_v15, 0.0 }
 0xa09   : > { %v9881_v18 = vmax.f32 %v9817_v28, 0.0  ;;  %12834 = vmatpush3.bf16.msra.mxu0 %v13993_v30 }
 0xa0a   : > { %v9217_v2 = vpop.f32.mrb[192].mxu1 }
 0xa0b   : > { %v9929_v31 = vpack.c.bf16 %v9881_v18, %v9880_v36  ;;  %v9747_v38 = vadd.f32 %v17817_v14, %v9217_v2  ;;  %v17887_v0 = vpop.f32.mrb[193].mxu1  ;;  %v13994_v14 = vld [vmem:[%s18700_s16 + $0x30] sm:$0xff]  }
 0xa0c   : > { %18744 = vst [vmem:[#allocation15_spill] sm:$0xff] %v17887_v0  ;;  %v9221_v21 = vpop.f32.mrb[194].mxu1  ;;  %v17889_v11 = vpop.f32.mrb[176].mxu0  ;;  %12835 = vmatprep.subr.bf16.mxu0 %v13994_v14 }
 0xa0d   : > { %v9818_v57 = vadd.f32 %v17744_v48, %v9747_v38  ;;  %v9748_v29 = vadd.f32 %v17822_v19, %v9221_v21  ;;  %v17893_v15 = vpop.f32.mrb[195].mxu1  ;;  %12788 = vmatmul.mubr.bf16.gmra.mrb[28].mxu1 %v9929_v31  ;;  %v17895_v8 = vpop.f32.mrb[177].mxu0  ;;  %12836 = vmatpush3.bf16.msra.mxu0 %v13994_v14  ;;  %v13995_v19 = vld [vmem:[%s18700_s16 + $0x38] sm:$0xff]  }
 0xa0e   : > { %18745 = vst [vmem:[#allocation16_spill] sm:$0xff] %v17893_v15  ;;  %v17900_v17 = vpop.f32.mrb[178].mxu0  ;;  %12837 = vmatprep.subr.bf16.mxu0 %v13995_v19 }
 0xa0f   : > { %v9819_v28 = vadd.f32 %v17744_v48, %v9748_v29  ;;  %v17903_v36 = vpop.f32.mrb[179].mxu0  ;;  %v9882_v18 = vmax.f32 %v9818_v57, 0.0 }
 0xa11   : > { %v9883_v30 = vmax.f32 %v9819_v28, 0.0  ;;  %12838 = vmatpush3.bf16.msra.mxu0 %v13995_v19 }
 0xa12   : > { %v9227_v2 = vpop.f32.mrb[196].mxu1 }
 0xa13   : > { %v9749_v31 = vadd.f32 %v17812_v60, %v9227_v2  ;;  %v17909_v38 = vpop.f32.mrb[197].mxu1  ;;  %v9930_v21 = vpack.c.bf16 %v9883_v30, %v9882_v18 }
 0xa14   : > { %18746 = vst [vmem:[#allocation17_spill] sm:$0xff] %v17909_v38  ;;  %v9231_v15 = vpop.f32.mrb[198].mxu1  ;;  %v17911_v0 = vpop.f32.mrb[180].mxu0 }
 0xa15   : > { %v9820_v29 = vadd.f32 %v17744_v48, %v9749_v31  ;;  %v9750_v57 = vadd.f32 %v17819_v47, %v9231_v15  ;;  %v17915_v14 = vpop.f32.mrb[199].mxu1  ;;  %12791 = vmatprep.mubr.bf16.mxu1 %v9930_v21  ;;  %v17917_v28 = vpop.f32.mrb[181].mxu0 }
 0xa16   : > { %18747 = vst [vmem:[#allocation18_spill] sm:$0xff] %v17915_v14  ;;  %v17919_v27 = vpop.f32.mrb[182].mxu0 }
 0xa17   : > { %v9821_v60 = vadd.f32 %v17744_v48, %v9750_v57  ;;  %v17922_v2 = vpop.f32.mrb[183].mxu0  ;;  %v9884_v18 = vmax.f32 %v9820_v29, 0.0 }
 0xa19   : > { %v9885_v30 = vmax.f32 %v9821_v60, 0.0 }
 0xa1a   : > { %v9237_v38 = vpop.f32.mrb[200].mxu1 }
 0xa1b   : > { %v9931_v62 = vpack.c.bf16 %v9885_v30, %v9884_v18  ;;  %v9751_v19 = vadd.f32 %v17831_v63, %v9237_v38  ;;  %v17925_v31 = vpop.f32.mrb[201].mxu1 }
 0xa1c   : > { %18748 = vst [vmem:[#allocation19_spill] sm:$0xff] %v17925_v31  ;;  %v9241_v47 = vpop.f32.mrb[202].mxu1  ;;  %v17927_v15 = vpop.f32.mrb[184].mxu0 }
 0xa1d   : > { %v9822_v21 = vadd.f32 %v17744_v48, %v9751_v19  ;;  %v9752_v14 = vadd.f32 %v17839_v33, %v9241_v47  ;;  %v17931_v52 = vpop.f32.mrb[203].mxu1  ;;  %12792 = vmatmul.mubr.bf16.gmra.mrb[32].mxu1 %v9931_v62  ;;  %v17933_v57 = vpop.f32.mrb[185].mxu0 }
 0xa1e   : > { %18749 = vst [vmem:[#allocation20_spill] sm:$0xff] %v17931_v52  ;;  %v17935_v29 = vpop.f32.mrb[186].mxu0 }
 0xa1f   : > { %v9823_v60 = vadd.f32 %v17744_v48, %v9752_v14  ;;  %v17938_v18 = vpop.f32.mrb[187].mxu0  ;;  %v9886_v63 = vmax.f32 %v9822_v21, 0.0 }
 0xa21   : > { %v9887_v38 = vmax.f32 %v9823_v60, 0.0 }
 0xa22   : > { %v9247_v30 = vpop.f32.mrb[204].mxu1 }
 0xa23   : > { %v9753_v31 = vadd.f32 %v17826_v45, %v9247_v30  ;;  %v17941_v16 = vpop.f32.mrb[205].mxu1  ;;  %v9932_v19 = vpack.c.bf16 %v9887_v38, %v9886_v63 }
 0xa24   : > { %18750 = vst [vmem:[#allocation21_spill] sm:$0xff] %v17941_v16  ;;  %v9251_v33 = vpop.f32.mrb[206].mxu1  ;;  %v17943_v47 = vpop.f32.mrb[188].mxu0 }
 0xa25   : > { %v9824_v62 = vadd.f32 %v17744_v48, %v9753_v31  ;;  %v9754_v52 = vadd.f32 %v17836_v25, %v9251_v33  ;;  %v17947_v58 = vpop.f32.mrb[207].mxu1  ;;  %12795 = vmatprep.mubr.bf16.mxu1 %v9932_v19  ;;  %v17949_v14 = vpop.f32.mrb[189].mxu0 }
 0xa26   : > { %18751 = vst [vmem:[#allocation22_spill] sm:$0xff] %v17947_v58  ;;  %v17951_v21 = vpop.f32.mrb[190].mxu0 }
 0xa27   : > { %v9825_v60 = vadd.f32 %v17744_v48, %v9754_v52  ;;  %v17954_v45 = vpop.f32.mrb[191].mxu0  ;;  %v9888_v30 = vmax.f32 %v9824_v62, 0.0 }
 0xa29   : > { %v9889_v63 = vmax.f32 %v9825_v60, 0.0 }
 0xa2a   : > { %v9257_v38 = vpop.f32.mrb[208].mxu1 }
 0xa2b   : > { %v9933_v16 = vpack.c.bf16 %v9889_v63, %v9888_v30  ;;  %v9755_v42 = vadd.f32 %v17851_v32, %v9257_v38  ;;  %v17957_v31 = vpop.f32.mrb[209].mxu1 }
 0xa2c   : > { %18752 = vst [vmem:[#allocation23_spill] sm:$0xff] %v17957_v31  ;;  %v9261_v25 = vpop.f32.mrb[210].mxu1 }
 0xa2d   : > { %v9826_v33 = vadd.f32 %v17744_v48, %v9755_v42  ;;  %v9756_v19 = vadd.f32 %v17859_v34, %v9261_v25  ;;  %v17961_v58 = vpop.f32.mrb[211].mxu1  ;;  %12796 = vmatmul.mubr.bf16.gmra.mrb[36].mxu1 %v9933_v16 }
 0xa2f   : > { %v9827_v52 = vadd.f32 %v17744_v48, %v9756_v19  ;;  %v9890_v61 = vmax.f32 %v9826_v33, 0.0 }
 0xa31   : > { %v9891_v37 = vmax.f32 %v9827_v52, 0.0 }
 0xa32   : > { %v9267_v62 = vpop.f32.mrb[212].mxu1 }
 0xa33   : > { %v9757_v60 = vadd.f32 %v17846_v49, %v9267_v62  ;;  %v17965_v30 = vpop.f32.mrb[213].mxu1  ;;  %v9934_v32 = vpack.c.bf16 %v9891_v37, %v9890_v61 }
 0xa34   : > { %v9271_v63 = vpop.f32.mrb[214].mxu1 }
 0xa35   : > { %v9828_v38 = vadd.f32 %v17744_v48, %v9757_v60  ;;  %v9758_v42 = vadd.f32 %v17856_v35, %v9271_v63  ;;  %v17969_v31 = vpop.f32.mrb[215].mxu1  ;;  %12799 = vmatprep.mubr.bf16.mxu1 %v9934_v32 }
 0xa37   : > { %v9829_v34 = vadd.f32 %v17744_v48, %v9758_v42  ;;  %v9892_v16 = vmax.f32 %v9828_v38, 0.0 }
 0xa39   : > { %v9893_v25 = vmax.f32 %v9829_v34, 0.0 }
 0xa3a   : > { %v9277_v33 = vpop.f32.mrb[216].mxu1 }
 0xa3b   : > { %v9935_v19 = vpack.c.bf16 %v9893_v25, %v9892_v16  ;;  %v9759_v52 = vadd.f32 %v17873_v5, %v9277_v33  ;;  %v17973_v49 = vpop.f32.mrb[217].mxu1 }
 0xa3c   : > { %v9281_v62 = vpop.f32.mrb[218].mxu1 }
 0xa3d   : > { %v9830_v61 = vadd.f32 %v17744_v48, %v9759_v52  ;;  %v9760_v37 = vadd.f32 %v17881_v20, %v9281_v62  ;;  %v17977_v60 = vpop.f32.mrb[219].mxu1  ;;  %12800 = vmatmul.mubr.bf16.gmra.mrb[40].mxu1 %v9935_v19 }
 0xa3f   : > { %v9831_v35 = vadd.f32 %v17744_v48, %v9760_v37  ;;  %v9894_v32 = vmax.f32 %v9830_v61, 0.0 }
 0xa41   : > { %v9895_v63 = vmax.f32 %v9831_v35, 0.0 }
 0xa42   : > { %v9287_v38 = vpop.f32.mrb[220].mxu1 }
 0xa43   : > { %v9761_v42 = vadd.f32 %v17867_v44, %v9287_v38  ;;  %v17981_v34 = vpop.f32.mrb[221].mxu1  ;;  %v9936_v5 = vpack.c.bf16 %v9895_v63, %v9894_v32 }
 0xa44   : > { %v9291_v16 = vpop.f32.mrb[222].mxu1 }
 0xa45   : > { %v9832_v25 = vadd.f32 %v17744_v48, %v9761_v42  ;;  %v9762_v33 = vadd.f32 %v17878_v22, %v9291_v16  ;;  %v17985_v52 = vpop.f32.mrb[223].mxu1  ;;  %12803 = vmatprep.mubr.bf16.mxu1 %v9936_v5 }
 0xa47   : > { %v9833_v20 = vadd.f32 %v17744_v48, %v9762_v33  ;;  %v9896_v19 = vmax.f32 %v9832_v25, 0.0 }
 0xa49   : > { %v9897_v62 = vmax.f32 %v9833_v20, 0.0 }
 0xa4a   : > { %v9297_v61 = vpop.f32.mrb[224].mxu1 }
 0xa4b   : > { %v9937_v37 = vpack.c.bf16 %v9897_v62, %v9896_v19  ;;  %v9763_v35 = vadd.f32 %v17895_v8, %v9297_v61  ;;  %v17989_v44 = vpop.f32.mrb[225].mxu1 }
 0xa4c   : > { %v9301_v38 = vpop.f32.mrb[226].mxu1 }
 0xa4d   : > { %v9834_v32 = vadd.f32 %v17744_v48, %v9763_v35  ;;  %v9764_v63 = vadd.f32 %v17903_v36, %v9301_v38  ;;  %v17993_v42 = vpop.f32.mrb[227].mxu1  ;;  %12804 = vmatmul.mubr.bf16.gmra.mrb[44].mxu1 %v9937_v37 }
 0xa4f   : > { %v9835_v22 = vadd.f32 %v17744_v48, %v9764_v63  ;;  %v9898_v5 = vmax.f32 %v9834_v32, 0.0 }
 0xa51   : > { %v9899_v16 = vmax.f32 %v9835_v22, 0.0 }
 0xa52   : > { %v9307_v25 = vpop.f32.mrb[228].mxu1 }
 0xa53   : > { %v9765_v33 = vadd.f32 %v17889_v11, %v9307_v25  ;;  %v17997_v20 = vpop.f32.mrb[229].mxu1  ;;  %v9938_v8 = vpack.c.bf16 %v9899_v16, %v9898_v5 }
 0xa54   : > { %v9311_v19 = vpop.f32.mrb[230].mxu1 }
 0xa55   : > { %v9836_v62 = vadd.f32 %v17744_v48, %v9765_v33  ;;  %v9766_v61 = vadd.f32 %v17900_v17, %v9311_v19  ;;  %v18001_v35 = vpop.f32.mrb[231].mxu1  ;;  %12807 = vmatprep.mubr.bf16.mxu1 %v9938_v8 }
 0xa57   : > { %v9837_v36 = vadd.f32 %v17744_v48, %v9766_v61  ;;  %v9900_v37 = vmax.f32 %v9836_v62, 0.0 }
 0xa59   : > { %v9901_v38 = vmax.f32 %v9837_v36, 0.0 }
 0xa5a   : > { %v9317_v32 = vpop.f32.mrb[232].mxu1 }
 0xa5b   : > { %v9939_v63 = vpack.c.bf16 %v9901_v38, %v9900_v37  ;;  %v9767_v22 = vadd.f32 %v17917_v28, %v9317_v32  ;;  %v18005_v11 = vpop.f32.mrb[233].mxu1 }
 0xa5c   : > { %v9321_v25 = vpop.f32.mrb[234].mxu1 }
 0xa5d   : > { %v9838_v5 = vadd.f32 %v17744_v48, %v9767_v22  ;;  %v9768_v16 = vadd.f32 %v17922_v2, %v9321_v25  ;;  %v18009_v33 = vpop.f32.mrb[235].mxu1  ;;  %12808 = vmatmul.mubr.bf16.gmra.mrb[48].mxu1 %v9939_v63 }
 0xa5f   : > { %v9839_v17 = vadd.f32 %v17744_v48, %v9768_v16  ;;  %v9902_v8 = vmax.f32 %v9838_v5, 0.0 }
 0xa61   : > { %v9903_v19 = vmax.f32 %v9839_v17, 0.0 }
 0xa62   : > { %v9327_v62 = vpop.f32.mrb[236].mxu1 }
 0xa63   : > { %v9769_v61 = vadd.f32 %v17911_v0, %v9327_v62  ;;  %v18013_v36 = vpop.f32.mrb[237].mxu1  ;;  %v9940_v28 = vpack.c.bf16 %v9903_v19, %v9902_v8 }
 0xa64   : > { %v9331_v37 = vpop.f32.mrb[238].mxu1 }
 0xa65   : > { %v9840_v38 = vadd.f32 %v17744_v48, %v9769_v61  ;;  %v9770_v32 = vadd.f32 %v17919_v27, %v9331_v37  ;;  %v18017_v22 = vpop.f32.mrb[239].mxu1  ;;  %12811 = vmatprep.mubr.bf16.mxu1 %v9940_v28 }
 0xa67   : > { %v9841_v2 = vadd.f32 %v17744_v48, %v9770_v32  ;;  %v9904_v63 = vmax.f32 %v9840_v38, 0.0 }
 0xa69   : > { %v9905_v25 = vmax.f32 %v9841_v2, 0.0 }
 0xa6a   : > { %v9337_v5 = vpop.f32.mrb[240].mxu1 }
 0xa6b   : > { %v9941_v16 = vpack.c.bf16 %v9905_v25, %v9904_v63  ;;  %v9771_v17 = vadd.f32 %v17933_v57, %v9337_v5  ;;  %v18021_v0 = vpop.f32.mrb[241].mxu1 }
 0xa6c   : > { %v9341_v62 = vpop.f32.mrb[242].mxu1 }
 0xa6d   : > { %v9842_v8 = vadd.f32 %v17744_v48, %v9771_v17  ;;  %v9772_v19 = vadd.f32 %v17938_v18, %v9341_v62  ;;  %v18025_v61 = vpop.f32.mrb[243].mxu1  ;;  %12812 = vmatmul.mubr.bf16.gmra.mrb[52].mxu1 %v9941_v16 }
 0xa6f   : > { %v9843_v27 = vadd.f32 %v17744_v48, %v9772_v19  ;;  %v9906_v28 = vmax.f32 %v9842_v8, 0.0 }
 0xa71   : > { %v9907_v37 = vmax.f32 %v9843_v27, 0.0 }
 0xa72   : > { %v9347_v38 = vpop.f32.mrb[244].mxu1 }
 0xa73   : > { %v9773_v32 = vadd.f32 %v17927_v15, %v9347_v38  ;;  %v18029_v2 = vpop.f32.mrb[245].mxu1  ;;  %v9942_v57 = vpack.c.bf16 %v9907_v37, %v9906_v28 }
 0xa74   : > { %v9351_v63 = vpop.f32.mrb[246].mxu1 }
 0xa75   : > { %v9844_v25 = vadd.f32 %v17744_v48, %v9773_v32  ;;  %v9774_v5 = vadd.f32 %v17935_v29, %v9351_v63  ;;  %v18033_v17 = vpop.f32.mrb[247].mxu1  ;;  %12815 = vmatprep.mubr.bf16.mxu1 %v9942_v57 }
 0xa77   : > { %v9845_v18 = vadd.f32 %v17744_v48, %v9774_v5  ;;  %v9908_v16 = vmax.f32 %v9844_v25, 0.0 }
 0xa79   : > { %v9909_v62 = vmax.f32 %v9845_v18, 0.0 }
 0xa7a   : > { %v9357_v8 = vpop.f32.mrb[248].mxu1 }
 0xa7b   : > { %v9943_v19 = vpack.c.bf16 %v9909_v62, %v9908_v16  ;;  %v9775_v27 = vadd.f32 %v17949_v14, %v9357_v8  ;;  %v18037_v15 = vpop.f32.mrb[249].mxu1 }
 0xa7c   : > { %18753 = vst [vmem:[#allocation24_spill] sm:$0xff] %v18037_v15  ;;  %v9361_v38 = vpop.f32.mrb[250].mxu1 }
 0xa7d   : > { %v9846_v28 = vadd.f32 %v17744_v48, %v9775_v27  ;;  %v9776_v37 = vadd.f32 %v17954_v45, %v9361_v38  ;;  %v18041_v32 = vpop.f32.mrb[251].mxu1  ;;  %12816 = vmatmul.mubr.bf16.gmra.mrb[56].mxu1 %v9943_v19 }
 0xa7e   : > { %18754 = vst [vmem:[#allocation25_spill] sm:$0xff] %v18041_v32 }
 0xa7f   : > { %v9847_v29 = vadd.f32 %v17744_v48, %v9776_v37  ;;  %v9910_v57 = vmax.f32 %v9846_v28, 0.0  ;;  %v18055_v28 = vld [vmem:[%s18699_s15] ss:$0 sm:$0xff] }
 0xa81   : > { %v9911_v63 = vmax.f32 %v9847_v29, 0.0 }
 0xa82   : > { %v9367_v25 = vpop.f32.mrb[252].mxu1 }
 0xa83   : > { %v9777_v5 = vadd.f32 %v17943_v47, %v9367_v25  ;;  %v18045_v18 = vpop.f32.mrb[253].mxu1  ;;  %v9944_v14 = vpack.c.bf16 %v9911_v63, %v9910_v57 }
 0xa84   : > { %v9371_v16 = vpop.f32.mrb[254].mxu1 }
 0xa85   : > { %v9848_v62 = vadd.f32 %v17744_v48, %v9777_v5  ;;  %v9778_v8 = vadd.f32 %v17951_v21, %v9371_v16  ;;  %v18049_v27 = vpop.f32.mrb[255].mxu1  ;;  %12819 = vmatprep.mubr.bf16.mxu1 %v9944_v14 }
 0xa86   : > { %18755 = vst [vmem:[#allocation26_spill] sm:$0xff] %v18049_v27 }
 0xa87   : > { %v9849_v45 = vadd.f32 %v17744_v48, %v9778_v8  ;;  %v9912_v19 = vmax.f32 %v9848_v62, 0.0 }
 0xa89   : > { %v9913_v38 = vmax.f32 %v9849_v45, 0.0 }
 0xa8b   : > { %v9945_v47 = vpack.c.bf16 %v9913_v38, %v9912_v19 }
 0xa8c   : > { %v12761_v37 = vpop.f32.mrb[0].mxu1 }
 0xa8d   : > { %v10060_v29 = vadd.f32 %v12761_v37, %v18055_v28  ;;  %v10051_v57 = vpop.f32.mrb[1].mxu1  ;;  %12820 = vmatmul.mubr.bf16.gmra.mrb[60].mxu1 %v9945_v47 }
 0xa8e   : > { %v10052_v21 = vadd.f32 %v18055_v28, %v10051_v57  ;;  %v12762_v63 = vpop.f32.mrb[2].mxu1 }
 0xa8f   : > { %v10063_v25 = vadd.f32 %v12762_v63, %v18055_v28  ;;  %v10054_v5 = vpop.f32.mrb[3].mxu1  ;;  %v10308_v14 = vmax.f32 %v10060_v29, 0.0 }
 0xa90   : > { %v10055_v48 = vadd.f32 %v18055_v28, %v10054_v5  ;;  %v10306_v62 = vmax.f32 %v10052_v21, 0.0 }
 0xa91   : > { %v10309_v16 = vmax.f32 %v10063_v25, 0.0 }
 0xa92   : > { %v10307_v8 = vmax.f32 %v10055_v48, 0.0 }
 0xa93   : > { %v10371_v45 = vpack.c.bf16 %v10309_v16, %v10308_v14 }
 0xa94   : > { %v10370_v32 = vpack.c.bf16 %v10307_v8, %v10306_v62  ;;  %v12765_v19 = vpop.f32.mrb[4].mxu1 }
 0xa95   : > { %v10076_v38 = vadd.f32 %v12765_v19, %v18055_v28  ;;  %v10067_v37 = vpop.f32.mrb[5].mxu1 }
 0xa96   : > { %v10068_v47 = vadd.f32 %v18055_v28, %v10067_v37  ;;  %v12766_v27 = vpop.f32.mrb[6].mxu1  ;;  %12839 = vmatprep.mubr.bf16.mxu0 %v10370_v32 }
 0xa97   : > { %v10079_v57 = vadd.f32 %v12766_v27, %v18055_v28  ;;  %v10070_v63 = vpop.f32.mrb[7].mxu1  ;;  %12840 = vmatmul.mubr.bf16.vlgmr.msra.gmra.mrb[192].mxu0 %v10371_v45  ;;  %v10312_v29 = vmax.f32 %v10076_v38, 0.0 }
 0xa98   : > { %v10071_v5 = vadd.f32 %v18055_v28, %v10070_v63  ;;  %v10310_v21 = vmax.f32 %v10068_v47, 0.0 }
 0xa99   : > { %v10313_v25 = vmax.f32 %v10079_v57, 0.0 }
 0xa9a   : > { %v10311_v48 = vmax.f32 %v10071_v5, 0.0 }
 0xa9b   : > { %v10373_v14 = vpack.c.bf16 %v10313_v25, %v10312_v29 }
 0xa9c   : > { %v10372_v16 = vpack.c.bf16 %v10311_v48, %v10310_v21  ;;  %v12769_v62 = vpop.f32.mrb[8].mxu1 }
 0xa9d   : > { %v10092_v8 = vadd.f32 %v12769_v62, %v18055_v28  ;;  %v10083_v19 = vpop.f32.mrb[9].mxu1 }
 0xa9e   : > { %v10084_v37 = vadd.f32 %v18055_v28, %v10083_v19  ;;  %v12770_v15 = vpop.f32.mrb[10].mxu1  ;;  %12843 = vmatprep.mubr.bf16.mxu0 %v10372_v16 }
 0xa9f   : > { %v10095_v32 = vadd.f32 %v12770_v15, %v18055_v28  ;;  %v10086_v27 = vpop.f32.mrb[11].mxu1  ;;  %12844 = vmatmul.mubr.bf16.gmra.mrb[196].mxu0 %v10373_v14  ;;  %v10316_v38 = vmax.f32 %v10092_v8, 0.0 }
 0xaa0   : > { %v10087_v45 = vadd.f32 %v18055_v28, %v10086_v27  ;;  %v10314_v47 = vmax.f32 %v10084_v37, 0.0 }
 0xaa1   : > { %v10317_v57 = vmax.f32 %v10095_v32, 0.0 }
 0xaa2   : > { %v10315_v63 = vmax.f32 %v10087_v45, 0.0 }
 0xaa3   : > { %v10375_v5 = vpack.c.bf16 %v10317_v57, %v10316_v38 }
 0xaa4   : > { %v10374_v29 = vpack.c.bf16 %v10315_v63, %v10314_v47  ;;  %v12773_v25 = vpop.f32.mrb[12].mxu1 }
 0xaa5   : > { %v10108_v21 = vadd.f32 %v12773_v25, %v18055_v28  ;;  %v10099_v48 = vpop.f32.mrb[13].mxu1 }
 0xaa6   : > { %v10100_v62 = vadd.f32 %v18055_v28, %v10099_v48  ;;  %v12774_v19 = vpop.f32.mrb[14].mxu1  ;;  %12847 = vmatprep.mubr.bf16.mxu0 %v10374_v29 }
 0xaa7   : > { %v10111_v15 = vadd.f32 %v12774_v19, %v18055_v28  ;;  %v10102_v16 = vpop.f32.mrb[15].mxu1  ;;  %12848 = vmatmul.mubr.bf16.gmra.mrb[200].mxu0 %v10375_v5  ;;  %v10320_v8 = vmax.f32 %v10108_v21, 0.0 }
 0xaa8   : > { %v10103_v14 = vadd.f32 %v18055_v28, %v10102_v16  ;;  %v10318_v37 = vmax.f32 %v10100_v62, 0.0 }
 0xaa9   : > { %v10321_v32 = vmax.f32 %v10111_v15, 0.0 }
 0xaaa   : > { %v10319_v27 = vmax.f32 %v10103_v14, 0.0 }
 0xaab   : > { %v10377_v45 = vpack.c.bf16 %v10321_v32, %v10320_v8 }
 0xaac   : > { %v10376_v38 = vpack.c.bf16 %v10319_v27, %v10318_v37 }
 0xaae   : > { %12851 = vmatprep.mubr.bf16.mxu0 %v10376_v38 }
 0xaaf   : > { %12852 = vmatmul.mubr.bf16.gmra.mrb[204].mxu0 %v10377_v45 }
 0xab0   : > { %v12777_v57 = vpop.f32.mrb[16].mxu1 }
 0xab1   : > { %v10124_v47 = vadd.f32 %v12777_v57, %v18055_v28  ;;  %v10115_v63 = vpop.f32.mrb[17].mxu1 }
 0xab2   : > { %v10116_v29 = vadd.f32 %v18055_v28, %v10115_v63  ;;  %v12778_v25 = vpop.f32.mrb[18].mxu1 }
 0xab3   : > { %v10127_v48 = vadd.f32 %v12778_v25, %v18055_v28  ;;  %v10118_v5 = vpop.f32.mrb[19].mxu1  ;;  %v10324_v21 = vmax.f32 %v10124_v47, 0.0 }
 0xab4   : > { %v10119_v19 = vadd.f32 %v18055_v28, %v10118_v5  ;;  %v10322_v62 = vmax.f32 %v10116_v29, 0.0 }
 0xab5   : > { %v10325_v15 = vmax.f32 %v10127_v48, 0.0 }
 0xab6   : > { %v10323_v16 = vmax.f32 %v10119_v19, 0.0 }
 0xab7   : > { %v10379_v14 = vpack.c.bf16 %v10325_v15, %v10324_v21 }
 0xab8   : > { %v10378_v8 = vpack.c.bf16 %v10323_v16, %v10322_v62 }
 0xaba   : > { %12855 = vmatprep.mubr.bf16.mxu0 %v10378_v8 }
 0xabb   : > { %12856 = vmatmul.mubr.bf16.gmra.mrb[208].mxu0 %v10379_v14 }
 0xac0   : > { %v12781_v32 = vpop.f32.mrb[20].mxu1 }
 0xac1   : > { %v10140_v37 = vadd.f32 %v12781_v32, %v18055_v28  ;;  %v10131_v27 = vpop.f32.mrb[21].mxu1 }
 0xac2   : > { %v10132_v45 = vadd.f32 %v18055_v28, %v10131_v27  ;;  %v12782_v38 = vpop.f32.mrb[22].mxu1 }
 0xac3   : > { %v10143_v57 = vadd.f32 %v12782_v38, %v18055_v28  ;;  %v10134_v63 = vpop.f32.mrb[23].mxu1  ;;  %v10328_v47 = vmax.f32 %v10140_v37, 0.0  ;;  %v13996_v37 = vld [vmem:[%s18702_s18] sm:$0xff]  }
 0xac4   : > { %v10135_v25 = vadd.f32 %v18055_v28, %v10134_v63  ;;  %v10326_v29 = vmax.f32 %v10132_v45, 0.0  ;;  %12903 = vmatprep.subr.bf16.mxu1 %v13996_v37 }
 0xac5   : > { %v10329_v48 = vmax.f32 %v10143_v57, 0.0  ;;  %12904 = vmatpush3.bf16.msra.mxu1 %v13996_v37 }
 0xac6   : > { %v10327_v5 = vmax.f32 %v10135_v25, 0.0 }
 0xac7   : > { %v10381_v19 = vpack.c.bf16 %v10329_v48, %v10328_v47  ;;  %v13997_v48 = vld [vmem:[%s18702_s18 + $0x8] sm:$0xff]  }
 0xac8   : > { %v10380_v21 = vpack.c.bf16 %v10327_v5, %v10326_v29  ;;  %12905 = vmatprep.subr.bf16.mxu1 %v13997_v48  ;;  %v13998_v5 = vld [vmem:[%s18702_s18 + $0x10] sm:$0xff]  }
 0xac9   : > { %12906 = vmatpush3.bf16.msra.mxu1 %v13997_v48 }
 0xaca   : > { %12859 = vmatprep.mubr.bf16.mxu0 %v10380_v21  ;;  %12907 = vmatprep.subr.bf16.mxu1 %v13998_v5 }
 0xacb   : > { %12860 = vmatmul.mubr.bf16.gmra.mrb[212].mxu0 %v10381_v19  ;;  %v13999_v19 = vld [vmem:[%s18702_s18 + $0x18] sm:$0xff]  }
 0xacd   : > { %12908 = vmatpush3.bf16.msra.mxu1 %v13998_v5  ;;  %v14003_v5 = vld [vmem:[%s18702_s18 + $0x38] sm:$0xff]  }
 0xace   : > { %12909 = vmatprep.subr.bf16.mxu1 %v13999_v19 }
 0xad0   : > { %v12785_v15 = vpop.f32.mrb[24].mxu1 }
 0xad1   : > { %v10156_v62 = vadd.f32 %v12785_v15, %v18055_v28  ;;  %v10147_v16 = vpop.f32.mrb[25].mxu1  ;;  %12910 = vmatpush3.bf16.msra.mxu1 %v13999_v19 }
 0xad2   : > { %v10148_v14 = vadd.f32 %v18055_v28, %v10147_v16  ;;  %v12786_v8 = vpop.f32.mrb[26].mxu1 }
 0xad3   : > { %v10159_v32 = vadd.f32 %v12786_v8, %v18055_v28  ;;  %v10150_v27 = vpop.f32.mrb[27].mxu1  ;;  %v10332_v38 = vmax.f32 %v10156_v62, 0.0 }
 0xad4   : > { %v10151_v45 = vadd.f32 %v18055_v28, %v10150_v27  ;;  %v10330_v63 = vmax.f32 %v10148_v14, 0.0  ;;  %v14000_v27 = vld [vmem:[%s18702_s18 + $0x20] sm:$0xff]  }
 0xad5   : > { %v10333_v57 = vmax.f32 %v10159_v32, 0.0  ;;  %12911 = vmatprep.subr.bf16.mxu1 %v14000_v27 }
 0xad6   : > { %v10331_v25 = vmax.f32 %v10151_v45, 0.0  ;;  %12912 = vmatpush3.bf16.msra.mxu1 %v14000_v27 }
 0xad7   : > { %v10383_v47 = vpack.c.bf16 %v10333_v57, %v10332_v38 }
 0xad8   : > { %v10382_v29 = vpack.c.bf16 %v10331_v25, %v10330_v63 }
 0xada   : > { %12863 = vmatprep.mubr.bf16.mxu0 %v10382_v29  ;;  %v14002_v29 = vld [vmem:[%s18702_s18 + $0x30] sm:$0xff]  }
 0xadb   : > { %12864 = vmatmul.mubr.bf16.gmra.mrb[216].mxu0 %v10383_v47  ;;  %v14001_v47 = vld [vmem:[%s18702_s18 + $0x28] sm:$0xff]  }
 0xadc   : > { %12913 = vmatprep.subr.bf16.mxu1 %v14001_v47 }
 0xadd   : > { %12914 = vmatpush3.bf16.msra.mxu1 %v14001_v47 }
 0xade   : > { %12915 = vmatprep.subr.bf16.mxu1 %v14002_v29 }
 0xae0   : > { %v12789_v21 = vpop.f32.mrb[28].mxu1 }
 0xae1   : > { %v10172_v15 = vadd.f32 %v12789_v21, %v18055_v28  ;;  %v10163_v62 = vpop.f32.mrb[29].mxu1  ;;  %12916 = vmatpush3.bf16.msra.mxu1 %v14002_v29 }
 0xae2   : > { %v10164_v16 = vadd.f32 %v18055_v28, %v10163_v62  ;;  %v12790_v14 = vpop.f32.mrb[30].mxu1  ;;  %12917 = vmatprep.subr.bf16.mxu1 %v14003_v5 }
 0xae3   : > { %v10175_v8 = vadd.f32 %v12790_v14, %v18055_v28  ;;  %v10166_v32 = vpop.f32.mrb[31].mxu1  ;;  %v10336_v45 = vmax.f32 %v10172_v15, 0.0 }
 0xae4   : > { %v10167_v37 = vadd.f32 %v18055_v28, %v10166_v32  ;;  %v10334_v57 = vmax.f32 %v10164_v16, 0.0 }
 0xae5   : > { %v10337_v38 = vmax.f32 %v10175_v8, 0.0  ;;  %12918 = vmatpush3.bf16.msra.mxu1 %v14003_v5 }
 0xae6   : > { %v10335_v63 = vmax.f32 %v10167_v37, 0.0 }
 0xae7   : > { %v10385_v25 = vpack.c.bf16 %v10337_v38, %v10336_v45 }
 0xae8   : > { %v10384_v48 = vpack.c.bf16 %v10335_v63, %v10334_v57 }
 0xaea   : > { %12867 = vmatprep.mubr.bf16.mxu0 %v10384_v48 }
 0xaeb   : > { %12868 = vmatmul.mubr.bf16.gmra.mrb[220].mxu0 %v10385_v25 }
 0xaf0   : > { %v12793_v19 = vpop.f32.mrb[32].mxu1 }
 0xaf1   : > { %v10188_v21 = vadd.f32 %v12793_v19, %v18055_v28  ;;  %v10179_v15 = vpop.f32.mrb[33].mxu1 }
 0xaf2   : > { %v10180_v62 = vadd.f32 %v18055_v28, %v10179_v15  ;;  %v12794_v16 = vpop.f32.mrb[34].mxu1 }
 0xaf3   : > { %v10191_v14 = vadd.f32 %v12794_v16, %v18055_v28  ;;  %v10182_v8 = vpop.f32.mrb[35].mxu1  ;;  %v10340_v27 = vmax.f32 %v10188_v21, 0.0 }
 0xaf4   : > { %v10183_v32 = vadd.f32 %v18055_v28, %v10182_v8  ;;  %v10338_v45 = vmax.f32 %v10180_v62, 0.0 }
 0xaf5   : > { %v10341_v37 = vmax.f32 %v10191_v14, 0.0 }
 0xaf6   : > { %v10339_v38 = vmax.f32 %v10183_v32, 0.0 }
 0xaf7   : > { %v10387_v57 = vpack.c.bf16 %v10341_v37, %v10340_v27 }
 0xaf8   : > { %v10386_v63 = vpack.c.bf16 %v10339_v38, %v10338_v45 }
 0xafa   : > { %12871 = vmatprep.mubr.bf16.mxu0 %v10386_v63 }
 0xafb   : > { %12872 = vmatmul.mubr.bf16.gmra.mrb[224].mxu0 %v10387_v57 }
 0xb00   : > { %v12797_v25 = vpop.f32.mrb[36].mxu1 }
 0xb01   : > { %v10204_v47 = vadd.f32 %v12797_v25, %v18055_v28  ;;  %v10195_v48 = vpop.f32.mrb[37].mxu1 }
 0xb02   : > { %v10196_v29 = vadd.f32 %v18055_v28, %v10195_v48  ;;  %v12798_v5 = vpop.f32.mrb[38].mxu1 }
 0xb03   : > { %v10207_v19 = vadd.f32 %v12798_v5, %v18055_v28  ;;  %v10198_v15 = vpop.f32.mrb[39].mxu1  ;;  %v10344_v21 = vmax.f32 %v10204_v47, 0.0 }
 0xb04   : > { %v10199_v16 = vadd.f32 %v18055_v28, %v10198_v15  ;;  %v10342_v62 = vmax.f32 %v10196_v29, 0.0 }
 0xb05   : > { %v10345_v14 = vmax.f32 %v10207_v19, 0.0 }
 0xb06   : > { %v10343_v8 = vmax.f32 %v10199_v16, 0.0 }
 0xb07   : > { %v10389_v32 = vpack.c.bf16 %v10345_v14, %v10344_v21 }
 0xb08   : > { %v10388_v27 = vpack.c.bf16 %v10343_v8, %v10342_v62 }
 0xb0a   : > { %12875 = vmatprep.mubr.bf16.mxu0 %v10388_v27 }
 0xb0b   : > { %12876 = vmatmul.mubr.bf16.gmra.mrb[228].mxu0 %v10389_v32 }
 0xb10   : > { %v12801_v37 = vpop.f32.mrb[40].mxu1 }
 0xb11   : > { %v10220_v45 = vadd.f32 %v12801_v37, %v18055_v28  ;;  %v10211_v38 = vpop.f32.mrb[41].mxu1 }
 0xb12   : > { %v10212_v57 = vadd.f32 %v18055_v28, %v10211_v38  ;;  %v12802_v63 = vpop.f32.mrb[42].mxu1 }
 0xb13   : > { %v10223_v25 = vadd.f32 %v12802_v63, %v18055_v28  ;;  %v10214_v48 = vpop.f32.mrb[43].mxu1  ;;  %v10348_v47 = vmax.f32 %v10220_v45, 0.0 }
 0xb14   : > { %v10215_v5 = vadd.f32 %v18055_v28, %v10214_v48  ;;  %v10346_v29 = vmax.f32 %v10212_v57, 0.0 }
 0xb15   : > { %v10349_v19 = vmax.f32 %v10223_v25, 0.0 }
 0xb16   : > { %v10347_v15 = vmax.f32 %v10215_v5, 0.0 }
 0xb17   : > { %v10391_v16 = vpack.c.bf16 %v10349_v19, %v10348_v47 }
 0xb18   : > { %v10390_v21 = vpack.c.bf16 %v10347_v15, %v10346_v29 }
 0xb1a   : > { %12879 = vmatprep.mubr.bf16.mxu0 %v10390_v21 }
 0xb1b   : > { %12880 = vmatmul.mubr.bf16.gmra.mrb[232].mxu0 %v10391_v16 }
 0xb20   : > { %v12805_v14 = vpop.f32.mrb[44].mxu1 }
 0xb21   : > { %v10236_v62 = vadd.f32 %v12805_v14, %v18055_v28  ;;  %v10227_v8 = vpop.f32.mrb[45].mxu1 }
 0xb22   : > { %v10228_v32 = vadd.f32 %v18055_v28, %v10227_v8  ;;  %v12806_v27 = vpop.f32.mrb[46].mxu1 }
 0xb23   : > { %v10239_v37 = vadd.f32 %v12806_v27, %v18055_v28  ;;  %v10230_v38 = vpop.f32.mrb[47].mxu1  ;;  %v10352_v45 = vmax.f32 %v10236_v62, 0.0 }
 0xb24   : > { %v10231_v63 = vadd.f32 %v18055_v28, %v10230_v38  ;;  %v10350_v57 = vmax.f32 %v10228_v32, 0.0 }
 0xb25   : > { %v10353_v25 = vmax.f32 %v10239_v37, 0.0 }
 0xb26   : > { %v10351_v48 = vmax.f32 %v10231_v63, 0.0 }
 0xb27   : > { %v10393_v5 = vpack.c.bf16 %v10353_v25, %v10352_v45 }
 0xb28   : > { %v10392_v47 = vpack.c.bf16 %v10351_v48, %v10350_v57 }
 0xb2a   : > { %12883 = vmatprep.mubr.bf16.mxu0 %v10392_v47 }
 0xb2b   : > { %12884 = vmatmul.mubr.bf16.gmra.mrb[236].mxu0 %v10393_v5 }
 0xb30   : > { %v12809_v19 = vpop.f32.mrb[48].mxu1 }
 0xb31   : > { %v10252_v29 = vadd.f32 %v12809_v19, %v18055_v28  ;;  %v10243_v15 = vpop.f32.mrb[49].mxu1 }
 0xb32   : > { %v10244_v16 = vadd.f32 %v18055_v28, %v10243_v15  ;;  %v12810_v21 = vpop.f32.mrb[50].mxu1 }
 0xb33   : > { %v10255_v14 = vadd.f32 %v12810_v21, %v18055_v28  ;;  %v10246_v8 = vpop.f32.mrb[51].mxu1  ;;  %v10356_v62 = vmax.f32 %v10252_v29, 0.0 }
 0xb34   : > { %v10247_v27 = vadd.f32 %v18055_v28, %v10246_v8  ;;  %v10354_v32 = vmax.f32 %v10244_v16, 0.0 }
 0xb35   : > { %v10357_v37 = vmax.f32 %v10255_v14, 0.0 }
 0xb36   : > { %v10355_v38 = vmax.f32 %v10247_v27, 0.0 }
 0xb37   : > { %v10395_v63 = vpack.c.bf16 %v10357_v37, %v10356_v62 }
 0xb38   : > { %v10394_v45 = vpack.c.bf16 %v10355_v38, %v10354_v32 }
 0xb3a   : > { %12887 = vmatprep.mubr.bf16.mxu0 %v10394_v45 }
 0xb3b   : > { %12888 = vmatmul.mubr.bf16.gmra.mrb[240].mxu0 %v10395_v63 }
 0xb40   : > { %v12813_v25 = vpop.f32.mrb[52].mxu1 }
 0xb41   : > { %v10268_v57 = vadd.f32 %v12813_v25, %v18055_v28  ;;  %v10259_v48 = vpop.f32.mrb[53].mxu1 }
 0xb42   : > { %v10260_v5 = vadd.f32 %v18055_v28, %v10259_v48  ;;  %v12814_v47 = vpop.f32.mrb[54].mxu1 }
 0xb43   : > { %v10271_v19 = vadd.f32 %v12814_v47, %v18055_v28  ;;  %v10262_v15 = vpop.f32.mrb[55].mxu1  ;;  %v10360_v29 = vmax.f32 %v10268_v57, 0.0 }
 0xb44   : > { %v10263_v21 = vadd.f32 %v18055_v28, %v10262_v15  ;;  %v10358_v16 = vmax.f32 %v10260_v5, 0.0 }
 0xb45   : > { %v10361_v14 = vmax.f32 %v10271_v19, 0.0 }
 0xb46   : > { %v10359_v8 = vmax.f32 %v10263_v21, 0.0 }
 0xb47   : > { %v10397_v27 = vpack.c.bf16 %v10361_v14, %v10360_v29 }
 0xb48   : > { %v10396_v62 = vpack.c.bf16 %v10359_v8, %v10358_v16 }
 0xb4a   : > { %12891 = vmatprep.mubr.bf16.mxu0 %v10396_v62 }
 0xb4b   : > { %12892 = vmatmul.mubr.bf16.gmra.mrb[244].mxu0 %v10397_v27 }
 0xb50   : > { %v12817_v37 = vpop.f32.mrb[56].mxu1 }
 0xb51   : > { %v10284_v32 = vadd.f32 %v12817_v37, %v18055_v28  ;;  %v10275_v38 = vpop.f32.mrb[57].mxu1 }
 0xb52   : > { %v10276_v63 = vadd.f32 %v18055_v28, %v10275_v38  ;;  %v12818_v45 = vpop.f32.mrb[58].mxu1 }
 0xb53   : > { %v10287_v25 = vadd.f32 %v12818_v45, %v18055_v28  ;;  %v10278_v48 = vpop.f32.mrb[59].mxu1  ;;  %v10364_v57 = vmax.f32 %v10284_v32, 0.0 }
 0xb54   : > { %v10279_v47 = vadd.f32 %v18055_v28, %v10278_v48  ;;  %v10362_v5 = vmax.f32 %v10276_v63, 0.0 }
 0xb55   : > { %v10365_v19 = vmax.f32 %v10287_v25, 0.0 }
 0xb56   : > { %v10363_v15 = vmax.f32 %v10279_v47, 0.0 }
 0xb57   : > { %v10399_v21 = vpack.c.bf16 %v10365_v19, %v10364_v57  ;;  %v18148_v19 = vld [vmem:[%s18701_s17] ss:$0 sm:$0xff] }
 0xb58   : > { %v10398_v29 = vpack.c.bf16 %v10363_v15, %v10362_v5 }
 0xb5a   : > { %12895 = vmatprep.mubr.bf16.mxu0 %v10398_v29 }
 0xb5b   : > { %12896 = vmatmul.mubr.bf16.gmra.mrb[248].mxu0 %v10399_v21 }
 0xb60   : > { %v12821_v14 = vpop.f32.mrb[60].mxu1 }
 0xb61   : > { %v10300_v16 = vadd.f32 %v12821_v14, %v18055_v28  ;;  %v10291_v8 = vpop.f32.mrb[61].mxu1 }
 0xb62   : > { %v10292_v27 = vadd.f32 %v18055_v28, %v10291_v8  ;;  %v12822_v62 = vpop.f32.mrb[62].mxu1 }
 0xb63   : > { %v10303_v37 = vadd.f32 %v12822_v62, %v18055_v28  ;;  %v10294_v38 = vpop.f32.mrb[63].mxu1  ;;  %v10368_v32 = vmax.f32 %v10300_v16, 0.0 }
 0xb64   : > { %v10295_v45 = vadd.f32 %v18055_v28, %v10294_v38  ;;  %v10366_v63 = vmax.f32 %v10292_v27, 0.0 }
 0xb65   : > { %v10369_v25 = vmax.f32 %v10303_v37, 0.0 }
 0xb66   : > { %v10367_v48 = vmax.f32 %v10295_v45, 0.0 }
 0xb67   : > { %v10401_v47 = vpack.c.bf16 %v10369_v25, %v10368_v32 }
 0xb68   : > { %v10400_v57 = vpack.c.bf16 %v10367_v48, %v10366_v63 }
 0xb6a   : > { %v12841_v5 = vpop.f32.mrb[192].mxu0  ;;  %12899 = vmatprep.mubr.bf16.mxu0 %v10400_v57 }
 0xb6b   : > { %v10516_v15 = vadd.f32 %v12841_v5, %v18148_v19  ;;  %v10507_v21 = vpop.f32.mrb[193].mxu0  ;;  %12900 = vmatmul.mubr.bf16.gmra.mrb[252].mxu0 %v10401_v47 }
 0xb6c   : > { %v10508_v29 = vadd.f32 %v18148_v19, %v10507_v21  ;;  %v12842_v28 = vpop.f32.mrb[194].mxu0 }
 0xb6d   : > { %v10519_v14 = vadd.f32 %v12842_v28, %v18148_v19  ;;  %v10510_v16 = vpop.f32.mrb[195].mxu0  ;;  %v10764_v27 = vmax.f32 %v10516_v15, 0.0 }
 0xb6e   : > { %v10511_v8 = vadd.f32 %v18148_v19, %v10510_v16  ;;  %v10762_v37 = vmax.f32 %v10508_v29, 0.0 }
 0xb6f   : > { %v10765_v62 = vmax.f32 %v10519_v14, 0.0 }
 0xb70   : > { %v10763_v38 = vmax.f32 %v10511_v8, 0.0 }
 0xb71   : > { %v10827_v45 = vpack.c.bf16 %v10765_v62, %v10764_v27 }
 0xb72   : > { %v10826_v32 = vpack.c.bf16 %v10763_v38, %v10762_v37  ;;  %v12845_v25 = vpop.f32.mrb[196].mxu0 }
 0xb73   : > { %v10532_v63 = vadd.f32 %v12845_v25, %v18148_v19  ;;  %v10523_v48 = vpop.f32.mrb[197].mxu0 }
 0xb74   : > { %v10524_v47 = vadd.f32 %v18148_v19, %v10523_v48  ;;  %v12846_v57 = vpop.f32.mrb[198].mxu0  ;;  %12919 = vmatprep.mubr.bf16.mxu1 %v10826_v32 }
 0xb75   : > { %v10535_v5 = vadd.f32 %v12846_v57, %v18148_v19  ;;  %v10526_v21 = vpop.f32.mrb[199].mxu0  ;;  %12920 = vmatmul.mubr.bf16.vlgmr.msra.gmra.mrb[64].mxu1 %v10827_v45  ;;  %v10768_v15 = vmax.f32 %v10532_v63, 0.0 }
 0xb76   : > { %v10527_v28 = vadd.f32 %v18148_v19, %v10526_v21  ;;  %v10766_v29 = vmax.f32 %v10524_v47, 0.0 }
 0xb77   : > { %v10769_v14 = vmax.f32 %v10535_v5, 0.0 }
 0xb78   : > { %v10767_v16 = vmax.f32 %v10527_v28, 0.0 }
 0xb79   : > { %v10829_v8 = vpack.c.bf16 %v10769_v14, %v10768_v15 }
 0xb7a   : > { %v10828_v27 = vpack.c.bf16 %v10767_v16, %v10766_v29  ;;  %v12849_v62 = vpop.f32.mrb[200].mxu0 }
 0xb7b   : > { %v10548_v37 = vadd.f32 %v12849_v62, %v18148_v19  ;;  %v10539_v38 = vpop.f32.mrb[201].mxu0 }
 0xb7c   : > { %v10540_v25 = vadd.f32 %v18148_v19, %v10539_v38  ;;  %v12850_v48 = vpop.f32.mrb[202].mxu0  ;;  %12923 = vmatprep.mubr.bf16.mxu1 %v10828_v27 }
 0xb7d   : > { %v10551_v32 = vadd.f32 %v12850_v48, %v18148_v19  ;;  %v10542_v57 = vpop.f32.mrb[203].mxu0  ;;  %12924 = vmatmul.mubr.bf16.gmra.mrb[68].mxu1 %v10829_v8  ;;  %v10772_v63 = vmax.f32 %v10548_v37, 0.0 }
 0xb7e   : > { %v10543_v45 = vadd.f32 %v18148_v19, %v10542_v57  ;;  %v10770_v47 = vmax.f32 %v10540_v25, 0.0 }
 0xb7f   : > { %v10773_v5 = vmax.f32 %v10551_v32, 0.0 }
 0xb80   : > { %v10771_v21 = vmax.f32 %v10543_v45, 0.0 }
 0xb81   : > { %v10831_v28 = vpack.c.bf16 %v10773_v5, %v10772_v63 }
 0xb82   : > { %v10830_v15 = vpack.c.bf16 %v10771_v21, %v10770_v47  ;;  %v12853_v14 = vpop.f32.mrb[204].mxu0 }
 0xb83   : > { %v10564_v29 = vadd.f32 %v12853_v14, %v18148_v19  ;;  %v10555_v16 = vpop.f32.mrb[205].mxu0 }
 0xb84   : > { %v10556_v62 = vadd.f32 %v18148_v19, %v10555_v16  ;;  %v12854_v38 = vpop.f32.mrb[206].mxu0  ;;  %12927 = vmatprep.mubr.bf16.mxu1 %v10830_v15 }
 0xb85   : > { %v10567_v27 = vadd.f32 %v12854_v38, %v18148_v19  ;;  %v10558_v48 = vpop.f32.mrb[207].mxu0  ;;  %12928 = vmatmul.mubr.bf16.gmra.mrb[72].mxu1 %v10831_v28  ;;  %v10776_v37 = vmax.f32 %v10564_v29, 0.0 }
 0xb86   : > { %v10559_v8 = vadd.f32 %v18148_v19, %v10558_v48  ;;  %v10774_v25 = vmax.f32 %v10556_v62, 0.0 }
 0xb87   : > { %v10777_v32 = vmax.f32 %v10567_v27, 0.0 }
 0xb88   : > { %v10775_v57 = vmax.f32 %v10559_v8, 0.0 }
 0xb89   : > { %v10833_v45 = vpack.c.bf16 %v10777_v32, %v10776_v37 }
 0xb8a   : > { %v10832_v63 = vpack.c.bf16 %v10775_v57, %v10774_v25 }
 0xb8c   : > { %12931 = vmatprep.mubr.bf16.mxu1 %v10832_v63 }
 0xb8d   : > { %12932 = vmatmul.mubr.bf16.gmra.mrb[76].mxu1 %v10833_v45 }
 0xb8e   : > { %v12857_v5 = vpop.f32.mrb[208].mxu0 }
 0xb8f   : > { %v10580_v47 = vadd.f32 %v12857_v5, %v18148_v19  ;;  %v10571_v21 = vpop.f32.mrb[209].mxu0 }
 0xb90   : > { %v10572_v15 = vadd.f32 %v18148_v19, %v10571_v21  ;;  %v12858_v14 = vpop.f32.mrb[210].mxu0 }
 0xb91   : > { %v10583_v16 = vadd.f32 %v12858_v14, %v18148_v19  ;;  %v10574_v28 = vpop.f32.mrb[211].mxu0  ;;  %v10780_v29 = vmax.f32 %v10580_v47, 0.0 }
 0xb92   : > { %v10575_v38 = vadd.f32 %v18148_v19, %v10574_v28  ;;  %v10778_v62 = vmax.f32 %v10572_v15, 0.0 }
 0xb93   : > { %v10781_v27 = vmax.f32 %v10583_v16, 0.0 }
 0xb94   : > { %v10779_v48 = vmax.f32 %v10575_v38, 0.0 }
 0xb95   : > { %v10835_v8 = vpack.c.bf16 %v10781_v27, %v10780_v29 }
 0xb96   : > { %v10834_v37 = vpack.c.bf16 %v10779_v48, %v10778_v62 }
 0xb98   : > { %12935 = vmatprep.mubr.bf16.mxu1 %v10834_v37 }
 0xb99   : > { %12936 = vmatmul.mubr.bf16.gmra.mrb[80].mxu1 %v10835_v8 }
 0xb9e   : > { %v12861_v32 = vpop.f32.mrb[212].mxu0 }
 0xb9f   : > { %v10596_v25 = vadd.f32 %v12861_v32, %v18148_v19  ;;  %v10587_v57 = vpop.f32.mrb[213].mxu0 }
 0xba0   : > { %v10588_v45 = vadd.f32 %v18148_v19, %v10587_v57  ;;  %v12862_v63 = vpop.f32.mrb[214].mxu0 }
 0xba1   : > { %v10599_v5 = vadd.f32 %v12862_v63, %v18148_v19  ;;  %v10590_v21 = vpop.f32.mrb[215].mxu0  ;;  %v10784_v47 = vmax.f32 %v10596_v25, 0.0 }
 0xba2   : > { %v10591_v14 = vadd.f32 %v18148_v19, %v10590_v21  ;;  %v10782_v15 = vmax.f32 %v10588_v45, 0.0 }
 0xba3   : > { %v10785_v16 = vmax.f32 %v10599_v5, 0.0 }
 0xba4   : > { %v10783_v28 = vmax.f32 %v10591_v14, 0.0 }
 0xba5   : > { %v10837_v38 = vpack.c.bf16 %v10785_v16, %v10784_v47 }
 0xba6   : > { %v10836_v29 = vpack.c.bf16 %v10783_v28, %v10782_v15 }
 0xba8   : > { %12939 = vmatprep.mubr.bf16.mxu1 %v10836_v29 }
 0xba9   : > { %12940 = vmatmul.mubr.bf16.gmra.mrb[84].mxu1 %v10837_v38 }
 0xbae   : > { %v12865_v27 = vpop.f32.mrb[216].mxu0 }
 0xbaf   : > { %v10612_v62 = vadd.f32 %v12865_v27, %v18148_v19  ;;  %v10603_v48 = vpop.f32.mrb[217].mxu0 }
 0xbb0   : > { %v10604_v8 = vadd.f32 %v18148_v19, %v10603_v48  ;;  %v12866_v37 = vpop.f32.mrb[218].mxu0 }
 0xbb1   : > { %v10615_v32 = vadd.f32 %v12866_v37, %v18148_v19  ;;  %v10606_v57 = vpop.f32.mrb[219].mxu0  ;;  %v10788_v25 = vmax.f32 %v10612_v62, 0.0 }
 0xbb2   : > { %v10607_v63 = vadd.f32 %v18148_v19, %v10606_v57  ;;  %v10786_v45 = vmax.f32 %v10604_v8, 0.0 }
 0xbb3   : > { %v10789_v5 = vmax.f32 %v10615_v32, 0.0 }
 0xbb4   : > { %v10787_v21 = vmax.f32 %v10607_v63, 0.0 }
 0xbb5   : > { %v10839_v14 = vpack.c.bf16 %v10789_v5, %v10788_v25 }
 0xbb6   : > { %v10838_v47 = vpack.c.bf16 %v10787_v21, %v10786_v45 }
 0xbb8   : > { %12943 = vmatprep.mubr.bf16.mxu1 %v10838_v47 }
 0xbb9   : > { %12944 = vmatmul.mubr.bf16.gmra.mrb[88].mxu1 %v10839_v14 }
 0xbbe   : > { %v12869_v16 = vpop.f32.mrb[220].mxu0 }
 0xbbf   : > { %v10628_v15 = vadd.f32 %v12869_v16, %v18148_v19  ;;  %v10619_v28 = vpop.f32.mrb[221].mxu0 }
 0xbc0   : > { %v10620_v38 = vadd.f32 %v18148_v19, %v10619_v28  ;;  %v12870_v29 = vpop.f32.mrb[222].mxu0 }
 0xbc1   : > { %v10631_v27 = vadd.f32 %v12870_v29, %v18148_v19  ;;  %v10622_v48 = vpop.f32.mrb[223].mxu0  ;;  %v10792_v62 = vmax.f32 %v10628_v15, 0.0 }
 0xbc2   : > { %v10623_v37 = vadd.f32 %v18148_v19, %v10622_v48  ;;  %v10790_v8 = vmax.f32 %v10620_v38, 0.0 }
 0xbc3   : > { %v10793_v32 = vmax.f32 %v10631_v27, 0.0 }
 0xbc4   : > { %v10791_v57 = vmax.f32 %v10623_v37, 0.0 }
 0xbc5   : > { %v10841_v63 = vpack.c.bf16 %v10793_v32, %v10792_v62 }
 0xbc6   : > { %v10840_v25 = vpack.c.bf16 %v10791_v57, %v10790_v8 }
 0xbc8   : > { %12947 = vmatprep.mubr.bf16.mxu1 %v10840_v25 }
 0xbc9   : > { %12948 = vmatmul.mubr.bf16.gmra.mrb[92].mxu1 %v10841_v63 }
 0xbce   : > { %v12873_v5 = vpop.f32.mrb[224].mxu0 }
 0xbcf   : > { %v10644_v45 = vadd.f32 %v12873_v5, %v18148_v19  ;;  %v10635_v21 = vpop.f32.mrb[225].mxu0 }
 0xbd0   : > { %v10636_v14 = vadd.f32 %v18148_v19, %v10635_v21  ;;  %v12874_v47 = vpop.f32.mrb[226].mxu0 }
 0xbd1   : > { %v10647_v16 = vadd.f32 %v12874_v47, %v18148_v19  ;;  %v10638_v28 = vpop.f32.mrb[227].mxu0  ;;  %v10796_v15 = vmax.f32 %v10644_v45, 0.0 }
 0xbd2   : > { %v10639_v29 = vadd.f32 %v18148_v19, %v10638_v28  ;;  %v10794_v38 = vmax.f32 %v10636_v14, 0.0 }
 0xbd3   : > { %v10797_v27 = vmax.f32 %v10647_v16, 0.0 }
 0xbd4   : > { %v10795_v48 = vmax.f32 %v10639_v29, 0.0 }
 0xbd5   : > { %v10843_v37 = vpack.c.bf16 %v10797_v27, %v10796_v15 }
 0xbd6   : > { %v10842_v62 = vpack.c.bf16 %v10795_v48, %v10794_v38 }
 0xbd8   : > { %12951 = vmatprep.mubr.bf16.mxu1 %v10842_v62 }
 0xbd9   : > { %12952 = vmatmul.mubr.bf16.gmra.mrb[96].mxu1 %v10843_v37 }
 0xbde   : > { %v12877_v32 = vpop.f32.mrb[228].mxu0 }
 0xbdf   : > { %v10660_v8 = vadd.f32 %v12877_v32, %v18148_v19  ;;  %v10651_v57 = vpop.f32.mrb[229].mxu0 }
 0xbe0   : > { %v10652_v63 = vadd.f32 %v18148_v19, %v10651_v57  ;;  %v12878_v25 = vpop.f32.mrb[230].mxu0 }
 0xbe1   : > { %v10663_v5 = vadd.f32 %v12878_v25, %v18148_v19  ;;  %v10654_v21 = vpop.f32.mrb[231].mxu0  ;;  %v10800_v45 = vmax.f32 %v10660_v8, 0.0 }
 0xbe2   : > { %v10655_v47 = vadd.f32 %v18148_v19, %v10654_v21  ;;  %v10798_v14 = vmax.f32 %v10652_v63, 0.0 }
 0xbe3   : > { %v10801_v16 = vmax.f32 %v10663_v5, 0.0 }
 0xbe4   : > { %v10799_v28 = vmax.f32 %v10655_v47, 0.0 }
 0xbe5   : > { %v10845_v29 = vpack.c.bf16 %v10801_v16, %v10800_v45 }
 0xbe6   : > { %v10844_v15 = vpack.c.bf16 %v10799_v28, %v10798_v14 }
 0xbe8   : > { %12955 = vmatprep.mubr.bf16.mxu1 %v10844_v15 }
 0xbe9   : > { %12956 = vmatmul.mubr.bf16.gmra.mrb[100].mxu1 %v10845_v29 }
 0xbee   : > { %v12881_v27 = vpop.f32.mrb[232].mxu0 }
 0xbef   : > { %v10676_v38 = vadd.f32 %v12881_v27, %v18148_v19  ;;  %v10667_v48 = vpop.f32.mrb[233].mxu0 }
 0xbf0   : > { %v10668_v37 = vadd.f32 %v18148_v19, %v10667_v48  ;;  %v12882_v62 = vpop.f32.mrb[234].mxu0 }
 0xbf1   : > { %v10679_v32 = vadd.f32 %v12882_v62, %v18148_v19  ;;  %v10670_v57 = vpop.f32.mrb[235].mxu0  ;;  %v10804_v8 = vmax.f32 %v10676_v38, 0.0 }
 0xbf2   : > { %v10671_v25 = vadd.f32 %v18148_v19, %v10670_v57  ;;  %v10802_v63 = vmax.f32 %v10668_v37, 0.0 }
 0xbf3   : > { %v10805_v5 = vmax.f32 %v10679_v32, 0.0 }
 0xbf4   : > { %v10803_v21 = vmax.f32 %v10671_v25, 0.0 }
 0xbf5   : > { %v10847_v47 = vpack.c.bf16 %v10805_v5, %v10804_v8 }
 0xbf6   : > { %v10846_v45 = vpack.c.bf16 %v10803_v21, %v10802_v63 }
 0xbf8   : > { %12959 = vmatprep.mubr.bf16.mxu1 %v10846_v45 }
 0xbf9   : > { %12960 = vmatmul.mubr.bf16.gmra.mrb[104].mxu1 %v10847_v47 }
 0xbfe   : > { %v12885_v16 = vpop.f32.mrb[236].mxu0 }
 0xbff   : > { %v10692_v14 = vadd.f32 %v12885_v16, %v18148_v19  ;;  %v10683_v28 = vpop.f32.mrb[237].mxu0 }
 0xc00   : > { %v10684_v29 = vadd.f32 %v18148_v19, %v10683_v28  ;;  %v12886_v15 = vpop.f32.mrb[238].mxu0 }
 0xc01   : > { %v10695_v27 = vadd.f32 %v12886_v15, %v18148_v19  ;;  %v10686_v48 = vpop.f32.mrb[239].mxu0  ;;  %v10808_v38 = vmax.f32 %v10692_v14, 0.0 }
 0xc02   : > { %v10687_v62 = vadd.f32 %v18148_v19, %v10686_v48  ;;  %v10806_v37 = vmax.f32 %v10684_v29, 0.0 }
 0xc03   : > { %v10809_v32 = vmax.f32 %v10695_v27, 0.0 }
 0xc04   : > { %v10807_v57 = vmax.f32 %v10687_v62, 0.0 }
 0xc05   : > { %v10849_v25 = vpack.c.bf16 %v10809_v32, %v10808_v38 }
 0xc06   : > { %v10848_v8 = vpack.c.bf16 %v10807_v57, %v10806_v37 }
 0xc08   : > { %12963 = vmatprep.mubr.bf16.mxu1 %v10848_v8 }
 0xc09   : > { %12964 = vmatmul.mubr.bf16.gmra.mrb[108].mxu1 %v10849_v25 }
 0xc0e   : > { %v12889_v5 = vpop.f32.mrb[240].mxu0 }
 0xc0f   : > { %v10708_v63 = vadd.f32 %v12889_v5, %v18148_v19  ;;  %v10699_v21 = vpop.f32.mrb[241].mxu0 }
 0xc10   : > { %v10700_v47 = vadd.f32 %v18148_v19, %v10699_v21  ;;  %v12890_v45 = vpop.f32.mrb[242].mxu0 }
 0xc11   : > { %v10711_v16 = vadd.f32 %v12890_v45, %v18148_v19  ;;  %v10702_v28 = vpop.f32.mrb[243].mxu0  ;;  %v10812_v14 = vmax.f32 %v10708_v63, 0.0 }
 0xc12   : > { %v10703_v15 = vadd.f32 %v18148_v19, %v10702_v28  ;;  %v10810_v29 = vmax.f32 %v10700_v47, 0.0 }
 0xc13   : > { %v10813_v27 = vmax.f32 %v10711_v16, 0.0 }
 0xc14   : > { %v10811_v48 = vmax.f32 %v10703_v15, 0.0 }
 0xc15   : > { %v10851_v62 = vpack.c.bf16 %v10813_v27, %v10812_v14 }
 0xc16   : > { %v10850_v38 = vpack.c.bf16 %v10811_v48, %v10810_v29 }
 0xc18   : > { %12967 = vmatprep.mubr.bf16.mxu1 %v10850_v38 }
 0xc19   : > { %12968 = vmatmul.mubr.bf16.gmra.mrb[112].mxu1 %v10851_v62 }
 0xc1e   : > { %v12893_v32 = vpop.f32.mrb[244].mxu0 }
 0xc1f   : > { %v10724_v37 = vadd.f32 %v12893_v32, %v18148_v19  ;;  %v10715_v57 = vpop.f32.mrb[245].mxu0 }
 0xc20   : > { %v10716_v25 = vadd.f32 %v18148_v19, %v10715_v57  ;;  %v12894_v8 = vpop.f32.mrb[246].mxu0 }
 0xc21   : > { %v10727_v5 = vadd.f32 %v12894_v8, %v18148_v19  ;;  %v10718_v21 = vpop.f32.mrb[247].mxu0  ;;  %v10816_v63 = vmax.f32 %v10724_v37, 0.0 }
 0xc22   : > { %v10719_v45 = vadd.f32 %v18148_v19, %v10718_v21  ;;  %v10814_v47 = vmax.f32 %v10716_v25, 0.0 }
 0xc23   : > { %v10817_v16 = vmax.f32 %v10727_v5, 0.0 }
 0xc24   : > { %v10815_v28 = vmax.f32 %v10719_v45, 0.0 }
 0xc25   : > { %v10853_v15 = vpack.c.bf16 %v10817_v16, %v10816_v63 }
 0xc26   : > { %v10852_v14 = vpack.c.bf16 %v10815_v28, %v10814_v47 }
 0xc28   : > { %12971 = vmatprep.mubr.bf16.mxu1 %v10852_v14 }
 0xc29   : > { %12972 = vmatmul.mubr.bf16.gmra.mrb[116].mxu1 %v10853_v15 }
 0xc2e   : > { %v12897_v27 = vpop.f32.mrb[248].mxu0 }
 0xc2f   : > { %v10740_v29 = vadd.f32 %v12897_v27, %v18148_v19  ;;  %v10731_v48 = vpop.f32.mrb[249].mxu0 }
 0xc30   : > { %v10732_v62 = vadd.f32 %v18148_v19, %v10731_v48  ;;  %v12898_v38 = vpop.f32.mrb[250].mxu0 }
 0xc31   : > { %v10743_v32 = vadd.f32 %v12898_v38, %v18148_v19  ;;  %v10734_v57 = vpop.f32.mrb[251].mxu0  ;;  %v10820_v37 = vmax.f32 %v10740_v29, 0.0 }
 0xc32   : > { %v10735_v8 = vadd.f32 %v18148_v19, %v10734_v57  ;;  %v10818_v25 = vmax.f32 %v10732_v62, 0.0 }
 0xc33   : > { %v10821_v5 = vmax.f32 %v10743_v32, 0.0 }
 0xc34   : > { %v10819_v21 = vmax.f32 %v10735_v8, 0.0 }
 0xc35   : > { %v10855_v45 = vpack.c.bf16 %v10821_v5, %v10820_v37 }
 0xc36   : > { %v10854_v63 = vpack.c.bf16 %v10819_v21, %v10818_v25  ;;  %v18218_v25 = vld [vmem:[%s18703_s19] ss:$0 sm:$0xff] }
 0xc38   : > { %12975 = vmatprep.mubr.bf16.mxu1 %v10854_v63 }
 0xc39   : > { %12976 = vmatmul.mubr.bf16.gmra.mrb[120].mxu1 %v10855_v45 }
 0xc3e   : > { %v12901_v16 = vpop.f32.mrb[252].mxu0 }
 0xc3f   : > { %v10756_v47 = vadd.f32 %v12901_v16, %v18148_v19  ;;  %v10747_v28 = vpop.f32.mrb[253].mxu0 }
 0xc40   : > { %v10748_v15 = vadd.f32 %v18148_v19, %v10747_v28  ;;  %v12902_v14 = vpop.f32.mrb[254].mxu0 }
 0xc41   : > { %v10759_v27 = vadd.f32 %v12902_v14, %v18148_v19  ;;  %v10750_v48 = vpop.f32.mrb[255].mxu0  ;;  %v10824_v38 = vmax.f32 %v10756_v47, 0.0 }
 0xc42   : > { %v10751_v29 = vadd.f32 %v18148_v19, %v10750_v48  ;;  %v10822_v32 = vmax.f32 %v10748_v15, 0.0 }
 0xc43   : > { %v10825_v62 = vmax.f32 %v10759_v27, 0.0 }
 0xc44   : > { %v10823_v57 = vmax.f32 %v10751_v29, 0.0 }
 0xc45   : > { %v10857_v8 = vpack.c.bf16 %v10825_v62, %v10824_v38 }
 0xc46   : > { %v10856_v37 = vpack.c.bf16 %v10823_v57, %v10822_v32 }
 0xc48   : > { %v12921_v5 = vpop.f32.mrb[64].mxu1  ;;  %12979 = vmatprep.mubr.bf16.mxu1 %v10856_v37 }
 0xc49   : > { %v10965_v21 = vadd.f32 %v12921_v5, %v17709_v9  ;;  %v10956_v45 = vpop.f32.mrb[65].mxu1  ;;  %12980 = vmatmul.mubr.bf16.gmra.mrb[124].mxu1 %v10857_v8 }
 0xc4a   : > { %v10957_v19 = vadd.f32 %v10956_v45, %v17697_v7  ;;  %v12922_v63 = vpop.f32.mrb[66].mxu1 }
 0xc4b   : > { %v11220_v16 = vadd.f32 %v18218_v25, %v10965_v21  ;;  %v10968_v47 = vadd.f32 %v12922_v63, %v17714_v26  ;;  %v10959_v28 = vpop.f32.mrb[67].mxu1 }
 0xc4c   : > { %v11218_v15 = vadd.f32 %v18218_v25, %v10957_v19  ;;  %v10960_v14 = vadd.f32 %v10959_v28, %v17702_v12 }
 0xc4d   : > { %11285 = vst.msk [vmem:[%s18226_s1 + $0x10] sm:$0xff] %vm11282_vm2, %v11220_v16  ;;  %v11221_v7 = vadd.f32 %v18218_v25, %v10968_v47 }
 0xc4e   : > { %11283 = vst.msk [vmem:[%s18226_s1] sm:$0xff] %vm11282_vm2, %v11218_v15  ;;  %v11219_v9 = vadd.f32 %v18218_v25, %v10960_v14 }
 0xc4f   : > { %11286 = vst.msk [vmem:[%s18226_s1 + $0x18] sm:$0xff] %vm11282_vm2, %v11221_v7 }
 0xc50   : > { %11284 = vst.msk [vmem:[%s18226_s1 + $0x8] sm:$0xff] %vm11282_vm2, %v11219_v9  ;;  %v12925_v12 = vpop.f32.mrb[68].mxu1 }
 0xc51   : > { %v10981_v26 = vadd.f32 %v12925_v12, %v17731_v43  ;;  %v10972_v27 = vpop.f32.mrb[69].mxu1 }
 0xc52   : > { %v10973_v48 = vadd.f32 %v10972_v27, %v17721_v59  ;;  %v12926_v29 = vpop.f32.mrb[70].mxu1 }
 0xc53   : > { %v11224_v38 = vadd.f32 %v18218_v25, %v10981_v26  ;;  %v10984_v62 = vadd.f32 %v12926_v29, %v17734_v13  ;;  %v10975_v32 = vpop.f32.mrb[71].mxu1 }
 0xc54   : > { %v11222_v57 = vadd.f32 %v18218_v25, %v10973_v48  ;;  %v10976_v8 = vadd.f32 %v10975_v32, %v17726_v23 }
 0xc55   : > { %11289 = vst.msk [vmem:[%s18226_s1 + $0x30] sm:$0xff] %vm11282_vm2, %v11224_v38  ;;  %v11225_v37 = vadd.f32 %v18218_v25, %v10984_v62 }
 0xc56   : > { %11287 = vst.msk [vmem:[%s18226_s1 + $0x20] sm:$0xff] %vm11282_vm2, %v11222_v57  ;;  %v11223_v59 = vadd.f32 %v18218_v25, %v10976_v8 }
 0xc57   : > { %11290 = vst.msk [vmem:[%s18226_s1 + $0x38] sm:$0xff] %vm11282_vm2, %v11225_v37 }
 0xc58   : > { %11288 = vst.msk [vmem:[%s18226_s1 + $0x28] sm:$0xff] %vm11282_vm2, %v11223_v59  ;;  %v12929_v43 = vpop.f32.mrb[72].mxu1 }
 0xc59   : > { %v10997_v13 = vadd.f32 %v12929_v43, %v17756_v1  ;;  %v10988_v23 = vpop.f32.mrb[73].mxu1 }
 0xc5a   : > { %v10989_v5 = vadd.f32 %v10988_v23, %v17739_v51  ;;  %v12930_v21 = vpop.f32.mrb[74].mxu1 }
 0xc5b   : > { %v11228_v45 = vadd.f32 %v18218_v25, %v10997_v13  ;;  %v11000_v19 = vadd.f32 %v12930_v21, %v17758_v4  ;;  %v10991_v63 = vpop.f32.mrb[75].mxu1 }
 0xc5c   : > { %v11226_v16 = vadd.f32 %v18218_v25, %v10989_v5  ;;  %v10992_v47 = vadd.f32 %v10991_v63, %v17747_v56 }
 0xc5d   : > { %11293 = vst.msk [vmem:[%s18226_s1 + $0x50] sm:$0xff] %vm11282_vm2, %v11228_v45  ;;  %v11229_v28 = vadd.f32 %v18218_v25, %v11000_v19 }
 0xc5e   : > { %11291 = vst.msk [vmem:[%s18226_s1 + $0x40] sm:$0xff] %vm11282_vm2, %v11226_v16  ;;  %v11227_v51 = vadd.f32 %v18218_v25, %v10992_v47  ;;  %v18757_v47 = vld [vmem:[#allocation7_spill] sm:$0xff] }
 0xc5f   : > { %11294 = vst.msk [vmem:[%s18226_s1 + $0x58] sm:$0xff] %vm11282_vm2, %v11229_v28 }
 0xc60   : > { %11292 = vst.msk [vmem:[%s18226_s1 + $0x48] sm:$0xff] %vm11282_vm2, %v11227_v51  ;;  %v12933_v1 = vpop.f32.mrb[76].mxu1 }
 0xc61   : > { %v11013_v4 = vadd.f32 %v12933_v1, %v17774_v10  ;;  %v11004_v56 = vpop.f32.mrb[77].mxu1 }
 0xc62   : > { %v11005_v15 = vadd.f32 %v11004_v56, %v17766_v53  ;;  %v12934_v14 = vpop.f32.mrb[78].mxu1 }
 0xc63   : > { %v11232_v7 = vadd.f32 %v18218_v25, %v11013_v4  ;;  %v11016_v9 = vadd.f32 %v12934_v14, %v17776_v39  ;;  %v11007_v12 = vpop.f32.mrb[79].mxu1  ;;  %v18758_v4 = vld [vmem:[#allocation10_spill] sm:$0xff] }
 0xc64   : > { %v11230_v26 = vadd.f32 %v18218_v25, %v11005_v15  ;;  %v11008_v27 = vadd.f32 %v11007_v12, %v17768_v55 }
 0xc65   : > { %11297 = vst.msk [vmem:[%s18226_s1 + $0x70] sm:$0xff] %vm11282_vm2, %v11232_v7  ;;  %v11233_v48 = vadd.f32 %v18218_v25, %v11016_v9  ;;  %v18759_v7 = vld [vmem:[#allocation8_spill] sm:$0xff] }
 0xc66   : > { %11295 = vst.msk [vmem:[%s18226_s1 + $0x60] sm:$0xff] %vm11282_vm2, %v11230_v26  ;;  %v11231_v53 = vadd.f32 %v18218_v25, %v11008_v27 }
 0xc67   : > { %11298 = vst.msk [vmem:[%s18226_s1 + $0x78] sm:$0xff] %vm11282_vm2, %v11233_v48  ;;  %v18760_v48 = vld [vmem:[#allocation13_spill] sm:$0xff] }
 0xc68   : > { %11296 = vst.msk [vmem:[%s18226_s1 + $0x68] sm:$0xff] %vm11282_vm2, %v11231_v53 }
 0xc6c   : > { %v12937_v10 = vpop.f32.mrb[80].mxu1 }
 0xc6d   : > { %v11029_v39 = vadd.f32 %v12937_v10, %v17788_v46  ;;  %v11020_v55 = vpop.f32.mrb[81].mxu1 }
 0xc6e   : > { %v11021_v29 = vadd.f32 %v11020_v55, %v17782_v54  ;;  %v12938_v38 = vpop.f32.mrb[82].mxu1 }
 0xc6f   : > { %v11236_v62 = vadd.f32 %v18218_v25, %v11029_v39  ;;  %v11032_v32 = vadd.f32 %v12938_v38, %v17791_v3  ;;  %v11023_v57 = vpop.f32.mrb[83].mxu1  ;;  %v18761_v39 = vld [vmem:[#allocation11_spill] sm:$0xff] }
 0xc70   : > { %v11234_v8 = vadd.f32 %v18218_v25, %v11021_v29  ;;  %v11024_v37 = vadd.f32 %v11023_v57, %v17784_v41 }
 0xc71   : > { %11301 = vst.msk [vmem:[%s18226_s1 + $0x90] sm:$0xff] %vm11282_vm2, %v11236_v62  ;;  %v11237_v59 = vadd.f32 %v18218_v25, %v11032_v32  ;;  %v18762_v62 = vld [vmem:[#allocation14_spill] sm:$0xff] }
 0xc72   : > { %11299 = vst.msk [vmem:[%s18226_s1 + $0x80] sm:$0xff] %vm11282_vm2, %v11234_v8  ;;  %v11235_v54 = vadd.f32 %v18218_v25, %v11024_v37  ;;  %v18763_v37 = vld [vmem:[#allocation12_spill] sm:$0xff] }
 0xc73   : > { %11302 = vst.msk [vmem:[%s18226_s1 + $0x98] sm:$0xff] %vm11282_vm2, %v11237_v59 }
 0xc74   : > { %11300 = vst.msk [vmem:[%s18226_s1 + $0x88] sm:$0xff] %vm11282_vm2, %v11235_v54 }
 0xc7c   : > { %v12941_v46 = vpop.f32.mrb[84].mxu1 }
 0xc7d   : > { %v11045_v3 = vadd.f32 %v12941_v46, %v17800_v40  ;;  %v11036_v41 = vpop.f32.mrb[85].mxu1 }
 0xc7e   : > { %v11037_v43 = vadd.f32 %v11036_v41, %v17794_v6  ;;  %v12942_v13 = vpop.f32.mrb[86].mxu1  ;;  %v18764_v41 = vld [vmem:[#allocation17_spill] sm:$0xff] }
 0xc7f   : > { %v11240_v23 = vadd.f32 %v18218_v25, %v11045_v3  ;;  %v11048_v5 = vadd.f32 %v12942_v13, %v17805_v50  ;;  %v11039_v21 = vpop.f32.mrb[87].mxu1  ;;  %v18756_v50 = vld [vmem:[#allocation9_spill] sm:$0xff] }
 0xc80   : > { %v11238_v45 = vadd.f32 %v18218_v25, %v11037_v43  ;;  %v11040_v19 = vadd.f32 %v11039_v21, %v17797_v24 }
 0xc81   : > { %11305 = vst.msk [vmem:[%s18226_s1 + $0xb0] sm:$0xff] %vm11282_vm2, %v11240_v23  ;;  %v11241_v63 = vadd.f32 %v18218_v25, %v11048_v5  ;;  %v18765_v23 = vld [vmem:[#allocation15_spill] sm:$0xff] }
 0xc82   : > { %11303 = vst.msk [vmem:[%s18226_s1 + $0xa0] sm:$0xff] %vm11282_vm2, %v11238_v45  ;;  %v11239_v6 = vadd.f32 %v18218_v25, %v11040_v19  ;;  %v18766_v19 = vld [vmem:[#allocation18_spill] sm:$0xff] }
 0xc83   : > { %11306 = vst.msk [vmem:[%s18226_s1 + $0xb8] sm:$0xff] %vm11282_vm2, %v11241_v63 }
 0xc84   : > { %11304 = vst.msk [vmem:[%s18226_s1 + $0xa8] sm:$0xff] %vm11282_vm2, %v11239_v6 }
 0xc8c   : > { %v12945_v40 = vpop.f32.mrb[88].mxu1 }
 0xc8d   : > { %v11061_v16 = vadd.f32 %v12945_v40, %v18756_v50  ;;  %v11052_v24 = vpop.f32.mrb[89].mxu1  ;;  %v18767_v50 = vld [vmem:[#allocation16_spill] sm:$0xff] }
 0xc8e   : > { %v11053_v28 = vadd.f32 %v11052_v24, %v18757_v47  ;;  %v12946_v51 = vpop.f32.mrb[90].mxu1 }
 0xc8f   : > { %v11244_v1 = vadd.f32 %v18218_v25, %v11061_v16  ;;  %v11064_v56 = vadd.f32 %v12946_v51, %v18758_v4  ;;  %v11055_v15 = vpop.f32.mrb[91].mxu1  ;;  %v18768_v51 = vld [vmem:[#allocation21_spill] sm:$0xff] }
 0xc90   : > { %v11242_v14 = vadd.f32 %v18218_v25, %v11053_v28  ;;  %v11056_v9 = vadd.f32 %v11055_v15, %v18759_v7 }
 0xc91   : > { %11309 = vst.msk [vmem:[%s18226_s1 + $0xd0] sm:$0xff] %vm11282_vm2, %v11244_v1  ;;  %v11245_v12 = vadd.f32 %v18218_v25, %v11064_v56  ;;  %v18769_v56 = vld [vmem:[#allocation19_spill] sm:$0xff] }
 0xc92   : > { %11307 = vst.msk [vmem:[%s18226_s1 + $0xc0] sm:$0xff] %vm11282_vm2, %v11242_v14  ;;  %v11243_v26 = vadd.f32 %v18218_v25, %v11056_v9  ;;  %v18770_v9 = vld [vmem:[#allocation22_spill] sm:$0xff] }
 0xc93   : > { %11310 = vst.msk [vmem:[%s18226_s1 + $0xd8] sm:$0xff] %vm11282_vm2, %v11245_v12 }
 0xc94   : > { %11308 = vst.msk [vmem:[%s18226_s1 + $0xc8] sm:$0xff] %vm11282_vm2, %v11243_v26 }
 0xc9c   : > { %v12949_v27 = vpop.f32.mrb[92].mxu1 }
 0xc9d   : > { %v11077_v53 = vadd.f32 %v12949_v27, %v18760_v48  ;;  %v11068_v10 = vpop.f32.mrb[93].mxu1  ;;  %v18771_v48 = vld [vmem:[#allocation20_spill] sm:$0xff] }
 0xc9e   : > { %v11069_v55 = vadd.f32 %v11068_v10, %v18761_v39  ;;  %v12950_v29 = vpop.f32.mrb[94].mxu1 }
 0xc9f   : > { %v11248_v38 = vadd.f32 %v18218_v25, %v11077_v53  ;;  %v11080_v32 = vadd.f32 %v12950_v29, %v18762_v62  ;;  %v11071_v57 = vpop.f32.mrb[95].mxu1  ;;  %v18772_v62 = vld [vmem:[#allocation23_spill] sm:$0xff] }
 0xca0   : > { %v11246_v8 = vadd.f32 %v18218_v25, %v11069_v55  ;;  %v11072_v59 = vadd.f32 %v11071_v57, %v18763_v37 }
 0xca1   : > { %11313 = vst.msk [vmem:[%s18226_s1 + $0xf0] sm:$0xff] %vm11282_vm2, %v11248_v38  ;;  %v11249_v54 = vadd.f32 %v18218_v25, %v11080_v32 }
 0xca2   : > { %11311 = vst.msk [vmem:[%s18226_s1 + $0xe0] sm:$0xff] %vm11282_vm2, %v11246_v8  ;;  %v11247_v46 = vadd.f32 %v18218_v25, %v11072_v59 }
 0xca3   : > { %11314 = vst.msk [vmem:[%s18226_s1 + $0xf8] sm:$0xff] %vm11282_vm2, %v11249_v54 }
 0xca4   : > { %11312 = vst.msk [vmem:[%s18226_s1 + $0xe8] sm:$0xff] %vm11282_vm2, %v11247_v46 }
 0xcac   : > { %v12953_v3 = vpop.f32.mrb[96].mxu1 }
 0xcad   : > { %v11093_v43 = vadd.f32 %v12953_v3, %v18764_v41  ;;  %v11084_v13 = vpop.f32.mrb[97].mxu1 }
 0xcae   : > { %v11085_v5 = vadd.f32 %v11084_v13, %v18765_v23  ;;  %v12954_v21 = vpop.f32.mrb[98].mxu1 }
 0xcaf   : > { %v11252_v45 = vadd.f32 %v18218_v25, %v11093_v43  ;;  %v11096_v63 = vadd.f32 %v12954_v21, %v18766_v19  ;;  %v11087_v6 = vpop.f32.mrb[99].mxu1 }
 0xcb0   : > { %v11250_v40 = vadd.f32 %v18218_v25, %v11085_v5  ;;  %v11088_v16 = vadd.f32 %v11087_v6, %v18767_v50 }
 0xcb1   : > { %11317 = vst.msk [vmem:[%s18226_s1 + $0x110] sm:$0xff] %vm11282_vm2, %v11252_v45  ;;  %v11253_v24 = vadd.f32 %v18218_v25, %v11096_v63 }
 0xcb2   : > { %11315 = vst.msk [vmem:[%s18226_s1 + $0x100] sm:$0xff] %vm11282_vm2, %v11250_v40  ;;  %v11251_v47 = vadd.f32 %v18218_v25, %v11088_v16 }
 0xcb3   : > { %11318 = vst.msk [vmem:[%s18226_s1 + $0x118] sm:$0xff] %vm11282_vm2, %v11253_v24 }
 0xcb4   : > { %11316 = vst.msk [vmem:[%s18226_s1 + $0x108] sm:$0xff] %vm11282_vm2, %v11251_v47 }
 0xcbc   : > { %v12957_v28 = vpop.f32.mrb[100].mxu1 }
 0xcbd   : > { %v11109_v1 = vadd.f32 %v12957_v28, %v18768_v51  ;;  %v11100_v4 = vpop.f32.mrb[101].mxu1 }
 0xcbe   : > { %v11101_v15 = vadd.f32 %v11100_v4, %v18769_v56  ;;  %v12958_v14 = vpop.f32.mrb[102].mxu1 }
 0xcbf   : > { %v11256_v7 = vadd.f32 %v18218_v25, %v11109_v1  ;;  %v11112_v12 = vadd.f32 %v12958_v14, %v18770_v9  ;;  %v11103_v26 = vpop.f32.mrb[103].mxu1 }
 0xcc0   : > { %v11254_v27 = vadd.f32 %v18218_v25, %v11101_v15  ;;  %v11104_v53 = vadd.f32 %v11103_v26, %v18771_v48 }
 0xcc1   : > { %11321 = vst.msk [vmem:[%s18226_s1 + $0x130] sm:$0xff] %vm11282_vm2, %v11256_v7  ;;  %v11257_v10 = vadd.f32 %v18218_v25, %v11112_v12 }
 0xcc2   : > { %11319 = vst.msk [vmem:[%s18226_s1 + $0x120] sm:$0xff] %vm11282_vm2, %v11254_v27  ;;  %v11255_v39 = vadd.f32 %v18218_v25, %v11104_v53 }
 0xcc3   : > { %11322 = vst.msk [vmem:[%s18226_s1 + $0x138] sm:$0xff] %vm11282_vm2, %v11257_v10 }
 0xcc4   : > { %11320 = vst.msk [vmem:[%s18226_s1 + $0x128] sm:$0xff] %vm11282_vm2, %v11255_v39 }
 0xccc   : > { %v12961_v55 = vpop.f32.mrb[104].mxu1 }
 0xccd   : > { %v11125_v29 = vadd.f32 %v12961_v55, %v17965_v30  ;;  %v11116_v38 = vpop.f32.mrb[105].mxu1 }
 0xcce   : > { %v11117_v32 = vadd.f32 %v11116_v38, %v18772_v62  ;;  %v12962_v57 = vpop.f32.mrb[106].mxu1  ;;  %v18773_v38 = vld [vmem:[#allocation24_spill] sm:$0xff] }
 0xccf   : > { %v11260_v8 = vadd.f32 %v18218_v25, %v11125_v29  ;;  %v11128_v37 = vadd.f32 %v12962_v57, %v17969_v31  ;;  %v11119_v59 = vpop.f32.mrb[107].mxu1 }
 0xcd0   : > { %v11258_v54 = vadd.f32 %v18218_v25, %v11117_v32  ;;  %v11120_v46 = vadd.f32 %v11119_v59, %v17961_v58 }
 0xcd1   : > { %11325 = vst.msk [vmem:[%s18226_s1 + $0x150] sm:$0xff] %vm11282_vm2, %v11260_v8  ;;  %v11261_v3 = vadd.f32 %v18218_v25, %v11128_v37  ;;  %v18774_v8 = vld [vmem:[#allocation26_spill] sm:$0xff] }
 0xcd2   : > { %11323 = vst.msk [vmem:[%s18226_s1 + $0x140] sm:$0xff] %vm11282_vm2, %v11258_v54  ;;  %v11259_v30 = vadd.f32 %v18218_v25, %v11120_v46  ;;  %v18775_v46 = vld [vmem:[#allocation25_spill] sm:$0xff] }
 0xcd3   : > { %11326 = vst.msk [vmem:[%s18226_s1 + $0x158] sm:$0xff] %vm11282_vm2, %v11261_v3 }
 0xcd4   : > { %11324 = vst.msk [vmem:[%s18226_s1 + $0x148] sm:$0xff] %vm11282_vm2, %v11259_v30 }
 0xcdc   : > { %v12965_v31 = vpop.f32.mrb[108].mxu1 }
 0xcdd   : > { %v11141_v41 = vadd.f32 %v12965_v31, %v17981_v34  ;;  %v11132_v58 = vpop.f32.mrb[109].mxu1 }
 0xcde   : > { %v11133_v43 = vadd.f32 %v11132_v58, %v17973_v49  ;;  %v12966_v13 = vpop.f32.mrb[110].mxu1 }
 0xcdf   : > { %v11264_v23 = vadd.f32 %v18218_v25, %v11141_v41  ;;  %v11144_v5 = vadd.f32 %v12966_v13, %v17985_v52  ;;  %v11135_v21 = vpop.f32.mrb[111].mxu1 }
 0xce0   : > { %v11262_v45 = vadd.f32 %v18218_v25, %v11133_v43  ;;  %v11136_v19 = vadd.f32 %v11135_v21, %v17977_v60 }
 0xce1   : > { %11329 = vst.msk [vmem:[%s18226_s1 + $0x170] sm:$0xff] %vm11282_vm2, %v11264_v23  ;;  %v11265_v63 = vadd.f32 %v18218_v25, %v11144_v5 }
 0xce2   : > { %11327 = vst.msk [vmem:[%s18226_s1 + $0x160] sm:$0xff] %vm11282_vm2, %v11262_v45  ;;  %v11263_v49 = vadd.f32 %v18218_v25, %v11136_v19 }
 0xce3   : > { %11330 = vst.msk [vmem:[%s18226_s1 + $0x178] sm:$0xff] %vm11282_vm2, %v11265_v63 }
 0xce4   : > { %11328 = vst.msk [vmem:[%s18226_s1 + $0x168] sm:$0xff] %vm11282_vm2, %v11263_v49 }
 0xcec   : > { %v12969_v34 = vpop.f32.mrb[112].mxu1 }
 0xced   : > { %v11157_v52 = vadd.f32 %v12969_v34, %v17997_v20  ;;  %v11148_v60 = vpop.f32.mrb[113].mxu1 }
 0xcee   : > { %v11149_v6 = vadd.f32 %v11148_v60, %v17989_v44  ;;  %v12970_v40 = vpop.f32.mrb[114].mxu1 }
 0xcef   : > { %v11268_v50 = vadd.f32 %v18218_v25, %v11157_v52  ;;  %v11160_v16 = vadd.f32 %v12970_v40, %v18001_v35  ;;  %v11151_v24 = vpop.f32.mrb[115].mxu1 }
 0xcf0   : > { %v11266_v47 = vadd.f32 %v18218_v25, %v11149_v6  ;;  %v11152_v28 = vadd.f32 %v11151_v24, %v17993_v42 }
 0xcf1   : > { %11333 = vst.msk [vmem:[%s18226_s1 + $0x190] sm:$0xff] %vm11282_vm2, %v11268_v50  ;;  %v11269_v51 = vadd.f32 %v18218_v25, %v11160_v16 }
 0xcf2   : > { %11331 = vst.msk [vmem:[%s18226_s1 + $0x180] sm:$0xff] %vm11282_vm2, %v11266_v47  ;;  %v11267_v44 = vadd.f32 %v18218_v25, %v11152_v28 }
 0xcf3   : > { %11334 = vst.msk [vmem:[%s18226_s1 + $0x198] sm:$0xff] %vm11282_vm2, %v11269_v51 }
 0xcf4   : > { %11332 = vst.msk [vmem:[%s18226_s1 + $0x188] sm:$0xff] %vm11282_vm2, %v11267_v44 }
 0xcfc   : > { %v12973_v20 = vpop.f32.mrb[116].mxu1 }
 0xcfd   : > { %v11173_v35 = vadd.f32 %v12973_v20, %v18013_v36  ;;  %v11164_v42 = vpop.f32.mrb[117].mxu1 }
 0xcfe   : > { %v11165_v1 = vadd.f32 %v11164_v42, %v18005_v11  ;;  %v12974_v4 = vpop.f32.mrb[118].mxu1 }
 0xcff   : > { %v11272_v56 = vadd.f32 %v18218_v25, %v11173_v35  ;;  %v11176_v15 = vadd.f32 %v12974_v4, %v18017_v22  ;;  %v11167_v14 = vpop.f32.mrb[119].mxu1 }
 0xd00   : > { %v11270_v7 = vadd.f32 %v18218_v25, %v11165_v1  ;;  %v11168_v9 = vadd.f32 %v11167_v14, %v18009_v33 }
 0xd01   : > { %11337 = vst.msk [vmem:[%s18226_s1 + $0x1b0] sm:$0xff] %vm11282_vm2, %v11272_v56  ;;  %v11273_v12 = vadd.f32 %v18218_v25, %v11176_v15 }
 0xd02   : > { %11335 = vst.msk [vmem:[%s18226_s1 + $0x1a0] sm:$0xff] %vm11282_vm2, %v11270_v7  ;;  %v11271_v11 = vadd.f32 %v18218_v25, %v11168_v9 }
 0xd03   : > { %11338 = vst.msk [vmem:[%s18226_s1 + $0x1b8] sm:$0xff] %vm11282_vm2, %v11273_v12 }
 0xd04   : > { %11336 = vst.msk [vmem:[%s18226_s1 + $0x1a8] sm:$0xff] %vm11282_vm2, %v11271_v11 }
 0xd0c   : > { %v12977_v36 = vpop.f32.mrb[120].mxu1 }
 0xd0d   : > { %v11189_v22 = vadd.f32 %v12977_v36, %v18029_v2  ;;  %v11180_v33 = vpop.f32.mrb[121].mxu1 }
 0xd0e   : > { %v11181_v26 = vadd.f32 %v11180_v33, %v18021_v0  ;;  %v12978_v27 = vpop.f32.mrb[122].mxu1 }
 0xd0f   : > { %v11276_v48 = vadd.f32 %v18218_v25, %v11189_v22  ;;  %v11192_v53 = vadd.f32 %v12978_v27, %v18033_v17  ;;  %v11183_v10 = vpop.f32.mrb[123].mxu1 }
 0xd10   : > { %v11274_v39 = vadd.f32 %v18218_v25, %v11181_v26  ;;  %v11184_v55 = vadd.f32 %v11183_v10, %v18025_v61 }
 0xd11   : > { %11341 = vst.msk [vmem:[%s18226_s1 + $0x1d0] sm:$0xff] %vm11282_vm2, %v11276_v48  ;;  %v11277_v29 = vadd.f32 %v18218_v25, %v11192_v53 }
 0xd12   : > { %11339 = vst.msk [vmem:[%s18226_s1 + $0x1c0] sm:$0xff] %vm11282_vm2, %v11274_v39  ;;  %v11275_v0 = vadd.f32 %v18218_v25, %v11184_v55 }
 0xd13   : > { %11342 = vst.msk [vmem:[%s18226_s1 + $0x1d8] sm:$0xff] %vm11282_vm2, %v11277_v29 }
 0xd14   : > { %11340 = vst.msk [vmem:[%s18226_s1 + $0x1c8] sm:$0xff] %vm11282_vm2, %v11275_v0 }
 0xd1c   : > { %v12981_v2 = vpop.f32.mrb[124].mxu1 }
 0xd1d   : > { %v11205_v17 = vadd.f32 %v12981_v2, %v18045_v18  ;;  %v11196_v61 = vpop.f32.mrb[125].mxu1 }
 0xd1e   : > { %v11197_v62 = vadd.f32 %v11196_v61, %v18773_v38  ;;  %v12982_v32 = vpop.f32.mrb[126].mxu1  ;;  %11353 = sbr.rel (!%p14223_p4) target bundleno = 3437 (0xd6d), region = 104 }
 0xd1f   : > { %v11280_v57 = vadd.f32 %v18218_v25, %v11205_v17  ;;  %v11208_v37 = vadd.f32 %v12982_v32, %v18774_v8  ;;  %v11199_v59 = vpop.f32.mrb[127].mxu1 }
 0xd20   : > { %v11278_v54 = vadd.f32 %v18218_v25, %v11197_v62  ;;  %v11200_v3 = vadd.f32 %v11199_v59, %v18775_v46 }
 0xd21   : > { %11345 = vst.msk [vmem:[%s18226_s1 + $0x1f0] sm:$0xff] %vm11282_vm2, %v11280_v57  ;;  %v11281_v30 = vadd.f32 %v18218_v25, %v11208_v37 }
 0xd22   : > { %11343 = vst.msk [vmem:[%s18226_s1 + $0x1e0] sm:$0xff] %vm11282_vm2, %v11278_v54  ;;  %v11279_v18 = vadd.f32 %v18218_v25, %v11200_v3 }
 0xd23   : > { %11346 = vst.msk [vmem:[%s18226_s1 + $0x1f8] sm:$0xff] %vm11282_vm2, %v11281_v30 }
 0xd24   : > { %11344 = vst.msk [vmem:[%s18226_s1 + $0x1e8] sm:$0xff] %vm11282_vm2, %v11279_v18 }
 0xd25   : > { %s18787_s25 = smov (!%p11356_p8, %s11355_s25), 64 }
 0xd26   : > { %s12491_s30 = sshll.u32 %s18787_s25, 7 }
 0xd27   : > { %p12494_p9 = scmp.eq.s32.totalorder %s12491_s30, 0 }
 0xd28   : > { %s18491_s20 = sshrl.u32 (!%p12494_p9), %s18787_s25, 6 }
 0xd29   : > { %11364 = sbr.rel (%p12494_p9) target bundleno = 3437 (0xd6d), region = 108  ;;  %p12495_p10 = scmp.le.s32.totalorder (!%p12494_p9), %s18491_s20, 0 }
 0xd30   : > { %11770 = sbr.rel (%p12495_p10) target bundleno = 3416 (0xd58), region = 190  ;;  %s18778_s27 = smov (!%p12495_p10), %s18485_s4 }
 0xd31   : > { %s18779_s23 = smov (!%p12495_p10), %s18226_s1  ;;  %s18500_s24 = smov (!%p12495_p10), 0  }
 0xd32   : > { %s18502_s2 = smov (!%p12495_p10), 0  }
 0xd37 LB: >> { %v11552_v25 = vld [vmem:[%s14066_s23] sm:$0xff]  ;;  %v11554_v31 = vld [vmem:[%s14066_s23 + $0x8] sm:$0xff]  ;;  %v11556_v41 = vld [vmem:[%s14066_s23 + $0x10] sm:$0xff]  ;;  %s11680_s21 = sadd.s32 1, %s14070_s24  ;;  %s11546_s2 = sadd.s32 1, %s14074_s2   ;;  %s14074_s2 = sphi %s18502_s2, %s11546_s2   ;;  %s14070_s24 = sphi %s18500_s24, %s18782_s24   ;;  %s14066_s23 = sphi %s18779_s23, %s18781_s23   ;;  %s14062_s27 = sphi %s18778_s27, %s18780_s27  }
 0xd38   : >> { %11553 = vst [vmem:[%s14062_s27] sm:$0xff] %v11552_v25  ;;  %11555 = vst [vmem:[%s14062_s27 + $0x8] sm:$0xff] %v11554_v31  ;;  %v11558_v58 = vld [vmem:[%s14066_s23 + $0x18] sm:$0xff]  ;;  %v11560_v43 = vld [vmem:[%s14066_s23 + $0x20] sm:$0xff]  ;;  %p11681_p11 = scmp.ge.s32.totalorder %s11680_s21, %s18491_s20  ;;  %p11545_p12 = scmp.ge.s32.totalorder %s11546_s2, %s18491_s20 }
 0xd39   : >> { %11557 = vst [vmem:[%s14062_s27 + $0x10] sm:$0xff] %v11556_v41  ;;  %v11562_v13 = vld [vmem:[%s14066_s23 + $0x28] sm:$0xff]  ;;  %11559 = vst [vmem:[%s14062_s27 + $0x18] sm:$0xff] %v11558_v58  ;;  %v11564_v23 = vld [vmem:[%s14066_s23 + $0x30] sm:$0xff] }
 0xd3a   : >> { %11561 = vst [vmem:[%s14062_s27 + $0x20] sm:$0xff] %v11560_v43  ;;  %11563 = vst [vmem:[%s14062_s27 + $0x28] sm:$0xff] %v11562_v13  ;;  %v11566_v5 = vld [vmem:[%s14066_s23 + $0x38] sm:$0xff]  ;;  %v11568_v21 = vld [vmem:[%s14066_s23 + $0x40] sm:$0xff]  ;;  %s18789_s21 = smov (%p11681_p11, %s11680_s21), 0 }
 0xd3b   : >> { %11565 = vst [vmem:[%s14062_s27 + $0x30] sm:$0xff] %v11564_v23  ;;  %11567 = vst [vmem:[%s14062_s27 + $0x38] sm:$0xff] %v11566_v5  ;;  %v11570_v45 = vld [vmem:[%s14066_s23 + $0x48] sm:$0xff]  ;;  %v11572_v19 = vld [vmem:[%s14066_s23 + $0x50] sm:$0xff]  ;;  %s12496_s3 = sshll.u32 %s18789_s21, 9  ;;  %s18782_s24 = smov %s18789_s21 }
 0xd3c   : >> { %11569 = vst [vmem:[%s14062_s27 + $0x40] sm:$0xff] %v11568_v21  ;;  %v11574_v63 = vld [vmem:[%s14066_s23 + $0x58] sm:$0xff]  ;;  %11571 = vst [vmem:[%s14062_s27 + $0x48] sm:$0xff] %v11570_v45  ;;  %v11576_v49 = vld [vmem:[%s14066_s23 + $0x60] sm:$0xff]  ;;  %s18558_s22 = scalar_lea.vmem %s18226_s1, %s12496_s3 [#allocation2]   ;;  %s18561_s28 = scalar_lea.vmem %s18485_s4, %s12496_s3  }
 0xd3d   : >> { %11573 = vst [vmem:[%s14062_s27 + $0x50] sm:$0xff] %v11572_v19  ;;  %11575 = vst [vmem:[%s14062_s27 + $0x58] sm:$0xff] %v11574_v63  ;;  %v11578_v34 = vld [vmem:[%s14066_s23 + $0x68] sm:$0xff]  ;;  %v11580_v52 = vld [vmem:[%s14066_s23 + $0x70] sm:$0xff] }
 0xd3e   : >> { %11577 = vst [vmem:[%s14062_s27 + $0x60] sm:$0xff] %v11576_v49  ;;  %11579 = vst [vmem:[%s14062_s27 + $0x68] sm:$0xff] %v11578_v34  ;;  %v11582_v60 = vld [vmem:[%s14066_s23 + $0x78] sm:$0xff]  ;;  %v11584_v6 = vld [vmem:[%s14066_s23 + $0x80] sm:$0xff] }
 0xd3f   : >> { %11581 = vst [vmem:[%s14062_s27 + $0x70] sm:$0xff] %v11580_v52  ;;  %v11586_v40 = vld [vmem:[%s14066_s23 + $0x88] sm:$0xff]  ;;  %11583 = vst [vmem:[%s14062_s27 + $0x78] sm:$0xff] %v11582_v60  ;;  %v11588_v50 = vld [vmem:[%s14066_s23 + $0x90] sm:$0xff] }
 0xd40   : >> { %11585 = vst [vmem:[%s14062_s27 + $0x80] sm:$0xff] %v11584_v6  ;;  %11587 = vst [vmem:[%s14062_s27 + $0x88] sm:$0xff] %v11586_v40  ;;  %v11590_v16 = vld [vmem:[%s14066_s23 + $0x98] sm:$0xff]  ;;  %v11592_v24 = vld [vmem:[%s14066_s23 + $0xa0] sm:$0xff] }
 0xd41   : >> { %11589 = vst [vmem:[%s14062_s27 + $0x90] sm:$0xff] %v11588_v50  ;;  %11591 = vst [vmem:[%s14062_s27 + $0x98] sm:$0xff] %v11590_v16  ;;  %v11594_v47 = vld [vmem:[%s14066_s23 + $0xa8] sm:$0xff]  ;;  %v11596_v28 = vld [vmem:[%s14066_s23 + $0xb0] sm:$0xff] }
 0xd42   : >> { %11593 = vst [vmem:[%s14062_s27 + $0xa0] sm:$0xff] %v11592_v24  ;;  %v11598_v51 = vld [vmem:[%s14066_s23 + $0xb8] sm:$0xff]  ;;  %11595 = vst [vmem:[%s14062_s27 + $0xa8] sm:$0xff] %v11594_v47  ;;  %v11600_v44 = vld [vmem:[%s14066_s23 + $0xc0] sm:$0xff] }
 0xd43   : >> { %11597 = vst [vmem:[%s14062_s27 + $0xb0] sm:$0xff] %v11596_v28  ;;  %11599 = vst [vmem:[%s14062_s27 + $0xb8] sm:$0xff] %v11598_v51  ;;  %v11602_v20 = vld [vmem:[%s14066_s23 + $0xc8] sm:$0xff]  ;;  %v11604_v35 = vld [vmem:[%s14066_s23 + $0xd0] sm:$0xff] }
 0xd44   : >> { %11601 = vst [vmem:[%s14062_s27 + $0xc0] sm:$0xff] %v11600_v44  ;;  %11603 = vst [vmem:[%s14062_s27 + $0xc8] sm:$0xff] %v11602_v20  ;;  %v11606_v42 = vld [vmem:[%s14066_s23 + $0xd8] sm:$0xff]  ;;  %v11608_v1 = vld [vmem:[%s14066_s23 + $0xe0] sm:$0xff] }
 0xd45   : >> { %11605 = vst [vmem:[%s14062_s27 + $0xd0] sm:$0xff] %v11604_v35  ;;  %v11610_v4 = vld [vmem:[%s14066_s23 + $0xe8] sm:$0xff]  ;;  %11607 = vst [vmem:[%s14062_s27 + $0xd8] sm:$0xff] %v11606_v42  ;;  %v11612_v56 = vld [vmem:[%s14066_s23 + $0xf0] sm:$0xff] }
 0xd46   : >> { %11609 = vst [vmem:[%s14062_s27 + $0xe0] sm:$0xff] %v11608_v1  ;;  %11611 = vst [vmem:[%s14062_s27 + $0xe8] sm:$0xff] %v11610_v4  ;;  %v11614_v15 = vld [vmem:[%s14066_s23 + $0xf8] sm:$0xff]  ;;  %v11616_v14 = vld [vmem:[%s14066_s23 + $0x100] sm:$0xff] }
 0xd47   : >> { %11613 = vst [vmem:[%s14062_s27 + $0xf0] sm:$0xff] %v11612_v56  ;;  %11615 = vst [vmem:[%s14062_s27 + $0xf8] sm:$0xff] %v11614_v15  ;;  %v11618_v7 = vld [vmem:[%s14066_s23 + $0x108] sm:$0xff]  ;;  %v11620_v9 = vld [vmem:[%s14066_s23 + $0x110] sm:$0xff] }
 0xd48   : >> { %11617 = vst [vmem:[%s14062_s27 + $0x100] sm:$0xff] %v11616_v14  ;;  %v11622_v12 = vld [vmem:[%s14066_s23 + $0x118] sm:$0xff]  ;;  %11619 = vst [vmem:[%s14062_s27 + $0x108] sm:$0xff] %v11618_v7  ;;  %v11624_v11 = vld [vmem:[%s14066_s23 + $0x120] sm:$0xff] }
 0xd49   : >> { %11621 = vst [vmem:[%s14062_s27 + $0x110] sm:$0xff] %v11620_v9  ;;  %11623 = vst [vmem:[%s14062_s27 + $0x118] sm:$0xff] %v11622_v12  ;;  %v11626_v36 = vld [vmem:[%s14066_s23 + $0x128] sm:$0xff]  ;;  %v11628_v22 = vld [vmem:[%s14066_s23 + $0x130] sm:$0xff] }
 0xd4a   : >> { %11625 = vst [vmem:[%s14062_s27 + $0x120] sm:$0xff] %v11624_v11  ;;  %11627 = vst [vmem:[%s14062_s27 + $0x128] sm:$0xff] %v11626_v36  ;;  %v11630_v33 = vld [vmem:[%s14066_s23 + $0x138] sm:$0xff]  ;;  %v11632_v26 = vld [vmem:[%s14066_s23 + $0x140] sm:$0xff] }
 0xd4b   : >> { %11629 = vst [vmem:[%s14062_s27 + $0x130] sm:$0xff] %v11628_v22  ;;  %v11634_v27 = vld [vmem:[%s14066_s23 + $0x148] sm:$0xff]  ;;  %11631 = vst [vmem:[%s14062_s27 + $0x138] sm:$0xff] %v11630_v33  ;;  %v11636_v48 = vld [vmem:[%s14066_s23 + $0x150] sm:$0xff] }
 0xd4c   : >> { %11633 = vst [vmem:[%s14062_s27 + $0x140] sm:$0xff] %v11632_v26  ;;  %11635 = vst [vmem:[%s14062_s27 + $0x148] sm:$0xff] %v11634_v27  ;;  %v11638_v53 = vld [vmem:[%s14066_s23 + $0x158] sm:$0xff]  ;;  %v11640_v10 = vld [vmem:[%s14066_s23 + $0x160] sm:$0xff] }
 0xd4d   : >> { %11637 = vst [vmem:[%s14062_s27 + $0x150] sm:$0xff] %v11636_v48  ;;  %11639 = vst [vmem:[%s14062_s27 + $0x158] sm:$0xff] %v11638_v53  ;;  %v11642_v39 = vld [vmem:[%s14066_s23 + $0x168] sm:$0xff]  ;;  %v11644_v55 = vld [vmem:[%s14066_s23 + $0x170] sm:$0xff] }
 0xd4e   : >> { %11641 = vst [vmem:[%s14062_s27 + $0x160] sm:$0xff] %v11640_v10  ;;  %v11646_v29 = vld [vmem:[%s14066_s23 + $0x178] sm:$0xff]  ;;  %11643 = vst [vmem:[%s14062_s27 + $0x168] sm:$0xff] %v11642_v39  ;;  %v11648_v0 = vld [vmem:[%s14066_s23 + $0x180] sm:$0xff] }
 0xd4f   : >> { %11645 = vst [vmem:[%s14062_s27 + $0x170] sm:$0xff] %v11644_v55  ;;  %11647 = vst [vmem:[%s14062_s27 + $0x178] sm:$0xff] %v11646_v29  ;;  %v11650_v2 = vld [vmem:[%s14066_s23 + $0x188] sm:$0xff]  ;;  %v11652_v17 = vld [vmem:[%s14066_s23 + $0x190] sm:$0xff] }
 0xd50   : >> { %11649 = vst [vmem:[%s14062_s27 + $0x180] sm:$0xff] %v11648_v0  ;;  %11651 = vst [vmem:[%s14062_s27 + $0x188] sm:$0xff] %v11650_v2  ;;  %v11654_v61 = vld [vmem:[%s14066_s23 + $0x198] sm:$0xff]  ;;  %v11656_v38 = vld [vmem:[%s14066_s23 + $0x1a0] sm:$0xff] }
 0xd51   : >> { %11653 = vst [vmem:[%s14062_s27 + $0x190] sm:$0xff] %v11652_v17  ;;  %v11658_v62 = vld [vmem:[%s14066_s23 + $0x1a8] sm:$0xff]  ;;  %11655 = vst [vmem:[%s14062_s27 + $0x198] sm:$0xff] %v11654_v61  ;;  %v11660_v32 = vld [vmem:[%s14066_s23 + $0x1b0] sm:$0xff]  ;;  %11548 = sbr.rel (!%p11545_p12) target bundleno = 3383 (0xd37), region = 196 }
 0xd52   : >> { %11657 = vst [vmem:[%s14062_s27 + $0x1a0] sm:$0xff] %v11656_v38  ;;  %11659 = vst [vmem:[%s14062_s27 + $0x1a8] sm:$0xff] %v11658_v62  ;;  %v11662_v57 = vld [vmem:[%s14066_s23 + $0x1b8] sm:$0xff]  ;;  %v11664_v8 = vld [vmem:[%s14066_s23 + $0x1c0] sm:$0xff] }
 0xd53   : >> { %11661 = vst [vmem:[%s14062_s27 + $0x1b0] sm:$0xff] %v11660_v32  ;;  %11663 = vst [vmem:[%s14062_s27 + $0x1b8] sm:$0xff] %v11662_v57  ;;  %v11666_v37 = vld [vmem:[%s14066_s23 + $0x1c8] sm:$0xff]  ;;  %v11668_v59 = vld [vmem:[%s14066_s23 + $0x1d0] sm:$0xff] }
 0xd54   : >> { %11665 = vst [vmem:[%s14062_s27 + $0x1c0] sm:$0xff] %v11664_v8  ;;  %v11670_v54 = vld [vmem:[%s14066_s23 + $0x1d8] sm:$0xff]  ;;  %11667 = vst [vmem:[%s14062_s27 + $0x1c8] sm:$0xff] %v11666_v37  ;;  %v11672_v46 = vld [vmem:[%s14066_s23 + $0x1e0] sm:$0xff] }
 0xd55   : >> { %11669 = vst [vmem:[%s14062_s27 + $0x1d0] sm:$0xff] %v11668_v59  ;;  %11671 = vst [vmem:[%s14062_s27 + $0x1d8] sm:$0xff] %v11670_v54  ;;  %v11674_v3 = vld [vmem:[%s14066_s23 + $0x1e8] sm:$0xff]  ;;  %v11676_v30 = vld [vmem:[%s14066_s23 + $0x1f0] sm:$0xff] }
 0xd56   : >> { %11673 = vst [vmem:[%s14062_s27 + $0x1e0] sm:$0xff] %v11672_v46  ;;  %11675 = vst [vmem:[%s14062_s27 + $0x1e8] sm:$0xff] %v11674_v3  ;;  %v11678_v18 = vld [vmem:[%s14066_s23 + $0x1f8] sm:$0xff]  ;;  %s18781_s23 = smov %s18558_s22 }
 0xd57   : >> { %11677 = vst [vmem:[%s14062_s27 + $0x1f0] sm:$0xff] %v11676_v30  ;;  %11679 = vst [vmem:[%s14062_s27 + $0x1f8] sm:$0xff] %v11678_v18  ;;  %s18780_s27 = smov %s18561_s28 }
 0xd58 PF: > { %s18666_s26 = sand.u32 63, %s18787_s25   ;;  %s12507_s30 = sshll.u32 %s18491_s20, 9 }
 0xd59   : > { %s11691_s3 = scalar_lea.vmem %s18226_s1, %s12507_s30 [#allocation2]   ;;  %s11693_s0 = scalar_lea.vmem %s18485_s4, %s12507_s30  }
 0xd5a   : > { %p12501_p13 = scmp.le.s32.totalorder %s18666_s26, 0 }
 0xd5b   : > { %s14076_s28 = smov (!%p12501_p13), %s11693_s0   ;;  %s14080_s22 = smov (!%p12501_p13), %s11691_s3  }
 0xd5c   : > { %11784 = sbr.rel (%p12501_p13) target bundleno = 3437 (0xd6d), region = 201  ;;  %s14084_s5 = smov (!%p12501_p13), 0  }
 0xd5d   : > { %s14088_s21 = smov (!%p12501_p13), 0  }
 0xd63 LB: >> { %v11703_v25 = vld [vmem:[%s14082_s22] sm:$0xff]  ;;  %s11705_s25 = sadd.s32 1, %s14086_s5  ;;  %s11697_s21 = sadd.s32 1, %s14090_s21   ;;  %s14090_s21 = sphi %s14088_s21, %s11697_s21   ;;  %s14086_s5 = sphi %s14084_s5, %s14085_s5   ;;  %s14082_s22 = sphi %s14080_s22, %s11710_s22   ;;  %s14078_s28 = sphi %s14076_s28, %s11711_s28  }
 0xd64   : >> { %11704 = vst [vmem:[%s14078_s28] sm:$0xff] %v11703_v25  ;;  %p11706_p0 = scmp.ge.s32.totalorder %s11705_s25, %s18666_s26  ;;  %p11696_p1 = scmp.ge.s32.totalorder %s11697_s21, %s18666_s26 }
 0xd66   : >> { %s18791_s25 = smov (%p11706_p0, %s11705_s25), 0  ;;  %11699 = sbr.rel (!%p11696_p1) target bundleno = 3427 (0xd63), region = 207 }
 0xd67   : >> { %s12502_s1 = sshll.u32 %s18791_s25, 3  ;;  %s14085_s5 = smov %s18791_s25  }
 0xd68   : >> { %s11710_s22 = scalar_lea.vmem %s11691_s3, %s12502_s1 [#allocation2]   ;;  %s11711_s28 = scalar_lea.vmem %s11693_s0, %s12502_s1  }
 0xd6d PF: > { %s18783_s23 = sld [smem:[#allocation5_spill]]  ;;  %s18784_s1 = sld [smem:[#allocation3_spill]] }
 0xd6e   : > { %s18785_s22 = sld [smem:[#allocation6_spill]] }
 0xd73   : > { %p27_p2 = scmp.ge.s32.totalorder %s18783_s23, 4  }
 0xd75   :  { %29 = sbr.rel (!%p27_p2) target bundleno = 10 (0xa), region = 218 }

</bundles_post_ra>
